<compile_context>
chip_gen: v5e
topology: v5e:2x2
jax: 0.10.0
libtpu: 0.0.40
codegen_flags: <defaults>
</compile_context>

<pallas_src>
import jax
import jax.numpy as jnp
from jax import lax
from jax.experimental import pallas as pl
from jax.experimental.pallas import tpu as pltpu

_EPS = 1e-5


# ------------------------------ fused Pallas kernel ---------------------------------

def _fused_kernel(x_ref,
                  w1_ref, s1_ref, b1_ref,
                  w2_ref, s2_ref, b2_ref,
                  w3_ref, s3_ref, b3_ref,
                  fcw_ref, fcb_ref,
                  out_ref,
                  c1_ref, p1_ref, c2_ref, p2_ref, c3_ref, p3_ref):
    """One image per grid step: 3x(conv+BN+ReLU+pool) then fc, all VMEM-resident."""

    def stage(in_ref, w_ref, s_ref, b_ref, conv_ref, pool_ref,
              H, Cin, Cout, dx_packed):
        # in_ref : flattened (row-major) image, one pixel per sublane-row, channels on lanes.
        #          dx_packed=True  -> (H*W, 3*Cin): each row already holds pixels [p, p+1, p+2].
        #          dx_packed=False -> (H*W + 2, Cin) with 2 zero slack rows for shifted reads.
        # w_ref  : (9*Cin, Cout) rows ordered (dy, dx, ci).
        # The flattened layout leaves W-Wo garbage columns per conv row; they are provably
        # never read by the pooling step (pool only touches x < Wo-1 positions).
        Ho = H - 2          # valid conv output height/width
        Hp = Ho // 2        # pooled height/width
        # --- conv as dy-shifted matmuls accumulated into the VMEM conv slab --------------
        for dy in range(3):
            if dx_packed:
                lhs = in_ref[pl.ds(dy * H, Ho * H), :]                 # (Ho*H, 3*Cin)
                tap = w_ref[pl.ds(dy * 3 * Cin, 3 * Cin), :]           # (3*Cin, Cout)
                acc = jnp.dot(lhs, tap, preferred_element_type=jnp.float32)
            else:
                acc = None
                for dx in range(3):                                    # register accumulation
                    lhs = in_ref[pl.ds(dy * H + dx, Ho * H), :]        # (Ho*H, Cin)
                    tap = w_ref[pl.ds((dy * 3 + dx) * Cin, Cin), :]    # (Cin, Cout)
                    c = jnp.dot(lhs, tap, preferred_element_type=jnp.float32)
                    acc = c if acc is None else acc + c
            if dy == 0:
                conv_ref[...] = acc
            elif dy == 1:
                conv_ref[...] += acc
            else:
                # last dy: finish accumulation and fuse folded-BN affine + ReLU in one pass
                conv_ref[...] = jnp.maximum(
                    (conv_ref[...] + acc) * s_ref[...] + b_ref[...], 0.0)
        # --- 2x2 stride-2 max-pool straight out of VMEM (strided row loads = window taps)
        for py in range(Hp):
            r0 = 2 * py * H          # conv row 2*py, flattened
            r1 = r0 + H              # conv row 2*py + 1
            q = jnp.maximum(
                jnp.maximum(conv_ref[pl.ds(r0,     Hp, stride=2), :],
                            conv_ref[pl.ds(r0 + 1, Hp, stride=2), :]),
                jnp.maximum(conv_ref[pl.ds(r1,     Hp, stride=2), :],
                            conv_ref[pl.ds(r1 + 1, Hp, stride=2), :]))
            pool_ref[pl.ds(py * Hp, Hp), :] = q
        # zero the +2 slack rows (read by the next stage's shifted loads, but only ever
        # land in garbage columns; zeroing keeps them finite and deterministic)
        pool_ref[pl.ds(Hp * Hp, 2), :] = jnp.zeros((2, Cout), jnp.float32)

    Cin = x_ref.shape[1] // 3                      # stage-1 input is dx-packed: lanes = 3*Cin
    stage(x_ref,  w1_ref, s1_ref, b1_ref, c1_ref, p1_ref, 30, Cin, 32, True)
    stage(p1_ref, w2_ref, s2_ref, b2_ref, c2_ref, p2_ref, 14, 32, 64, False)
    stage(p2_ref, w3_ref, s3_ref, b3_ref, c3_ref, p3_ref, 6,  64, 128, False)

    # --- fc on the flattened 2x2x128 features (fc_w rows pre-permuted to (s, c) order) ---
    acc = fcb_ref[...]
    for s in range(4):
        acc = acc + jnp.dot(p3_ref[pl.ds(s, 1), :],
                            fcw_ref[pl.ds(s * 128, 128), :],
                            preferred_element_type=jnp.float32)
    out_ref[...] = acc.astype(out_ref.dtype)
    # dropout == identity in eval mode.


def feature_extractor(x_nchw, p):
    N, Cin, H, W = x_nchw.shape
    assert H == 30 and W == 30, "fc(512) requires a 30x30 spatial input"
    F = p["fc_b"].shape[-1]

    # NCHW -> flattened NHWC rows (H*W, Cin); then pack the 3 horizontal neighbours of
    # every pixel onto the lane axis so the stage-1 conv needs only 3 matmuls with K=3*Cin.
    x = jnp.transpose(x_nchw, (0, 2, 3, 1)).reshape(N, H * W, Cin)
    x = jnp.pad(x, ((0, 0), (0, 2), (0, 0)))                           # (N, H*W+2, Cin)
    x_dx = jnp.concatenate([x[:, 0:H * W], x[:, 1:H * W + 1], x[:, 2:H * W + 2]],
                           axis=-1)                                     # (N, H*W, 3*Cin)

    args = (x_dx, p["w1"], p["s1"], p["b1"], p["w2"], p["s2"], p["b2"],
            p["w3"], p["s3"], p["b3"], p["fc_w"], p["fc_b"])

    def full(a):
        return pl.BlockSpec(a.shape, lambda n: (0,) * a.ndim)

    in_specs = [pl.BlockSpec((None, H * W, 3 * Cin), lambda n: (n, 0, 0))]
    in_specs += [full(a) for a in args[1:]]

    out3 = pl.pallas_call(
        _fused_kernel,
        out_shape=jax.ShapeDtypeStruct((N, 1, F), jnp.float32),
        grid=(N,),
        in_specs=in_specs,
        out_specs=pl.BlockSpec((None, 1, F), lambda n: (n, 0, 0)),
        scratch_shapes=[
            pltpu.VMEM((28 * 30, 32), jnp.float32),        # stage-1 conv slab
            pltpu.VMEM((14 * 14 + 2, 32), jnp.float32),    # stage-1 pooled (stage-2 input)
            pltpu.VMEM((12 * 14, 64), jnp.float32),        # stage-2 conv slab
            pltpu.VMEM((6 * 6 + 2, 64), jnp.float32),      # stage-2 pooled (stage-3 input)
            pltpu.VMEM((4 * 6, 128), jnp.float32),         # stage-3 conv slab
            pltpu.VMEM((2 * 2 + 2, 128), jnp.float32),     # stage-3 pooled (fc input)
        ],
        compiler_params=pltpu.CompilerParams(dimension_semantics=("parallel",)),
    )(*args)
    return out3.reshape(N, F)


# ------------------------------ parameters & reference ------------------------------

def make_params(key, in_features, out_features):
    chans = [in_features, 32, 64, 128]
    raw, fold = {}, {}
    for i in (1, 2, 3):
        cin, cout = chans[i - 1], chans[i]
        key, k1, k2, k3, k4, k5, k6 = jax.random.split(key, 7)
        w_oihw = jax.random.normal(k1, (cout, cin, 3, 3), jnp.float32) / jnp.sqrt(9.0 * cin)
        b = 0.01 * jax.random.normal(k2, (cout,), jnp.float32)
        gamma = 1.0 + 0.1 * jax.random.normal(k3, (cout,), jnp.float32)
        beta = 0.1 * jax.random.normal(k4, (cout,), jnp.float32)
        mean = 0.1 * jax.random.normal(k5, (cout,), jnp.float32)
        var = jax.random.uniform(k6, (cout,), jnp.float32, 0.5, 1.5)
        raw[i] = (w_oihw, b, gamma, beta, mean, var)
        scale = gamma / jnp.sqrt(var + _EPS)
        # OIHW -> HWIO -> (9*Cin, Cout), rows ordered (dy, dx, ci) to match the kernel taps.
        fold[f"w{i}"] = jnp.transpose(w_oihw, (2, 3, 1, 0)).reshape(9 * cin, cout)
        fold[f"s{i}"] = scale.reshape(1, cout)
        fold[f"b{i}"] = ((b - mean) * scale + beta).reshape(1, cout)
    key, k1, k2 = jax.random.split(key, 3)
    fc_w = jax.random.normal(k1, (512, out_features), jnp.float32) / jnp.sqrt(512.0)
    fc_b = 0.01 * jax.random.normal(k2, (out_features,), jnp.float32)
    raw["fc"] = (fc_w, fc_b)
    # PyTorch NCHW-flatten orders fc rows as (c, s); the kernel flattens as (s, c): permute once.
    fold["fc_w"] = fc_w.reshape(128, 4, out_features).transpose(1, 0, 2).reshape(512, out_features)
    fold["fc_b"] = fc_b.reshape(1, out_features)
    return raw, fold


def reference(x_nchw, raw):
    x = x_nchw
    for i in (1, 2, 3):
        w_oihw, b, gamma, beta, mean, var = raw[i]
        x = lax.conv_general_dilated(
            x, w_oihw, window_strides=(1, 1), padding="VALID",
            dimension_numbers=("NCHW", "OIHW", "NCHW"),
            precision=lax.Precision.HIGHEST) + b[None, :, None, None]
        x = (x - mean[None, :, None, None]) / jnp.sqrt(var + _EPS)[None, :, None, None]
        x = x * gamma[None, :, None, None] + beta[None, :, None, None]
        x = jnp.maximum(x, 0.0)
        x = lax.reduce_window(x, -jnp.inf, lax.max, (1, 1, 2, 2), (1, 1, 2, 2), "VALID")
    flat = x.reshape(x.shape[0], -1)
    fc_w, fc_b = raw["fc"]
    return jnp.dot(flat, fc_w, precision=lax.Precision.HIGHEST) + fc_b


# ----------------------------------------- main --------------------------------------

if __name__ == "__main__":
    key = jax.random.PRNGKey(0)
    key, kx = jax.random.split(key)
    in_features, out_features = 4, 16
    # fc expects 512 = 128 * 2 * 2 features, which forces 30x30 spatial input.
    x = jax.random.normal(kx, (2, in_features, 30, 30), jnp.float32)

    raw, fold = make_params(key, in_features, out_features)

    fx = jax.jit(feature_extractor)
    out = jax.block_until_ready(fx(x, fold))
    assert out.shape == (2, out_features), out.shape

    ref = jax.block_until_ready(reference(x, raw))
    assert jnp.allclose(out, ref, rtol=2e-2, atol=2e-2), (
        float(jnp.max(jnp.abs(out - ref))))

    print("KERNEL_OK")
</pallas_src>

<mosaic_0001>
module attributes {stable_mosaic.version = 11 : i64} {
  func.func @_fused_kernel(%arg0: i32, %arg1: memref<1x900x12xf32, #tpu.memory_space<vmem>>, %arg2: memref<36x32xf32, #tpu.memory_space<vmem>>, %arg3: memref<1x32xf32, #tpu.memory_space<vmem>>, %arg4: memref<1x32xf32, #tpu.memory_space<vmem>>, %arg5: memref<288x64xf32, #tpu.memory_space<vmem>>, %arg6: memref<1x64xf32, #tpu.memory_space<vmem>>, %arg7: memref<1x64xf32, #tpu.memory_space<vmem>>, %arg8: memref<576x128xf32, #tpu.memory_space<vmem>>, %arg9: memref<1x128xf32, #tpu.memory_space<vmem>>, %arg10: memref<1x128xf32, #tpu.memory_space<vmem>>, %arg11: memref<512x16xf32, #tpu.memory_space<vmem>>, %arg12: memref<1x16xf32, #tpu.memory_space<vmem>>, %arg13: memref<1x1x16xf32, #tpu.memory_space<vmem>>, %arg14: memref<840x32xf32, #tpu.memory_space<vmem>>, %arg15: memref<198x32xf32, #tpu.memory_space<vmem>>, %arg16: memref<168x64xf32, #tpu.memory_space<vmem>>, %arg17: memref<38x64xf32, #tpu.memory_space<vmem>>, %arg18: memref<24x128xf32, #tpu.memory_space<vmem>>, %arg19: memref<6x128xf32, #tpu.memory_space<vmem>>) attributes {dimension_semantics = [#tpu.dimension_semantics<parallel>], iteration_bounds = array<i64: 2>, scalar_prefetch = 0 : i64, scratch_operands = 6 : i64, tpu.core_type = #tpu.core_type<tc>, window_params = [{transform_indices = @transform_0, window_bounds = array<i64: 1, 900, 12>}, {pipeline_mode = #tpu.pipeline_mode<synchronous>, transform_indices = @transform_1, window_bounds = array<i64: 36, 32>}, {pipeline_mode = #tpu.pipeline_mode<synchronous>, transform_indices = @transform_2, window_bounds = array<i64: 1, 32>}, {pipeline_mode = #tpu.pipeline_mode<synchronous>, transform_indices = @transform_3, window_bounds = array<i64: 1, 32>}, {pipeline_mode = #tpu.pipeline_mode<synchronous>, transform_indices = @transform_4, window_bounds = array<i64: 288, 64>}, {pipeline_mode = #tpu.pipeline_mode<synchronous>, transform_indices = @transform_5, window_bounds = array<i64: 1, 64>}, {pipeline_mode = #tpu.pipeline_mode<synchronous>, transform_indices = @transform_6, window_bounds = array<i64: 1, 64>}, {pipeline_mode = #tpu.pipeline_mode<synchronous>, transform_indices = @transform_7, window_bounds = array<i64: 576, 128>}, {pipeline_mode = #tpu.pipeline_mode<synchronous>, transform_indices = @transform_8, window_bounds = array<i64: 1, 128>}, {pipeline_mode = #tpu.pipeline_mode<synchronous>, transform_indices = @transform_9, window_bounds = array<i64: 1, 128>}, {pipeline_mode = #tpu.pipeline_mode<synchronous>, transform_indices = @transform_10, window_bounds = array<i64: 512, 16>}, {pipeline_mode = #tpu.pipeline_mode<synchronous>, transform_indices = @transform_11, window_bounds = array<i64: 1, 16>}, {transform_indices = @transform_12, window_bounds = array<i64: 1, 1, 16>}]} {
    %c0 = arith.constant 0 : index
    %c0_0 = arith.constant 0 : index
    %c0_1 = arith.constant 0 : index
    %0 = vector.load %arg1[%c0, %c0_0, %c0_1] : memref<1x900x12xf32, #tpu.memory_space<vmem>>, vector<1x840x12xf32>
    %1 = vector.shape_cast %0 : vector<1x840x12xf32> to vector<840x12xf32>
    %c0_2 = arith.constant 0 : index
    %c0_3 = arith.constant 0 : index
    %2 = vector.load %arg2[%c0_2, %c0_3] : memref<36x32xf32, #tpu.memory_space<vmem>>, vector<12x32xf32>
    %cst = arith.constant dense<0.000000e+00> : vector<840x32xf32>
    %3 = tpu.matmul %1, %2, %cst {dimension_numbers = #tpu.dot_dimension_numbers<[1], [0], [0], [1], [0, 0, 1, 1], [], []>} : vector<840x12xf32>, vector<12x32xf32>, vector<840x32xf32> -> vector<840x32xf32>
    %c0_4 = arith.constant 0 : index
    %c0_5 = arith.constant 0 : index
    %4 = vector.load %arg14[%c0_4, %c0_5] : memref<840x32xf32, #tpu.memory_space<vmem>>, vector<840x32xf32>
    tpu.vector_store %arg14[%c0_4, %c0_5], %3 {strides = array<i32>} : memref<840x32xf32, #tpu.memory_space<vmem>>, vector<840x32xf32>,
    %c0_6 = arith.constant 0 : index
    %c30 = arith.constant 30 : index
    %c0_7 = arith.constant 0 : index
    %5 = vector.load %arg1[%c0_6, %c30, %c0_7] : memref<1x900x12xf32, #tpu.memory_space<vmem>>, vector<1x840x12xf32>
    %6 = vector.shape_cast %5 : vector<1x840x12xf32> to vector<840x12xf32>
    %c12 = arith.constant 12 : index
    %c0_8 = arith.constant 0 : index
    %7 = vector.load %arg2[%c12, %c0_8] : memref<36x32xf32, #tpu.memory_space<vmem>>, vector<12x32xf32>
    %cst_9 = arith.constant dense<0.000000e+00> : vector<840x32xf32>
    %8 = tpu.matmul %6, %7, %cst_9 {dimension_numbers = #tpu.dot_dimension_numbers<[1], [0], [0], [1], [0, 0, 1, 1], [], []>} : vector<840x12xf32>, vector<12x32xf32>, vector<840x32xf32> -> vector<840x32xf32>
    %c0_10 = arith.constant 0 : index
    %c0_11 = arith.constant 0 : index
    %9 = vector.load %arg14[%c0_10, %c0_11] : memref<840x32xf32, #tpu.memory_space<vmem>>, vector<840x32xf32>
    %10 = arith.addf %9, %8 : vector<840x32xf32>
    %c0_12 = arith.constant 0 : index
    %c0_13 = arith.constant 0 : index
    %11 = vector.load %arg14[%c0_12, %c0_13] : memref<840x32xf32, #tpu.memory_space<vmem>>, vector<840x32xf32>
    tpu.vector_store %arg14[%c0_12, %c0_13], %10 {strides = array<i32>} : memref<840x32xf32, #tpu.memory_space<vmem>>, vector<840x32xf32>,
    %c0_14 = arith.constant 0 : index
    %c60 = arith.constant 60 : index
    %c0_15 = arith.constant 0 : index
    %12 = vector.load %arg1[%c0_14, %c60, %c0_15] : memref<1x900x12xf32, #tpu.memory_space<vmem>>, vector<1x840x12xf32>
    %13 = vector.shape_cast %12 : vector<1x840x12xf32> to vector<840x12xf32>
    %c24 = arith.constant 24 : index
    %c0_16 = arith.constant 0 : index
    %14 = vector.load %arg2[%c24, %c0_16] : memref<36x32xf32, #tpu.memory_space<vmem>>, vector<12x32xf32>
    %cst_17 = arith.constant dense<0.000000e+00> : vector<840x32xf32>
    %15 = tpu.matmul %13, %14, %cst_17 {dimension_numbers = #tpu.dot_dimension_numbers<[1], [0], [0], [1], [0, 0, 1, 1], [], []>} : vector<840x12xf32>, vector<12x32xf32>, vector<840x32xf32> -> vector<840x32xf32>
    %c0_18 = arith.constant 0 : index
    %c0_19 = arith.constant 0 : index
    %16 = vector.load %arg14[%c0_18, %c0_19] : memref<840x32xf32, #tpu.memory_space<vmem>>, vector<840x32xf32>
    %17 = arith.addf %16, %15 : vector<840x32xf32>
    %c0_20 = arith.constant 0 : index
    %c0_21 = arith.constant 0 : index
    %18 = vector.load %arg3[%c0_20, %c0_21] : memref<1x32xf32, #tpu.memory_space<vmem>>, vector<1x32xf32>
    %19 = vector.broadcast %18 : vector<1x32xf32> to vector<840x32xf32>
    %20 = arith.mulf %17, %19 : vector<840x32xf32>
    %c0_22 = arith.constant 0 : index
    %c0_23 = arith.constant 0 : index
    %21 = vector.load %arg4[%c0_22, %c0_23] : memref<1x32xf32, #tpu.memory_space<vmem>>, vector<1x32xf32>
    %22 = vector.broadcast %21 : vector<1x32xf32> to vector<840x32xf32>
    %23 = arith.addf %20, %22 : vector<840x32xf32>
    %cst_24 = arith.constant 0.000000e+00 : f32
    %24 = vector.broadcast %cst_24 : f32 to vector<840x32xf32>
    %25 = arith.maximumf %23, %24 : vector<840x32xf32>
    %c0_25 = arith.constant 0 : index
    %c0_26 = arith.constant 0 : index
    %26 = vector.load %arg14[%c0_25, %c0_26] : memref<840x32xf32, #tpu.memory_space<vmem>>, vector<840x32xf32>
    tpu.vector_store %arg14[%c0_25, %c0_26], %25 {strides = array<i32>} : memref<840x32xf32, #tpu.memory_space<vmem>>, vector<840x32xf32>,
    %c0_27 = arith.constant 0 : index
    %c0_28 = arith.constant 0 : index
    %27 = tpu.strided_load %arg14[%c0_27, %c0_28] {strides = array<i32: 2, 1>} : memref<840x32xf32, #tpu.memory_space<vmem>>, vector<14x32xf32>
    %c1 = arith.constant 1 : index
    %c0_29 = arith.constant 0 : index
    %28 = tpu.strided_load %arg14[%c1, %c0_29] {strides = array<i32: 2, 1>} : memref<840x32xf32, #tpu.memory_space<vmem>>, vector<14x32xf32>
    %29 = arith.maximumf %27, %28 : vector<14x32xf32>
    %c30_30 = arith.constant 30 : index
    %c0_31 = arith.constant 0 : index
    %30 = tpu.strided_load %arg14[%c30_30, %c0_31] {strides = array<i32: 2, 1>} : memref<840x32xf32, #tpu.memory_space<vmem>>, vector<14x32xf32>
    %c31 = arith.constant 31 : index
    %c0_32 = arith.constant 0 : index
    %31 = tpu.strided_load %arg14[%c31, %c0_32] {strides = array<i32: 2, 1>} : memref<840x32xf32, #tpu.memory_space<vmem>>, vector<14x32xf32>
    %32 = arith.maximumf %30, %31 : vector<14x32xf32>
    %33 = arith.maximumf %29, %32 : vector<14x32xf32>
    %c0_33 = arith.constant 0 : index
    %c0_34 = arith.constant 0 : index
    %34 = vector.load %arg15[%c0_33, %c0_34] : memref<198x32xf32, #tpu.memory_space<vmem>>, vector<14x32xf32>
    tpu.vector_store %arg15[%c0_33, %c0_34], %33 {strides = array<i32>} : memref<198x32xf32, #tpu.memory_space<vmem>>, vector<14x32xf32>,
    %c60_35 = arith.constant 60 : index
    %c0_36 = arith.constant 0 : index
    %35 = tpu.strided_load %arg14[%c60_35, %c0_36] {strides = array<i32: 2, 1>} : memref<840x32xf32, #tpu.memory_space<vmem>>, vector<14x32xf32>
    %c61 = arith.constant 61 : index
    %c0_37 = arith.constant 0 : index
    %36 = tpu.strided_load %arg14[%c61, %c0_37] {strides = array<i32: 2, 1>} : memref<840x32xf32, #tpu.memory_space<vmem>>, vector<14x32xf32>
    %37 = arith.maximumf %35, %36 : vector<14x32xf32>
    %c90 = arith.constant 90 : index
    %c0_38 = arith.constant 0 : index
    %38 = tpu.strided_load %arg14[%c90, %c0_38] {strides = array<i32: 2, 1>} : memref<840x32xf32, #tpu.memory_space<vmem>>, vector<14x32xf32>
    %c91 = arith.constant 91 : index
    %c0_39 = arith.constant 0 : index
    %39 = tpu.strided_load %arg14[%c91, %c0_39] {strides = array<i32: 2, 1>} : memref<840x32xf32, #tpu.memory_space<vmem>>, vector<14x32xf32>
    %40 = arith.maximumf %38, %39 : vector<14x32xf32>
    %41 = arith.maximumf %37, %40 : vector<14x32xf32>
    %c14 = arith.constant 14 : index
    %c0_40 = arith.constant 0 : index
    %42 = vector.load %arg15[%c14, %c0_40] : memref<198x32xf32, #tpu.memory_space<vmem>>, vector<14x32xf32>
    tpu.vector_store %arg15[%c14, %c0_40], %41 {strides = array<i32>} : memref<198x32xf32, #tpu.memory_space<vmem>>, vector<14x32xf32>,
    %c120 = arith.constant 120 : index
    %c0_41 = arith.constant 0 : index
    %43 = tpu.strided_load %arg14[%c120, %c0_41] {strides = array<i32: 2, 1>} : memref<840x32xf32, #tpu.memory_space<vmem>>, vector<14x32xf32>
    %c121 = arith.constant 121 : index
    %c0_42 = arith.constant 0 : index
    %44 = tpu.strided_load %arg14[%c121, %c0_42] {strides = array<i32: 2, 1>} : memref<840x32xf32, #tpu.memory_space<vmem>>, vector<14x32xf32>
    %45 = arith.maximumf %43, %44 : vector<14x32xf32>
    %c150 = arith.constant 150 : index
    %c0_43 = arith.constant 0 : index
    %46 = tpu.strided_load %arg14[%c150, %c0_43] {strides = array<i32: 2, 1>} : memref<840x32xf32, #tpu.memory_space<vmem>>, vector<14x32xf32>
    %c151 = arith.constant 151 : index
    %c0_44 = arith.constant 0 : index
    %47 = tpu.strided_load %arg14[%c151, %c0_44] {strides = array<i32: 2, 1>} : memref<840x32xf32, #tpu.memory_space<vmem>>, vector<14x32xf32>
    %48 = arith.maximumf %46, %47 : vector<14x32xf32>
    %49 = arith.maximumf %45, %48 : vector<14x32xf32>
    %c28 = arith.constant 28 : index
    %c0_45 = arith.constant 0 : index
    %50 = vector.load %arg15[%c28, %c0_45] : memref<198x32xf32, #tpu.memory_space<vmem>>, vector<14x32xf32>
    tpu.vector_store %arg15[%c28, %c0_45], %49 {strides = array<i32>} : memref<198x32xf32, #tpu.memory_space<vmem>>, vector<14x32xf32>,
    %c180 = arith.constant 180 : index
    %c0_46 = arith.constant 0 : index
    %51 = tpu.strided_load %arg14[%c180, %c0_46] {strides = array<i32: 2, 1>} : memref<840x32xf32, #tpu.memory_space<vmem>>, vector<14x32xf32>
    %c181 = arith.constant 181 : index
    %c0_47 = arith.constant 0 : index
    %52 = tpu.strided_load %arg14[%c181, %c0_47] {strides = array<i32: 2, 1>} : memref<840x32xf32, #tpu.memory_space<vmem>>, vector<14x32xf32>
    %53 = arith.maximumf %51, %52 : vector<14x32xf32>
    %c210 = arith.constant 210 : index
    %c0_48 = arith.constant 0 : index
    %54 = tpu.strided_load %arg14[%c210, %c0_48] {strides = array<i32: 2, 1>} : memref<840x32xf32, #tpu.memory_space<vmem>>, vector<14x32xf32>
    %c211 = arith.constant 211 : index
    %c0_49 = arith.constant 0 : index
    %55 = tpu.strided_load %arg14[%c211, %c0_49] {strides = array<i32: 2, 1>} : memref<840x32xf32, #tpu.memory_space<vmem>>, vector<14x32xf32>
    %56 = arith.maximumf %54, %55 : vector<14x32xf32>
    %57 = arith.maximumf %53, %56 : vector<14x32xf32>
    %c42 = arith.constant 42 : index
    %c0_50 = arith.constant 0 : index
    %58 = vector.load %arg15[%c42, %c0_50] : memref<198x32xf32, #tpu.memory_space<vmem>>, vector<14x32xf32>
    tpu.vector_store %arg15[%c42, %c0_50], %57 {strides = array<i32>} : memref<198x32xf32, #tpu.memory_space<vmem>>, vector<14x32xf32>,
    %c240 = arith.constant 240 : index
    %c0_51 = arith.constant 0 : index
    %59 = tpu.strided_load %arg14[%c240, %c0_51] {strides = array<i32: 2, 1>} : memref<840x32xf32, #tpu.memory_space<vmem>>, vector<14x32xf32>
    %c241 = arith.constant 241 : index
    %c0_52 = arith.constant 0 : index
    %60 = tpu.strided_load %arg14[%c241, %c0_52] {strides = array<i32: 2, 1>} : memref<840x32xf32, #tpu.memory_space<vmem>>, vector<14x32xf32>
    %61 = arith.maximumf %59, %60 : vector<14x32xf32>
    %c270 = arith.constant 270 : index
    %c0_53 = arith.constant 0 : index
    %62 = tpu.strided_load %arg14[%c270, %c0_53] {strides = array<i32: 2, 1>} : memref<840x32xf32, #tpu.memory_space<vmem>>, vector<14x32xf32>
    %c271 = arith.constant 271 : index
    %c0_54 = arith.constant 0 : index
    %63 = tpu.strided_load %arg14[%c271, %c0_54] {strides = array<i32: 2, 1>} : memref<840x32xf32, #tpu.memory_space<vmem>>, vector<14x32xf32>
    %64 = arith.maximumf %62, %63 : vector<14x32xf32>
    %65 = arith.maximumf %61, %64 : vector<14x32xf32>
    %c56 = arith.constant 56 : index
    %c0_55 = arith.constant 0 : index
    %66 = vector.load %arg15[%c56, %c0_55] : memref<198x32xf32, #tpu.memory_space<vmem>>, vector<14x32xf32>
    tpu.vector_store %arg15[%c56, %c0_55], %65 {strides = array<i32>} : memref<198x32xf32, #tpu.memory_space<vmem>>, vector<14x32xf32>,
    %c300 = arith.constant 300 : index
    %c0_56 = arith.constant 0 : index
    %67 = tpu.strided_load %arg14[%c300, %c0_56] {strides = array<i32: 2, 1>} : memref<840x32xf32, #tpu.memory_space<vmem>>, vector<14x32xf32>
    %c301 = arith.constant 301 : index
    %c0_57 = arith.constant 0 : index
    %68 = tpu.strided_load %arg14[%c301, %c0_57] {strides = array<i32: 2, 1>} : memref<840x32xf32, #tpu.memory_space<vmem>>, vector<14x32xf32>
    %69 = arith.maximumf %67, %68 : vector<14x32xf32>
    %c330 = arith.constant 330 : index
    %c0_58 = arith.constant 0 : index
    %70 = tpu.strided_load %arg14[%c330, %c0_58] {strides = array<i32: 2, 1>} : memref<840x32xf32, #tpu.memory_space<vmem>>, vector<14x32xf32>
    %c331 = arith.constant 331 : index
    %c0_59 = arith.constant 0 : index
    %71 = tpu.strided_load %arg14[%c331, %c0_59] {strides = array<i32: 2, 1>} : memref<840x32xf32, #tpu.memory_space<vmem>>, vector<14x32xf32>
    %72 = arith.maximumf %70, %71 : vector<14x32xf32>
    %73 = arith.maximumf %69, %72 : vector<14x32xf32>
    %c70 = arith.constant 70 : index
    %c0_60 = arith.constant 0 : index
    %74 = vector.load %arg15[%c70, %c0_60] : memref<198x32xf32, #tpu.memory_space<vmem>>, vector<14x32xf32>
    tpu.vector_store %arg15[%c70, %c0_60], %73 {strides = array<i32>} : memref<198x32xf32, #tpu.memory_space<vmem>>, vector<14x32xf32>,
    %c360 = arith.constant 360 : index
    %c0_61 = arith.constant 0 : index
    %75 = tpu.strided_load %arg14[%c360, %c0_61] {strides = array<i32: 2, 1>} : memref<840x32xf32, #tpu.memory_space<vmem>>, vector<14x32xf32>
    %c361 = arith.constant 361 : index
    %c0_62 = arith.constant 0 : index
    %76 = tpu.strided_load %arg14[%c361, %c0_62] {strides = array<i32: 2, 1>} : memref<840x32xf32, #tpu.memory_space<vmem>>, vector<14x32xf32>
    %77 = arith.maximumf %75, %76 : vector<14x32xf32>
    %c390 = arith.constant 390 : index
    %c0_63 = arith.constant 0 : index
    %78 = tpu.strided_load %arg14[%c390, %c0_63] {strides = array<i32: 2, 1>} : memref<840x32xf32, #tpu.memory_space<vmem>>, vector<14x32xf32>
    %c391 = arith.constant 391 : index
    %c0_64 = arith.constant 0 : index
    %79 = tpu.strided_load %arg14[%c391, %c0_64] {strides = array<i32: 2, 1>} : memref<840x32xf32, #tpu.memory_space<vmem>>, vector<14x32xf32>
    %80 = arith.maximumf %78, %79 : vector<14x32xf32>
    %81 = arith.maximumf %77, %80 : vector<14x32xf32>
    %c84 = arith.constant 84 : index
    %c0_65 = arith.constant 0 : index
    %82 = vector.load %arg15[%c84, %c0_65] : memref<198x32xf32, #tpu.memory_space<vmem>>, vector<14x32xf32>
    tpu.vector_store %arg15[%c84, %c0_65], %81 {strides = array<i32>} : memref<198x32xf32, #tpu.memory_space<vmem>>, vector<14x32xf32>,
    %c420 = arith.constant 420 : index
    %c0_66 = arith.constant 0 : index
    %83 = tpu.strided_load %arg14[%c420, %c0_66] {strides = array<i32: 2, 1>} : memref<840x32xf32, #tpu.memory_space<vmem>>, vector<14x32xf32>
    %c421 = arith.constant 421 : index
    %c0_67 = arith.constant 0 : index
    %84 = tpu.strided_load %arg14[%c421, %c0_67] {strides = array<i32: 2, 1>} : memref<840x32xf32, #tpu.memory_space<vmem>>, vector<14x32xf32>
    %85 = arith.maximumf %83, %84 : vector<14x32xf32>
    %c450 = arith.constant 450 : index
    %c0_68 = arith.constant 0 : index
    %86 = tpu.strided_load %arg14[%c450, %c0_68] {strides = array<i32: 2, 1>} : memref<840x32xf32, #tpu.memory_space<vmem>>, vector<14x32xf32>
    %c451 = arith.constant 451 : index
    %c0_69 = arith.constant 0 : index
    %87 = tpu.strided_load %arg14[%c451, %c0_69] {strides = array<i32: 2, 1>} : memref<840x32xf32, #tpu.memory_space<vmem>>, vector<14x32xf32>
    %88 = arith.maximumf %86, %87 : vector<14x32xf32>
    %89 = arith.maximumf %85, %88 : vector<14x32xf32>
    %c98 = arith.constant 98 : index
    %c0_70 = arith.constant 0 : index
    %90 = vector.load %arg15[%c98, %c0_70] : memref<198x32xf32, #tpu.memory_space<vmem>>, vector<14x32xf32>
    tpu.vector_store %arg15[%c98, %c0_70], %89 {strides = array<i32>} : memref<198x32xf32, #tpu.memory_space<vmem>>, vector<14x32xf32>,
    %c480 = arith.constant 480 : index
    %c0_71 = arith.constant 0 : index
    %91 = tpu.strided_load %arg14[%c480, %c0_71] {strides = array<i32: 2, 1>} : memref<840x32xf32, #tpu.memory_space<vmem>>, vector<14x32xf32>
    %c481 = arith.constant 481 : index
    %c0_72 = arith.constant 0 : index
    %92 = tpu.strided_load %arg14[%c481, %c0_72] {strides = array<i32: 2, 1>} : memref<840x32xf32, #tpu.memory_space<vmem>>, vector<14x32xf32>
    %93 = arith.maximumf %91, %92 : vector<14x32xf32>
    %c510 = arith.constant 510 : index
    %c0_73 = arith.constant 0 : index
    %94 = tpu.strided_load %arg14[%c510, %c0_73] {strides = array<i32: 2, 1>} : memref<840x32xf32, #tpu.memory_space<vmem>>, vector<14x32xf32>
    %c511 = arith.constant 511 : index
    %c0_74 = arith.constant 0 : index
    %95 = tpu.strided_load %arg14[%c511, %c0_74] {strides = array<i32: 2, 1>} : memref<840x32xf32, #tpu.memory_space<vmem>>, vector<14x32xf32>
    %96 = arith.maximumf %94, %95 : vector<14x32xf32>
    %97 = arith.maximumf %93, %96 : vector<14x32xf32>
    %c112 = arith.constant 112 : index
    %c0_75 = arith.constant 0 : index
    %98 = vector.load %arg15[%c112, %c0_75] : memref<198x32xf32, #tpu.memory_space<vmem>>, vector<14x32xf32>
    tpu.vector_store %arg15[%c112, %c0_75], %97 {strides = array<i32>} : memref<198x32xf32, #tpu.memory_space<vmem>>, vector<14x32xf32>,
    %c540 = arith.constant 540 : index
    %c0_76 = arith.constant 0 : index
    %99 = tpu.strided_load %arg14[%c540, %c0_76] {strides = array<i32: 2, 1>} : memref<840x32xf32, #tpu.memory_space<vmem>>, vector<14x32xf32>
    %c541 = arith.constant 541 : index
    %c0_77 = arith.constant 0 : index
    %100 = tpu.strided_load %arg14[%c541, %c0_77] {strides = array<i32: 2, 1>} : memref<840x32xf32, #tpu.memory_space<vmem>>, vector<14x32xf32>
    %101 = arith.maximumf %99, %100 : vector<14x32xf32>
    %c570 = arith.constant 570 : index
    %c0_78 = arith.constant 0 : index
    %102 = tpu.strided_load %arg14[%c570, %c0_78] {strides = array<i32: 2, 1>} : memref<840x32xf32, #tpu.memory_space<vmem>>, vector<14x32xf32>
    %c571 = arith.constant 571 : index
    %c0_79 = arith.constant 0 : index
    %103 = tpu.strided_load %arg14[%c571, %c0_79] {strides = array<i32: 2, 1>} : memref<840x32xf32, #tpu.memory_space<vmem>>, vector<14x32xf32>
    %104 = arith.maximumf %102, %103 : vector<14x32xf32>
    %105 = arith.maximumf %101, %104 : vector<14x32xf32>
    %c126 = arith.constant 126 : index
    %c0_80 = arith.constant 0 : index
    %106 = vector.load %arg15[%c126, %c0_80] : memref<198x32xf32, #tpu.memory_space<vmem>>, vector<14x32xf32>
    tpu.vector_store %arg15[%c126, %c0_80], %105 {strides = array<i32>} : memref<198x32xf32, #tpu.memory_space<vmem>>, vector<14x32xf32>,
    %c600 = arith.constant 600 : index
    %c0_81 = arith.constant 0 : index
    %107 = tpu.strided_load %arg14[%c600, %c0_81] {strides = array<i32: 2, 1>} : memref<840x32xf32, #tpu.memory_space<vmem>>, vector<14x32xf32>
    %c601 = arith.constant 601 : index
    %c0_82 = arith.constant 0 : index
    %108 = tpu.strided_load %arg14[%c601, %c0_82] {strides = array<i32: 2, 1>} : memref<840x32xf32, #tpu.memory_space<vmem>>, vector<14x32xf32>
    %109 = arith.maximumf %107, %108 : vector<14x32xf32>
    %c630 = arith.constant 630 : index
    %c0_83 = arith.constant 0 : index
    %110 = tpu.strided_load %arg14[%c630, %c0_83] {strides = array<i32: 2, 1>} : memref<840x32xf32, #tpu.memory_space<vmem>>, vector<14x32xf32>
    %c631 = arith.constant 631 : index
    %c0_84 = arith.constant 0 : index
    %111 = tpu.strided_load %arg14[%c631, %c0_84] {strides = array<i32: 2, 1>} : memref<840x32xf32, #tpu.memory_space<vmem>>, vector<14x32xf32>
    %112 = arith.maximumf %110, %111 : vector<14x32xf32>
    %113 = arith.maximumf %109, %112 : vector<14x32xf32>
    %c140 = arith.constant 140 : index
    %c0_85 = arith.constant 0 : index
    %114 = vector.load %arg15[%c140, %c0_85] : memref<198x32xf32, #tpu.memory_space<vmem>>, vector<14x32xf32>
    tpu.vector_store %arg15[%c140, %c0_85], %113 {strides = array<i32>} : memref<198x32xf32, #tpu.memory_space<vmem>>, vector<14x32xf32>,
    %c660 = arith.constant 660 : index
    %c0_86 = arith.constant 0 : index
    %115 = tpu.strided_load %arg14[%c660, %c0_86] {strides = array<i32: 2, 1>} : memref<840x32xf32, #tpu.memory_space<vmem>>, vector<14x32xf32>
    %c661 = arith.constant 661 : index
    %c0_87 = arith.constant 0 : index
    %116 = tpu.strided_load %arg14[%c661, %c0_87] {strides = array<i32: 2, 1>} : memref<840x32xf32, #tpu.memory_space<vmem>>, vector<14x32xf32>
    %117 = arith.maximumf %115, %116 : vector<14x32xf32>
    %c690 = arith.constant 690 : index
    %c0_88 = arith.constant 0 : index
    %118 = tpu.strided_load %arg14[%c690, %c0_88] {strides = array<i32: 2, 1>} : memref<840x32xf32, #tpu.memory_space<vmem>>, vector<14x32xf32>
    %c691 = arith.constant 691 : index
    %c0_89 = arith.constant 0 : index
    %119 = tpu.strided_load %arg14[%c691, %c0_89] {strides = array<i32: 2, 1>} : memref<840x32xf32, #tpu.memory_space<vmem>>, vector<14x32xf32>
    %120 = arith.maximumf %118, %119 : vector<14x32xf32>
    %121 = arith.maximumf %117, %120 : vector<14x32xf32>
    %c154 = arith.constant 154 : index
    %c0_90 = arith.constant 0 : index
    %122 = vector.load %arg15[%c154, %c0_90] : memref<198x32xf32, #tpu.memory_space<vmem>>, vector<14x32xf32>
    tpu.vector_store %arg15[%c154, %c0_90], %121 {strides = array<i32>} : memref<198x32xf32, #tpu.memory_space<vmem>>, vector<14x32xf32>,
    %c720 = arith.constant 720 : index
    %c0_91 = arith.constant 0 : index
    %123 = tpu.strided_load %arg14[%c720, %c0_91] {strides = array<i32: 2, 1>} : memref<840x32xf32, #tpu.memory_space<vmem>>, vector<14x32xf32>
    %c721 = arith.constant 721 : index
    %c0_92 = arith.constant 0 : index
    %124 = tpu.strided_load %arg14[%c721, %c0_92] {strides = array<i32: 2, 1>} : memref<840x32xf32, #tpu.memory_space<vmem>>, vector<14x32xf32>
    %125 = arith.maximumf %123, %124 : vector<14x32xf32>
    %c750 = arith.constant 750 : index
    %c0_93 = arith.constant 0 : index
    %126 = tpu.strided_load %arg14[%c750, %c0_93] {strides = array<i32: 2, 1>} : memref<840x32xf32, #tpu.memory_space<vmem>>, vector<14x32xf32>
    %c751 = arith.constant 751 : index
    %c0_94 = arith.constant 0 : index
    %127 = tpu.strided_load %arg14[%c751, %c0_94] {strides = array<i32: 2, 1>} : memref<840x32xf32, #tpu.memory_space<vmem>>, vector<14x32xf32>
    %128 = arith.maximumf %126, %127 : vector<14x32xf32>
    %129 = arith.maximumf %125, %128 : vector<14x32xf32>
    %c168 = arith.constant 168 : index
    %c0_95 = arith.constant 0 : index
    %130 = vector.load %arg15[%c168, %c0_95] : memref<198x32xf32, #tpu.memory_space<vmem>>, vector<14x32xf32>
    tpu.vector_store %arg15[%c168, %c0_95], %129 {strides = array<i32>} : memref<198x32xf32, #tpu.memory_space<vmem>>, vector<14x32xf32>,
    %c780 = arith.constant 780 : index
    %c0_96 = arith.constant 0 : index
    %131 = tpu.strided_load %arg14[%c780, %c0_96] {strides = array<i32: 2, 1>} : memref<840x32xf32, #tpu.memory_space<vmem>>, vector<14x32xf32>
    %c781 = arith.constant 781 : index
    %c0_97 = arith.constant 0 : index
    %132 = tpu.strided_load %arg14[%c781, %c0_97] {strides = array<i32: 2, 1>} : memref<840x32xf32, #tpu.memory_space<vmem>>, vector<14x32xf32>
    %133 = arith.maximumf %131, %132 : vector<14x32xf32>
    %c810 = arith.constant 810 : index
    %c0_98 = arith.constant 0 : index
    %134 = tpu.strided_load %arg14[%c810, %c0_98] {strides = array<i32: 2, 1>} : memref<840x32xf32, #tpu.memory_space<vmem>>, vector<14x32xf32>
    %c811 = arith.constant 811 : index
    %c0_99 = arith.constant 0 : index
    %135 = tpu.strided_load %arg14[%c811, %c0_99] {strides = array<i32: 2, 1>} : memref<840x32xf32, #tpu.memory_space<vmem>>, vector<14x32xf32>
    %136 = arith.maximumf %134, %135 : vector<14x32xf32>
    %137 = arith.maximumf %133, %136 : vector<14x32xf32>
    %c182 = arith.constant 182 : index
    %c0_100 = arith.constant 0 : index
    %138 = vector.load %arg15[%c182, %c0_100] : memref<198x32xf32, #tpu.memory_space<vmem>>, vector<14x32xf32>
    tpu.vector_store %arg15[%c182, %c0_100], %137 {strides = array<i32>} : memref<198x32xf32, #tpu.memory_space<vmem>>, vector<14x32xf32>,
    %cst_101 = arith.constant 0.000000e+00 : f32
    %139 = vector.broadcast %cst_101 : f32 to vector<2x32xf32>
    %c196 = arith.constant 196 : index
    %c0_102 = arith.constant 0 : index
    %140 = vector.load %arg15[%c196, %c0_102] : memref<198x32xf32, #tpu.memory_space<vmem>>, vector<2x32xf32>
    tpu.vector_store %arg15[%c196, %c0_102], %139 {strides = array<i32>} : memref<198x32xf32, #tpu.memory_space<vmem>>, vector<2x32xf32>,
    %c0_103 = arith.constant 0 : index
    %c0_104 = arith.constant 0 : index
    %141 = vector.load %arg15[%c0_103, %c0_104] : memref<198x32xf32, #tpu.memory_space<vmem>>, vector<168x32xf32>
    %c0_105 = arith.constant 0 : index
    %c0_106 = arith.constant 0 : index
    %142 = vector.load %arg5[%c0_105, %c0_106] : memref<288x64xf32, #tpu.memory_space<vmem>>, vector<32x64xf32>
    %cst_107 = arith.constant dense<0.000000e+00> : vector<168x64xf32>
    %143 = tpu.matmul %141, %142, %cst_107 {dimension_numbers = #tpu.dot_dimension_numbers<[1], [0], [0], [1], [0, 0, 1, 1], [], []>} : vector<168x32xf32>, vector<32x64xf32>, vector<168x64xf32> -> vector<168x64xf32>
    %c1_108 = arith.constant 1 : index
    %c0_109 = arith.constant 0 : index
    %144 = vector.load %arg15[%c1_108, %c0_109] : memref<198x32xf32, #tpu.memory_space<vmem>>, vector<168x32xf32>
    %c32 = arith.constant 32 : index
    %c0_110 = arith.constant 0 : index
    %145 = vector.load %arg5[%c32, %c0_110] : memref<288x64xf32, #tpu.memory_space<vmem>>, vector<32x64xf32>
    %cst_111 = arith.constant dense<0.000000e+00> : vector<168x64xf32>
    %146 = tpu.matmul %144, %145, %cst_111 {dimension_numbers = #tpu.dot_dimension_numbers<[1], [0], [0], [1], [0, 0, 1, 1], [], []>} : vector<168x32xf32>, vector<32x64xf32>, vector<168x64xf32> -> vector<168x64xf32>
    %147 = arith.addf %143, %146 : vector<168x64xf32>
    %c2 = arith.constant 2 : index
    %c0_112 = arith.constant 0 : index
    %148 = vector.load %arg15[%c2, %c0_112] : memref<198x32xf32, #tpu.memory_space<vmem>>, vector<168x32xf32>
    %c64 = arith.constant 64 : index
    %c0_113 = arith.constant 0 : index
    %149 = vector.load %arg5[%c64, %c0_113] : memref<288x64xf32, #tpu.memory_space<vmem>>, vector<32x64xf32>
    %cst_114 = arith.constant dense<0.000000e+00> : vector<168x64xf32>
    %150 = tpu.matmul %148, %149, %cst_114 {dimension_numbers = #tpu.dot_dimension_numbers<[1], [0], [0], [1], [0, 0, 1, 1], [], []>} : vector<168x32xf32>, vector<32x64xf32>, vector<168x64xf32> -> vector<168x64xf32>
    %151 = arith.addf %147, %150 : vector<168x64xf32>
    %c0_115 = arith.constant 0 : index
    %c0_116 = arith.constant 0 : index
    %152 = vector.load %arg16[%c0_115, %c0_116] : memref<168x64xf32, #tpu.memory_space<vmem>>, vector<168x64xf32>
    tpu.vector_store %arg16[%c0_115, %c0_116], %151 {strides = array<i32>} : memref<168x64xf32, #tpu.memory_space<vmem>>, vector<168x64xf32>,
    %c14_117 = arith.constant 14 : index
    %c0_118 = arith.constant 0 : index
    %153 = vector.load %arg15[%c14_117, %c0_118] : memref<198x32xf32, #tpu.memory_space<vmem>>, vector<168x32xf32>
    %c96 = arith.constant 96 : index
    %c0_119 = arith.constant 0 : index
    %154 = vector.load %arg5[%c96, %c0_119] : memref<288x64xf32, #tpu.memory_space<vmem>>, vector<32x64xf32>
    %cst_120 = arith.constant dense<0.000000e+00> : vector<168x64xf32>
    %155 = tpu.matmul %153, %154, %cst_120 {dimension_numbers = #tpu.dot_dimension_numbers<[1], [0], [0], [1], [0, 0, 1, 1], [], []>} : vector<168x32xf32>, vector<32x64xf32>, vector<168x64xf32> -> vector<168x64xf32>
    %c15 = arith.constant 15 : index
    %c0_121 = arith.constant 0 : index
    %156 = vector.load %arg15[%c15, %c0_121] : memref<198x32xf32, #tpu.memory_space<vmem>>, vector<168x32xf32>
    %c128 = arith.constant 128 : index
    %c0_122 = arith.constant 0 : index
    %157 = vector.load %arg5[%c128, %c0_122] : memref<288x64xf32, #tpu.memory_space<vmem>>, vector<32x64xf32>
    %cst_123 = arith.constant dense<0.000000e+00> : vector<168x64xf32>
    %158 = tpu.matmul %156, %157, %cst_123 {dimension_numbers = #tpu.dot_dimension_numbers<[1], [0], [0], [1], [0, 0, 1, 1], [], []>} : vector<168x32xf32>, vector<32x64xf32>, vector<168x64xf32> -> vector<168x64xf32>
    %159 = arith.addf %155, %158 : vector<168x64xf32>
    %c16 = arith.constant 16 : index
    %c0_124 = arith.constant 0 : index
    %160 = vector.load %arg15[%c16, %c0_124] : memref<198x32xf32, #tpu.memory_space<vmem>>, vector<168x32xf32>
    %c160 = arith.constant 160 : index
    %c0_125 = arith.constant 0 : index
    %161 = vector.load %arg5[%c160, %c0_125] : memref<288x64xf32, #tpu.memory_space<vmem>>, vector<32x64xf32>
    %cst_126 = arith.constant dense<0.000000e+00> : vector<168x64xf32>
    %162 = tpu.matmul %160, %161, %cst_126 {dimension_numbers = #tpu.dot_dimension_numbers<[1], [0], [0], [1], [0, 0, 1, 1], [], []>} : vector<168x32xf32>, vector<32x64xf32>, vector<168x64xf32> -> vector<168x64xf32>
    %163 = arith.addf %159, %162 : vector<168x64xf32>
    %c0_127 = arith.constant 0 : index
    %c0_128 = arith.constant 0 : index
    %164 = vector.load %arg16[%c0_127, %c0_128] : memref<168x64xf32, #tpu.memory_space<vmem>>, vector<168x64xf32>
    %165 = arith.addf %164, %163 : vector<168x64xf32>
    %c0_129 = arith.constant 0 : index
    %c0_130 = arith.constant 0 : index
    %166 = vector.load %arg16[%c0_129, %c0_130] : memref<168x64xf32, #tpu.memory_space<vmem>>, vector<168x64xf32>
    tpu.vector_store %arg16[%c0_129, %c0_130], %165 {strides = array<i32>} : memref<168x64xf32, #tpu.memory_space<vmem>>, vector<168x64xf32>,
    %c28_131 = arith.constant 28 : index
    %c0_132 = arith.constant 0 : index
    %167 = vector.load %arg15[%c28_131, %c0_132] : memref<198x32xf32, #tpu.memory_space<vmem>>, vector<168x32xf32>
    %c192 = arith.constant 192 : index
    %c0_133 = arith.constant 0 : index
    %168 = vector.load %arg5[%c192, %c0_133] : memref<288x64xf32, #tpu.memory_space<vmem>>, vector<32x64xf32>
    %cst_134 = arith.constant dense<0.000000e+00> : vector<168x64xf32>
    %169 = tpu.matmul %167, %168, %cst_134 {dimension_numbers = #tpu.dot_dimension_numbers<[1], [0], [0], [1], [0, 0, 1, 1], [], []>} : vector<168x32xf32>, vector<32x64xf32>, vector<168x64xf32> -> vector<168x64xf32>
    %c29 = arith.constant 29 : index
    %c0_135 = arith.constant 0 : index
    %170 = vector.load %arg15[%c29, %c0_135] : memref<198x32xf32, #tpu.memory_space<vmem>>, vector<168x32xf32>
    %c224 = arith.constant 224 : index
    %c0_136 = arith.constant 0 : index
    %171 = vector.load %arg5[%c224, %c0_136] : memref<288x64xf32, #tpu.memory_space<vmem>>, vector<32x64xf32>
    %cst_137 = arith.constant dense<0.000000e+00> : vector<168x64xf32>
    %172 = tpu.matmul %170, %171, %cst_137 {dimension_numbers = #tpu.dot_dimension_numbers<[1], [0], [0], [1], [0, 0, 1, 1], [], []>} : vector<168x32xf32>, vector<32x64xf32>, vector<168x64xf32> -> vector<168x64xf32>
    %173 = arith.addf %169, %172 : vector<168x64xf32>
    %c30_138 = arith.constant 30 : index
    %c0_139 = arith.constant 0 : index
    %174 = vector.load %arg15[%c30_138, %c0_139] : memref<198x32xf32, #tpu.memory_space<vmem>>, vector<168x32xf32>
    %c256 = arith.constant 256 : index
    %c0_140 = arith.constant 0 : index
    %175 = vector.load %arg5[%c256, %c0_140] : memref<288x64xf32, #tpu.memory_space<vmem>>, vector<32x64xf32>
    %cst_141 = arith.constant dense<0.000000e+00> : vector<168x64xf32>
    %176 = tpu.matmul %174, %175, %cst_141 {dimension_numbers = #tpu.dot_dimension_numbers<[1], [0], [0], [1], [0, 0, 1, 1], [], []>} : vector<168x32xf32>, vector<32x64xf32>, vector<168x64xf32> -> vector<168x64xf32>
    %177 = arith.addf %173, %176 : vector<168x64xf32>
    %c0_142 = arith.constant 0 : index
    %c0_143 = arith.constant 0 : index
    %178 = vector.load %arg16[%c0_142, %c0_143] : memref<168x64xf32, #tpu.memory_space<vmem>>, vector<168x64xf32>
    %179 = arith.addf %178, %177 : vector<168x64xf32>
    %c0_144 = arith.constant 0 : index
    %c0_145 = arith.constant 0 : index
    %180 = vector.load %arg6[%c0_144, %c0_145] : memref<1x64xf32, #tpu.memory_space<vmem>>, vector<1x64xf32>
    %181 = vector.broadcast %180 : vector<1x64xf32> to vector<168x64xf32>
    %182 = arith.mulf %179, %181 : vector<168x64xf32>
    %c0_146 = arith.constant 0 : index
    %c0_147 = arith.constant 0 : index
    %183 = vector.load %arg7[%c0_146, %c0_147] : memref<1x64xf32, #tpu.memory_space<vmem>>, vector<1x64xf32>
    %184 = vector.broadcast %183 : vector<1x64xf32> to vector<168x64xf32>
    %185 = arith.addf %182, %184 : vector<168x64xf32>
    %cst_148 = arith.constant 0.000000e+00 : f32
    %186 = vector.broadcast %cst_148 : f32 to vector<168x64xf32>
    %187 = arith.maximumf %185, %186 : vector<168x64xf32>
    %c0_149 = arith.constant 0 : index
    %c0_150 = arith.constant 0 : index
    %188 = vector.load %arg16[%c0_149, %c0_150] : memref<168x64xf32, #tpu.memory_space<vmem>>, vector<168x64xf32>
    tpu.vector_store %arg16[%c0_149, %c0_150], %187 {strides = array<i32>} : memref<168x64xf32, #tpu.memory_space<vmem>>, vector<168x64xf32>,
    %c0_151 = arith.constant 0 : index
    %c0_152 = arith.constant 0 : index
    %189 = tpu.strided_load %arg16[%c0_151, %c0_152] {strides = array<i32: 2, 1>} : memref<168x64xf32, #tpu.memory_space<vmem>>, vector<6x64xf32>
    %c1_153 = arith.constant 1 : index
    %c0_154 = arith.constant 0 : index
    %190 = tpu.strided_load %arg16[%c1_153, %c0_154] {strides = array<i32: 2, 1>} : memref<168x64xf32, #tpu.memory_space<vmem>>, vector<6x64xf32>
    %191 = arith.maximumf %189, %190 : vector<6x64xf32>
    %c14_155 = arith.constant 14 : index
    %c0_156 = arith.constant 0 : index
    %192 = tpu.strided_load %arg16[%c14_155, %c0_156] {strides = array<i32: 2, 1>} : memref<168x64xf32, #tpu.memory_space<vmem>>, vector<6x64xf32>
    %c15_157 = arith.constant 15 : index
    %c0_158 = arith.constant 0 : index
    %193 = tpu.strided_load %arg16[%c15_157, %c0_158] {strides = array<i32: 2, 1>} : memref<168x64xf32, #tpu.memory_space<vmem>>, vector<6x64xf32>
    %194 = arith.maximumf %192, %193 : vector<6x64xf32>
    %195 = arith.maximumf %191, %194 : vector<6x64xf32>
    %c0_159 = arith.constant 0 : index
    %c0_160 = arith.constant 0 : index
    %196 = vector.load %arg17[%c0_159, %c0_160] : memref<38x64xf32, #tpu.memory_space<vmem>>, vector<6x64xf32>
    tpu.vector_store %arg17[%c0_159, %c0_160], %195 {strides = array<i32>} : memref<38x64xf32, #tpu.memory_space<vmem>>, vector<6x64xf32>,
    %c28_161 = arith.constant 28 : index
    %c0_162 = arith.constant 0 : index
    %197 = tpu.strided_load %arg16[%c28_161, %c0_162] {strides = array<i32: 2, 1>} : memref<168x64xf32, #tpu.memory_space<vmem>>, vector<6x64xf32>
    %c29_163 = arith.constant 29 : index
    %c0_164 = arith.constant 0 : index
    %198 = tpu.strided_load %arg16[%c29_163, %c0_164] {strides = array<i32: 2, 1>} : memref<168x64xf32, #tpu.memory_space<vmem>>, vector<6x64xf32>
    %199 = arith.maximumf %197, %198 : vector<6x64xf32>
    %c42_165 = arith.constant 42 : index
    %c0_166 = arith.constant 0 : index
    %200 = tpu.strided_load %arg16[%c42_165, %c0_166] {strides = array<i32: 2, 1>} : memref<168x64xf32, #tpu.memory_space<vmem>>, vector<6x64xf32>
    %c43 = arith.constant 43 : index
    %c0_167 = arith.constant 0 : index
    %201 = tpu.strided_load %arg16[%c43, %c0_167] {strides = array<i32: 2, 1>} : memref<168x64xf32, #tpu.memory_space<vmem>>, vector<6x64xf32>
    %202 = arith.maximumf %200, %201 : vector<6x64xf32>
    %203 = arith.maximumf %199, %202 : vector<6x64xf32>
    %c6 = arith.constant 6 : index
    %c0_168 = arith.constant 0 : index
    %204 = vector.load %arg17[%c6, %c0_168] : memref<38x64xf32, #tpu.memory_space<vmem>>, vector<6x64xf32>
    tpu.vector_store %arg17[%c6, %c0_168], %203 {strides = array<i32>} : memref<38x64xf32, #tpu.memory_space<vmem>>, vector<6x64xf32>,
    %c56_169 = arith.constant 56 : index
    %c0_170 = arith.constant 0 : index
    %205 = tpu.strided_load %arg16[%c56_169, %c0_170] {strides = array<i32: 2, 1>} : memref<168x64xf32, #tpu.memory_space<vmem>>, vector<6x64xf32>
    %c57 = arith.constant 57 : index
    %c0_171 = arith.constant 0 : index
    %206 = tpu.strided_load %arg16[%c57, %c0_171] {strides = array<i32: 2, 1>} : memref<168x64xf32, #tpu.memory_space<vmem>>, vector<6x64xf32>
    %207 = arith.maximumf %205, %206 : vector<6x64xf32>
    %c70_172 = arith.constant 70 : index
    %c0_173 = arith.constant 0 : index
    %208 = tpu.strided_load %arg16[%c70_172, %c0_173] {strides = array<i32: 2, 1>} : memref<168x64xf32, #tpu.memory_space<vmem>>, vector<6x64xf32>
    %c71 = arith.constant 71 : index
    %c0_174 = arith.constant 0 : index
    %209 = tpu.strided_load %arg16[%c71, %c0_174] {strides = array<i32: 2, 1>} : memref<168x64xf32, #tpu.memory_space<vmem>>, vector<6x64xf32>
    %210 = arith.maximumf %208, %209 : vector<6x64xf32>
    %211 = arith.maximumf %207, %210 : vector<6x64xf32>
    %c12_175 = arith.constant 12 : index
    %c0_176 = arith.constant 0 : index
    %212 = vector.load %arg17[%c12_175, %c0_176] : memref<38x64xf32, #tpu.memory_space<vmem>>, vector<6x64xf32>
    tpu.vector_store %arg17[%c12_175, %c0_176], %211 {strides = array<i32>} : memref<38x64xf32, #tpu.memory_space<vmem>>, vector<6x64xf32>,
    %c84_177 = arith.constant 84 : index
    %c0_178 = arith.constant 0 : index
    %213 = tpu.strided_load %arg16[%c84_177, %c0_178] {strides = array<i32: 2, 1>} : memref<168x64xf32, #tpu.memory_space<vmem>>, vector<6x64xf32>
    %c85 = arith.constant 85 : index
    %c0_179 = arith.constant 0 : index
    %214 = tpu.strided_load %arg16[%c85, %c0_179] {strides = array<i32: 2, 1>} : memref<168x64xf32, #tpu.memory_space<vmem>>, vector<6x64xf32>
    %215 = arith.maximumf %213, %214 : vector<6x64xf32>
    %c98_180 = arith.constant 98 : index
    %c0_181 = arith.constant 0 : index
    %216 = tpu.strided_load %arg16[%c98_180, %c0_181] {strides = array<i32: 2, 1>} : memref<168x64xf32, #tpu.memory_space<vmem>>, vector<6x64xf32>
    %c99 = arith.constant 99 : index
    %c0_182 = arith.constant 0 : index
    %217 = tpu.strided_load %arg16[%c99, %c0_182] {strides = array<i32: 2, 1>} : memref<168x64xf32, #tpu.memory_space<vmem>>, vector<6x64xf32>
    %218 = arith.maximumf %216, %217 : vector<6x64xf32>
    %219 = arith.maximumf %215, %218 : vector<6x64xf32>
    %c18 = arith.constant 18 : index
    %c0_183 = arith.constant 0 : index
    %220 = vector.load %arg17[%c18, %c0_183] : memref<38x64xf32, #tpu.memory_space<vmem>>, vector<6x64xf32>
    tpu.vector_store %arg17[%c18, %c0_183], %219 {strides = array<i32>} : memref<38x64xf32, #tpu.memory_space<vmem>>, vector<6x64xf32>,
    %c112_184 = arith.constant 112 : index
    %c0_185 = arith.constant 0 : index
    %221 = tpu.strided_load %arg16[%c112_184, %c0_185] {strides = array<i32: 2, 1>} : memref<168x64xf32, #tpu.memory_space<vmem>>, vector<6x64xf32>
    %c113 = arith.constant 113 : index
    %c0_186 = arith.constant 0 : index
    %222 = tpu.strided_load %arg16[%c113, %c0_186] {strides = array<i32: 2, 1>} : memref<168x64xf32, #tpu.memory_space<vmem>>, vector<6x64xf32>
    %223 = arith.maximumf %221, %222 : vector<6x64xf32>
    %c126_187 = arith.constant 126 : index
    %c0_188 = arith.constant 0 : index
    %224 = tpu.strided_load %arg16[%c126_187, %c0_188] {strides = array<i32: 2, 1>} : memref<168x64xf32, #tpu.memory_space<vmem>>, vector<6x64xf32>
    %c127 = arith.constant 127 : index
    %c0_189 = arith.constant 0 : index
    %225 = tpu.strided_load %arg16[%c127, %c0_189] {strides = array<i32: 2, 1>} : memref<168x64xf32, #tpu.memory_space<vmem>>, vector<6x64xf32>
    %226 = arith.maximumf %224, %225 : vector<6x64xf32>
    %227 = arith.maximumf %223, %226 : vector<6x64xf32>
    %c24_190 = arith.constant 24 : index
    %c0_191 = arith.constant 0 : index
    %228 = vector.load %arg17[%c24_190, %c0_191] : memref<38x64xf32, #tpu.memory_space<vmem>>, vector<6x64xf32>
    tpu.vector_store %arg17[%c24_190, %c0_191], %227 {strides = array<i32>} : memref<38x64xf32, #tpu.memory_space<vmem>>, vector<6x64xf32>,
    %c140_192 = arith.constant 140 : index
    %c0_193 = arith.constant 0 : index
    %229 = tpu.strided_load %arg16[%c140_192, %c0_193] {strides = array<i32: 2, 1>} : memref<168x64xf32, #tpu.memory_space<vmem>>, vector<6x64xf32>
    %c141 = arith.constant 141 : index
    %c0_194 = arith.constant 0 : index
    %230 = tpu.strided_load %arg16[%c141, %c0_194] {strides = array<i32: 2, 1>} : memref<168x64xf32, #tpu.memory_space<vmem>>, vector<6x64xf32>
    %231 = arith.maximumf %229, %230 : vector<6x64xf32>
    %c154_195 = arith.constant 154 : index
    %c0_196 = arith.constant 0 : index
    %232 = tpu.strided_load %arg16[%c154_195, %c0_196] {strides = array<i32: 2, 1>} : memref<168x64xf32, #tpu.memory_space<vmem>>, vector<6x64xf32>
    %c155 = arith.constant 155 : index
    %c0_197 = arith.constant 0 : index
    %233 = tpu.strided_load %arg16[%c155, %c0_197] {strides = array<i32: 2, 1>} : memref<168x64xf32, #tpu.memory_space<vmem>>, vector<6x64xf32>
    %234 = arith.maximumf %232, %233 : vector<6x64xf32>
    %235 = arith.maximumf %231, %234 : vector<6x64xf32>
    %c30_198 = arith.constant 30 : index
    %c0_199 = arith.constant 0 : index
    %236 = vector.load %arg17[%c30_198, %c0_199] : memref<38x64xf32, #tpu.memory_space<vmem>>, vector<6x64xf32>
    tpu.vector_store %arg17[%c30_198, %c0_199], %235 {strides = array<i32>} : memref<38x64xf32, #tpu.memory_space<vmem>>, vector<6x64xf32>,
    %cst_200 = arith.constant 0.000000e+00 : f32
    %237 = vector.broadcast %cst_200 : f32 to vector<2x64xf32>
    %c36 = arith.constant 36 : index
    %c0_201 = arith.constant 0 : index
    %238 = vector.load %arg17[%c36, %c0_201] : memref<38x64xf32, #tpu.memory_space<vmem>>, vector<2x64xf32>
    tpu.vector_store %arg17[%c36, %c0_201], %237 {strides = array<i32>} : memref<38x64xf32, #tpu.memory_space<vmem>>, vector<2x64xf32>,
    %c0_202 = arith.constant 0 : index
    %c0_203 = arith.constant 0 : index
    %239 = vector.load %arg17[%c0_202, %c0_203] : memref<38x64xf32, #tpu.memory_space<vmem>>, vector<24x64xf32>
    %c0_204 = arith.constant 0 : index
    %c0_205 = arith.constant 0 : index
    %240 = vector.load %arg8[%c0_204, %c0_205] : memref<576x128xf32, #tpu.memory_space<vmem>>, vector<64x128xf32>
    %cst_206 = arith.constant dense<0.000000e+00> : vector<24x128xf32>
    %241 = tpu.matmul %239, %240, %cst_206 {dimension_numbers = #tpu.dot_dimension_numbers<[1], [0], [0], [1], [0, 0, 1, 1], [], []>} : vector<24x64xf32>, vector<64x128xf32>, vector<24x128xf32> -> vector<24x128xf32>
    %c1_207 = arith.constant 1 : index
    %c0_208 = arith.constant 0 : index
    %242 = vector.load %arg17[%c1_207, %c0_208] : memref<38x64xf32, #tpu.memory_space<vmem>>, vector<24x64xf32>
    %c64_209 = arith.constant 64 : index
    %c0_210 = arith.constant 0 : index
    %243 = vector.load %arg8[%c64_209, %c0_210] : memref<576x128xf32, #tpu.memory_space<vmem>>, vector<64x128xf32>
    %cst_211 = arith.constant dense<0.000000e+00> : vector<24x128xf32>
    %244 = tpu.matmul %242, %243, %cst_211 {dimension_numbers = #tpu.dot_dimension_numbers<[1], [0], [0], [1], [0, 0, 1, 1], [], []>} : vector<24x64xf32>, vector<64x128xf32>, vector<24x128xf32> -> vector<24x128xf32>
    %245 = arith.addf %241, %244 : vector<24x128xf32>
    %c2_212 = arith.constant 2 : index
    %c0_213 = arith.constant 0 : index
    %246 = vector.load %arg17[%c2_212, %c0_213] : memref<38x64xf32, #tpu.memory_space<vmem>>, vector<24x64xf32>
    %c128_214 = arith.constant 128 : index
    %c0_215 = arith.constant 0 : index
    %247 = vector.load %arg8[%c128_214, %c0_215] : memref<576x128xf32, #tpu.memory_space<vmem>>, vector<64x128xf32>
    %cst_216 = arith.constant dense<0.000000e+00> : vector<24x128xf32>
    %248 = tpu.matmul %246, %247, %cst_216 {dimension_numbers = #tpu.dot_dimension_numbers<[1], [0], [0], [1], [0, 0, 1, 1], [], []>} : vector<24x64xf32>, vector<64x128xf32>, vector<24x128xf32> -> vector<24x128xf32>
    %249 = arith.addf %245, %248 : vector<24x128xf32>
    %c0_217 = arith.constant 0 : index
    %c0_218 = arith.constant 0 : index
    %250 = vector.load %arg18[%c0_217, %c0_218] : memref<24x128xf32, #tpu.memory_space<vmem>>, vector<24x128xf32>
    tpu.vector_store %arg18[%c0_217, %c0_218], %249 {strides = array<i32>} : memref<24x128xf32, #tpu.memory_space<vmem>>, vector<24x128xf32>,
    %c6_219 = arith.constant 6 : index
    %c0_220 = arith.constant 0 : index
    %251 = vector.load %arg17[%c6_219, %c0_220] : memref<38x64xf32, #tpu.memory_space<vmem>>, vector<24x64xf32>
    %c192_221 = arith.constant 192 : index
    %c0_222 = arith.constant 0 : index
    %252 = vector.load %arg8[%c192_221, %c0_222] : memref<576x128xf32, #tpu.memory_space<vmem>>, vector<64x128xf32>
    %cst_223 = arith.constant dense<0.000000e+00> : vector<24x128xf32>
    %253 = tpu.matmul %251, %252, %cst_223 {dimension_numbers = #tpu.dot_dimension_numbers<[1], [0], [0], [1], [0, 0, 1, 1], [], []>} : vector<24x64xf32>, vector<64x128xf32>, vector<24x128xf32> -> vector<24x128xf32>
    %c7 = arith.constant 7 : index
    %c0_224 = arith.constant 0 : index
    %254 = vector.load %arg17[%c7, %c0_224] : memref<38x64xf32, #tpu.memory_space<vmem>>, vector<24x64xf32>
    %c256_225 = arith.constant 256 : index
    %c0_226 = arith.constant 0 : index
    %255 = vector.load %arg8[%c256_225, %c0_226] : memref<576x128xf32, #tpu.memory_space<vmem>>, vector<64x128xf32>
    %cst_227 = arith.constant dense<0.000000e+00> : vector<24x128xf32>
    %256 = tpu.matmul %254, %255, %cst_227 {dimension_numbers = #tpu.dot_dimension_numbers<[1], [0], [0], [1], [0, 0, 1, 1], [], []>} : vector<24x64xf32>, vector<64x128xf32>, vector<24x128xf32> -> vector<24x128xf32>
    %257 = arith.addf %253, %256 : vector<24x128xf32>
    %c8 = arith.constant 8 : index
    %c0_228 = arith.constant 0 : index
    %258 = vector.load %arg17[%c8, %c0_228] : memref<38x64xf32, #tpu.memory_space<vmem>>, vector<24x64xf32>
    %c320 = arith.constant 320 : index
    %c0_229 = arith.constant 0 : index
    %259 = vector.load %arg8[%c320, %c0_229] : memref<576x128xf32, #tpu.memory_space<vmem>>, vector<64x128xf32>
    %cst_230 = arith.constant dense<0.000000e+00> : vector<24x128xf32>
    %260 = tpu.matmul %258, %259, %cst_230 {dimension_numbers = #tpu.dot_dimension_numbers<[1], [0], [0], [1], [0, 0, 1, 1], [], []>} : vector<24x64xf32>, vector<64x128xf32>, vector<24x128xf32> -> vector<24x128xf32>
    %261 = arith.addf %257, %260 : vector<24x128xf32>
    %c0_231 = arith.constant 0 : index
    %c0_232 = arith.constant 0 : index
    %262 = vector.load %arg18[%c0_231, %c0_232] : memref<24x128xf32, #tpu.memory_space<vmem>>, vector<24x128xf32>
    %263 = arith.addf %262, %261 : vector<24x128xf32>
    %c0_233 = arith.constant 0 : index
    %c0_234 = arith.constant 0 : index
    %264 = vector.load %arg18[%c0_233, %c0_234] : memref<24x128xf32, #tpu.memory_space<vmem>>, vector<24x128xf32>
    tpu.vector_store %arg18[%c0_233, %c0_234], %263 {strides = array<i32>} : memref<24x128xf32, #tpu.memory_space<vmem>>, vector<24x128xf32>,
    %c12_235 = arith.constant 12 : index
    %c0_236 = arith.constant 0 : index
    %265 = vector.load %arg17[%c12_235, %c0_236] : memref<38x64xf32, #tpu.memory_space<vmem>>, vector<24x64xf32>
    %c384 = arith.constant 384 : index
    %c0_237 = arith.constant 0 : index
    %266 = vector.load %arg8[%c384, %c0_237] : memref<576x128xf32, #tpu.memory_space<vmem>>, vector<64x128xf32>
    %cst_238 = arith.constant dense<0.000000e+00> : vector<24x128xf32>
    %267 = tpu.matmul %265, %266, %cst_238 {dimension_numbers = #tpu.dot_dimension_numbers<[1], [0], [0], [1], [0, 0, 1, 1], [], []>} : vector<24x64xf32>, vector<64x128xf32>, vector<24x128xf32> -> vector<24x128xf32>
    %c13 = arith.constant 13 : index
    %c0_239 = arith.constant 0 : index
    %268 = vector.load %arg17[%c13, %c0_239] : memref<38x64xf32, #tpu.memory_space<vmem>>, vector<24x64xf32>
    %c448 = arith.constant 448 : index
    %c0_240 = arith.constant 0 : index
    %269 = vector.load %arg8[%c448, %c0_240] : memref<576x128xf32, #tpu.memory_space<vmem>>, vector<64x128xf32>
    %cst_241 = arith.constant dense<0.000000e+00> : vector<24x128xf32>
    %270 = tpu.matmul %268, %269, %cst_241 {dimension_numbers = #tpu.dot_dimension_numbers<[1], [0], [0], [1], [0, 0, 1, 1], [], []>} : vector<24x64xf32>, vector<64x128xf32>, vector<24x128xf32> -> vector<24x128xf32>
    %271 = arith.addf %267, %270 : vector<24x128xf32>
    %c14_242 = arith.constant 14 : index
    %c0_243 = arith.constant 0 : index
    %272 = vector.load %arg17[%c14_242, %c0_243] : memref<38x64xf32, #tpu.memory_space<vmem>>, vector<24x64xf32>
    %c512 = arith.constant 512 : index
    %c0_244 = arith.constant 0 : index
    %273 = vector.load %arg8[%c512, %c0_244] : memref<576x128xf32, #tpu.memory_space<vmem>>, vector<64x128xf32>
    %cst_245 = arith.constant dense<0.000000e+00> : vector<24x128xf32>
    %274 = tpu.matmul %272, %273, %cst_245 {dimension_numbers = #tpu.dot_dimension_numbers<[1], [0], [0], [1], [0, 0, 1, 1], [], []>} : vector<24x64xf32>, vector<64x128xf32>, vector<24x128xf32> -> vector<24x128xf32>
    %275 = arith.addf %271, %274 : vector<24x128xf32>
    %c0_246 = arith.constant 0 : index
    %c0_247 = arith.constant 0 : index
    %276 = vector.load %arg18[%c0_246, %c0_247] : memref<24x128xf32, #tpu.memory_space<vmem>>, vector<24x128xf32>
    %277 = arith.addf %276, %275 : vector<24x128xf32>
    %c0_248 = arith.constant 0 : index
    %c0_249 = arith.constant 0 : index
    %278 = vector.load %arg9[%c0_248, %c0_249] : memref<1x128xf32, #tpu.memory_space<vmem>>, vector<1x128xf32>
    %279 = vector.broadcast %278 : vector<1x128xf32> to vector<24x128xf32>
    %280 = arith.mulf %277, %279 : vector<24x128xf32>
    %c0_250 = arith.constant 0 : index
    %c0_251 = arith.constant 0 : index
    %281 = vector.load %arg10[%c0_250, %c0_251] : memref<1x128xf32, #tpu.memory_space<vmem>>, vector<1x128xf32>
    %282 = vector.broadcast %281 : vector<1x128xf32> to vector<24x128xf32>
    %283 = arith.addf %280, %282 : vector<24x128xf32>
    %cst_252 = arith.constant 0.000000e+00 : f32
    %284 = vector.broadcast %cst_252 : f32 to vector<24x128xf32>
    %285 = arith.maximumf %283, %284 : vector<24x128xf32>
    %c0_253 = arith.constant 0 : index
    %c0_254 = arith.constant 0 : index
    %286 = vector.load %arg18[%c0_253, %c0_254] : memref<24x128xf32, #tpu.memory_space<vmem>>, vector<24x128xf32>
    tpu.vector_store %arg18[%c0_253, %c0_254], %285 {strides = array<i32>} : memref<24x128xf32, #tpu.memory_space<vmem>>, vector<24x128xf32>,
    %c0_255 = arith.constant 0 : index
    %c0_256 = arith.constant 0 : index
    %287 = tpu.strided_load %arg18[%c0_255, %c0_256] {strides = array<i32: 2, 1>} : memref<24x128xf32, #tpu.memory_space<vmem>>, vector<2x128xf32>
    %c1_257 = arith.constant 1 : index
    %c0_258 = arith.constant 0 : index
    %288 = tpu.strided_load %arg18[%c1_257, %c0_258] {strides = array<i32: 2, 1>} : memref<24x128xf32, #tpu.memory_space<vmem>>, vector<2x128xf32>
    %289 = arith.maximumf %287, %288 : vector<2x128xf32>
    %c6_259 = arith.constant 6 : index
    %c0_260 = arith.constant 0 : index
    %290 = tpu.strided_load %arg18[%c6_259, %c0_260] {strides = array<i32: 2, 1>} : memref<24x128xf32, #tpu.memory_space<vmem>>, vector<2x128xf32>
    %c7_261 = arith.constant 7 : index
    %c0_262 = arith.constant 0 : index
    %291 = tpu.strided_load %arg18[%c7_261, %c0_262] {strides = array<i32: 2, 1>} : memref<24x128xf32, #tpu.memory_space<vmem>>, vector<2x128xf32>
    %292 = arith.maximumf %290, %291 : vector<2x128xf32>
    %293 = arith.maximumf %289, %292 : vector<2x128xf32>
    %c0_263 = arith.constant 0 : index
    %c0_264 = arith.constant 0 : index
    %294 = vector.load %arg19[%c0_263, %c0_264] : memref<6x128xf32, #tpu.memory_space<vmem>>, vector<2x128xf32>
    tpu.vector_store %arg19[%c0_263, %c0_264], %293 {strides = array<i32>} : memref<6x128xf32, #tpu.memory_space<vmem>>, vector<2x128xf32>,
    %c12_265 = arith.constant 12 : index
    %c0_266 = arith.constant 0 : index
    %295 = tpu.strided_load %arg18[%c12_265, %c0_266] {strides = array<i32: 2, 1>} : memref<24x128xf32, #tpu.memory_space<vmem>>, vector<2x128xf32>
    %c13_267 = arith.constant 13 : index
    %c0_268 = arith.constant 0 : index
    %296 = tpu.strided_load %arg18[%c13_267, %c0_268] {strides = array<i32: 2, 1>} : memref<24x128xf32, #tpu.memory_space<vmem>>, vector<2x128xf32>
    %297 = arith.maximumf %295, %296 : vector<2x128xf32>
    %c18_269 = arith.constant 18 : index
    %c0_270 = arith.constant 0 : index
    %298 = tpu.strided_load %arg18[%c18_269, %c0_270] {strides = array<i32: 2, 1>} : memref<24x128xf32, #tpu.memory_space<vmem>>, vector<2x128xf32>
    %c19 = arith.constant 19 : index
    %c0_271 = arith.constant 0 : index
    %299 = tpu.strided_load %arg18[%c19, %c0_271] {strides = array<i32: 2, 1>} : memref<24x128xf32, #tpu.memory_space<vmem>>, vector<2x128xf32>
    %300 = arith.maximumf %298, %299 : vector<2x128xf32>
    %301 = arith.maximumf %297, %300 : vector<2x128xf32>
    %c2_272 = arith.constant 2 : index
    %c0_273 = arith.constant 0 : index
    %302 = vector.load %arg19[%c2_272, %c0_273] : memref<6x128xf32, #tpu.memory_space<vmem>>, vector<2x128xf32>
    tpu.vector_store %arg19[%c2_272, %c0_273], %301 {strides = array<i32>} : memref<6x128xf32, #tpu.memory_space<vmem>>, vector<2x128xf32>,
    %cst_274 = arith.constant 0.000000e+00 : f32
    %303 = vector.broadcast %cst_274 : f32 to vector<2x128xf32>
    %c4 = arith.constant 4 : index
    %c0_275 = arith.constant 0 : index
    %304 = vector.load %arg19[%c4, %c0_275] : memref<6x128xf32, #tpu.memory_space<vmem>>, vector<2x128xf32>
    tpu.vector_store %arg19[%c4, %c0_275], %303 {strides = array<i32>} : memref<6x128xf32, #tpu.memory_space<vmem>>, vector<2x128xf32>,
    %c0_276 = arith.constant 0 : index
    %c0_277 = arith.constant 0 : index
    %305 = vector.load %arg12[%c0_276, %c0_277] : memref<1x16xf32, #tpu.memory_space<vmem>>, vector<1x16xf32>
    %c0_278 = arith.constant 0 : index
    %c0_279 = arith.constant 0 : index
    %306 = vector.load %arg19[%c0_278, %c0_279] : memref<6x128xf32, #tpu.memory_space<vmem>>, vector<1x128xf32>
    %c0_280 = arith.constant 0 : index
    %c0_281 = arith.constant 0 : index
    %307 = vector.load %arg11[%c0_280, %c0_281] : memref<512x16xf32, #tpu.memory_space<vmem>>, vector<128x16xf32>
    %cst_282 = arith.constant dense<0.000000e+00> : vector<1x16xf32>
    %308 = tpu.matmul %306, %307, %cst_282 {dimension_numbers = #tpu.dot_dimension_numbers<[1], [0], [0], [1], [0, 0, 1, 1], [], []>} : vector<1x128xf32>, vector<128x16xf32>, vector<1x16xf32> -> vector<1x16xf32>
    %309 = arith.addf %305, %308 : vector<1x16xf32>
    %c1_283 = arith.constant 1 : index
    %c0_284 = arith.constant 0 : index
    %310 = vector.load %arg19[%c1_283, %c0_284] : memref<6x128xf32, #tpu.memory_space<vmem>>, vector<1x128xf32>
    %c128_285 = arith.constant 128 : index
    %c0_286 = arith.constant 0 : index
    %311 = vector.load %arg11[%c128_285, %c0_286] : memref<512x16xf32, #tpu.memory_space<vmem>>, vector<128x16xf32>
    %cst_287 = arith.constant dense<0.000000e+00> : vector<1x16xf32>
    %312 = tpu.matmul %310, %311, %cst_287 {dimension_numbers = #tpu.dot_dimension_numbers<[1], [0], [0], [1], [0, 0, 1, 1], [], []>} : vector<1x128xf32>, vector<128x16xf32>, vector<1x16xf32> -> vector<1x16xf32>
    %313 = arith.addf %309, %312 : vector<1x16xf32>
    %c2_288 = arith.constant 2 : index
    %c0_289 = arith.constant 0 : index
    %314 = vector.load %arg19[%c2_288, %c0_289] : memref<6x128xf32, #tpu.memory_space<vmem>>, vector<1x128xf32>
    %c256_290 = arith.constant 256 : index
    %c0_291 = arith.constant 0 : index
    %315 = vector.load %arg11[%c256_290, %c0_291] : memref<512x16xf32, #tpu.memory_space<vmem>>, vector<128x16xf32>
    %cst_292 = arith.constant dense<0.000000e+00> : vector<1x16xf32>
    %316 = tpu.matmul %314, %315, %cst_292 {dimension_numbers = #tpu.dot_dimension_numbers<[1], [0], [0], [1], [0, 0, 1, 1], [], []>} : vector<1x128xf32>, vector<128x16xf32>, vector<1x16xf32> -> vector<1x16xf32>
    %317 = arith.addf %313, %316 : vector<1x16xf32>
    %c3 = arith.constant 3 : index
    %c0_293 = arith.constant 0 : index
    %318 = vector.load %arg19[%c3, %c0_293] : memref<6x128xf32, #tpu.memory_space<vmem>>, vector<1x128xf32>
    %c384_294 = arith.constant 384 : index
    %c0_295 = arith.constant 0 : index
    %319 = vector.load %arg11[%c384_294, %c0_295] : memref<512x16xf32, #tpu.memory_space<vmem>>, vector<128x16xf32>
    %cst_296 = arith.constant dense<0.000000e+00> : vector<1x16xf32>
    %320 = tpu.matmul %318, %319, %cst_296 {dimension_numbers = #tpu.dot_dimension_numbers<[1], [0], [0], [1], [0, 0, 1, 1], [], []>} : vector<1x128xf32>, vector<128x16xf32>, vector<1x16xf32> -> vector<1x16xf32>
    %321 = arith.addf %317, %320 : vector<1x16xf32>
    %c0_297 = arith.constant 0 : index
    %c0_298 = arith.constant 0 : index
    %c0_299 = arith.constant 0 : index
    %322 = vector.load %arg13[%c0_297, %c0_298, %c0_299] : memref<1x1x16xf32, #tpu.memory_space<vmem>>, vector<1x1x16xf32>
    %323 = vector.shape_cast %322 : vector<1x1x16xf32> to vector<1x16xf32>
    %324 = vector.shape_cast %321 : vector<1x16xf32> to vector<1x1x16xf32>
    tpu.vector_store %arg13[%c0_297, %c0_298, %c0_299], %324 {strides = array<i32>} : memref<1x1x16xf32, #tpu.memory_space<vmem>>, vector<1x1x16xf32>,
    return
  }
  func.func @transform_0(%arg0: i32) -> (i32, i32, i32) {
    %c0_i32 = arith.constant 0 : i32
    %c0_i32_0 = arith.constant 0 : i32
    %c0_i32_1 = arith.constant 0 : i32
    return %arg0, %c0_i32, %c0_i32_0 : i32, i32, i32
  }
  func.func @transform_1(%arg0: i32) -> (i32, i32) {
    %c0_i32 = arith.constant 0 : i32
    %c0_i32_0 = arith.constant 0 : i32
    %c0_i32_1 = arith.constant 0 : i32
    return %c0_i32, %c0_i32_0 : i32, i32
  }
  func.func @transform_2(%arg0: i32) -> (i32, i32) {
    %c0_i32 = arith.constant 0 : i32
    %c0_i32_0 = arith.constant 0 : i32
    %c0_i32_1 = arith.constant 0 : i32
    return %c0_i32, %c0_i32_0 : i32, i32
  }
  func.func @transform_3(%arg0: i32) -> (i32, i32) {
    %c0_i32 = arith.constant 0 : i32
    %c0_i32_0 = arith.constant 0 : i32
    %c0_i32_1 = arith.constant 0 : i32
    return %c0_i32, %c0_i32_0 : i32, i32
  }
  func.func @transform_4(%arg0: i32) -> (i32, i32) {
    %c0_i32 = arith.constant 0 : i32
    %c0_i32_0 = arith.constant 0 : i32
    %c0_i32_1 = arith.constant 0 : i32
    return %c0_i32, %c0_i32_0 : i32, i32
  }
  func.func @transform_5(%arg0: i32) -> (i32, i32) {
    %c0_i32 = arith.constant 0 : i32
    %c0_i32_0 = arith.constant 0 : i32
    %c0_i32_1 = arith.constant 0 : i32
    return %c0_i32, %c0_i32_0 : i32, i32
  }
  func.func @transform_6(%arg0: i32) -> (i32, i32) {
    %c0_i32 = arith.constant 0 : i32
    %c0_i32_0 = arith.constant 0 : i32
    %c0_i32_1 = arith.constant 0 : i32
    return %c0_i32, %c0_i32_0 : i32, i32
  }
  func.func @transform_7(%arg0: i32) -> (i32, i32) {
    %c0_i32 = arith.constant 0 : i32
    %c0_i32_0 = arith.constant 0 : i32
    %c0_i32_1 = arith.constant 0 : i32
    return %c0_i32, %c0_i32_0 : i32, i32
  }
  func.func @transform_8(%arg0: i32) -> (i32, i32) {
    %c0_i32 = arith.constant 0 : i32
    %c0_i32_0 = arith.constant 0 : i32
    %c0_i32_1 = arith.constant 0 : i32
    return %c0_i32, %c0_i32_0 : i32, i32
  }
  func.func @transform_9(%arg0: i32) -> (i32, i32) {
    %c0_i32 = arith.constant 0 : i32
    %c0_i32_0 = arith.constant 0 : i32
    %c0_i32_1 = arith.constant 0 : i32
    return %c0_i32, %c0_i32_0 : i32, i32
  }
  func.func @transform_10(%arg0: i32) -> (i32, i32) {
    %c0_i32 = arith.constant 0 : i32
    %c0_i32_0 = arith.constant 0 : i32
    %c0_i32_1 = arith.constant 0 : i32
    return %c0_i32, %c0_i32_0 : i32, i32
  }
  func.func @transform_11(%arg0: i32) -> (i32, i32) {
    %c0_i32 = arith.constant 0 : i32
    %c0_i32_0 = arith.constant 0 : i32
    %c0_i32_1 = arith.constant 0 : i32
    return %c0_i32, %c0_i32_0 : i32, i32
  }
  func.func @transform_12(%arg0: i32) -> (i32, i32, i32) {
    %c0_i32 = arith.constant 0 : i32
    %c0_i32_0 = arith.constant 0 : i32
    %c0_i32_1 = arith.constant 0 : i32
    return %arg0, %c0_i32, %c0_i32_0 : i32, i32, i32
  }
}

</mosaic_0001>

<bundles_post_ra>
// kernel: feature_extractor.1
= control target key start
LH: loop header
LB: loop body
LE: loop exit
PB: predicated region body
PF: predicated region fallthrough
CT: control target
= control target key end

     0   :  { %s10028_s0 = inlined_call_operand.vmem [shape: f32[2,900,12], index: 0, kind: input, shape index: {}]   ;;  %s10029_s1 = inlined_call_operand.vmem [shape: f32[36,32], index: 1, kind: input, shape index: {}]   ;;  %s10030_s2 = inlined_call_operand.vmem [shape: f32[1,32], index: 2, kind: input, shape index: {}]   ;;  %s10031_s3 = inlined_call_operand.vmem [shape: f32[1,32], index: 3, kind: input, shape index: {}]   ;;  %s10032_s4 = inlined_call_operand.vmem [shape: f32[288,64], index: 4, kind: input, shape index: {}]   ;;  %s10033_s5 = inlined_call_operand.vmem [shape: f32[1,64], index: 5, kind: input, shape index: {}]   ;;  %s10034_s6 = inlined_call_operand.vmem [shape: f32[1,64], index: 6, kind: input, shape index: {}]   ;;  %s10035_s7 = inlined_call_operand.vmem [shape: f32[576,128], index: 7, kind: input, shape index: {}]   ;;  %s10036_s8 = inlined_call_operand.vmem [shape: f32[1,128], index: 8, kind: input, shape index: {}]   ;;  %s10037_s9 = inlined_call_operand.vmem [shape: f32[1,128], index: 9, kind: input, shape index: {}]   ;;  %s10038_s10 = inlined_call_operand.vmem [shape: f32[512,16], index: 10, kind: input, shape index: {}]   ;;  %s10039_s11 = inlined_call_operand.vmem [shape: f32[1,16], index: 11, kind: input, shape index: {}]   ;;  %s10040_s12 = inlined_call_operand.hbm [shape: f32[2,1,16], index: 12, kind: output, shape index: {}]  }
   0x1   :  { %10041 = sst [smem:[#allocation11_spill]] %s10028_s0 }
   0x2   :  { %10042 = sst [smem:[#allocation12_spill]] %s10029_s1 }
   0x3   :  { %17 = vsyncpa [#allocation9], 0 }
   0x4   :  { %19 = vsyncpa [#allocation9 + $0x1], 0  ;;  %s7387_s21 = smov 0   ;;  %s7389_s22 = smov 0  }
   0x5   :  { %s7391_s23 = smov 0   ;;  %s7393_s24 = smov 0  }
   0x6 LB: > { %s7408_s25 = sadd.s32 4294967295, %s7319_s24   ;;  %s6657_s26 = sadd.s32 4294967294, %s7319_s24   ;;  %s7319_s24 = sphi %s7393_s24, %s10050_s24   ;;  %s7315_s23 = sphi %s7391_s23, %s10049_s23   ;;  %s7311_s22 = sphi %s7389_s22, %s10048_s22   ;;  %s7307_s21 = sphi %s7387_s21, %s10047_s21  }
   0x7   : > { %s7412_s27 = sadd.s32 1, %s7319_s24   ;;  %s289_s28 = sadd.s32 1, %s7315_s23 }
   0x8   : > { %s286_s29 = ssub.s32 %s7319_s24, %s7412_s27  ;;  %p299_p0 = scmp.ne.s32.totalorder %s7315_s23, %s7311_s22 }
   0x9   : > { %p287_p1 = scmp.eq.s32.totalorder %s286_s29, 0  ;;  %p300_p2 = scmp.eq.s32.totalorder %s7408_s25, 1 }
   0xa   : > { %p305_p3 = scmp.ne.s32.totalorder %s7311_s22, %s7307_s21  ;;  %p306_p4 = scmp.eq.s32.totalorder %s6657_s26, 1 }
   0xb   : > { %s7423_s30 = scalar_select %p287_p1, %s7315_s23, %s289_s28  }
   0xc   : > { %p7425_p5 = por %p300_p2, %p299_p0  ;;  %p7429_p6 = por %p306_p4, %p305_p3 }
   0xd   : > { %p6660_p7 = scmp.ge.s32.totalorder %s7319_s24, 1  ;;  %p365_p8 = scmp.lt.s32.totalorder %s7319_s24, 3 }
   0xf   : > { %p366_p9 = pnand %p6660_p7, %p365_p8 }
  0x10   : > { %s10045_s1 = sld [smem:[#allocation12_spill]] (!%p366_p9)  ;;  %p406_p10 = scmp.lt.s32.totalorder (!%p366_p9), %s7408_s25, 1 }
  0x11   : > { %369 = sbr.rel (%p366_p9) target bundleno = 2292 (0x8f4), region = 68  ;;  %s10046_s0 = sld [smem:[#allocation11_spill]] (!%p366_p9) }
  0x12   : > { %s404_s18 = sand.u32 (!%p366_p9), 1, %s7311_s22  }
  0x13   : > { %s405_s20 = scalar_lea.vmem (!%p366_p9), [#allocation8], %s404_s18  ;;  %s6590_s15 = scalar_lea.sflag (!%p366_p9), [#allocation9], %s404_s18 }
  0x14   : > { %s6600_s26 = sshll.u32 (!%p366_p9), %s405_s20, 4  ;;  %s6601_s26 = int_to_ptr.vmem [resolvable:$true] %s6600_s26 }
  0x16   : > { %v517_v0 = vld [vmem:[%s10045_s1 + $0x8] sm:$0xf]  ;;  %vm834_vm0 = vcmask 1043456   ;;  %v516_v1 = vld [vmem:[%s10045_s1] sm:$0xff]  ;;  %v1382_v2 = vld [vmem:[%s10045_s1 + $0x14] sm:$0xf] }
  0x17   : > { %6662 = vmatpush.msk.msra.mxu0 %vm834_vm0, %v517_v0  ;;  %7198 = vmatpush.msk.msra.mxu1 %vm834_vm0, %v517_v0  ;;  %v2454_v3 = vld [vmem:[%s10045_s1 + $0x20] sm:$0xf]  ;;  %s407_s29 = scalar_select %p406_p10, %s7408_s25, 1  ;;  %v1381_v4 = vld [vmem:[%s10045_s1 + $0xc] sm:$0xff]  ;;  %v2453_v5 = vld [vmem:[%s10045_s1 + $0x18] sm:$0xff]  ;;  %vm518_vm1 = vcmask 97280  }
  0x18   : > { %7199 = vmatpush.msk.msra.mxu2 %vm834_vm0, %v517_v0  ;;  %vm1170_vm2 = vcmask 261120   ;;  %vm3765_vm3 = vcmask 259072   ;;  %vm4079_vm4 = vcmask 254976   ;;  %vm4606_vm5 = vcmask 523264  }
  0x19   : > { %853 = vmatpush.msra.mxu0 %v516_v1  ;;  %7200 = vmatpush.msra.mxu1 %v516_v1  ;;  %s7202_s17 = smul.u32 904, %s407_s29  ;;  %vm5885_vm6 = vcmask 521216   ;;  %vm5947_vm7 = vcmask 517120   ;;  %vm6587_vm8 = vcmask 122880  }
  0x1a   : > { %7201 = vmatpush.msra.mxu2 %v516_v1 }
  0x1b   : > { %6768 = vmatpush.msk.msrb.mxu1 %vm834_vm0, %v1382_v2  ;;  %s7463_s28 = scalar_lea.vmem %s10046_s0, %s7202_s17  ;;  %s6598_s0 = scalar_lea.hbm %s10040_s12, %s7408_s25 }
  0x1c   : > { %6874 = vmatpush.msk.msrb.mxu2 %vm834_vm0, %v2454_v3  ;;  %v411_v6 = vld [vmem:[%s7463_s28] sm:$0xff]  ;;  %v514_v7 = vld [vmem:[%s7463_s28 + $0x338] sm:$0xff]  ;;  %v412_v9 = vld [vmem:[%s7463_s28 + $0x8] sm:$0xff]  ;;  %s6602_s29 = sshll.u32 %s6598_s0, 4  ;;  %s6603_s29 = int_to_ptr.hbm [resolvable:$true] %s6602_s29 }
  0x1d   : > { %1716 = vmatpush.msrb.mxu1 %v1381_v4  ;;  %v515_v8 = vld [vmem:[%s7463_s28 + $0x340] sm:$0xff]  ;;  %6663 = vmatmul.msk.f32.vlgmr.msra.gmra.mxu0 %vm518_vm1, %v411_v6  ;;  %v413_v12 = vld [vmem:[%s7463_s28 + $0x10] sm:$0xff]  ;;  %v414_v15 = vld [vmem:[%s7463_s28 + $0x18] sm:$0xff]  ;;  %s7271_s16 = sshra.s32 %s6603_s29, 4  ;;  %s7272_s16 = int_to_ptr.hbm [resolvable:$true] %s7271_s16 }
  0x1e   : > { %2788 = vmatpush.msrb.mxu2 %v2453_v5  ;;  %6766 = vmatmul.msk.f32.vlgmr.msra.gmra.mxu1 %vm518_vm1, %v514_v7  ;;  %v1276_v10 = vld [vmem:[%s7463_s28 + $0x1e] sm:$0xff]  ;;  %v1277_v13 = vld [vmem:[%s7463_s28 + $0x26] sm:$0xff]  ;;  %v1278_v16 = vld [vmem:[%s7463_s28 + $0x2e] sm:$0xff]  ;;  %s7273_s17 = scalar_lea.hbm %s7272_s16, 1  ;;  %p7278_p0 = scmp.lt.s32.totalorder %s7272_s16, %s10040_s12 }
  0x1f   : > { %6767 = vmatmul.msk.f32.vlgmr.msra.gmra.mxu2 %vm518_vm1, %v515_v8  ;;  %v2348_v11 = vld [vmem:[%s7463_s28 + $0x3c] sm:$0xff]  ;;  %v2349_v14 = vld [vmem:[%s7463_s28 + $0x44] sm:$0xff]  ;;  %v2350_v17 = vld [vmem:[%s7463_s28 + $0x4c] sm:$0xff]  ;;  %p7274_p11 = scmp.ne.s32.totalorder %s7272_s16, %s7273_s17 }
  0x20   : > { %v415_v18 = vld [vmem:[%s7463_s28 + $0x20] sm:$0xff]  ;;  %v1279_v19 = vld [vmem:[%s7463_s28 + $0x36] sm:$0xff]  ;;  %v416_v21 = vld [vmem:[%s7463_s28 + $0x28] sm:$0xff] }
  0x21   : > { %v2351_v20 = vld [vmem:[%s7463_s28 + $0x54] sm:$0xff]  ;;  %v1280_v22 = vld [vmem:[%s7463_s28 + $0x3e] sm:$0xff]  ;;  %v1281_v25 = vld [vmem:[%s7463_s28 + $0x46] sm:$0xff]  ;;  %p7275_p12 = pnand %p7274_p11, %p7425_p5 }
  0x22   : > { %v2352_v23 = vld [vmem:[%s7463_s28 + $0x5c] sm:$0xff]  ;;  %v417_v24 = vld [vmem:[%s7463_s28 + $0x30] sm:$0xff]  ;;  %v2353_v26 = vld [vmem:[%s7463_s28 + $0x64] sm:$0xff] }
  0x23   : > { %v418_v27 = vld [vmem:[%s7463_s28 + $0x38] sm:$0xff]  ;;  %v1282_v28 = vld [vmem:[%s7463_s28 + $0x4e] sm:$0xff]  ;;  %v419_v30 = vld [vmem:[%s7463_s28 + $0x40] sm:$0xff]  ;;  %p7276_p13 = pneg %p7275_p12 }
  0x24   : > { %v2354_v29 = vld [vmem:[%s7463_s28 + $0x6c] sm:$0xff]  ;;  %v1283_v31 = vld [vmem:[%s7463_s28 + $0x56] sm:$0xff]  ;;  %v1284_v34 = vld [vmem:[%s7463_s28 + $0x5e] sm:$0xff] }
  0x25   : > { %6664 = vmatmul.msk.f32.gmra.mxu0 %vm518_vm1, %v412_v9  ;;  %v2355_v32 = vld [vmem:[%s7463_s28 + $0x74] sm:$0xff]  ;;  %v420_v33 = vld [vmem:[%s7463_s28 + $0x48] sm:$0xff]  ;;  %v2356_v35 = vld [vmem:[%s7463_s28 + $0x7c] sm:$0xff] }
  0x26   : > { %6769 = vmatmul.msk.f32.vlgmr.msrb.gmra.mxu1 %vm518_vm1, %v1276_v10  ;;  %v421_v36 = vld [vmem:[%s7463_s28 + $0x50] sm:$0xff]  ;;  %v1285_v37 = vld [vmem:[%s7463_s28 + $0x66] sm:$0xff]  ;;  %v422_v39 = vld [vmem:[%s7463_s28 + $0x58] sm:$0xff] }
  0x27   : > { %6875 = vmatmul.msk.f32.vlgmr.msrb.gmra.mxu2 %vm518_vm1, %v2348_v11  ;;  %v2357_v38 = vld [vmem:[%s7463_s28 + $0x84] sm:$0xff]  ;;  %v1286_v40 = vld [vmem:[%s7463_s28 + $0x6e] sm:$0xff]  ;;  %v1287_v43 = vld [vmem:[%s7463_s28 + $0x76] sm:$0xff] }
  0x28   : > { %v2358_v41 = vld [vmem:[%s7463_s28 + $0x8c] sm:$0xff]  ;;  %v423_v42 = vld [vmem:[%s7463_s28 + $0x60] sm:$0xff]  ;;  %v2359_v44 = vld [vmem:[%s7463_s28 + $0x94] sm:$0xff] }
  0x29   : > { %v424_v45 = vld [vmem:[%s7463_s28 + $0x68] sm:$0xff]  ;;  %v1288_v46 = vld [vmem:[%s7463_s28 + $0x7e] sm:$0xff]  ;;  %v425_v48 = vld [vmem:[%s7463_s28 + $0x70] sm:$0xff] }
  0x2a   : > { %v2360_v47 = vld [vmem:[%s7463_s28 + $0x9c] sm:$0xff]  ;;  %v1289_v49 = vld [vmem:[%s7463_s28 + $0x86] sm:$0xff]  ;;  %v1290_v52 = vld [vmem:[%s7463_s28 + $0x8e] sm:$0xff] }
  0x2b   : > { %v2361_v50 = vld [vmem:[%s7463_s28 + $0xa4] sm:$0xff]  ;;  %v426_v51 = vld [vmem:[%s7463_s28 + $0x78] sm:$0xff]  ;;  %v2362_v53 = vld [vmem:[%s7463_s28 + $0xac] sm:$0xff] }
  0x2c   : > { %v427_v56 = vld [vmem:[%s7463_s28 + $0x80] sm:$0xff]  ;;  %v1291_v57 = vld [vmem:[%s7463_s28 + $0x96] sm:$0xff]  ;;  %v428_v63 = vld [vmem:[%s7463_s28 + $0x88] sm:$0xff] }
  0x2d   : > { %6665 = vmatmul.msk.f32.gmra.mxu0 %vm518_vm1, %v413_v12  ;;  %v2363_v58 = vld [vmem:[%s7463_s28 + $0xb4] sm:$0xff]  ;;  %v1292_v0 = vld [vmem:[%s7463_s28 + $0x9e] sm:$0xff]  ;;  %v1293_v8 = vld [vmem:[%s7463_s28 + $0xa6] sm:$0xff] }
  0x2e   : > { %6770 = vmatmul.msk.f32.gmra.mxu1 %vm518_vm1, %v1277_v13  ;;  %v2364_v2 = vld [vmem:[%s7463_s28 + $0xbc] sm:$0xff]  ;;  %v429_v7 = vld [vmem:[%s7463_s28 + $0x90] sm:$0xff]  ;;  %v2365_v11 = vld [vmem:[%s7463_s28 + $0xc4] sm:$0xff] }
  0x2f   : > { %6876 = vmatmul.msk.f32.gmra.mxu2 %vm518_vm1, %v2349_v14  ;;  %v7583_v9 = vld [vmem:[%s10030_s2] ss:$0 sm:$0xff] }
  0x30   : > { %v7590_v14 = vld [vmem:[%s10031_s3] ss:$0 sm:$0xff] }
  0x35   : > { %6666 = vmatmul.msk.f32.gmra.mxu0 %vm518_vm1, %v414_v15 }
  0x36   : > { %6771 = vmatmul.msk.f32.gmra.mxu1 %vm518_vm1, %v1278_v16 }
  0x37   : > { %6877 = vmatmul.msk.f32.gmra.mxu2 %vm518_vm1, %v2350_v17 }
  0x3d   : > { %6667 = vmatmul.msk.f32.gmra.mxu0 %vm518_vm1, %v415_v18 }
  0x3e   : > { %6772 = vmatmul.msk.f32.gmra.mxu1 %vm518_vm1, %v1279_v19 }
  0x3f   : > { %6878 = vmatmul.msk.f32.gmra.mxu2 %vm518_vm1, %v2351_v20 }
  0x45   : > { %6668 = vmatmul.msk.f32.gmra.mxu0 %vm518_vm1, %v416_v21  ;;  %v430_v21 = vld [vmem:[%s7463_s28 + $0x98] sm:$0xff] }
  0x46   : > { %6773 = vmatmul.msk.f32.gmra.mxu1 %vm518_vm1, %v1280_v22  ;;  %v1294_v22 = vld [vmem:[%s7463_s28 + $0xae] sm:$0xff] }
  0x47   : > { %6879 = vmatmul.msk.f32.gmra.mxu2 %vm518_vm1, %v2352_v23 }
  0x4d   : > { %6669 = vmatmul.msk.f32.gmra.mxu0 %vm518_vm1, %v417_v24 }
  0x4e   : > { %6774 = vmatmul.msk.f32.gmra.mxu1 %vm518_vm1, %v1281_v25  ;;  %v2366_v25 = vld [vmem:[%s7463_s28 + $0xcc] sm:$0xff] }
  0x4f   : > { %6880 = vmatmul.msk.f32.gmra.mxu2 %vm518_vm1, %v2353_v26 }
  0x55   : > { %6670 = vmatmul.msk.f32.gmra.mxu0 %vm518_vm1, %v418_v27 }
  0x56   : > { %6775 = vmatmul.msk.f32.gmra.mxu1 %vm518_vm1, %v1282_v28 }
  0x57   : > { %6881 = vmatmul.msk.f32.gmra.mxu2 %vm518_vm1, %v2354_v29 }
  0x5d   : > { %6671 = vmatmul.msk.f32.gmra.mxu0 %vm518_vm1, %v419_v30 }
  0x5e   : > { %6776 = vmatmul.msk.f32.gmra.mxu1 %vm518_vm1, %v1283_v31 }
  0x5f   : > { %6882 = vmatmul.msk.f32.gmra.mxu2 %vm518_vm1, %v2355_v32 }
  0x65   : > { %6672 = vmatmul.msk.f32.gmra.mxu0 %vm518_vm1, %v420_v33 }
  0x66   : > { %6777 = vmatmul.msk.f32.gmra.mxu1 %vm518_vm1, %v1284_v34  ;;  %v431_v34 = vld [vmem:[%s7463_s28 + $0xa0] sm:$0xff] }
  0x67   : > { %6883 = vmatmul.msk.f32.gmra.mxu2 %vm518_vm1, %v2356_v35  ;;  %v1295_v35 = vld [vmem:[%s7463_s28 + $0xb6] sm:$0xff] }
  0x6d   : > { %6673 = vmatmul.msk.f32.gmra.mxu0 %vm518_vm1, %v421_v36 }
  0x6e   : > { %6778 = vmatmul.msk.f32.gmra.mxu1 %vm518_vm1, %v1285_v37 }
  0x6f   : > { %6884 = vmatmul.msk.f32.gmra.mxu2 %vm518_vm1, %v2357_v38  ;;  %v2367_v38 = vld [vmem:[%s7463_s28 + $0xd4] sm:$0xff] }
  0x75   : > { %6674 = vmatmul.msk.f32.gmra.mxu0 %vm518_vm1, %v422_v39 }
  0x76   : > { %6779 = vmatmul.msk.f32.gmra.mxu1 %vm518_vm1, %v1286_v40 }
  0x77   : > { %6885 = vmatmul.msk.f32.gmra.mxu2 %vm518_vm1, %v2358_v41 }
  0x7d   : > { %6675 = vmatmul.msk.f32.gmra.mxu0 %vm518_vm1, %v423_v42 }
  0x7e   : > { %6780 = vmatmul.msk.f32.gmra.mxu1 %vm518_vm1, %v1287_v43 }
  0x7f   : > { %6886 = vmatmul.msk.f32.gmra.mxu2 %vm518_vm1, %v2359_v44 }
  0x85   : > { %6676 = vmatmul.msk.f32.gmra.mxu0 %vm518_vm1, %v424_v45 }
  0x86   : > { %6781 = vmatmul.msk.f32.gmra.mxu1 %vm518_vm1, %v1288_v46 }
  0x87   : > { %6887 = vmatmul.msk.f32.gmra.mxu2 %vm518_vm1, %v2360_v47  ;;  %v432_v47 = vld [vmem:[%s7463_s28 + $0xa8] sm:$0xff] }
  0x8d   : > { %6677 = vmatmul.msk.f32.gmra.mxu0 %vm518_vm1, %v425_v48  ;;  %v1296_v48 = vld [vmem:[%s7463_s28 + $0xbe] sm:$0xff] }
  0x8e   : > { %6782 = vmatmul.msk.f32.gmra.mxu1 %vm518_vm1, %v1289_v49 }
  0x8f   : > { %6888 = vmatmul.msk.f32.gmra.mxu2 %vm518_vm1, %v2361_v50  ;;  %v2368_v50 = vld [vmem:[%s7463_s28 + $0xdc] sm:$0xff] }
  0x95   : > { %6678 = vmatmul.msk.f32.gmra.mxu0 %vm518_vm1, %v426_v51 }
  0x96   : > { %6783 = vmatmul.msk.f32.gmra.mxu1 %vm518_vm1, %v1290_v52 }
  0x97   : > { %6889 = vmatmul.msk.f32.gmra.mxu2 %vm518_vm1, %v2362_v53 }
  0x9a   : > { %v855_v54 = vpop.f32.mrf.mxu0 }
  0x9b   : > { %v1164_v55 = vpop.f32.mrf.mxu1  ;;  %1171 = vst.msk [vmem:[#allocation2] sm:$0xff] %vm1170_vm2, %v855_v54 }
  0x9c   : > { %1274 = vst.msk [vmem:[#allocation2 + $0x338] sm:$0xff] %vm1170_vm2, %v1164_v55 }
  0x9d   : > { %6679 = vmatmul.msk.f32.gmra.mxu0 %vm518_vm1, %v427_v56 }
  0x9e   : > { %6784 = vmatmul.msk.f32.gmra.mxu1 %vm518_vm1, %v1291_v57 }
  0x9f   : > { %6890 = vmatmul.msk.f32.gmra.mxu2 %vm518_vm1, %v2363_v58 }
  0xa2   : > { %v1167_v59 = vpop.f32.mrf.mxu2  ;;  %v858_v60 = vpop.f32.mrf.mxu0  ;;  %v2033_v62 = vld [vmem:[#allocation2] sm:$0xff] }
  0xa3   : > { %1275 = vst.msk [vmem:[#allocation2 + $0x340] sm:$0xff] %vm1170_vm2, %v1167_v59  ;;  %v1718_v61 = vpop.f32.mrf.mxu1 }
  0xa4   : > { %1172 = vst.msk [vmem:[#allocation2 + $0x8] sm:$0xff] %vm1170_vm2, %v858_v60  ;;  %v2138_v1 = vadd.f32 %v2033_v62, %v1718_v61  ;;  %v433_v60 = vld [vmem:[%s7463_s28 + $0xb0] sm:$0xff]  ;;  %v1297_v61 = vld [vmem:[%s7463_s28 + $0xc6] sm:$0xff] }
  0xa5   : > { %6680 = vmatmul.msk.f32.gmra.mxu0 %vm518_vm1, %v428_v63  ;;  %v2369_v63 = vld [vmem:[%s7463_s28 + $0xe4] sm:$0xff] }
  0xa6   : > { %2243 = vst.msk [vmem:[#allocation2] sm:$0xff] %vm1170_vm2, %v2138_v1  ;;  %6785 = vmatmul.msk.f32.gmra.mxu1 %vm518_vm1, %v1292_v0 }
  0xa7   : > { %6891 = vmatmul.msk.f32.gmra.mxu2 %vm518_vm1, %v2364_v2 }
  0xaa   : > { %v2790_v3 = vpop.f32.mrf.mxu2  ;;  %v861_v4 = vpop.f32.mrf.mxu0 }
  0xab   : > { %v1721_v5 = vpop.f32.mrf.mxu1  ;;  %v2034_v6 = vld [vmem:[#allocation2 + $0x8] sm:$0xff]  ;;  %1173 = vst.msk [vmem:[#allocation2 + $0x10] sm:$0xff] %vm1170_vm2, %v861_v4 }
  0xac   : > { %v2139_v10 = vadd.f32 %v2034_v6, %v1721_v5 }
  0xad   : > { %v3105_v12 = vld [vmem:[#allocation2] sm:$0xff]  ;;  %6681 = vmatmul.msk.f32.gmra.mxu0 %vm518_vm1, %v429_v7 }
  0xae   : > { %v3210_v13 = vadd.f32 %v3105_v12, %v2790_v3  ;;  %2244 = vst.msk [vmem:[#allocation2 + $0x8] sm:$0xff] %vm1170_vm2, %v2139_v10  ;;  %6786 = vmatmul.msk.f32.gmra.mxu1 %vm518_vm1, %v1293_v8  ;;  %v434_v10 = vld [vmem:[%s7463_s28 + $0xb8] sm:$0xff] }
  0xaf   : > { %6892 = vmatmul.msk.f32.gmra.mxu2 %vm518_vm1, %v2365_v11  ;;  %v1298_v11 = vld [vmem:[%s7463_s28 + $0xce] sm:$0xff] }
  0xb0   : > { %v3319_v15 = vmul.f32 %v7583_v9, %v3210_v13 }
  0xb2   : > { %v3428_v16 = vadd.f32 %v7590_v14, %v3319_v15  ;;  %v2793_v17 = vpop.f32.mrf.mxu2  ;;  %v864_v18 = vpop.f32.mrf.mxu0  ;;  %v2035_v20 = vld [vmem:[#allocation2 + $0x10] sm:$0xff] }
  0xb3   : > { %v1724_v19 = vpop.f32.mrf.mxu1  ;;  %1174 = vst.msk [vmem:[#allocation2 + $0x18] sm:$0xff] %vm1170_vm2, %v864_v18  ;;  %v2370_v15 = vld [vmem:[%s7463_s28 + $0xec] sm:$0xff] }
  0xb4   : > { %v3533_v23 = vmax.f32 %v3428_v16, 0.0  ;;  %v2140_v24 = vadd.f32 %v2035_v20, %v1724_v19 }
  0xb5   : > { %v3106_v26 = vld [vmem:[#allocation2 + $0x8] sm:$0xff]  ;;  %6682 = vmatmul.msk.f32.gmra.mxu0 %vm518_vm1, %v430_v21  ;;  %v435_v21 = vld [vmem:[%s7463_s28 + $0xc0] sm:$0xff] }
  0xb6   : > { %3638 = vst.msk [vmem:[#allocation2] sm:$0xff] %vm1170_vm2, %v3533_v23  ;;  %v3211_v27 = vadd.f32 %v3106_v26, %v2793_v17  ;;  %6787 = vmatmul.msk.f32.gmra.mxu1 %vm518_vm1, %v1294_v22  ;;  %v4130_v26 = vld [vmem:[%s10032_s4 + $0x38] sm:$0xff] }
  0xb7   : > { %2245 = vst.msk [vmem:[#allocation2 + $0x10] sm:$0xff] %vm1170_vm2, %v2140_v24  ;;  %6893 = vmatmul.msk.f32.gmra.mxu2 %vm518_vm1, %v2366_v25  ;;  %v1299_v25 = vld [vmem:[%s7463_s28 + $0xd6] sm:$0xff]  ;;  %4206 = vmatpush.msra.mxu3 %v4130_v26 }
  0xb8   : > { %v3320_v28 = vmul.f32 %v7583_v9, %v3211_v27 }
  0xba   : > { %v3429_v29 = vadd.f32 %v7590_v14, %v3320_v28  ;;  %v2796_v30 = vpop.f32.mrf.mxu2  ;;  %v867_v31 = vpop.f32.mrf.mxu0  ;;  %v2036_v33 = vld [vmem:[#allocation2 + $0x18] sm:$0xff] }
  0xbb   : > { %v1727_v32 = vpop.f32.mrf.mxu1  ;;  %1175 = vst.msk [vmem:[#allocation2 + $0x20] sm:$0xff] %vm1170_vm2, %v867_v31 }
  0xbc   : > { %v3534_v36 = vmax.f32 %v3429_v29, 0.0  ;;  %v2141_v37 = vadd.f32 %v2036_v33, %v1727_v32  ;;  %v2371_v29 = vld [vmem:[%s7463_s28 + $0xf4] sm:$0xff]  ;;  %v4128_v33 = vld [vmem:[%s10032_s4 + $0x28] sm:$0xff] }
  0xbd   : > { %6683 = vmatmul.msk.f32.gmra.mxu0 %vm518_vm1, %v431_v34 }
  0xbe   : > { %3639 = vst.msk [vmem:[#allocation2 + $0x8] sm:$0xff] %vm1170_vm2, %v3534_v36  ;;  %v3107_v39 = vld [vmem:[#allocation2 + $0x10] sm:$0xff]  ;;  %6788 = vmatmul.msk.f32.gmra.mxu1 %vm518_vm1, %v1295_v35  ;;  %v4127_v35 = vld [vmem:[%s10032_s4 + $0x20] sm:$0xff] }
  0xbf   : > { %v3212_v40 = vadd.f32 %v3107_v39, %v2796_v30  ;;  %2246 = vst.msk [vmem:[#allocation2 + $0x18] sm:$0xff] %vm1170_vm2, %v2141_v37  ;;  %6894 = vmatmul.msk.f32.gmra.mxu2 %vm518_vm1, %v2367_v38  ;;  %v4129_v30 = vld [vmem:[%s10032_s4 + $0x30] sm:$0xff] }
  0xc0   : > { %4207 = vmatpush.msra.mxu3 %v4129_v30 }
  0xc1   : > { %v3321_v41 = vmul.f32 %v7583_v9, %v3212_v40 }
  0xc2   : > { %v2799_v42 = vpop.f32.mrf.mxu2  ;;  %v870_v44 = vpop.f32.mrf.mxu0  ;;  %v2037_v46 = vld [vmem:[#allocation2 + $0x20] sm:$0xff]  ;;  %4208 = vmatpush.msra.mxu3 %v4128_v33  ;;  %v1303_v33 = vld [vmem:[%s7463_s28 + $0xf6] sm:$0xff] }
  0xc3   : > { %v3430_v43 = vadd.f32 %v7590_v14, %v3321_v41  ;;  %v1730_v45 = vpop.f32.mrf.mxu1  ;;  %1176 = vst.msk [vmem:[#allocation2 + $0x28] sm:$0xff] %vm1170_vm2, %v870_v44  ;;  %v1300_v44 = vld [vmem:[%s7463_s28 + $0xde] sm:$0xff] }
  0xc4   : > { %v2142_v49 = vadd.f32 %v2037_v46, %v1730_v45  ;;  %4209 = vmatpush.msra.mxu3 %v4127_v35  ;;  %v2372_v46 = vld [vmem:[%s7463_s28 + $0xfc] sm:$0xff] }
  0xc5   : > { %v3535_v51 = vmax.f32 %v3430_v43, 0.0  ;;  %6684 = vmatmul.msk.f32.gmra.mxu0 %vm518_vm1, %v432_v47  ;;  %v3743_v37 = vld [vmem:[#allocation2] ss:$2 sm:$0xff]  ;;  %v3747_v38 = vld [vmem:[#allocation2 + $0x1] ss:$2 sm:$0xff] }
  0xc6   : > { %v3108_v52 = vld [vmem:[#allocation2 + $0x18] sm:$0xff]  ;;  %2247 = vst.msk [vmem:[#allocation2 + $0x20] sm:$0xff] %vm1170_vm2, %v2142_v49  ;;  %6789 = vmatmul.msk.f32.gmra.mxu1 %vm518_vm1, %v1296_v48  ;;  %v436_v43 = vld [vmem:[%s7463_s28 + $0xc8] sm:$0xff] }
  0xc7   : > { %3640 = vst.msk [vmem:[#allocation2 + $0x10] sm:$0xff] %vm1170_vm2, %v3535_v51  ;;  %v3213_v53 = vadd.f32 %v3108_v52, %v2799_v42  ;;  %6895 = vmatmul.msk.f32.gmra.mxu2 %vm518_vm1, %v2368_v50  ;;  %v3750_v51 = vmax.f32 %v3743_v37, %v3747_v38 }
  0xc9   : > { %v3322_v54 = vmul.f32 %v7583_v9, %v3213_v53 }
  0xca   : > { %v2802_v55 = vpop.f32.mrf.mxu2  ;;  %v873_v57 = vpop.f32.mrf.mxu0  ;;  %v2038_v59 = vld [vmem:[#allocation2 + $0x28] sm:$0xff] }
  0xcb   : > { %v3431_v56 = vadd.f32 %v7590_v14, %v3322_v54  ;;  %v1733_v58 = vpop.f32.mrf.mxu1  ;;  %1177 = vst.msk [vmem:[#allocation2 + $0x30] sm:$0xff] %vm1170_vm2, %v873_v57 }
  0xcc   : > { %v2143_v62 = vadd.f32 %v2038_v59, %v1733_v58 }
  0xcd   : > { %v3536_v0 = vmax.f32 %v3431_v56, 0.0  ;;  %v3109_v1 = vld [vmem:[#allocation2 + $0x20] sm:$0xff]  ;;  %6685 = vmatmul.msk.f32.gmra.mxu0 %vm518_vm1, %v433_v60 }
  0xce   : > { %v3214_v2 = vadd.f32 %v3109_v1, %v2802_v55  ;;  %2248 = vst.msk [vmem:[#allocation2 + $0x28] sm:$0xff] %vm1170_vm2, %v2143_v62  ;;  %6790 = vmatmul.msk.f32.gmra.mxu1 %vm518_vm1, %v1297_v61  ;;  %v437_v61 = vld [vmem:[%s7463_s28 + $0xd0] sm:$0xff]  ;;  %v1301_v62 = vld [vmem:[%s7463_s28 + $0xe6] sm:$0xff] }
  0xcf   : > { %3641 = vst.msk [vmem:[#allocation2 + $0x18] sm:$0xff] %vm1170_vm2, %v3536_v0  ;;  %6896 = vmatmul.msk.f32.gmra.mxu2 %vm518_vm1, %v2369_v63  ;;  %v2373_v0 = vld [vmem:[%s7463_s28 + $0x104] sm:$0xff] }
  0xd0   : > { %v3323_v3 = vmul.f32 %v7583_v9, %v3214_v2 }
  0xd2   : > { %v3432_v4 = vadd.f32 %v7590_v14, %v3323_v3  ;;  %v2805_v5 = vpop.f32.mrf.mxu2  ;;  %v876_v6 = vpop.f32.mrf.mxu0  ;;  %v2039_v8 = vld [vmem:[#allocation2 + $0x30] sm:$0xff] }
  0xd3   : > { %v1736_v7 = vpop.f32.mrf.mxu1  ;;  %1178 = vst.msk [vmem:[#allocation2 + $0x38] sm:$0xff] %vm1170_vm2, %v876_v6 }
  0xd4   : > { %v3537_v12 = vmax.f32 %v3432_v4, 0.0  ;;  %v2144_v13 = vadd.f32 %v2039_v8, %v1736_v7 }
  0xd5   : > { %v3110_v16 = vld [vmem:[#allocation2 + $0x28] sm:$0xff]  ;;  %6686 = vmatmul.msk.f32.gmra.mxu0 %vm518_vm1, %v434_v10 }
  0xd6   : > { %3642 = vst.msk [vmem:[#allocation2 + $0x20] sm:$0xff] %vm1170_vm2, %v3537_v12  ;;  %v3215_v17 = vadd.f32 %v3110_v16, %v2805_v5  ;;  %6791 = vmatmul.msk.f32.gmra.mxu1 %vm518_vm1, %v1298_v11  ;;  %v438_v11 = vld [vmem:[%s7463_s28 + $0xd8] sm:$0xff]  ;;  %v1302_v12 = vld [vmem:[%s7463_s28 + $0xee] sm:$0xff] }
  0xd7   : > { %2249 = vst.msk [vmem:[#allocation2 + $0x30] sm:$0xff] %vm1170_vm2, %v2144_v13  ;;  %6897 = vmatmul.msk.f32.gmra.mxu2 %vm518_vm1, %v2370_v15  ;;  %v2374_v16 = vld [vmem:[%s7463_s28 + $0x10c] sm:$0xff] }
  0xd8   : > { %v3324_v18 = vmul.f32 %v7583_v9, %v3215_v17  ;;  %v3745_v17 = vld [vmem:[#allocation2 + $0x10] ss:$2 sm:$0x3f] }
  0xda   : > { %v3433_v19 = vadd.f32 %v7590_v14, %v3324_v18  ;;  %v2808_v20 = vpop.f32.mrf.mxu2  ;;  %v879_v22 = vpop.f32.mrf.mxu0  ;;  %v2040_v24 = vld [vmem:[#allocation2 + $0x38] sm:$0xff] }
  0xdb   : > { %v1739_v23 = vpop.f32.mrf.mxu1  ;;  %1179 = vst.msk [vmem:[#allocation2 + $0x40] sm:$0xff] %vm1170_vm2, %v879_v22 }
  0xdc   : > { %v3538_v27 = vmax.f32 %v3433_v19, 0.0  ;;  %v2145_v28 = vadd.f32 %v2040_v24, %v1739_v23  ;;  %v3749_v19 = vld [vmem:[#allocation2 + $0x11] ss:$2 sm:$0x3f] }
  0xdd   : > { %6687 = vmatmul.msk.f32.gmra.mxu0 %vm518_vm1, %v435_v21  ;;  %v3751_v24 = vmax.f32 %v3745_v17, %v3749_v19 }
  0xde   : > { %3643 = vst.msk [vmem:[#allocation2 + $0x28] sm:$0xff] %vm1170_vm2, %v3538_v27  ;;  %v3111_v31 = vld [vmem:[#allocation2 + $0x30] sm:$0xff]  ;;  %6792 = vmatmul.msk.f32.gmra.mxu1 %vm518_vm1, %v1299_v25 }
  0xdf   : > { %v3216_v32 = vadd.f32 %v3111_v31, %v2808_v20  ;;  %2250 = vst.msk [vmem:[#allocation2 + $0x38] sm:$0xff] %vm1170_vm2, %v2145_v28  ;;  %6898 = vmatmul.msk.f32.gmra.mxu2 %vm518_vm1, %v2371_v29 }
  0xe1   : > { %v3325_v34 = vmul.f32 %v7583_v9, %v3216_v32  ;;  %v439_v32 = vld [vmem:[%s7463_s28 + $0xe0] sm:$0xff] }
  0xe2   : > { %v2811_v36 = vpop.f32.mrf.mxu2  ;;  %v882_v40 = vpop.f32.mrf.mxu0  ;;  %v2041_v42 = vld [vmem:[#allocation2 + $0x40] sm:$0xff] }
  0xe3   : > { %v3434_v39 = vadd.f32 %v7590_v14, %v3325_v34  ;;  %v1742_v41 = vpop.f32.mrf.mxu1  ;;  %1180 = vst.msk [vmem:[#allocation2 + $0x48] sm:$0xff] %vm1170_vm2, %v882_v40 }
  0xe4   : > { %v2146_v45 = vadd.f32 %v2041_v42, %v1742_v41 }
  0xe5   : > { %v3539_v47 = vmax.f32 %v3434_v39, 0.0  ;;  %v3753_v48 = vld [vmem:[#allocation2 + $0x1e] ss:$2 sm:$0xff]  ;;  %v3757_v49 = vld [vmem:[#allocation2 + $0x1f] ss:$2 sm:$0xff]  ;;  %6688 = vmatmul.msk.f32.gmra.mxu0 %vm518_vm1, %v436_v43 }
  0xe6   : > { %v3112_v50 = vld [vmem:[#allocation2 + $0x38] sm:$0xff]  ;;  %2251 = vst.msk [vmem:[#allocation2 + $0x40] sm:$0xff] %vm1170_vm2, %v2146_v45  ;;  %6793 = vmatmul.msk.f32.gmra.mxu1 %vm518_vm1, %v1300_v44  ;;  %v3760_v52 = vmax.f32 %v3753_v48, %v3757_v49  ;;  %v440_v45 = vld [vmem:[%s7463_s28 + $0xe8] sm:$0xff] }
  0xe7   : > { %3644 = vst.msk [vmem:[#allocation2 + $0x30] sm:$0xff] %vm1170_vm2, %v3539_v47  ;;  %v3217_v53 = vadd.f32 %v3112_v50, %v2811_v36  ;;  %6899 = vmatmul.msk.f32.gmra.mxu2 %vm518_vm1, %v2372_v46  ;;  %v2375_v36 = vld [vmem:[%s7463_s28 + $0x114] sm:$0xff]  ;;  %v1304_v46 = vld [vmem:[%s7463_s28 + $0xfe] sm:$0xff] }
  0xe8   : > { %v3762_v54 = vmax.f32 %v3750_v51, %v3760_v52  ;;  %v2376_v49 = vld [vmem:[%s7463_s28 + $0x11c] sm:$0xff] }
  0xe9   : > { %v3326_v55 = vmul.f32 %v7583_v9, %v3217_v53 }
  0xea   : > { %v2814_v56 = vpop.f32.mrf.mxu2  ;;  %3764 = vst.msk [vmem:[#allocation3] sm:$0xff] %vm1170_vm2, %v3762_v54  ;;  %v885_v58 = vpop.f32.mrf.mxu0  ;;  %v2042_v60 = vld [vmem:[#allocation2 + $0x48] sm:$0xff] }
  0xeb   : > { %v3435_v57 = vadd.f32 %v7590_v14, %v3326_v55  ;;  %v1745_v59 = vpop.f32.mrf.mxu1  ;;  %1181 = vst.msk [vmem:[#allocation2 + $0x50] sm:$0xff] %vm1170_vm2, %v885_v58 }
  0xec   : > { %v2147_v63 = vadd.f32 %v2042_v60, %v1745_v59  ;;  %v441_v59 = vld [vmem:[%s7463_s28 + $0xf0] sm:$0xff]  ;;  %v1305_v60 = vld [vmem:[%s7463_s28 + $0x106] sm:$0xff] }
  0xed   : > { %v3540_v1 = vmax.f32 %v3435_v57, 0.0  ;;  %v3113_v2 = vld [vmem:[#allocation2 + $0x40] sm:$0xff]  ;;  %6689 = vmatmul.msk.f32.gmra.mxu0 %vm518_vm1, %v437_v61 }
  0xee   : > { %v3218_v3 = vadd.f32 %v3113_v2, %v2814_v56  ;;  %2252 = vst.msk [vmem:[#allocation2 + $0x48] sm:$0xff] %vm1170_vm2, %v2147_v63  ;;  %6794 = vmatmul.msk.f32.gmra.mxu1 %vm518_vm1, %v1301_v62  ;;  %v2377_v62 = vld [vmem:[%s7463_s28 + $0x124] sm:$0xff] }
  0xef   : > { %3645 = vst.msk [vmem:[#allocation2 + $0x38] sm:$0xff] %vm1170_vm2, %v3540_v1  ;;  %6900 = vmatmul.msk.f32.gmra.mxu2 %vm518_vm1, %v2373_v0 }
  0xf0   : > { %v3327_v4 = vmul.f32 %v7583_v9, %v3218_v3 }
  0xf2   : > { %v3436_v5 = vadd.f32 %v7590_v14, %v3327_v4  ;;  %v2817_v6 = vpop.f32.mrf.mxu2  ;;  %v888_v7 = vpop.f32.mrf.mxu0  ;;  %v2043_v10 = vld [vmem:[#allocation2 + $0x50] sm:$0xff] }
  0xf3   : > { %v1748_v8 = vpop.f32.mrf.mxu1  ;;  %1182 = vst.msk [vmem:[#allocation2 + $0x58] sm:$0xff] %vm1170_vm2, %v888_v7 }
  0xf4   : > { %v3541_v13 = vmax.f32 %v3436_v5, 0.0  ;;  %v2148_v15 = vadd.f32 %v2043_v10, %v1748_v8  ;;  %v442_v8 = vld [vmem:[%s7463_s28 + $0xf8] sm:$0xff]  ;;  %v1306_v10 = vld [vmem:[%s7463_s28 + $0x10e] sm:$0xff] }
  0xf5   : > { %v3114_v18 = vld [vmem:[#allocation2 + $0x48] sm:$0xff]  ;;  %6690 = vmatmul.msk.f32.gmra.mxu0 %vm518_vm1, %v438_v11 }
  0xf6   : > { %3646 = vst.msk [vmem:[#allocation2 + $0x40] sm:$0xff] %vm1170_vm2, %v3541_v13  ;;  %v3219_v20 = vadd.f32 %v3114_v18, %v2817_v6  ;;  %6795 = vmatmul.msk.f32.gmra.mxu1 %vm518_vm1, %v1302_v12  ;;  %v3755_v21 = vld [vmem:[#allocation2 + $0x2e] ss:$2 sm:$0x3f] }
  0xf7   : > { %2253 = vst.msk [vmem:[#allocation2 + $0x50] sm:$0xff] %vm1170_vm2, %v2148_v15  ;;  %6901 = vmatmul.msk.f32.gmra.mxu2 %vm518_vm1, %v2374_v16  ;;  %v3759_v22 = vld [vmem:[#allocation2 + $0x2f] ss:$2 sm:$0x3f] }
  0xf8   : > { %v3328_v23 = vmul.f32 %v7583_v9, %v3219_v20  ;;  %v3761_v25 = vmax.f32 %v3755_v21, %v3759_v22  ;;  %v2378_v13 = vld [vmem:[%s7463_s28 + $0x12c] sm:$0xff] }
  0xfa   : > { %v3437_v26 = vadd.f32 %v7590_v14, %v3328_v23  ;;  %v2820_v27 = vpop.f32.mrf.mxu2  ;;  %v3763_v28 = vmax.f32 %v3751_v24, %v3761_v25  ;;  %v891_v29 = vpop.f32.mrf.mxu0  ;;  %v2044_v31 = vld [vmem:[#allocation2 + $0x58] sm:$0xff]  ;;  %v443_v23 = vld [vmem:[%s7463_s28 + $0x100] sm:$0xff] }
  0xfb   : > { %v1751_v30 = vpop.f32.mrf.mxu1  ;;  %1183 = vst.msk [vmem:[#allocation2 + $0x60] sm:$0xff] %vm1170_vm2, %v891_v29  ;;  %v1307_v24 = vld [vmem:[%s7463_s28 + $0x116] sm:$0xff] }
  0xfc   : > { %v3542_v34 = vmax.f32 %v3437_v26, 0.0  ;;  %v2149_v35 = vadd.f32 %v2044_v31, %v1751_v30  ;;  %3766 = vst.msk [vmem:[#allocation3 + $0x8] sm:$0x3f] %vm3765_vm3, %v3763_v28 }
  0xfd   : > { %6691 = vmatmul.msk.f32.gmra.mxu0 %vm518_vm1, %v439_v32 }
  0xfe   : > { %3647 = vst.msk [vmem:[#allocation2 + $0x48] sm:$0xff] %vm1170_vm2, %v3542_v34  ;;  %v3115_v37 = vld [vmem:[#allocation2 + $0x50] sm:$0xff]  ;;  %6796 = vmatmul.msk.f32.gmra.mxu1 %vm518_vm1, %v1303_v33 }
  0xff   : > { %v3220_v38 = vadd.f32 %v3115_v37, %v2820_v27  ;;  %2254 = vst.msk [vmem:[#allocation2 + $0x58] sm:$0xff] %vm1170_vm2, %v2149_v35  ;;  %6902 = vmatmul.msk.f32.gmra.mxu2 %vm518_vm1, %v2375_v36  ;;  %v2379_v27 = vld [vmem:[%s7463_s28 + $0x134] sm:$0xff] }
 0x101   : > { %v3329_v39 = vmul.f32 %v7583_v9, %v3220_v38  ;;  %v444_v38 = vld [vmem:[%s7463_s28 + $0x108] sm:$0xff] }
 0x102   : > { %v2823_v40 = vpop.f32.mrf.mxu2  ;;  %v894_v42 = vpop.f32.mrf.mxu0  ;;  %v2045_v44 = vld [vmem:[#allocation2 + $0x60] sm:$0xff] }
 0x103   : > { %v3438_v41 = vadd.f32 %v7590_v14, %v3329_v39  ;;  %v1754_v43 = vpop.f32.mrf.mxu1  ;;  %v4106_v47 = vld [vmem:[#allocation3 + $0x1] sm:$0xff]  ;;  %1184 = vst.msk [vmem:[#allocation2 + $0x68] sm:$0xff] %vm1170_vm2, %v894_v42  ;;  %v1308_v39 = vld [vmem:[%s7463_s28 + $0x11e] sm:$0xff] }
 0x104   : > { %v2150_v48 = vadd.f32 %v2045_v44, %v1754_v43  ;;  %6980 = vmatmul.msk.f32.vlgmr.msra.gmra.mxu3 %vm1170_vm2, %v4106_v47 }
 0x105   : > { %v3543_v50 = vmax.f32 %v3438_v41, 0.0  ;;  %6692 = vmatmul.msk.f32.gmra.mxu0 %vm518_vm1, %v440_v45  ;;  %v3768_v32 = vld [vmem:[#allocation2 + $0x3c] ss:$2 sm:$0xff]  ;;  %v3772_v33 = vld [vmem:[#allocation2 + $0x3d] ss:$2 sm:$0xff] }
 0x106   : > { %v3116_v51 = vld [vmem:[#allocation2 + $0x58] sm:$0xff]  ;;  %2255 = vst.msk [vmem:[#allocation2 + $0x60] sm:$0xff] %vm1170_vm2, %v2150_v48  ;;  %6797 = vmatmul.msk.f32.gmra.mxu1 %vm518_vm1, %v1304_v46  ;;  %v3775_v46 = vmax.f32 %v3768_v32, %v3772_v33 }
 0x107   : > { %3648 = vst.msk [vmem:[#allocation2 + $0x50] sm:$0xff] %vm1170_vm2, %v3543_v50  ;;  %v3221_v52 = vadd.f32 %v3116_v51, %v2823_v40  ;;  %6903 = vmatmul.msk.f32.gmra.mxu2 %vm518_vm1, %v2376_v49  ;;  %v2380_v41 = vld [vmem:[%s7463_s28 + $0x13c] sm:$0xff]  ;;  %v2383_v33 = vld [vmem:[%s7463_s28 + $0x154] sm:$0xff] }
 0x109   : > { %v3330_v53 = vmul.f32 %v7583_v9, %v3221_v52 }
 0x10a   : > { %v2826_v54 = vpop.f32.mrf.mxu2  ;;  %v897_v56 = vpop.f32.mrf.mxu0  ;;  %v2046_v58 = vld [vmem:[#allocation2 + $0x68] sm:$0xff] }
 0x10b   : > { %v3439_v55 = vadd.f32 %v7590_v14, %v3330_v53  ;;  %v1757_v57 = vpop.f32.mrf.mxu1  ;;  %1185 = vst.msk [vmem:[#allocation2 + $0x70] sm:$0xff] %vm1170_vm2, %v897_v56  ;;  %v445_v56 = vld [vmem:[%s7463_s28 + $0x110] sm:$0xff] }
 0x10c   : > { %v2151_v61 = vadd.f32 %v2046_v58, %v1757_v57  ;;  %v1309_v57 = vld [vmem:[%s7463_s28 + $0x126] sm:$0xff] }
 0x10d   : > { %v3544_v63 = vmax.f32 %v3439_v55, 0.0  ;;  %v3117_v0 = vld [vmem:[#allocation2 + $0x60] sm:$0xff]  ;;  %6693 = vmatmul.msk.f32.gmra.mxu0 %vm518_vm1, %v441_v59 }
 0x10e   : > { %v3222_v1 = vadd.f32 %v3117_v0, %v2826_v54  ;;  %2256 = vst.msk [vmem:[#allocation2 + $0x68] sm:$0xff] %vm1170_vm2, %v2151_v61  ;;  %6798 = vmatmul.msk.f32.gmra.mxu1 %vm518_vm1, %v1305_v60  ;;  %v2381_v59 = vld [vmem:[%s7463_s28 + $0x144] sm:$0xff]  ;;  %v3770_v60 = vld [vmem:[#allocation2 + $0x4c] ss:$2 sm:$0x3f] }
 0x10f   : > { %3649 = vst.msk [vmem:[#allocation2 + $0x58] sm:$0xff] %vm1170_vm2, %v3544_v63  ;;  %6904 = vmatmul.msk.f32.gmra.mxu2 %vm518_vm1, %v2377_v62  ;;  %v3774_v63 = vld [vmem:[#allocation2 + $0x4d] ss:$2 sm:$0x3f] }
 0x110   : > { %v3331_v2 = vmul.f32 %v7583_v9, %v3222_v1 }
 0x112   : > { %v3440_v3 = vadd.f32 %v7590_v14, %v3331_v2  ;;  %v2829_v4 = vpop.f32.mrf.mxu2  ;;  %v900_v5 = vpop.f32.mrf.mxu0  ;;  %v2047_v7 = vld [vmem:[#allocation2 + $0x70] sm:$0xff] }
 0x113   : > { %v1760_v6 = vpop.f32.mrf.mxu1  ;;  %1186 = vst.msk [vmem:[#allocation2 + $0x78] sm:$0xff] %vm1170_vm2, %v900_v5 }
 0x114   : > { %v3545_v11 = vmax.f32 %v3440_v3, 0.0  ;;  %v2152_v12 = vadd.f32 %v2047_v7, %v1760_v6 }
 0x115   : > { %v3118_v15 = vld [vmem:[#allocation2 + $0x68] sm:$0xff]  ;;  %6694 = vmatmul.msk.f32.gmra.mxu0 %vm518_vm1, %v442_v8 }
 0x116   : > { %3650 = vst.msk [vmem:[#allocation2 + $0x60] sm:$0xff] %vm1170_vm2, %v3545_v11  ;;  %v3223_v16 = vadd.f32 %v3118_v15, %v2829_v4  ;;  %6799 = vmatmul.msk.f32.gmra.mxu1 %vm518_vm1, %v1306_v10  ;;  %v3776_v4 = vmax.f32 %v3770_v60, %v3774_v63  ;;  %v446_v15 = vld [vmem:[%s7463_s28 + $0x118] sm:$0xff] }
 0x117   : > { %2257 = vst.msk [vmem:[#allocation2 + $0x70] sm:$0xff] %vm1170_vm2, %v2152_v12  ;;  %6905 = vmatmul.msk.f32.gmra.mxu2 %vm518_vm1, %v2378_v13 }
 0x118   : > { %v3332_v17 = vmul.f32 %v7583_v9, %v3223_v16  ;;  %v1310_v16 = vld [vmem:[%s7463_s28 + $0x12e] sm:$0xff] }
 0x11a   : > { %v3441_v18 = vadd.f32 %v7590_v14, %v3332_v17  ;;  %v2832_v19 = vpop.f32.mrf.mxu2  ;;  %v903_v20 = vpop.f32.mrf.mxu0  ;;  %v2048_v22 = vld [vmem:[#allocation2 + $0x78] sm:$0xff] }
 0x11b   : > { %v1763_v21 = vpop.f32.mrf.mxu1  ;;  %1187 = vst.msk [vmem:[#allocation2 + $0x80] sm:$0xff] %vm1170_vm2, %v903_v20 }
 0x11c   : > { %v3546_v25 = vmax.f32 %v3441_v18, 0.0  ;;  %v2153_v26 = vadd.f32 %v2048_v22, %v1763_v21 }
 0x11d   : > { %6695 = vmatmul.msk.f32.gmra.mxu0 %vm518_vm1, %v443_v23 }
 0x11e   : > { %3651 = vst.msk [vmem:[#allocation2 + $0x68] sm:$0xff] %vm1170_vm2, %v3546_v25  ;;  %v3119_v28 = vld [vmem:[#allocation2 + $0x70] sm:$0xff]  ;;  %6800 = vmatmul.msk.f32.gmra.mxu1 %vm518_vm1, %v1307_v24 }
 0x11f   : > { %v3224_v29 = vadd.f32 %v3119_v28, %v2832_v19  ;;  %2258 = vst.msk [vmem:[#allocation2 + $0x78] sm:$0xff] %vm1170_vm2, %v2153_v26  ;;  %6906 = vmatmul.msk.f32.gmra.mxu2 %vm518_vm1, %v2379_v27  ;;  %v2382_v19 = vld [vmem:[%s7463_s28 + $0x14c] sm:$0xff]  ;;  %v447_v28 = vld [vmem:[%s7463_s28 + $0x120] sm:$0xff] }
 0x121   : > { %v3333_v30 = vmul.f32 %v7583_v9, %v3224_v29  ;;  %v1311_v29 = vld [vmem:[%s7463_s28 + $0x136] sm:$0xff] }
 0x122   : > { %v2835_v31 = vpop.f32.mrf.mxu2  ;;  %v906_v35 = vpop.f32.mrf.mxu0  ;;  %v2049_v37 = vld [vmem:[#allocation2 + $0x80] sm:$0xff] }
 0x123   : > { %v3442_v34 = vadd.f32 %v7590_v14, %v3333_v30  ;;  %v1766_v36 = vpop.f32.mrf.mxu1  ;;  %1188 = vst.msk [vmem:[#allocation2 + $0x88] sm:$0xff] %vm1170_vm2, %v906_v35 }
 0x124   : > { %v2154_v40 = vadd.f32 %v2049_v37, %v1766_v36 }
 0x125   : > { %v3547_v42 = vmax.f32 %v3442_v34, 0.0  ;;  %v3778_v43 = vld [vmem:[#allocation2 + $0x5a] ss:$2 sm:$0xff]  ;;  %v3782_v44 = vld [vmem:[#allocation2 + $0x5b] ss:$2 sm:$0xff]  ;;  %6696 = vmatmul.msk.f32.gmra.mxu0 %vm518_vm1, %v444_v38 }
 0x126   : > { %v3120_v45 = vld [vmem:[#allocation2 + $0x78] sm:$0xff]  ;;  %2259 = vst.msk [vmem:[#allocation2 + $0x80] sm:$0xff] %vm1170_vm2, %v2154_v40  ;;  %6801 = vmatmul.msk.f32.gmra.mxu1 %vm518_vm1, %v1308_v39  ;;  %v3785_v47 = vmax.f32 %v3778_v43, %v3782_v44 }
 0x127   : > { %3652 = vst.msk [vmem:[#allocation2 + $0x70] sm:$0xff] %vm1170_vm2, %v3547_v42  ;;  %v3225_v48 = vadd.f32 %v3120_v45, %v2835_v31  ;;  %6907 = vmatmul.msk.f32.gmra.mxu2 %vm518_vm1, %v2380_v41  ;;  %v448_v42 = vld [vmem:[%s7463_s28 + $0x128] sm:$0xff]  ;;  %v1312_v43 = vld [vmem:[%s7463_s28 + $0x13e] sm:$0xff] }
 0x128   : > { %v3787_v49 = vmax.f32 %v3775_v46, %v3785_v47  ;;  %v2384_v45 = vld [vmem:[%s7463_s28 + $0x15c] sm:$0xff] }
 0x129   : > { %v3334_v50 = vmul.f32 %v7583_v9, %v3225_v48 }
 0x12a   : > { %v2838_v51 = vpop.f32.mrf.mxu2  ;;  %3789 = vst.msk [vmem:[#allocation3 + $0xe] sm:$0xff] %vm1170_vm2, %v3787_v49  ;;  %v909_v53 = vpop.f32.mrf.mxu0  ;;  %v2050_v55 = vld [vmem:[#allocation2 + $0x88] sm:$0xff] }
 0x12b   : > { %v3443_v52 = vadd.f32 %v7590_v14, %v3334_v50  ;;  %v1769_v54 = vpop.f32.mrf.mxu1  ;;  %1189 = vst.msk [vmem:[#allocation2 + $0x90] sm:$0xff] %vm1170_vm2, %v909_v53 }
 0x12c   : > { %v2155_v58 = vadd.f32 %v2050_v55, %v1769_v54  ;;  %v449_v55 = vld [vmem:[%s7463_s28 + $0x130] sm:$0xff] }
 0x12d   : > { %v3548_v61 = vmax.f32 %v3443_v52, 0.0  ;;  %v3121_v62 = vld [vmem:[#allocation2 + $0x80] sm:$0xff]  ;;  %6697 = vmatmul.msk.f32.gmra.mxu0 %vm518_vm1, %v445_v56 }
 0x12e   : > { %v3226_v0 = vadd.f32 %v3121_v62, %v2838_v51  ;;  %2260 = vst.msk [vmem:[#allocation2 + $0x88] sm:$0xff] %vm1170_vm2, %v2155_v58  ;;  %6802 = vmatmul.msk.f32.gmra.mxu1 %vm518_vm1, %v1309_v57  ;;  %v3780_v1 = vld [vmem:[#allocation2 + $0x6a] ss:$2 sm:$0x3f] }
 0x12f   : > { %3653 = vst.msk [vmem:[#allocation2 + $0x78] sm:$0xff] %vm1170_vm2, %v3548_v61  ;;  %6908 = vmatmul.msk.f32.gmra.mxu2 %vm518_vm1, %v2381_v59  ;;  %v3784_v2 = vld [vmem:[#allocation2 + $0x6b] ss:$2 sm:$0x3f] }
 0x130   : > { %v3335_v3 = vmul.f32 %v7583_v9, %v3226_v0  ;;  %v3786_v5 = vmax.f32 %v3780_v1, %v3784_v2  ;;  %v1313_v56 = vld [vmem:[%s7463_s28 + $0x146] sm:$0xff] }
 0x131   : > { %v4107_v6 = vld [vmem:[#allocation3 + $0x9] sm:$0xff]  ;;  %v2385_v58 = vld [vmem:[%s7463_s28 + $0x164] sm:$0xff] }
 0x132   : > { %v3444_v7 = vadd.f32 %v7590_v14, %v3335_v3  ;;  %v2841_v8 = vpop.f32.mrf.mxu2  ;;  %6981 = vmatmul.msk.f32.gmra.mxu3 %vm1170_vm2, %v4107_v6  ;;  %v3788_v10 = vmax.f32 %v3776_v4, %v3786_v5  ;;  %v912_v11 = vpop.f32.mrf.mxu0  ;;  %v2051_v13 = vld [vmem:[#allocation2 + $0x90] sm:$0xff]  ;;  %v450_v4 = vld [vmem:[%s7463_s28 + $0x138] sm:$0xff] }
 0x133   : > { %v1772_v12 = vpop.f32.mrf.mxu1  ;;  %1190 = vst.msk [vmem:[#allocation2 + $0x98] sm:$0xff] %vm1170_vm2, %v912_v11  ;;  %v1314_v5 = vld [vmem:[%s7463_s28 + $0x14e] sm:$0xff] }
 0x134   : > { %v3549_v17 = vmax.f32 %v3444_v7, 0.0  ;;  %v2156_v18 = vadd.f32 %v2051_v13, %v1772_v12  ;;  %3790 = vst.msk [vmem:[#allocation3 + $0x16] sm:$0x3f] %vm3765_vm3, %v3788_v10 }
 0x135   : > { %v3122_v20 = vld [vmem:[#allocation2 + $0x88] sm:$0xff]  ;;  %6698 = vmatmul.msk.f32.gmra.mxu0 %vm518_vm1, %v446_v15 }
 0x136   : > { %3654 = vst.msk [vmem:[#allocation2 + $0x80] sm:$0xff] %vm1170_vm2, %v3549_v17  ;;  %v3227_v21 = vadd.f32 %v3122_v20, %v2841_v8  ;;  %6803 = vmatmul.msk.f32.gmra.mxu1 %vm518_vm1, %v1310_v16  ;;  %v2386_v8 = vld [vmem:[%s7463_s28 + $0x16c] sm:$0xff] }
 0x137   : > { %2261 = vst.msk [vmem:[#allocation2 + $0x90] sm:$0xff] %vm1170_vm2, %v2156_v18  ;;  %6909 = vmatmul.msk.f32.gmra.mxu2 %vm518_vm1, %v2382_v19 }
 0x138   : > { %v3336_v22 = vmul.f32 %v7583_v9, %v3227_v21  ;;  %v451_v21 = vld [vmem:[%s7463_s28 + $0x140] sm:$0xff] }
 0x13a   : > { %v3445_v23 = vadd.f32 %v7590_v14, %v3336_v22  ;;  %v2844_v24 = vpop.f32.mrf.mxu2  ;;  %v915_v25 = vpop.f32.mrf.mxu0  ;;  %v2052_v27 = vld [vmem:[#allocation2 + $0x98] sm:$0xff] }
 0x13b   : > { %v1775_v26 = vpop.f32.mrf.mxu1  ;;  %v4108_v31 = vld [vmem:[#allocation3 + $0x11] sm:$0xff]  ;;  %1191 = vst.msk [vmem:[#allocation2 + $0xa0] sm:$0xff] %vm1170_vm2, %v915_v25 }
 0x13c   : > { %v3550_v30 = vmax.f32 %v3445_v23, 0.0  ;;  %v2157_v32 = vadd.f32 %v2052_v27, %v1775_v26  ;;  %6982 = vmatmul.msk.f32.gmra.mxu3 %vm1170_vm2, %v4108_v31  ;;  %v1315_v22 = vld [vmem:[%s7463_s28 + $0x156] sm:$0xff] }
 0x13d   : > { %6699 = vmatmul.msk.f32.gmra.mxu0 %vm518_vm1, %v447_v28  ;;  %v3792_v16 = vld [vmem:[#allocation2 + $0x78] ss:$2 sm:$0xff]  ;;  %v3796_v17 = vld [vmem:[#allocation2 + $0x79] ss:$2 sm:$0xff] }
 0x13e   : > { %3655 = vst.msk [vmem:[#allocation2 + $0x88] sm:$0xff] %vm1170_vm2, %v3550_v30  ;;  %v3123_v34 = vld [vmem:[#allocation2 + $0x90] sm:$0xff]  ;;  %6804 = vmatmul.msk.f32.gmra.mxu1 %vm518_vm1, %v1311_v29  ;;  %v3799_v29 = vmax.f32 %v3792_v16, %v3796_v17 }
 0x13f   : > { %v3228_v35 = vadd.f32 %v3123_v34, %v2844_v24  ;;  %2262 = vst.msk [vmem:[#allocation2 + $0x98] sm:$0xff] %vm1170_vm2, %v2157_v32  ;;  %6910 = vmatmul.msk.f32.gmra.mxu2 %vm518_vm1, %v2383_v33  ;;  %v2387_v25 = vld [vmem:[%s7463_s28 + $0x174] sm:$0xff] }
 0x141   : > { %v3337_v36 = vmul.f32 %v7583_v9, %v3228_v35 }
 0x142   : > { %v2847_v37 = vpop.f32.mrf.mxu2  ;;  %v918_v39 = vpop.f32.mrf.mxu0  ;;  %v2053_v41 = vld [vmem:[#allocation2 + $0xa0] sm:$0xff] }
 0x143   : > { %v3446_v38 = vadd.f32 %v7590_v14, %v3337_v36  ;;  %v1778_v40 = vpop.f32.mrf.mxu1  ;;  %1192 = vst.msk [vmem:[#allocation2 + $0xa8] sm:$0xff] %vm1170_vm2, %v918_v39  ;;  %v452_v39 = vld [vmem:[%s7463_s28 + $0x148] sm:$0xff] }
 0x144   : > { %v2158_v44 = vadd.f32 %v2053_v41, %v1778_v40  ;;  %v1316_v40 = vld [vmem:[%s7463_s28 + $0x15e] sm:$0xff] }
 0x145   : > { %v3551_v46 = vmax.f32 %v3446_v38, 0.0  ;;  %6700 = vmatmul.msk.f32.gmra.mxu0 %vm518_vm1, %v448_v42  ;;  %v2388_v42 = vld [vmem:[%s7463_s28 + $0x17c] sm:$0xff] }
 0x146   : > { %v3124_v47 = vld [vmem:[#allocation2 + $0x98] sm:$0xff]  ;;  %2263 = vst.msk [vmem:[#allocation2 + $0xa0] sm:$0xff] %vm1170_vm2, %v2158_v44  ;;  %6805 = vmatmul.msk.f32.gmra.mxu1 %vm518_vm1, %v1312_v43 }
 0x147   : > { %3656 = vst.msk [vmem:[#allocation2 + $0x90] sm:$0xff] %vm1170_vm2, %v3551_v46  ;;  %v3229_v48 = vadd.f32 %v3124_v47, %v2847_v37  ;;  %6911 = vmatmul.msk.f32.gmra.mxu2 %vm518_vm1, %v2384_v45 }
 0x149   : > { %v3338_v49 = vmul.f32 %v7583_v9, %v3229_v48 }
 0x14a   : > { %v2850_v50 = vpop.f32.mrf.mxu2  ;;  %v921_v52 = vpop.f32.mrf.mxu0  ;;  %v2054_v54 = vld [vmem:[#allocation2 + $0xa8] sm:$0xff] }
 0x14b   : > { %v3447_v51 = vadd.f32 %v7590_v14, %v3338_v49  ;;  %v1781_v53 = vpop.f32.mrf.mxu1  ;;  %1193 = vst.msk [vmem:[#allocation2 + $0xb0] sm:$0xff] %vm1170_vm2, %v921_v52 }
 0x14c   : > { %v2159_v57 = vadd.f32 %v2054_v54, %v1781_v53  ;;  %v453_v53 = vld [vmem:[%s7463_s28 + $0x150] sm:$0xff]  ;;  %v1317_v54 = vld [vmem:[%s7463_s28 + $0x166] sm:$0xff] }
 0x14d   : > { %v3552_v59 = vmax.f32 %v3447_v51, 0.0  ;;  %v3125_v60 = vld [vmem:[#allocation2 + $0xa0] sm:$0xff]  ;;  %6701 = vmatmul.msk.f32.gmra.mxu0 %vm518_vm1, %v449_v55 }
 0x14e   : > { %v3230_v61 = vadd.f32 %v3125_v60, %v2850_v50  ;;  %2264 = vst.msk [vmem:[#allocation2 + $0xa8] sm:$0xff] %vm1170_vm2, %v2159_v57  ;;  %6806 = vmatmul.msk.f32.gmra.mxu1 %vm518_vm1, %v1313_v56  ;;  %v2389_v56 = vld [vmem:[%s7463_s28 + $0x184] sm:$0xff] }
 0x14f   : > { %3657 = vst.msk [vmem:[#allocation2 + $0x98] sm:$0xff] %vm1170_vm2, %v3552_v59  ;;  %6912 = vmatmul.msk.f32.gmra.mxu2 %vm518_vm1, %v2385_v58  ;;  %v3794_v57 = vld [vmem:[#allocation2 + $0x88] ss:$2 sm:$0x3f] }
 0x150   : > { %v3339_v62 = vmul.f32 %v7583_v9, %v3230_v61  ;;  %v3798_v60 = vld [vmem:[#allocation2 + $0x89] ss:$2 sm:$0x3f] }
 0x152   : > { %v3448_v63 = vadd.f32 %v7590_v14, %v3339_v62  ;;  %v2853_v0 = vpop.f32.mrf.mxu2  ;;  %v924_v1 = vpop.f32.mrf.mxu0  ;;  %v2055_v3 = vld [vmem:[#allocation2 + $0xb0] sm:$0xff]  ;;  %v7884_v62 = vld [vmem:[%s10030_s2] ss:$0 sm:$0xff] }
 0x153   : > { %v1784_v2 = vpop.f32.mrf.mxu1  ;;  %1194 = vst.msk [vmem:[#allocation2 + $0xb8] sm:$0xff] %vm1170_vm2, %v924_v1 }
 0x154   : > { %v3553_v6 = vmax.f32 %v3448_v63, 0.0  ;;  %v2160_v7 = vadd.f32 %v2055_v3, %v1784_v2  ;;  %v7890_v2 = vld [vmem:[%s10031_s3] ss:$0 sm:$0xff] }
 0x155   : > { %v3126_v10 = vld [vmem:[#allocation2 + $0xa8] sm:$0xff]  ;;  %6702 = vmatmul.msk.f32.gmra.mxu0 %vm518_vm1, %v450_v4 }
 0x156   : > { %3658 = vst.msk [vmem:[#allocation2 + $0xa0] sm:$0xff] %vm1170_vm2, %v3553_v6  ;;  %v3231_v11 = vadd.f32 %v3126_v10, %v2853_v0  ;;  %6807 = vmatmul.msk.f32.gmra.mxu1 %vm518_vm1, %v1314_v5  ;;  %v3800_v0 = vmax.f32 %v3794_v57, %v3798_v60  ;;  %v454_v10 = vld [vmem:[%s7463_s28 + $0x158] sm:$0xff] }
 0x157   : > { %2265 = vst.msk [vmem:[#allocation2 + $0xb0] sm:$0xff] %vm1170_vm2, %v2160_v7  ;;  %6913 = vmatmul.msk.f32.gmra.mxu2 %vm518_vm1, %v2386_v8 }
 0x158   : > { %v3340_v12 = vmul.f32 %v7583_v9, %v3231_v11  ;;  %v1318_v11 = vld [vmem:[%s7463_s28 + $0x16e] sm:$0xff] }
 0x15a   : > { %v3449_v13 = vadd.f32 %v7590_v14, %v3340_v12  ;;  %v2856_v15 = vpop.f32.mrf.mxu2  ;;  %v927_v18 = vpop.f32.mrf.mxu0  ;;  %v2056_v20 = vld [vmem:[#allocation2 + $0xb8] sm:$0xff] }
 0x15b   : > { %v1787_v19 = vpop.f32.mrf.mxu1  ;;  %1195 = vst.msk [vmem:[#allocation2 + $0xc0] sm:$0xff] %vm1170_vm2, %v927_v18 }
 0x15c   : > { %v3554_v23 = vmax.f32 %v3449_v13, 0.0  ;;  %v2161_v24 = vadd.f32 %v2056_v20, %v1787_v19 }
 0x15d   : > { %v3802_v26 = vld [vmem:[#allocation2 + $0x96] ss:$2 sm:$0xff]  ;;  %v3806_v27 = vld [vmem:[#allocation2 + $0x97] ss:$2 sm:$0xff]  ;;  %6703 = vmatmul.msk.f32.gmra.mxu0 %vm518_vm1, %v451_v21 }
 0x15e   : > { %3659 = vst.msk [vmem:[#allocation2 + $0xa8] sm:$0xff] %vm1170_vm2, %v3554_v23  ;;  %v3127_v28 = vld [vmem:[#allocation2 + $0xb0] sm:$0xff]  ;;  %6808 = vmatmul.msk.f32.gmra.mxu1 %vm518_vm1, %v1315_v22  ;;  %v3809_v30 = vmax.f32 %v3802_v26, %v3806_v27 }
 0x15f   : > { %v3232_v31 = vadd.f32 %v3127_v28, %v2856_v15  ;;  %2266 = vst.msk [vmem:[#allocation2 + $0xb8] sm:$0xff] %vm1170_vm2, %v2161_v24  ;;  %6914 = vmatmul.msk.f32.gmra.mxu2 %vm518_vm1, %v2387_v25  ;;  %v2390_v15 = vld [vmem:[%s7463_s28 + $0x18c] sm:$0xff]  ;;  %v455_v24 = vld [vmem:[%s7463_s28 + $0x160] sm:$0xff]  ;;  %v1319_v25 = vld [vmem:[%s7463_s28 + $0x176] sm:$0xff] }
 0x160   : > { %v3811_v32 = vmax.f32 %v3799_v29, %v3809_v30  ;;  %v2391_v29 = vld [vmem:[%s7463_s28 + $0x194] sm:$0xff] }
 0x161   : > { %v3341_v33 = vmul.f32 %v7583_v9, %v3232_v31 }
 0x162   : > { %v2859_v34 = vpop.f32.mrf.mxu2  ;;  %3813 = vst.msk [vmem:[#allocation3 + $0x1c] sm:$0xff] %vm1170_vm2, %v3811_v32  ;;  %v930_v36 = vpop.f32.mrf.mxu0  ;;  %v2057_v38 = vld [vmem:[#allocation2 + $0xc0] sm:$0xff] }
 0x163   : > { %v3450_v35 = vadd.f32 %v7590_v14, %v3341_v33  ;;  %v1790_v37 = vpop.f32.mrf.mxu1  ;;  %1196 = vst.msk [vmem:[#allocation2 + $0xc8] sm:$0xff] %vm1170_vm2, %v930_v36 }
 0x164   : > { %v2162_v41 = vadd.f32 %v2057_v38, %v1790_v37  ;;  %v456_v38 = vld [vmem:[%s7463_s28 + $0x168] sm:$0xff] }
 0x165   : > { %v3555_v43 = vmax.f32 %v3450_v35, 0.0  ;;  %6704 = vmatmul.msk.f32.gmra.mxu0 %vm518_vm1, %v452_v39  ;;  %v1320_v39 = vld [vmem:[%s7463_s28 + $0x17e] sm:$0xff] }
 0x166   : > { %v3128_v44 = vld [vmem:[#allocation2 + $0xb8] sm:$0xff]  ;;  %2267 = vst.msk [vmem:[#allocation2 + $0xc0] sm:$0xff] %vm1170_vm2, %v2162_v41  ;;  %6809 = vmatmul.msk.f32.gmra.mxu1 %vm518_vm1, %v1316_v40 }
 0x167   : > { %3660 = vst.msk [vmem:[#allocation2 + $0xb0] sm:$0xff] %vm1170_vm2, %v3555_v43  ;;  %v3233_v45 = vadd.f32 %v3128_v44, %v2859_v34  ;;  %6915 = vmatmul.msk.f32.gmra.mxu2 %vm518_vm1, %v2388_v42  ;;  %v2392_v41 = vld [vmem:[%s7463_s28 + $0x19c] sm:$0xff] }
 0x169   : > { %v3342_v46 = vmul.f32 %v7583_v9, %v3233_v45  ;;  %v4109_v47 = vld [vmem:[#allocation3 + $0x19] sm:$0xff] }
 0x16a   : > { %v2862_v48 = vpop.f32.mrf.mxu2  ;;  %6983 = vmatmul.msk.f32.gmra.mxu3 %vm1170_vm2, %v4109_v47  ;;  %v933_v50 = vpop.f32.mrf.mxu0  ;;  %v2058_v52 = vld [vmem:[#allocation2 + $0xc8] sm:$0xff] }
 0x16b   : > { %v3451_v49 = vadd.f32 %v7590_v14, %v3342_v46  ;;  %v1793_v51 = vpop.f32.mrf.mxu1  ;;  %1197 = vst.msk [vmem:[#allocation2 + $0xd0] sm:$0xff] %vm1170_vm2, %v933_v50 }
 0x16c   : > { %v2163_v55 = vadd.f32 %v2058_v52, %v1793_v51  ;;  %v457_v51 = vld [vmem:[%s7463_s28 + $0x170] sm:$0xff]  ;;  %v1321_v52 = vld [vmem:[%s7463_s28 + $0x186] sm:$0xff] }
 0x16d   : > { %v3556_v58 = vmax.f32 %v3451_v49, 0.0  ;;  %v3129_v59 = vld [vmem:[#allocation2 + $0xc0] sm:$0xff]  ;;  %6705 = vmatmul.msk.f32.gmra.mxu0 %vm518_vm1, %v453_v53 }
 0x16e   : > { %v3234_v9 = vadd.f32 %v3129_v59, %v2862_v48  ;;  %2268 = vst.msk [vmem:[#allocation2 + $0xc8] sm:$0xff] %vm1170_vm2, %v2163_v55  ;;  %6810 = vmatmul.msk.f32.gmra.mxu1 %vm518_vm1, %v1317_v54  ;;  %v3804_v14 = vld [vmem:[#allocation2 + $0xa6] ss:$2 sm:$0x3f] }
 0x16f   : > { %3661 = vst.msk [vmem:[#allocation2 + $0xb8] sm:$0xff] %vm1170_vm2, %v3556_v58  ;;  %6916 = vmatmul.msk.f32.gmra.mxu2 %vm518_vm1, %v2389_v56  ;;  %v3808_v61 = vld [vmem:[#allocation2 + $0xa7] ss:$2 sm:$0x3f] }
 0x170   : > { %v3343_v63 = vmul.f32 %v7884_v62, %v3234_v9  ;;  %v3810_v1 = vmax.f32 %v3804_v14, %v3808_v61  ;;  %v2393_v54 = vld [vmem:[%s7463_s28 + $0x1a4] sm:$0xff] }
 0x172   : > { %v3452_v3 = vadd.f32 %v7890_v2, %v3343_v63  ;;  %v2865_v4 = vpop.f32.mrf.mxu2  ;;  %v3812_v5 = vmax.f32 %v3800_v0, %v3810_v1  ;;  %v936_v6 = vpop.f32.mrf.mxu0  ;;  %v2059_v8 = vld [vmem:[#allocation2 + $0xd0] sm:$0xff]  ;;  %v458_v63 = vld [vmem:[%s7463_s28 + $0x178] sm:$0xff] }
 0x173   : > { %v1796_v7 = vpop.f32.mrf.mxu1  ;;  %1198 = vst.msk [vmem:[#allocation2 + $0xd8] sm:$0xff] %vm1170_vm2, %v936_v6  ;;  %v1322_v0 = vld [vmem:[%s7463_s28 + $0x18e] sm:$0xff] }
 0x174   : > { %v3557_v12 = vmax.f32 %v3452_v3, 0.0  ;;  %v2164_v13 = vadd.f32 %v2059_v8, %v1796_v7  ;;  %3814 = vst.msk [vmem:[#allocation3 + $0x24] sm:$0x3f] %vm3765_vm3, %v3812_v5 }
 0x175   : > { %v3130_v16 = vld [vmem:[#allocation2 + $0xc8] sm:$0xff]  ;;  %6706 = vmatmul.msk.f32.gmra.mxu0 %vm518_vm1, %v454_v10 }
 0x176   : > { %3662 = vst.msk [vmem:[#allocation2 + $0xc0] sm:$0xff] %vm1170_vm2, %v3557_v12  ;;  %v3235_v17 = vadd.f32 %v3130_v16, %v2865_v4  ;;  %6811 = vmatmul.msk.f32.gmra.mxu1 %vm518_vm1, %v1318_v11  ;;  %v2394_v4 = vld [vmem:[%s7463_s28 + $0x1ac] sm:$0xff] }
 0x177   : > { %2269 = vst.msk [vmem:[#allocation2 + $0xd0] sm:$0xff] %vm1170_vm2, %v2164_v13  ;;  %6917 = vmatmul.msk.f32.gmra.mxu2 %vm518_vm1, %v2390_v15 }
 0x178   : > { %v3344_v18 = vmul.f32 %v7884_v62, %v3235_v17  ;;  %v459_v17 = vld [vmem:[%s7463_s28 + $0x180] sm:$0xff] }
 0x17a   : > { %v3453_v19 = vadd.f32 %v7890_v2, %v3344_v18  ;;  %v2868_v20 = vpop.f32.mrf.mxu2  ;;  %v939_v21 = vpop.f32.mrf.mxu0  ;;  %v2060_v23 = vld [vmem:[#allocation2 + $0xd8] sm:$0xff] }
 0x17b   : > { %v1799_v22 = vpop.f32.mrf.mxu1  ;;  %v4110_v27 = vld [vmem:[#allocation3 + $0x21] sm:$0xff]  ;;  %1199 = vst.msk [vmem:[#allocation2 + $0xe0] sm:$0xff] %vm1170_vm2, %v939_v21  ;;  %v1323_v18 = vld [vmem:[%s7463_s28 + $0x196] sm:$0xff] }
 0x17c   : > { %v3558_v26 = vmax.f32 %v3453_v19, 0.0  ;;  %v2165_v28 = vadd.f32 %v2060_v23, %v1799_v22  ;;  %6984 = vmatmul.msk.f32.gmra.mxu3 %vm1170_vm2, %v4110_v27  ;;  %v2395_v21 = vld [vmem:[%s7463_s28 + $0x1b4] sm:$0xff] }
 0x17d   : > { %6707 = vmatmul.msk.f32.gmra.mxu0 %vm518_vm1, %v455_v24  ;;  %v3816_v11 = vld [vmem:[#allocation2 + $0xb4] ss:$2 sm:$0xff]  ;;  %v3820_v12 = vld [vmem:[#allocation2 + $0xb5] ss:$2 sm:$0xff] }
 0x17e   : > { %3663 = vst.msk [vmem:[#allocation2 + $0xc8] sm:$0xff] %vm1170_vm2, %v3558_v26  ;;  %v3131_v30 = vld [vmem:[#allocation2 + $0xd0] sm:$0xff]  ;;  %6812 = vmatmul.msk.f32.gmra.mxu1 %vm518_vm1, %v1319_v25  ;;  %v3823_v25 = vmax.f32 %v3816_v11, %v3820_v12 }
 0x17f   : > { %v3236_v31 = vadd.f32 %v3131_v30, %v2868_v20  ;;  %2270 = vst.msk [vmem:[#allocation2 + $0xd8] sm:$0xff] %vm1170_vm2, %v2165_v28  ;;  %6918 = vmatmul.msk.f32.gmra.mxu2 %vm518_vm1, %v2391_v29 }
 0x181   : > { %v3345_v32 = vmul.f32 %v7884_v62, %v3236_v31 }
 0x182   : > { %v2871_v33 = vpop.f32.mrf.mxu2  ;;  %v942_v35 = vpop.f32.mrf.mxu0  ;;  %v2061_v37 = vld [vmem:[#allocation2 + $0xe0] sm:$0xff] }
 0x183   : > { %v3454_v34 = vadd.f32 %v7890_v2, %v3345_v32  ;;  %v1802_v36 = vpop.f32.mrf.mxu1  ;;  %1200 = vst.msk [vmem:[#allocation2 + $0xe8] sm:$0xff] %vm1170_vm2, %v942_v35 }
 0x184   : > { %v2166_v40 = vadd.f32 %v2061_v37, %v1802_v36  ;;  %v460_v36 = vld [vmem:[%s7463_s28 + $0x188] sm:$0xff]  ;;  %v1324_v37 = vld [vmem:[%s7463_s28 + $0x19e] sm:$0xff] }
 0x185   : > { %v3559_v42 = vmax.f32 %v3454_v34, 0.0  ;;  %6708 = vmatmul.msk.f32.gmra.mxu0 %vm518_vm1, %v456_v38  ;;  %v3818_v31 = vld [vmem:[#allocation2 + $0xc4] ss:$2 sm:$0x3f] }
 0x186   : > { %v3132_v43 = vld [vmem:[#allocation2 + $0xd8] sm:$0xff]  ;;  %2271 = vst.msk [vmem:[#allocation2 + $0xe0] sm:$0xff] %vm1170_vm2, %v2166_v40  ;;  %6813 = vmatmul.msk.f32.gmra.mxu1 %vm518_vm1, %v1320_v39  ;;  %v3822_v40 = vld [vmem:[#allocation2 + $0xc5] ss:$2 sm:$0x3f] }
 0x187   : > { %3664 = vst.msk [vmem:[#allocation2 + $0xd0] sm:$0xff] %vm1170_vm2, %v3559_v42  ;;  %v3237_v44 = vadd.f32 %v3132_v43, %v2871_v33  ;;  %6919 = vmatmul.msk.f32.gmra.mxu2 %vm518_vm1, %v2392_v41  ;;  %v2396_v39 = vld [vmem:[%s7463_s28 + $0x1bc] sm:$0xff] }
 0x189   : > { %v3346_v45 = vmul.f32 %v7884_v62, %v3237_v44 }
 0x18a   : > { %v2874_v46 = vpop.f32.mrf.mxu2  ;;  %v945_v48 = vpop.f32.mrf.mxu0  ;;  %v2062_v50 = vld [vmem:[#allocation2 + $0xe8] sm:$0xff] }
 0x18b   : > { %v3455_v47 = vadd.f32 %v7890_v2, %v3346_v45  ;;  %v1805_v49 = vpop.f32.mrf.mxu1  ;;  %1201 = vst.msk [vmem:[#allocation2 + $0xf0] sm:$0xff] %vm1170_vm2, %v945_v48 }
 0x18c   : > { %v2167_v53 = vadd.f32 %v2062_v50, %v1805_v49 }
 0x18d   : > { %v3560_v55 = vmax.f32 %v3455_v47, 0.0  ;;  %v3133_v56 = vld [vmem:[#allocation2 + $0xe0] sm:$0xff]  ;;  %6709 = vmatmul.msk.f32.gmra.mxu0 %vm518_vm1, %v457_v51 }
 0x18e   : > { %v3238_v57 = vadd.f32 %v3133_v56, %v2874_v46  ;;  %2272 = vst.msk [vmem:[#allocation2 + $0xe8] sm:$0xff] %vm1170_vm2, %v2167_v53  ;;  %6814 = vmatmul.msk.f32.gmra.mxu1 %vm518_vm1, %v1321_v52  ;;  %v3824_v46 = vmax.f32 %v3818_v31, %v3822_v40  ;;  %v461_v56 = vld [vmem:[%s7463_s28 + $0x190] sm:$0xff] }
 0x18f   : > { %3665 = vst.msk [vmem:[#allocation2 + $0xd8] sm:$0xff] %vm1170_vm2, %v3560_v55  ;;  %6920 = vmatmul.msk.f32.gmra.mxu2 %vm518_vm1, %v2393_v54 }
 0x190   : > { %v3347_v58 = vmul.f32 %v7884_v62, %v3238_v57  ;;  %v1325_v57 = vld [vmem:[%s7463_s28 + $0x1a6] sm:$0xff] }
 0x192   : > { %v3456_v59 = vadd.f32 %v7890_v2, %v3347_v58  ;;  %v2877_v60 = vpop.f32.mrf.mxu2  ;;  %v948_v9 = vpop.f32.mrf.mxu0  ;;  %v2063_v61 = vld [vmem:[#allocation2 + $0xf0] sm:$0xff] }
 0x193   : > { %v1808_v14 = vpop.f32.mrf.mxu1  ;;  %1202 = vst.msk [vmem:[#allocation2 + $0xf8] sm:$0xff] %vm1170_vm2, %v948_v9 }
 0x194   : > { %v3561_v1 = vmax.f32 %v3456_v59, 0.0  ;;  %v2168_v3 = vadd.f32 %v2063_v61, %v1808_v14  ;;  %v2397_v59 = vld [vmem:[%s7463_s28 + $0x1c4] sm:$0xff] }
 0x195   : > { %v3134_v5 = vld [vmem:[#allocation2 + $0xe8] sm:$0xff]  ;;  %6710 = vmatmul.msk.f32.gmra.mxu0 %vm518_vm1, %v458_v63 }
 0x196   : > { %3666 = vst.msk [vmem:[#allocation2 + $0xe0] sm:$0xff] %vm1170_vm2, %v3561_v1  ;;  %v3239_v6 = vadd.f32 %v3134_v5, %v2877_v60  ;;  %6815 = vmatmul.msk.f32.gmra.mxu1 %vm518_vm1, %v1322_v0  ;;  %v462_v5 = vld [vmem:[%s7463_s28 + $0x198] sm:$0xff] }
 0x197   : > { %2273 = vst.msk [vmem:[#allocation2 + $0xf0] sm:$0xff] %vm1170_vm2, %v2168_v3  ;;  %6921 = vmatmul.msk.f32.gmra.mxu2 %vm518_vm1, %v2394_v4 }
 0x198   : > { %v3348_v7 = vmul.f32 %v7884_v62, %v3239_v6  ;;  %v1326_v6 = vld [vmem:[%s7463_s28 + $0x1ae] sm:$0xff] }
 0x19a   : > { %v3457_v8 = vadd.f32 %v7890_v2, %v3348_v7  ;;  %v2880_v10 = vpop.f32.mrf.mxu2  ;;  %v951_v13 = vpop.f32.mrf.mxu0  ;;  %v2064_v16 = vld [vmem:[#allocation2 + $0xf8] sm:$0xff] }
 0x19b   : > { %v1811_v15 = vpop.f32.mrf.mxu1  ;;  %1203 = vst.msk [vmem:[#allocation2 + $0x100] sm:$0xff] %vm1170_vm2, %v951_v13 }
 0x19c   : > { %v3562_v19 = vmax.f32 %v3457_v8, 0.0  ;;  %v2169_v20 = vadd.f32 %v2064_v16, %v1811_v15 }
 0x19d   : > { %v3826_v22 = vld [vmem:[#allocation2 + $0xd2] ss:$2 sm:$0xff]  ;;  %v3830_v23 = vld [vmem:[#allocation2 + $0xd3] ss:$2 sm:$0xff]  ;;  %6711 = vmatmul.msk.f32.gmra.mxu0 %vm518_vm1, %v459_v17 }
 0x19e   : > { %3667 = vst.msk [vmem:[#allocation2 + $0xe8] sm:$0xff] %vm1170_vm2, %v3562_v19  ;;  %v3135_v24 = vld [vmem:[#allocation2 + $0xf0] sm:$0xff]  ;;  %6816 = vmatmul.msk.f32.gmra.mxu1 %vm518_vm1, %v1323_v18  ;;  %v3833_v26 = vmax.f32 %v3826_v22, %v3830_v23 }
 0x19f   : > { %v3240_v27 = vadd.f32 %v3135_v24, %v2880_v10  ;;  %2274 = vst.msk [vmem:[#allocation2 + $0xf8] sm:$0xff] %vm1170_vm2, %v2169_v20  ;;  %6922 = vmatmul.msk.f32.gmra.mxu2 %vm518_vm1, %v2395_v21  ;;  %v2398_v10 = vld [vmem:[%s7463_s28 + $0x1cc] sm:$0xff]  ;;  %v463_v20 = vld [vmem:[%s7463_s28 + $0x1a0] sm:$0xff]  ;;  %v1327_v21 = vld [vmem:[%s7463_s28 + $0x1b6] sm:$0xff] }
 0x1a0   : > { %v3835_v28 = vmax.f32 %v3823_v25, %v3833_v26  ;;  %v2399_v24 = vld [vmem:[%s7463_s28 + $0x1d4] sm:$0xff] }
 0x1a1   : > { %v3349_v29 = vmul.f32 %v7884_v62, %v3240_v27 }
 0x1a2   : > { %v2883_v30 = vpop.f32.mrf.mxu2  ;;  %3837 = vst.msk [vmem:[#allocation3 + $0x2a] sm:$0xff] %vm1170_vm2, %v3835_v28  ;;  %v954_v33 = vpop.f32.mrf.mxu0  ;;  %v2065_v35 = vld [vmem:[#allocation2 + $0x100] sm:$0xff] }
 0x1a3   : > { %v3458_v32 = vadd.f32 %v7890_v2, %v3349_v29  ;;  %v1814_v34 = vpop.f32.mrf.mxu1  ;;  %1204 = vst.msk [vmem:[#allocation2 + $0x108] sm:$0xff] %vm1170_vm2, %v954_v33  ;;  %v464_v33 = vld [vmem:[%s7463_s28 + $0x1a8] sm:$0xff] }
 0x1a4   : > { %v2170_v38 = vadd.f32 %v2065_v35, %v1814_v34  ;;  %v1328_v34 = vld [vmem:[%s7463_s28 + $0x1be] sm:$0xff] }
 0x1a5   : > { %v3563_v41 = vmax.f32 %v3458_v32, 0.0  ;;  %v3828_v42 = vld [vmem:[#allocation2 + $0xe2] ss:$2 sm:$0x3f]  ;;  %6712 = vmatmul.msk.f32.gmra.mxu0 %vm518_vm1, %v460_v36 }
 0x1a6   : > { %v3136_v43 = vld [vmem:[#allocation2 + $0xf8] sm:$0xff]  ;;  %2275 = vst.msk [vmem:[#allocation2 + $0x100] sm:$0xff] %vm1170_vm2, %v2170_v38  ;;  %6817 = vmatmul.msk.f32.gmra.mxu1 %vm518_vm1, %v1324_v37  ;;  %v3832_v44 = vld [vmem:[#allocation2 + $0xe3] ss:$2 sm:$0x3f] }
 0x1a7   : > { %3668 = vst.msk [vmem:[#allocation2 + $0xf0] sm:$0xff] %vm1170_vm2, %v3563_v41  ;;  %v3241_v45 = vadd.f32 %v3136_v43, %v2883_v30  ;;  %6923 = vmatmul.msk.f32.gmra.mxu2 %vm518_vm1, %v2396_v39  ;;  %v3834_v47 = vmax.f32 %v3828_v42, %v3832_v44  ;;  %v2400_v36 = vld [vmem:[%s7463_s28 + $0x1dc] sm:$0xff] }
 0x1a9   : > { %v3350_v48 = vmul.f32 %v7884_v62, %v3241_v45  ;;  %v4111_v49 = vld [vmem:[#allocation3 + $0x29] sm:$0xff]  ;;  %v3836_v50 = vmax.f32 %v3824_v46, %v3834_v47  ;;  %v1329_v47 = vld [vmem:[%s7463_s28 + $0x1c6] sm:$0xff] }
 0x1aa   : > { %v2886_v51 = vpop.f32.mrf.mxu2  ;;  %6985 = vmatmul.msk.f32.gmra.mxu3 %vm1170_vm2, %v4111_v49  ;;  %v957_v53 = vpop.f32.mrf.mxu0  ;;  %v2066_v55 = vld [vmem:[#allocation2 + $0x108] sm:$0xff]  ;;  %v465_v46 = vld [vmem:[%s7463_s28 + $0x1b0] sm:$0xff] }
 0x1ab   : > { %v3459_v52 = vadd.f32 %v7890_v2, %v3350_v48  ;;  %v1817_v54 = vpop.f32.mrf.mxu1  ;;  %3838 = vst.msk [vmem:[#allocation3 + $0x32] sm:$0x3f] %vm3765_vm3, %v3836_v50  ;;  %v2401_v49 = vld [vmem:[%s7463_s28 + $0x1e4] sm:$0xff] }
 0x1ac   : > { %1205 = vst.msk [vmem:[#allocation2 + $0x110] sm:$0xff] %vm1170_vm2, %v957_v53  ;;  %v2171_v58 = vadd.f32 %v2066_v55, %v1817_v54 }
 0x1ad   : > { %v3564_v60 = vmax.f32 %v3459_v52, 0.0  ;;  %v3137_v9 = vld [vmem:[#allocation2 + $0x100] sm:$0xff]  ;;  %6713 = vmatmul.msk.f32.gmra.mxu0 %vm518_vm1, %v461_v56 }
 0x1ae   : > { %v3242_v14 = vadd.f32 %v3137_v9, %v2886_v51  ;;  %2276 = vst.msk [vmem:[#allocation2 + $0x108] sm:$0xff] %vm1170_vm2, %v2171_v58  ;;  %6818 = vmatmul.msk.f32.gmra.mxu1 %vm518_vm1, %v1325_v57  ;;  %v1330_v9 = vld [vmem:[%s7463_s28 + $0x1ce] sm:$0xff] }
 0x1af   : > { %3669 = vst.msk [vmem:[#allocation2 + $0xf8] sm:$0xff] %vm1170_vm2, %v3564_v60  ;;  %6924 = vmatmul.msk.f32.gmra.mxu2 %vm518_vm1, %v2397_v59  ;;  %v466_v60 = vld [vmem:[%s7463_s28 + $0x1b8] sm:$0xff] }
 0x1b0   : > { %v3351_v61 = vmul.f32 %v7884_v62, %v3242_v14 }
 0x1b2   : > { %v3460_v63 = vadd.f32 %v7890_v2, %v3351_v61  ;;  %v2889_v0 = vpop.f32.mrf.mxu2  ;;  %v960_v1 = vpop.f32.mrf.mxu0 }
 0x1b3   : > { %v1820_v3 = vpop.f32.mrf.mxu1  ;;  %v2067_v4 = vld [vmem:[#allocation2 + $0x110] sm:$0xff]  ;;  %1206 = vst.msk [vmem:[#allocation2 + $0x118] sm:$0xff] %vm1170_vm2, %v960_v1 }
 0x1b4   : > { %v3565_v7 = vmax.f32 %v3460_v63, 0.0  ;;  %v2172_v8 = vadd.f32 %v2067_v4, %v1820_v3  ;;  %v2402_v63 = vld [vmem:[%s7463_s28 + $0x1ec] sm:$0xff] }
 0x1b5   : > { %v3138_v11 = vld [vmem:[#allocation2 + $0x108] sm:$0xff]  ;;  %6714 = vmatmul.msk.f32.gmra.mxu0 %vm518_vm1, %v462_v5 }
 0x1b6   : > { %3670 = vst.msk [vmem:[#allocation2 + $0x100] sm:$0xff] %vm1170_vm2, %v3565_v7  ;;  %v3243_v12 = vadd.f32 %v3138_v11, %v2889_v0  ;;  %6819 = vmatmul.msk.f32.gmra.mxu1 %vm518_vm1, %v1326_v6  ;;  %v3840_v56 = vld [vmem:[#allocation2 + $0xf0] ss:$2 sm:$0xff]  ;;  %v3844_v0 = vld [vmem:[#allocation2 + $0xf1] ss:$2 sm:$0xff] }
 0x1b7   : > { %2277 = vst.msk [vmem:[#allocation2 + $0x110] sm:$0xff] %vm1170_vm2, %v2172_v8  ;;  %6925 = vmatmul.msk.f32.gmra.mxu2 %vm518_vm1, %v2398_v10  ;;  %v3847_v6 = vmax.f32 %v3840_v56, %v3844_v0  ;;  %v470_v0 = vld [vmem:[%s7463_s28 + $0x1d8] sm:$0xff] }
 0x1b8   : > { %v3352_v13 = vmul.f32 %v7884_v62, %v3243_v12 }
 0x1ba   : > { %v3461_v15 = vadd.f32 %v7890_v2, %v3352_v13  ;;  %v2892_v16 = vpop.f32.mrf.mxu2  ;;  %v963_v17 = vpop.f32.mrf.mxu0  ;;  %v2068_v19 = vld [vmem:[#allocation2 + $0x118] sm:$0xff] }
 0x1bb   : > { %v1823_v18 = vpop.f32.mrf.mxu1  ;;  %1207 = vst.msk [vmem:[#allocation2 + $0x120] sm:$0xff] %vm1170_vm2, %v963_v17  ;;  %v467_v17 = vld [vmem:[%s7463_s28 + $0x1c0] sm:$0xff] }
 0x1bc   : > { %v3566_v22 = vmax.f32 %v3461_v15, 0.0  ;;  %v2173_v23 = vadd.f32 %v2068_v19, %v1823_v18  ;;  %v1331_v18 = vld [vmem:[%s7463_s28 + $0x1d6] sm:$0xff] }
 0x1bd   : > { %6715 = vmatmul.msk.f32.gmra.mxu0 %vm518_vm1, %v463_v20 }
 0x1be   : > { %3671 = vst.msk [vmem:[#allocation2 + $0x108] sm:$0xff] %vm1170_vm2, %v3566_v22  ;;  %v3139_v25 = vld [vmem:[#allocation2 + $0x110] sm:$0xff]  ;;  %6820 = vmatmul.msk.f32.gmra.mxu1 %vm518_vm1, %v1327_v21 }
 0x1bf   : > { %v3244_v26 = vadd.f32 %v3139_v25, %v2892_v16  ;;  %2278 = vst.msk [vmem:[#allocation2 + $0x118] sm:$0xff] %vm1170_vm2, %v2173_v23  ;;  %6926 = vmatmul.msk.f32.gmra.mxu2 %vm518_vm1, %v2399_v24  ;;  %v2403_v21 = vld [vmem:[%s7463_s28 + $0x1f4] sm:$0xff] }
 0x1c1   : > { %v3353_v27 = vmul.f32 %v7884_v62, %v3244_v26 }
 0x1c2   : > { %v2895_v28 = vpop.f32.mrf.mxu2  ;;  %v966_v30 = vpop.f32.mrf.mxu0  ;;  %v2069_v32 = vld [vmem:[#allocation2 + $0x120] sm:$0xff] }
 0x1c3   : > { %v3462_v29 = vadd.f32 %v7890_v2, %v3353_v27  ;;  %v1826_v31 = vpop.f32.mrf.mxu1  ;;  %1208 = vst.msk [vmem:[#allocation2 + $0x128] sm:$0xff] %vm1170_vm2, %v966_v30 }
 0x1c4   : > { %v2174_v35 = vadd.f32 %v2069_v32, %v1826_v31  ;;  %v468_v32 = vld [vmem:[%s7463_s28 + $0x1c8] sm:$0xff] }
 0x1c5   : > { %v3567_v37 = vmax.f32 %v3462_v29, 0.0  ;;  %6716 = vmatmul.msk.f32.gmra.mxu0 %vm518_vm1, %v464_v33  ;;  %v3842_v27 = vld [vmem:[#allocation2 + $0x100] ss:$2 sm:$0x3f] }
 0x1c6   : > { %v3140_v38 = vld [vmem:[#allocation2 + $0x118] sm:$0xff]  ;;  %2279 = vst.msk [vmem:[#allocation2 + $0x120] sm:$0xff] %vm1170_vm2, %v2174_v35  ;;  %6821 = vmatmul.msk.f32.gmra.mxu1 %vm518_vm1, %v1328_v34 }
 0x1c7   : > { %3672 = vst.msk [vmem:[#allocation2 + $0x110] sm:$0xff] %vm1170_vm2, %v3567_v37  ;;  %v3245_v39 = vadd.f32 %v3140_v38, %v2895_v28  ;;  %6927 = vmatmul.msk.f32.gmra.mxu2 %vm518_vm1, %v2400_v36  ;;  %v1332_v33 = vld [vmem:[%s7463_s28 + $0x1de] sm:$0xff] }
 0x1c8   : > { %v2404_v35 = vld [vmem:[%s7463_s28 + $0x1fc] sm:$0xff] }
 0x1c9   : > { %v3354_v40 = vmul.f32 %v7884_v62, %v3245_v39  ;;  %v3846_v36 = vld [vmem:[#allocation2 + $0x101] ss:$2 sm:$0x3f] }
 0x1ca   : > { %v2898_v41 = vpop.f32.mrf.mxu2  ;;  %v969_v43 = vpop.f32.mrf.mxu0  ;;  %v2070_v45 = vld [vmem:[#allocation2 + $0x128] sm:$0xff] }
 0x1cb   : > { %v3463_v42 = vadd.f32 %v7890_v2, %v3354_v40  ;;  %v1829_v44 = vpop.f32.mrf.mxu1  ;;  %1209 = vst.msk [vmem:[#allocation2 + $0x130] sm:$0xff] %vm1170_vm2, %v969_v43 }
 0x1cc   : > { %v2175_v48 = vadd.f32 %v2070_v45, %v1829_v44 }
 0x1cd   : > { %v3568_v50 = vmax.f32 %v3463_v42, 0.0  ;;  %v3141_v51 = vld [vmem:[#allocation2 + $0x120] sm:$0xff]  ;;  %6717 = vmatmul.msk.f32.gmra.mxu0 %vm518_vm1, %v465_v46  ;;  %v3848_v42 = vmax.f32 %v3842_v27, %v3846_v36 }
 0x1ce   : > { %v3246_v52 = vadd.f32 %v3141_v51, %v2898_v41  ;;  %2280 = vst.msk [vmem:[#allocation2 + $0x128] sm:$0xff] %vm1170_vm2, %v2175_v48  ;;  %6822 = vmatmul.msk.f32.gmra.mxu1 %vm518_vm1, %v1329_v47  ;;  %v469_v51 = vld [vmem:[%s7463_s28 + $0x1d0] sm:$0xff] }
 0x1cf   : > { %3673 = vst.msk [vmem:[#allocation2 + $0x118] sm:$0xff] %vm1170_vm2, %v3568_v50  ;;  %6928 = vmatmul.msk.f32.gmra.mxu2 %vm518_vm1, %v2401_v49 }
 0x1d0   : > { %v3355_v53 = vmul.f32 %v7884_v62, %v3246_v52  ;;  %v1333_v52 = vld [vmem:[%s7463_s28 + $0x1e6] sm:$0xff] }
 0x1d2   : > { %v3464_v54 = vadd.f32 %v7890_v2, %v3355_v53  ;;  %v2901_v55 = vpop.f32.mrf.mxu2  ;;  %v972_v57 = vpop.f32.mrf.mxu0  ;;  %v2071_v59 = vld [vmem:[#allocation2 + $0x130] sm:$0xff] }
 0x1d3   : > { %v1832_v58 = vpop.f32.mrf.mxu1  ;;  %1210 = vst.msk [vmem:[#allocation2 + $0x138] sm:$0xff] %vm1170_vm2, %v972_v57 }
 0x1d4   : > { %v3569_v14 = vmax.f32 %v3464_v54, 0.0  ;;  %v2176_v61 = vadd.f32 %v2071_v59, %v1832_v58  ;;  %v2405_v54 = vld [vmem:[%s7463_s28 + $0x204] sm:$0xff] }
 0x1d5   : > { %v3142_v1 = vld [vmem:[#allocation2 + $0x128] sm:$0xff]  ;;  %6718 = vmatmul.msk.f32.gmra.mxu0 %vm518_vm1, %v466_v60 }
 0x1d6   : > { %3674 = vst.msk [vmem:[#allocation2 + $0x120] sm:$0xff] %vm1170_vm2, %v3569_v14  ;;  %v3247_v3 = vadd.f32 %v3142_v1, %v2901_v55  ;;  %6823 = vmatmul.msk.f32.gmra.mxu1 %vm518_vm1, %v1330_v9  ;;  %v3850_v4 = vld [vmem:[#allocation2 + $0x10e] ss:$2 sm:$0xff]  ;;  %v3854_v5 = vld [vmem:[#allocation2 + $0x10f] ss:$2 sm:$0xff] }
 0x1d7   : > { %2281 = vst.msk [vmem:[#allocation2 + $0x130] sm:$0xff] %vm1170_vm2, %v2176_v61  ;;  %6929 = vmatmul.msk.f32.gmra.mxu2 %vm518_vm1, %v2402_v63  ;;  %v3857_v7 = vmax.f32 %v3850_v4, %v3854_v5  ;;  %v1334_v1 = vld [vmem:[%s7463_s28 + $0x1ee] sm:$0xff] }
 0x1d8   : > { %v3356_v8 = vmul.f32 %v7884_v62, %v3247_v3  ;;  %v2406_v5 = vld [vmem:[%s7463_s28 + $0x20c] sm:$0xff] }
 0x1d9   : > { %v3859_v10 = vmax.f32 %v3847_v6, %v3857_v7 }
 0x1da   : > { %v3465_v11 = vadd.f32 %v7890_v2, %v3356_v8  ;;  %v2904_v12 = vpop.f32.mrf.mxu2  ;;  %v975_v13 = vpop.f32.mrf.mxu0  ;;  %v2072_v16 = vld [vmem:[#allocation2 + $0x138] sm:$0xff] }
 0x1db   : > { %v1835_v15 = vpop.f32.mrf.mxu1  ;;  %3861 = vst.msk [vmem:[#allocation3 + $0x38] sm:$0xff] %vm1170_vm2, %v3859_v10 }
 0x1dc   : > { %v3570_v19 = vmax.f32 %v3465_v11, 0.0  ;;  %1211 = vst.msk [vmem:[#allocation2 + $0x140] sm:$0xff] %vm1170_vm2, %v975_v13  ;;  %v2177_v20 = vadd.f32 %v2072_v16, %v1835_v15  ;;  %v471_v16 = vld [vmem:[%s7463_s28 + $0x1e0] sm:$0xff] }
 0x1dd   : > { %6719 = vmatmul.msk.f32.gmra.mxu0 %vm518_vm1, %v467_v17  ;;  %v1335_v17 = vld [vmem:[%s7463_s28 + $0x1f6] sm:$0xff] }
 0x1de   : > { %3675 = vst.msk [vmem:[#allocation2 + $0x128] sm:$0xff] %vm1170_vm2, %v3570_v19  ;;  %v3143_v22 = vld [vmem:[#allocation2 + $0x130] sm:$0xff]  ;;  %6824 = vmatmul.msk.f32.gmra.mxu1 %vm518_vm1, %v1331_v18 }
 0x1df   : > { %v3248_v23 = vadd.f32 %v3143_v22, %v2904_v12  ;;  %2282 = vst.msk [vmem:[#allocation2 + $0x138] sm:$0xff] %vm1170_vm2, %v2177_v20  ;;  %6930 = vmatmul.msk.f32.gmra.mxu2 %vm518_vm1, %v2403_v21  ;;  %v2407_v20 = vld [vmem:[%s7463_s28 + $0x214] sm:$0xff] }
 0x1e1   : > { %v3357_v24 = vmul.f32 %v7884_v62, %v3248_v23 }
 0x1e2   : > { %v2907_v25 = vpop.f32.mrf.mxu2  ;;  %v4112_v26 = vld [vmem:[#allocation3 + $0x31] sm:$0xff]  ;;  %v978_v29 = vpop.f32.mrf.mxu0 }
 0x1e3   : > { %v3466_v28 = vadd.f32 %v7890_v2, %v3357_v24  ;;  %6986 = vmatmul.msk.f32.gmra.mxu3 %vm1170_vm2, %v4112_v26  ;;  %v1838_v30 = vpop.f32.mrf.mxu1  ;;  %v2073_v31 = vld [vmem:[#allocation2 + $0x140] sm:$0xff]  ;;  %1212 = vst.msk [vmem:[#allocation2 + $0x148] sm:$0xff] %vm1170_vm2, %v978_v29  ;;  %v472_v29 = vld [vmem:[%s7463_s28 + $0x1e8] sm:$0xff] }
 0x1e4   : > { %v2178_v34 = vadd.f32 %v2073_v31, %v1838_v30  ;;  %v1336_v30 = vld [vmem:[%s7463_s28 + $0x1fe] sm:$0xff] }
 0x1e5   : > { %v3571_v37 = vmax.f32 %v3466_v28, 0.0  ;;  %v3852_v38 = vld [vmem:[#allocation2 + $0x11e] ss:$2 sm:$0x3f]  ;;  %6720 = vmatmul.msk.f32.gmra.mxu0 %vm518_vm1, %v468_v32 }
 0x1e6   : > { %v3144_v39 = vld [vmem:[#allocation2 + $0x138] sm:$0xff]  ;;  %2283 = vst.msk [vmem:[#allocation2 + $0x140] sm:$0xff] %vm1170_vm2, %v2178_v34  ;;  %6825 = vmatmul.msk.f32.gmra.mxu1 %vm518_vm1, %v1332_v33 }
 0x1e7   : > { %v3856_v40 = vld [vmem:[#allocation2 + $0x11f] ss:$2 sm:$0x3f]  ;;  %3676 = vst.msk [vmem:[#allocation2 + $0x130] sm:$0xff] %vm1170_vm2, %v3571_v37  ;;  %v3249_v41 = vadd.f32 %v3144_v39, %v2907_v25  ;;  %6931 = vmatmul.msk.f32.gmra.mxu2 %vm518_vm1, %v2404_v35 }
 0x1e8   : > { %v3858_v43 = vmax.f32 %v3852_v38, %v3856_v40  ;;  %v2408_v32 = vld [vmem:[%s7463_s28 + $0x21c] sm:$0xff] }
 0x1e9   : > { %v3358_v44 = vmul.f32 %v7884_v62, %v3249_v41 }
 0x1ea   : > { %v3860_v45 = vmax.f32 %v3848_v42, %v3858_v43  ;;  %v2910_v46 = vpop.f32.mrf.mxu2  ;;  %v981_v48 = vpop.f32.mrf.mxu0  ;;  %v2074_v50 = vld [vmem:[#allocation2 + $0x148] sm:$0xff]  ;;  %v473_v42 = vld [vmem:[%s7463_s28 + $0x1f0] sm:$0xff] }
 0x1eb   : > { %v3467_v47 = vadd.f32 %v7890_v2, %v3358_v44  ;;  %v1841_v49 = vpop.f32.mrf.mxu1  ;;  %1213 = vst.msk [vmem:[#allocation2 + $0x150] sm:$0xff] %vm1170_vm2, %v981_v48  ;;  %v1337_v43 = vld [vmem:[%s7463_s28 + $0x206] sm:$0xff] }
 0x1ec   : > { %3862 = vst.msk [vmem:[#allocation3 + $0x40] sm:$0x3f] %vm3765_vm3, %v3860_v45  ;;  %v2179_v53 = vadd.f32 %v2074_v50, %v1841_v49  ;;  %v2409_v45 = vld [vmem:[%s7463_s28 + $0x224] sm:$0xff] }
 0x1ed   : > { %v3572_v55 = vmax.f32 %v3467_v47, 0.0  ;;  %v3145_v56 = vld [vmem:[#allocation2 + $0x140] sm:$0xff]  ;;  %6721 = vmatmul.msk.f32.gmra.mxu0 %vm518_vm1, %v469_v51 }
 0x1ee   : > { %v3250_v57 = vadd.f32 %v3145_v56, %v2910_v46  ;;  %2284 = vst.msk [vmem:[#allocation2 + $0x148] sm:$0xff] %vm1170_vm2, %v2179_v53  ;;  %6826 = vmatmul.msk.f32.gmra.mxu1 %vm518_vm1, %v1333_v52  ;;  %v474_v56 = vld [vmem:[%s7463_s28 + $0x1f8] sm:$0xff] }
 0x1ef   : > { %3677 = vst.msk [vmem:[#allocation2 + $0x138] sm:$0xff] %vm1170_vm2, %v3572_v55  ;;  %6932 = vmatmul.msk.f32.gmra.mxu2 %vm518_vm1, %v2405_v54 }
 0x1f0   : > { %v3359_v58 = vmul.f32 %v7884_v62, %v3250_v57  ;;  %v1338_v57 = vld [vmem:[%s7463_s28 + $0x20e] sm:$0xff] }
 0x1f2   : > { %v3468_v59 = vadd.f32 %v7890_v2, %v3359_v58  ;;  %v2913_v60 = vpop.f32.mrf.mxu2  ;;  %v984_v14 = vpop.f32.mrf.mxu0  ;;  %v2075_v63 = vld [vmem:[#allocation2 + $0x150] sm:$0xff] }
 0x1f3   : > { %v4113_v9 = vld [vmem:[#allocation3 + $0x39] sm:$0xff]  ;;  %v1844_v61 = vpop.f32.mrf.mxu1  ;;  %1214 = vst.msk [vmem:[#allocation2 + $0x158] sm:$0xff] %vm1170_vm2, %v984_v14 }
 0x1f4   : > { %6987 = vmatmul.msk.f32.gmra.mxu3 %vm1170_vm2, %v4113_v9  ;;  %v3573_v3 = vmax.f32 %v3468_v59, 0.0  ;;  %v2180_v4 = vadd.f32 %v2075_v63, %v1844_v61 }
 0x1f5   : > { %v3146_v6 = vld [vmem:[#allocation2 + $0x148] sm:$0xff]  ;;  %6722 = vmatmul.msk.f32.gmra.mxu0 %vm518_vm1, %v470_v0 }
 0x1f6   : > { %3678 = vst.msk [vmem:[#allocation2 + $0x140] sm:$0xff] %vm1170_vm2, %v3573_v3  ;;  %v3251_v7 = vadd.f32 %v3146_v6, %v2913_v60  ;;  %6827 = vmatmul.msk.f32.gmra.mxu1 %vm518_vm1, %v1334_v1  ;;  %v3864_v52 = vld [vmem:[#allocation2 + $0x12c] ss:$2 sm:$0xff]  ;;  %v3868_v9 = vld [vmem:[#allocation2 + $0x12d] ss:$2 sm:$0xff] }
 0x1f7   : > { %2285 = vst.msk [vmem:[#allocation2 + $0x150] sm:$0xff] %vm1170_vm2, %v2180_v4  ;;  %6933 = vmatmul.msk.f32.gmra.mxu2 %vm518_vm1, %v2406_v5  ;;  %v2410_v60 = vld [vmem:[%s7463_s28 + $0x22c] sm:$0xff]  ;;  %v3871_v1 = vmax.f32 %v3864_v52, %v3868_v9  ;;  %v478_v9 = vld [vmem:[%s7463_s28 + $0x218] sm:$0xff] }
 0x1f8   : > { %v3360_v8 = vmul.f32 %v7884_v62, %v3251_v7 }
 0x1fa   : > { %v3469_v10 = vadd.f32 %v7890_v2, %v3360_v8  ;;  %v2916_v11 = vpop.f32.mrf.mxu2  ;;  %v987_v12 = vpop.f32.mrf.mxu0  ;;  %v2076_v15 = vld [vmem:[#allocation2 + $0x158] sm:$0xff] }
 0x1fb   : > { %v1847_v13 = vpop.f32.mrf.mxu1  ;;  %1215 = vst.msk [vmem:[#allocation2 + $0x160] sm:$0xff] %vm1170_vm2, %v987_v12 }
 0x1fc   : > { %v3574_v18 = vmax.f32 %v3469_v10, 0.0  ;;  %v2181_v19 = vadd.f32 %v2076_v15, %v1847_v13  ;;  %v475_v15 = vld [vmem:[%s7463_s28 + $0x200] sm:$0xff] }
 0x1fd   : > { %6723 = vmatmul.msk.f32.gmra.mxu0 %vm518_vm1, %v471_v16  ;;  %v3866_v8 = vld [vmem:[#allocation2 + $0x13c] ss:$2 sm:$0x3f]  ;;  %v3870_v10 = vld [vmem:[#allocation2 + $0x13d] ss:$2 sm:$0x3f] }
 0x1fe   : > { %3679 = vst.msk [vmem:[#allocation2 + $0x148] sm:$0xff] %vm1170_vm2, %v3574_v18  ;;  %v3147_v21 = vld [vmem:[#allocation2 + $0x150] sm:$0xff]  ;;  %6828 = vmatmul.msk.f32.gmra.mxu1 %vm518_vm1, %v1335_v17 }
 0x1ff   : > { %v3252_v22 = vadd.f32 %v3147_v21, %v2916_v11  ;;  %2286 = vst.msk [vmem:[#allocation2 + $0x158] sm:$0xff] %vm1170_vm2, %v2181_v19  ;;  %6934 = vmatmul.msk.f32.gmra.mxu2 %vm518_vm1, %v2407_v20  ;;  %v1339_v16 = vld [vmem:[%s7463_s28 + $0x216] sm:$0xff] }
 0x200   : > { %v2411_v19 = vld [vmem:[%s7463_s28 + $0x234] sm:$0xff] }
 0x201   : > { %v3361_v23 = vmul.f32 %v7884_v62, %v3252_v22 }
 0x202   : > { %v2919_v24 = vpop.f32.mrf.mxu2  ;;  %v990_v26 = vpop.f32.mrf.mxu0  ;;  %v2077_v28 = vld [vmem:[#allocation2 + $0x160] sm:$0xff] }
 0x203   : > { %v3470_v25 = vadd.f32 %v7890_v2, %v3361_v23  ;;  %v1850_v27 = vpop.f32.mrf.mxu1  ;;  %1216 = vst.msk [vmem:[#allocation2 + $0x168] sm:$0xff] %vm1170_vm2, %v990_v26  ;;  %v3872_v23 = vmax.f32 %v3866_v8, %v3870_v10 }
 0x204   : > { %v2182_v31 = vadd.f32 %v2077_v28, %v1850_v27 }
 0x205   : > { %v3575_v33 = vmax.f32 %v3470_v25, 0.0  ;;  %6724 = vmatmul.msk.f32.gmra.mxu0 %vm518_vm1, %v472_v29 }
 0x206   : > { %v3148_v34 = vld [vmem:[#allocation2 + $0x158] sm:$0xff]  ;;  %2287 = vst.msk [vmem:[#allocation2 + $0x160] sm:$0xff] %vm1170_vm2, %v2182_v31  ;;  %6829 = vmatmul.msk.f32.gmra.mxu1 %vm518_vm1, %v1336_v30 }
 0x207   : > { %3680 = vst.msk [vmem:[#allocation2 + $0x150] sm:$0xff] %vm1170_vm2, %v3575_v33  ;;  %v3253_v35 = vadd.f32 %v3148_v34, %v2919_v24  ;;  %6935 = vmatmul.msk.f32.gmra.mxu2 %vm518_vm1, %v2408_v32  ;;  %v476_v34 = vld [vmem:[%s7463_s28 + $0x208] sm:$0xff] }
 0x209   : > { %v3362_v36 = vmul.f32 %v7884_v62, %v3253_v35  ;;  %v1340_v35 = vld [vmem:[%s7463_s28 + $0x21e] sm:$0xff] }
 0x20a   : > { %v2922_v37 = vpop.f32.mrf.mxu2  ;;  %v993_v39 = vpop.f32.mrf.mxu0  ;;  %v2078_v41 = vld [vmem:[#allocation2 + $0x168] sm:$0xff] }
 0x20b   : > { %v3471_v38 = vadd.f32 %v7890_v2, %v3362_v36  ;;  %v1853_v40 = vpop.f32.mrf.mxu1  ;;  %1217 = vst.msk [vmem:[#allocation2 + $0x170] sm:$0xff] %vm1170_vm2, %v993_v39 }
 0x20c   : > { %v2183_v44 = vadd.f32 %v2078_v41, %v1853_v40 }
 0x20d   : > { %v3576_v46 = vmax.f32 %v3471_v38, 0.0  ;;  %v3149_v47 = vld [vmem:[#allocation2 + $0x160] sm:$0xff]  ;;  %6725 = vmatmul.msk.f32.gmra.mxu0 %vm518_vm1, %v473_v42 }
 0x20e   : > { %v3254_v48 = vadd.f32 %v3149_v47, %v2922_v37  ;;  %2288 = vst.msk [vmem:[#allocation2 + $0x168] sm:$0xff] %vm1170_vm2, %v2183_v44  ;;  %6830 = vmatmul.msk.f32.gmra.mxu1 %vm518_vm1, %v1337_v43  ;;  %v2412_v37 = vld [vmem:[%s7463_s28 + $0x23c] sm:$0xff] }
 0x20f   : > { %3681 = vst.msk [vmem:[#allocation2 + $0x158] sm:$0xff] %vm1170_vm2, %v3576_v46  ;;  %6936 = vmatmul.msk.f32.gmra.mxu2 %vm518_vm1, %v2409_v45 }
 0x210   : > { %v3363_v49 = vmul.f32 %v7884_v62, %v3254_v48  ;;  %v477_v48 = vld [vmem:[%s7463_s28 + $0x210] sm:$0xff] }
 0x212   : > { %v3472_v50 = vadd.f32 %v7890_v2, %v3363_v49  ;;  %v2925_v51 = vpop.f32.mrf.mxu2  ;;  %v996_v53 = vpop.f32.mrf.mxu0  ;;  %v2079_v55 = vld [vmem:[#allocation2 + $0x170] sm:$0xff]  ;;  %v1341_v49 = vld [vmem:[%s7463_s28 + $0x226] sm:$0xff] }
 0x213   : > { %v1856_v54 = vpop.f32.mrf.mxu1  ;;  %1218 = vst.msk [vmem:[#allocation2 + $0x178] sm:$0xff] %vm1170_vm2, %v996_v53 }
 0x214   : > { %v3577_v58 = vmax.f32 %v3472_v50, 0.0  ;;  %v2184_v59 = vadd.f32 %v2079_v55, %v1856_v54  ;;  %v8177_v55 = vld [vmem:[%s10031_s3] ss:$0 sm:$0xff] }
 0x215   : > { %v3150_v14 = vld [vmem:[#allocation2 + $0x168] sm:$0xff]  ;;  %6726 = vmatmul.msk.f32.gmra.mxu0 %vm518_vm1, %v474_v56 }
 0x216   : > { %3682 = vst.msk [vmem:[#allocation2 + $0x160] sm:$0xff] %vm1170_vm2, %v3577_v58  ;;  %v3255_v61 = vadd.f32 %v3150_v14, %v2925_v51  ;;  %6831 = vmatmul.msk.f32.gmra.mxu1 %vm518_vm1, %v1338_v57  ;;  %v3874_v63 = vld [vmem:[#allocation2 + $0x14a] ss:$2 sm:$0xff]  ;;  %v3878_v0 = vld [vmem:[#allocation2 + $0x14b] ss:$2 sm:$0xff] }
 0x217   : > { %2289 = vst.msk [vmem:[#allocation2 + $0x170] sm:$0xff] %vm1170_vm2, %v2184_v59  ;;  %6937 = vmatmul.msk.f32.gmra.mxu2 %vm518_vm1, %v2410_v60  ;;  %v3881_v3 = vmax.f32 %v3874_v63, %v3878_v0  ;;  %v2413_v51 = vld [vmem:[%s7463_s28 + $0x244] sm:$0xff]  ;;  %v1342_v14 = vld [vmem:[%s7463_s28 + $0x22e] sm:$0xff] }
 0x218   : > { %v3364_v4 = vmul.f32 %v7884_v62, %v3255_v61  ;;  %v2414_v0 = vld [vmem:[%s7463_s28 + $0x24c] sm:$0xff] }
 0x219   : > { %v3883_v5 = vmax.f32 %v3871_v1, %v3881_v3 }
 0x21a   : > { %v3473_v6 = vadd.f32 %v7890_v2, %v3364_v4  ;;  %v2928_v7 = vpop.f32.mrf.mxu2  ;;  %v999_v11 = vpop.f32.mrf.mxu0  ;;  %v2080_v13 = vld [vmem:[#allocation2 + $0x178] sm:$0xff] }
 0x21b   : > { %v1859_v12 = vpop.f32.mrf.mxu1  ;;  %3885 = vst.msk [vmem:[#allocation3 + $0x46] sm:$0xff] %vm1170_vm2, %v3883_v5 }
 0x21c   : > { %v3578_v17 = vmax.f32 %v3473_v6, 0.0  ;;  %1219 = vst.msk [vmem:[#allocation2 + $0x180] sm:$0xff] %vm1170_vm2, %v999_v11  ;;  %v2185_v18 = vadd.f32 %v2080_v13, %v1859_v12  ;;  %v479_v11 = vld [vmem:[%s7463_s28 + $0x220] sm:$0xff]  ;;  %v1343_v12 = vld [vmem:[%s7463_s28 + $0x236] sm:$0xff] }
 0x21d   : > { %v3876_v20 = vld [vmem:[#allocation2 + $0x15a] ss:$2 sm:$0x3f]  ;;  %v3880_v21 = vld [vmem:[#allocation2 + $0x15b] ss:$2 sm:$0x3f]  ;;  %6727 = vmatmul.msk.f32.gmra.mxu0 %vm518_vm1, %v475_v15 }
 0x21e   : > { %3683 = vst.msk [vmem:[#allocation2 + $0x168] sm:$0xff] %vm1170_vm2, %v3578_v17  ;;  %v3151_v22 = vld [vmem:[#allocation2 + $0x170] sm:$0xff]  ;;  %6832 = vmatmul.msk.f32.gmra.mxu1 %vm518_vm1, %v1339_v16  ;;  %v3882_v24 = vmax.f32 %v3876_v20, %v3880_v21 }
 0x21f   : > { %v3256_v25 = vadd.f32 %v3151_v22, %v2928_v7  ;;  %2290 = vst.msk [vmem:[#allocation2 + $0x178] sm:$0xff] %vm1170_vm2, %v2185_v18  ;;  %6938 = vmatmul.msk.f32.gmra.mxu2 %vm518_vm1, %v2411_v19  ;;  %v2415_v16 = vld [vmem:[%s7463_s28 + $0x254] sm:$0xff] }
 0x220   : > { %v3884_v26 = vmax.f32 %v3872_v23, %v3882_v24 }
 0x221   : > { %v3365_v27 = vmul.f32 %v7884_v62, %v3256_v25  ;;  %v480_v25 = vld [vmem:[%s7463_s28 + $0x228] sm:$0xff] }
 0x222   : > { %v2931_v28 = vpop.f32.mrf.mxu2  ;;  %v4114_v29 = vld [vmem:[#allocation3 + $0x41] sm:$0xff]  ;;  %3886 = vst.msk [vmem:[#allocation3 + $0x4e] sm:$0x3f] %vm3765_vm3, %v3884_v26  ;;  %v1002_v31 = vpop.f32.mrf.mxu0  ;;  %v1344_v26 = vld [vmem:[%s7463_s28 + $0x23e] sm:$0xff] }
 0x223   : > { %v3474_v30 = vadd.f32 %v7890_v2, %v3365_v27  ;;  %6988 = vmatmul.msk.f32.gmra.mxu3 %vm1170_vm2, %v4114_v29  ;;  %v1862_v32 = vpop.f32.mrf.mxu1  ;;  %v2081_v33 = vld [vmem:[#allocation2 + $0x180] sm:$0xff]  ;;  %1220 = vst.msk [vmem:[#allocation2 + $0x188] sm:$0xff] %vm1170_vm2, %v1002_v31 }
 0x224   : > { %v2186_v36 = vadd.f32 %v2081_v33, %v1862_v32 }
 0x225   : > { %v3579_v38 = vmax.f32 %v3474_v30, 0.0  ;;  %6728 = vmatmul.msk.f32.gmra.mxu0 %vm518_vm1, %v476_v34 }
 0x226   : > { %v3152_v39 = vld [vmem:[#allocation2 + $0x178] sm:$0xff]  ;;  %2291 = vst.msk [vmem:[#allocation2 + $0x180] sm:$0xff] %vm1170_vm2, %v2186_v36  ;;  %6833 = vmatmul.msk.f32.gmra.mxu1 %vm518_vm1, %v1340_v35 }
 0x227   : > { %3684 = vst.msk [vmem:[#allocation2 + $0x170] sm:$0xff] %vm1170_vm2, %v3579_v38  ;;  %v3257_v40 = vadd.f32 %v3152_v39, %v2931_v28  ;;  %6939 = vmatmul.msk.f32.gmra.mxu2 %vm518_vm1, %v2412_v37  ;;  %v2416_v28 = vld [vmem:[%s7463_s28 + $0x25c] sm:$0xff]  ;;  %v481_v38 = vld [vmem:[%s7463_s28 + $0x230] sm:$0xff]  ;;  %v1345_v39 = vld [vmem:[%s7463_s28 + $0x246] sm:$0xff] }
 0x229   : > { %v3366_v41 = vmul.f32 %v7884_v62, %v3257_v40  ;;  %v4115_v42 = vld [vmem:[#allocation3 + $0x49] sm:$0xff] }
 0x22a   : > { %v2934_v43 = vpop.f32.mrf.mxu2  ;;  %v1005_v45 = vpop.f32.mrf.mxu0  ;;  %v2082_v47 = vld [vmem:[#allocation2 + $0x188] sm:$0xff] }
 0x22b   : > { %v3475_v44 = vadd.f32 %v7890_v2, %v3366_v41  ;;  %6989 = vmatmul.msk.f32.gmra.mxu3 %vm1170_vm2, %v4115_v42  ;;  %v1865_v46 = vpop.f32.mrf.mxu1  ;;  %1221 = vst.msk [vmem:[#allocation2 + $0x190] sm:$0xff] %vm1170_vm2, %v1005_v45  ;;  %v8171_v2 = vld [vmem:[%s10030_s2] ss:$0 sm:$0xff]  ;;  %v2417_v41 = vld [vmem:[%s7463_s28 + $0x264] sm:$0xff] }
 0x22c   : > { %v2187_v50 = vadd.f32 %v2082_v47, %v1865_v46 }
 0x22d   : > { %v3580_v52 = vmax.f32 %v3475_v44, 0.0  ;;  %v3153_v53 = vld [vmem:[#allocation2 + $0x180] sm:$0xff]  ;;  %6729 = vmatmul.msk.f32.gmra.mxu0 %vm518_vm1, %v477_v48 }
 0x22e   : > { %v3258_v62 = vadd.f32 %v3153_v53, %v2934_v43  ;;  %2292 = vst.msk [vmem:[#allocation2 + $0x188] sm:$0xff] %vm1170_vm2, %v2187_v50  ;;  %6834 = vmatmul.msk.f32.gmra.mxu1 %vm518_vm1, %v1341_v49  ;;  %v3888_v42 = vld [vmem:[#allocation2 + $0x168] ss:$2 sm:$0xff]  ;;  %v3892_v43 = vld [vmem:[#allocation2 + $0x169] ss:$2 sm:$0xff] }
 0x22f   : > { %3685 = vst.msk [vmem:[#allocation2 + $0x178] sm:$0xff] %vm1170_vm2, %v3580_v52  ;;  %6940 = vmatmul.msk.f32.gmra.mxu2 %vm518_vm1, %v2413_v51  ;;  %v3895_v49 = vmax.f32 %v3888_v42, %v3892_v43 }
 0x230   : > { %v3367_v54 = vmul.f32 %v8171_v2, %v3258_v62 }
 0x232   : > { %v3476_v56 = vadd.f32 %v8177_v55, %v3367_v54  ;;  %v2937_v57 = vpop.f32.mrf.mxu2  ;;  %v1008_v58 = vpop.f32.mrf.mxu0  ;;  %v2083_v60 = vld [vmem:[#allocation2 + $0x190] sm:$0xff] }
 0x233   : > { %v1868_v59 = vpop.f32.mrf.mxu1  ;;  %1222 = vst.msk [vmem:[#allocation2 + $0x198] sm:$0xff] %vm1170_vm2, %v1008_v58  ;;  %v482_v58 = vld [vmem:[%s7463_s28 + $0x238] sm:$0xff] }
 0x234   : > { %v3581_v61 = vmax.f32 %v3476_v56, 0.0  ;;  %v2188_v63 = vadd.f32 %v2083_v60, %v1868_v59  ;;  %v1346_v59 = vld [vmem:[%s7463_s28 + $0x24e] sm:$0xff] }
 0x235   : > { %v3154_v1 = vld [vmem:[#allocation2 + $0x188] sm:$0xff]  ;;  %6730 = vmatmul.msk.f32.gmra.mxu0 %vm518_vm1, %v478_v9 }
 0x236   : > { %3686 = vst.msk [vmem:[#allocation2 + $0x180] sm:$0xff] %vm1170_vm2, %v3581_v61  ;;  %v3259_v3 = vadd.f32 %v3154_v1, %v2937_v57  ;;  %6835 = vmatmul.msk.f32.gmra.mxu1 %vm518_vm1, %v1342_v14  ;;  %v2418_v14 = vld [vmem:[%s7463_s28 + $0x26c] sm:$0xff] }
 0x237   : > { %2293 = vst.msk [vmem:[#allocation2 + $0x190] sm:$0xff] %vm1170_vm2, %v2188_v63  ;;  %6941 = vmatmul.msk.f32.gmra.mxu2 %vm518_vm1, %v2414_v0 }
 0x238   : > { %v3368_v4 = vmul.f32 %v8171_v2, %v3259_v3 }
 0x23a   : > { %v3477_v5 = vadd.f32 %v8177_v55, %v3368_v4  ;;  %v2940_v6 = vpop.f32.mrf.mxu2  ;;  %v1011_v7 = vpop.f32.mrf.mxu0  ;;  %v2084_v10 = vld [vmem:[#allocation2 + $0x198] sm:$0xff] }
 0x23b   : > { %v1871_v8 = vpop.f32.mrf.mxu1  ;;  %1223 = vst.msk [vmem:[#allocation2 + $0x1a0] sm:$0xff] %vm1170_vm2, %v1011_v7 }
 0x23c   : > { %v3582_v13 = vmax.f32 %v3477_v5, 0.0  ;;  %v2189_v15 = vadd.f32 %v2084_v10, %v1871_v8 }
 0x23d   : > { %6731 = vmatmul.msk.f32.gmra.mxu0 %vm518_vm1, %v479_v11  ;;  %v3890_v1 = vld [vmem:[#allocation2 + $0x178] ss:$2 sm:$0x3f] }
 0x23e   : > { %3687 = vst.msk [vmem:[#allocation2 + $0x188] sm:$0xff] %vm1170_vm2, %v3582_v13  ;;  %v3155_v17 = vld [vmem:[#allocation2 + $0x190] sm:$0xff]  ;;  %6836 = vmatmul.msk.f32.gmra.mxu1 %vm518_vm1, %v1343_v12  ;;  %v483_v11 = vld [vmem:[%s7463_s28 + $0x240] sm:$0xff] }
 0x23f   : > { %v3260_v18 = vadd.f32 %v3155_v17, %v2940_v6  ;;  %2294 = vst.msk [vmem:[#allocation2 + $0x198] sm:$0xff] %vm1170_vm2, %v2189_v15  ;;  %6942 = vmatmul.msk.f32.gmra.mxu2 %vm518_vm1, %v2415_v16  ;;  %v3894_v6 = vld [vmem:[#allocation2 + $0x179] ss:$2 sm:$0x3f] }
 0x240   : > { %v1347_v12 = vld [vmem:[%s7463_s28 + $0x256] sm:$0xff] }
 0x241   : > { %v3369_v19 = vmul.f32 %v8171_v2, %v3260_v18  ;;  %v2419_v16 = vld [vmem:[%s7463_s28 + $0x274] sm:$0xff] }
 0x242   : > { %v2943_v20 = vpop.f32.mrf.mxu2  ;;  %v1014_v22 = vpop.f32.mrf.mxu0  ;;  %v2085_v24 = vld [vmem:[#allocation2 + $0x1a0] sm:$0xff] }
 0x243   : > { %v3478_v21 = vadd.f32 %v8177_v55, %v3369_v19  ;;  %v1874_v23 = vpop.f32.mrf.mxu1  ;;  %1224 = vst.msk [vmem:[#allocation2 + $0x1a8] sm:$0xff] %vm1170_vm2, %v1014_v22 }
 0x244   : > { %v2190_v27 = vadd.f32 %v2085_v24, %v1874_v23 }
 0x245   : > { %v3583_v29 = vmax.f32 %v3478_v21, 0.0  ;;  %6732 = vmatmul.msk.f32.gmra.mxu0 %vm518_vm1, %v480_v25 }
 0x246   : > { %v3156_v30 = vld [vmem:[#allocation2 + $0x198] sm:$0xff]  ;;  %2295 = vst.msk [vmem:[#allocation2 + $0x1a0] sm:$0xff] %vm1170_vm2, %v2190_v27  ;;  %6837 = vmatmul.msk.f32.gmra.mxu1 %vm518_vm1, %v1344_v26 }
 0x247   : > { %3688 = vst.msk [vmem:[#allocation2 + $0x190] sm:$0xff] %vm1170_vm2, %v3583_v29  ;;  %v3261_v31 = vadd.f32 %v3156_v30, %v2943_v20  ;;  %6943 = vmatmul.msk.f32.gmra.mxu2 %vm518_vm1, %v2416_v28  ;;  %v3896_v20 = vmax.f32 %v3890_v1, %v3894_v6  ;;  %v484_v30 = vld [vmem:[%s7463_s28 + $0x248] sm:$0xff]  ;;  %v487_v6 = vld [vmem:[%s7463_s28 + $0x260] sm:$0xff] }
 0x249   : > { %v3370_v32 = vmul.f32 %v8171_v2, %v3261_v31  ;;  %v1348_v31 = vld [vmem:[%s7463_s28 + $0x25e] sm:$0xff] }
 0x24a   : > { %v2946_v33 = vpop.f32.mrf.mxu2  ;;  %v1017_v35 = vpop.f32.mrf.mxu0  ;;  %v2086_v37 = vld [vmem:[#allocation2 + $0x1a8] sm:$0xff] }
 0x24b   : > { %v3479_v34 = vadd.f32 %v8177_v55, %v3370_v32  ;;  %v1877_v36 = vpop.f32.mrf.mxu1  ;;  %1225 = vst.msk [vmem:[#allocation2 + $0x1b0] sm:$0xff] %vm1170_vm2, %v1017_v35 }
 0x24c   : > { %v2191_v40 = vadd.f32 %v2086_v37, %v1877_v36 }
 0x24d   : > { %v3584_v44 = vmax.f32 %v3479_v34, 0.0  ;;  %v3157_v45 = vld [vmem:[#allocation2 + $0x1a0] sm:$0xff]  ;;  %6733 = vmatmul.msk.f32.gmra.mxu0 %vm518_vm1, %v481_v38 }
 0x24e   : > { %v3262_v46 = vadd.f32 %v3157_v45, %v2946_v33  ;;  %2296 = vst.msk [vmem:[#allocation2 + $0x1a8] sm:$0xff] %vm1170_vm2, %v2191_v40  ;;  %6838 = vmatmul.msk.f32.gmra.mxu1 %vm518_vm1, %v1345_v39  ;;  %v3898_v47 = vld [vmem:[#allocation2 + $0x186] ss:$2 sm:$0xff]  ;;  %v3902_v48 = vld [vmem:[#allocation2 + $0x187] ss:$2 sm:$0xff]  ;;  %v2420_v33 = vld [vmem:[%s7463_s28 + $0x27c] sm:$0xff] }
 0x24f   : > { %3689 = vst.msk [vmem:[#allocation2 + $0x198] sm:$0xff] %vm1170_vm2, %v3584_v44  ;;  %6944 = vmatmul.msk.f32.gmra.mxu2 %vm518_vm1, %v2417_v41  ;;  %v3905_v50 = vmax.f32 %v3898_v47, %v3902_v48  ;;  %v485_v44 = vld [vmem:[%s7463_s28 + $0x250] sm:$0xff]  ;;  %v1349_v45 = vld [vmem:[%s7463_s28 + $0x266] sm:$0xff] }
 0x250   : > { %v3371_v51 = vmul.f32 %v8171_v2, %v3262_v46  ;;  %v2421_v47 = vld [vmem:[%s7463_s28 + $0x284] sm:$0xff] }
 0x251   : > { %v3907_v52 = vmax.f32 %v3895_v49, %v3905_v50 }
 0x252   : > { %v3480_v53 = vadd.f32 %v8177_v55, %v3371_v51  ;;  %v2949_v62 = vpop.f32.mrf.mxu2  ;;  %v1020_v54 = vpop.f32.mrf.mxu0  ;;  %v2087_v57 = vld [vmem:[#allocation2 + $0x1b0] sm:$0xff] }
 0x253   : > { %v1880_v56 = vpop.f32.mrf.mxu1  ;;  %3909 = vst.msk [vmem:[#allocation3 + $0x54] sm:$0xff] %vm1170_vm2, %v3907_v52 }
 0x254   : > { %v3585_v60 = vmax.f32 %v3480_v53, 0.0  ;;  %1226 = vst.msk [vmem:[#allocation2 + $0x1b8] sm:$0xff] %vm1170_vm2, %v1020_v54  ;;  %v2192_v9 = vadd.f32 %v2087_v57, %v1880_v56  ;;  %v486_v57 = vld [vmem:[%s7463_s28 + $0x258] sm:$0xff] }
 0x255   : > { %v3158_v61 = vld [vmem:[#allocation2 + $0x1a8] sm:$0xff]  ;;  %6734 = vmatmul.msk.f32.gmra.mxu0 %vm518_vm1, %v482_v58 }
 0x256   : > { %3690 = vst.msk [vmem:[#allocation2 + $0x1a0] sm:$0xff] %vm1170_vm2, %v3585_v60  ;;  %v3263_v63 = vadd.f32 %v3158_v61, %v2949_v62  ;;  %6839 = vmatmul.msk.f32.gmra.mxu1 %vm518_vm1, %v1346_v59  ;;  %v1350_v58 = vld [vmem:[%s7463_s28 + $0x26e] sm:$0xff] }
 0x257   : > { %2297 = vst.msk [vmem:[#allocation2 + $0x1b0] sm:$0xff] %vm1170_vm2, %v2192_v9  ;;  %6945 = vmatmul.msk.f32.gmra.mxu2 %vm518_vm1, %v2418_v14  ;;  %v2422_v9 = vld [vmem:[%s7463_s28 + $0x28c] sm:$0xff] }
 0x258   : > { %v3372_v0 = vmul.f32 %v8171_v2, %v3263_v63 }
 0x25a   : > { %v3481_v3 = vadd.f32 %v8177_v55, %v3372_v0  ;;  %v2952_v4 = vpop.f32.mrf.mxu2  ;;  %v4116_v5 = vld [vmem:[#allocation3 + $0x51] sm:$0xff]  ;;  %v1023_v7 = vpop.f32.mrf.mxu0 }
 0x25b   : > { %6990 = vmatmul.msk.f32.gmra.mxu3 %vm1170_vm2, %v4116_v5  ;;  %v1883_v8 = vpop.f32.mrf.mxu1  ;;  %v2088_v10 = vld [vmem:[#allocation2 + $0x1b8] sm:$0xff]  ;;  %1227 = vst.msk [vmem:[#allocation2 + $0x1c0] sm:$0xff] %vm1170_vm2, %v1023_v7 }
 0x25c   : > { %v3586_v13 = vmax.f32 %v3481_v3, 0.0  ;;  %v2193_v15 = vadd.f32 %v2088_v10, %v1883_v8  ;;  %v1351_v7 = vld [vmem:[%s7463_s28 + $0x276] sm:$0xff] }
 0x25d   : > { %v3900_v17 = vld [vmem:[#allocation2 + $0x196] ss:$2 sm:$0x3f]  ;;  %v3904_v18 = vld [vmem:[#allocation2 + $0x197] ss:$2 sm:$0x3f]  ;;  %6735 = vmatmul.msk.f32.gmra.mxu0 %vm518_vm1, %v483_v11 }
 0x25e   : > { %3691 = vst.msk [vmem:[#allocation2 + $0x1a8] sm:$0xff] %vm1170_vm2, %v3586_v13  ;;  %v3159_v19 = vld [vmem:[#allocation2 + $0x1b0] sm:$0xff]  ;;  %6840 = vmatmul.msk.f32.gmra.mxu1 %vm518_vm1, %v1347_v12  ;;  %v3906_v21 = vmax.f32 %v3900_v17, %v3904_v18 }
 0x25f   : > { %v3264_v22 = vadd.f32 %v3159_v19, %v2952_v4  ;;  %2298 = vst.msk [vmem:[#allocation2 + $0x1b8] sm:$0xff] %vm1170_vm2, %v2193_v15  ;;  %6946 = vmatmul.msk.f32.gmra.mxu2 %vm518_vm1, %v2419_v16  ;;  %v2423_v11 = vld [vmem:[%s7463_s28 + $0x294] sm:$0xff] }
 0x260   : > { %v3908_v23 = vmax.f32 %v3896_v20, %v3906_v21  ;;  %v488_v21 = vld [vmem:[%s7463_s28 + $0x268] sm:$0xff] }
 0x261   : > { %v3373_v24 = vmul.f32 %v8171_v2, %v3264_v22  ;;  %v1352_v22 = vld [vmem:[%s7463_s28 + $0x27e] sm:$0xff] }
 0x262   : > { %v2955_v25 = vpop.f32.mrf.mxu2  ;;  %3910 = vst.msk [vmem:[#allocation3 + $0x5c] sm:$0x3f] %vm3765_vm3, %v3908_v23  ;;  %v1026_v27 = vpop.f32.mrf.mxu0  ;;  %v2089_v29 = vld [vmem:[#allocation2 + $0x1c0] sm:$0xff] }
 0x263   : > { %v3482_v26 = vadd.f32 %v8177_v55, %v3373_v24  ;;  %v1886_v28 = vpop.f32.mrf.mxu1  ;;  %1228 = vst.msk [vmem:[#allocation2 + $0x1c8] sm:$0xff] %vm1170_vm2, %v1026_v27  ;;  %v2424_v24 = vld [vmem:[%s7463_s28 + $0x29c] sm:$0xff] }
 0x264   : > { %v2194_v32 = vadd.f32 %v2089_v29, %v1886_v28 }
 0x265   : > { %v3587_v34 = vmax.f32 %v3482_v26, 0.0  ;;  %6736 = vmatmul.msk.f32.gmra.mxu0 %vm518_vm1, %v484_v30 }
 0x266   : > { %v3160_v35 = vld [vmem:[#allocation2 + $0x1b8] sm:$0xff]  ;;  %2299 = vst.msk [vmem:[#allocation2 + $0x1c0] sm:$0xff] %vm1170_vm2, %v2194_v32  ;;  %6841 = vmatmul.msk.f32.gmra.mxu1 %vm518_vm1, %v1348_v31 }
 0x267   : > { %3692 = vst.msk [vmem:[#allocation2 + $0x1b0] sm:$0xff] %vm1170_vm2, %v3587_v34  ;;  %v3265_v36 = vadd.f32 %v3160_v35, %v2955_v25  ;;  %6947 = vmatmul.msk.f32.gmra.mxu2 %vm518_vm1, %v2420_v33  ;;  %v489_v34 = vld [vmem:[%s7463_s28 + $0x270] sm:$0xff]  ;;  %v1353_v35 = vld [vmem:[%s7463_s28 + $0x286] sm:$0xff] }
 0x269   : > { %v3374_v37 = vmul.f32 %v8171_v2, %v3265_v36  ;;  %v4117_v38 = vld [vmem:[#allocation3 + $0x59] sm:$0xff] }
 0x26a   : > { %v2958_v39 = vpop.f32.mrf.mxu2  ;;  %6991 = vmatmul.msk.f32.gmra.mxu3 %vm1170_vm2, %v4117_v38  ;;  %v1029_v41 = vpop.f32.mrf.mxu0  ;;  %v2090_v43 = vld [vmem:[#allocation2 + $0x1c8] sm:$0xff] }
 0x26b   : > { %v3483_v40 = vadd.f32 %v8177_v55, %v3374_v37  ;;  %v1889_v42 = vpop.f32.mrf.mxu1  ;;  %1229 = vst.msk [vmem:[#allocation2 + $0x1d0] sm:$0xff] %vm1170_vm2, %v1029_v41  ;;  %v2425_v37 = vld [vmem:[%s7463_s28 + $0x2a4] sm:$0xff] }
 0x26c   : > { %v2195_v46 = vadd.f32 %v2090_v43, %v1889_v42 }
 0x26d   : > { %v3588_v48 = vmax.f32 %v3483_v40, 0.0  ;;  %v3161_v49 = vld [vmem:[#allocation2 + $0x1c0] sm:$0xff]  ;;  %6737 = vmatmul.msk.f32.gmra.mxu0 %vm518_vm1, %v485_v44 }
 0x26e   : > { %v3266_v50 = vadd.f32 %v3161_v49, %v2958_v39  ;;  %2300 = vst.msk [vmem:[#allocation2 + $0x1c8] sm:$0xff] %vm1170_vm2, %v2195_v46  ;;  %6842 = vmatmul.msk.f32.gmra.mxu1 %vm518_vm1, %v1349_v45  ;;  %v3912_v38 = vld [vmem:[#allocation2 + $0x1a4] ss:$2 sm:$0xff]  ;;  %v3916_v39 = vld [vmem:[#allocation2 + $0x1a5] ss:$2 sm:$0xff] }
 0x26f   : > { %3693 = vst.msk [vmem:[#allocation2 + $0x1b8] sm:$0xff] %vm1170_vm2, %v3588_v48  ;;  %6948 = vmatmul.msk.f32.gmra.mxu2 %vm518_vm1, %v2421_v47  ;;  %v3919_v45 = vmax.f32 %v3912_v38, %v3916_v39  ;;  %v493_v39 = vld [vmem:[%s7463_s28 + $0x290] sm:$0xff] }
 0x270   : > { %v3375_v51 = vmul.f32 %v8171_v2, %v3266_v50 }
 0x272   : > { %v3484_v52 = vadd.f32 %v8177_v55, %v3375_v51  ;;  %v2961_v53 = vpop.f32.mrf.mxu2  ;;  %v1032_v62 = vpop.f32.mrf.mxu0  ;;  %v2091_v56 = vld [vmem:[#allocation2 + $0x1d0] sm:$0xff] }
 0x273   : > { %v1892_v54 = vpop.f32.mrf.mxu1  ;;  %1230 = vst.msk [vmem:[#allocation2 + $0x1d8] sm:$0xff] %vm1170_vm2, %v1032_v62  ;;  %v490_v62 = vld [vmem:[%s7463_s28 + $0x278] sm:$0xff] }
 0x274   : > { %v3589_v59 = vmax.f32 %v3484_v52, 0.0  ;;  %v2196_v60 = vadd.f32 %v2091_v56, %v1892_v54  ;;  %v1354_v54 = vld [vmem:[%s7463_s28 + $0x28e] sm:$0xff] }
 0x275   : > { %v3162_v14 = vld [vmem:[#allocation2 + $0x1c8] sm:$0xff]  ;;  %6738 = vmatmul.msk.f32.gmra.mxu0 %vm518_vm1, %v486_v57 }
 0x276   : > { %3694 = vst.msk [vmem:[#allocation2 + $0x1c0] sm:$0xff] %vm1170_vm2, %v3589_v59  ;;  %v3267_v61 = vadd.f32 %v3162_v14, %v2961_v53  ;;  %6843 = vmatmul.msk.f32.gmra.mxu1 %vm518_vm1, %v1350_v58  ;;  %v2426_v58 = vld [vmem:[%s7463_s28 + $0x2ac] sm:$0xff]  ;;  %v3914_v59 = vld [vmem:[#allocation2 + $0x1b4] ss:$2 sm:$0x3f] }
 0x277   : > { %2301 = vst.msk [vmem:[#allocation2 + $0x1d0] sm:$0xff] %vm1170_vm2, %v2196_v60  ;;  %6949 = vmatmul.msk.f32.gmra.mxu2 %vm518_vm1, %v2422_v9  ;;  %v3918_v9 = vld [vmem:[#allocation2 + $0x1b5] ss:$2 sm:$0x3f] }
 0x278   : > { %v3376_v63 = vmul.f32 %v8171_v2, %v3267_v61 }
 0x27a   : > { %v3485_v0 = vadd.f32 %v8177_v55, %v3376_v63  ;;  %v2964_v1 = vpop.f32.mrf.mxu2  ;;  %v1035_v3 = vpop.f32.mrf.mxu0  ;;  %v2092_v5 = vld [vmem:[#allocation2 + $0x1d8] sm:$0xff] }
 0x27b   : > { %v1895_v4 = vpop.f32.mrf.mxu1  ;;  %1231 = vst.msk [vmem:[#allocation2 + $0x1e0] sm:$0xff] %vm1170_vm2, %v1035_v3 }
 0x27c   : > { %v3590_v8 = vmax.f32 %v3485_v0, 0.0  ;;  %v2197_v10 = vadd.f32 %v2092_v5, %v1895_v4 }
 0x27d   : > { %6739 = vmatmul.msk.f32.gmra.mxu0 %vm518_vm1, %v487_v6 }
 0x27e   : > { %3695 = vst.msk [vmem:[#allocation2 + $0x1c8] sm:$0xff] %vm1170_vm2, %v3590_v8  ;;  %v3163_v12 = vld [vmem:[#allocation2 + $0x1d0] sm:$0xff]  ;;  %6844 = vmatmul.msk.f32.gmra.mxu1 %vm518_vm1, %v1351_v7 }
 0x27f   : > { %v3268_v13 = vadd.f32 %v3163_v12, %v2964_v1  ;;  %2302 = vst.msk [vmem:[#allocation2 + $0x1d8] sm:$0xff] %vm1170_vm2, %v2197_v10  ;;  %6950 = vmatmul.msk.f32.gmra.mxu2 %vm518_vm1, %v2423_v11  ;;  %v3920_v1 = vmax.f32 %v3914_v59, %v3918_v9  ;;  %v491_v12 = vld [vmem:[%s7463_s28 + $0x280] sm:$0xff] }
 0x281   : > { %v3377_v15 = vmul.f32 %v8171_v2, %v3268_v13  ;;  %v1355_v13 = vld [vmem:[%s7463_s28 + $0x296] sm:$0xff] }
 0x282   : > { %v2967_v16 = vpop.f32.mrf.mxu2  ;;  %v1038_v18 = vpop.f32.mrf.mxu0  ;;  %v2093_v20 = vld [vmem:[#allocation2 + $0x1e0] sm:$0xff] }
 0x283   : > { %v3486_v17 = vadd.f32 %v8177_v55, %v3377_v15  ;;  %v1898_v19 = vpop.f32.mrf.mxu1  ;;  %1232 = vst.msk [vmem:[#allocation2 + $0x1e8] sm:$0xff] %vm1170_vm2, %v1038_v18 }
 0x284   : > { %v2198_v23 = vadd.f32 %v2093_v20, %v1898_v19 }
 0x285   : > { %v3591_v25 = vmax.f32 %v3486_v17, 0.0  ;;  %6740 = vmatmul.msk.f32.gmra.mxu0 %vm518_vm1, %v488_v21  ;;  %v2427_v17 = vld [vmem:[%s7463_s28 + $0x2b4] sm:$0xff] }
 0x286   : > { %v3164_v26 = vld [vmem:[#allocation2 + $0x1d8] sm:$0xff]  ;;  %2303 = vst.msk [vmem:[#allocation2 + $0x1e0] sm:$0xff] %vm1170_vm2, %v2198_v23  ;;  %6845 = vmatmul.msk.f32.gmra.mxu1 %vm518_vm1, %v1352_v22 }
 0x287   : > { %3696 = vst.msk [vmem:[#allocation2 + $0x1d0] sm:$0xff] %vm1170_vm2, %v3591_v25  ;;  %v3269_v27 = vadd.f32 %v3164_v26, %v2967_v16  ;;  %6951 = vmatmul.msk.f32.gmra.mxu2 %vm518_vm1, %v2424_v24  ;;  %v492_v26 = vld [vmem:[%s7463_s28 + $0x288] sm:$0xff] }
 0x289   : > { %v3378_v28 = vmul.f32 %v8171_v2, %v3269_v27  ;;  %v1356_v27 = vld [vmem:[%s7463_s28 + $0x29e] sm:$0xff] }
 0x28a   : > { %v2970_v29 = vpop.f32.mrf.mxu2  ;;  %v1041_v31 = vpop.f32.mrf.mxu0  ;;  %v2094_v33 = vld [vmem:[#allocation2 + $0x1e8] sm:$0xff] }
 0x28b   : > { %v3487_v30 = vadd.f32 %v8177_v55, %v3378_v28  ;;  %v1901_v32 = vpop.f32.mrf.mxu1  ;;  %1233 = vst.msk [vmem:[#allocation2 + $0x1f0] sm:$0xff] %vm1170_vm2, %v1041_v31 }
 0x28c   : > { %v2199_v36 = vadd.f32 %v2094_v33, %v1901_v32 }
 0x28d   : > { %v3592_v40 = vmax.f32 %v3487_v30, 0.0  ;;  %v3165_v41 = vld [vmem:[#allocation2 + $0x1e0] sm:$0xff]  ;;  %6741 = vmatmul.msk.f32.gmra.mxu0 %vm518_vm1, %v489_v34 }
 0x28e   : > { %v3270_v42 = vadd.f32 %v3165_v41, %v2970_v29  ;;  %2304 = vst.msk [vmem:[#allocation2 + $0x1e8] sm:$0xff] %vm1170_vm2, %v2199_v36  ;;  %6846 = vmatmul.msk.f32.gmra.mxu1 %vm518_vm1, %v1353_v35  ;;  %v3922_v43 = vld [vmem:[#allocation2 + $0x1c2] ss:$2 sm:$0xff]  ;;  %v3926_v44 = vld [vmem:[#allocation2 + $0x1c3] ss:$2 sm:$0xff] }
 0x28f   : > { %3697 = vst.msk [vmem:[#allocation2 + $0x1d8] sm:$0xff] %vm1170_vm2, %v3592_v40  ;;  %6952 = vmatmul.msk.f32.gmra.mxu2 %vm518_vm1, %v2425_v37  ;;  %v3929_v46 = vmax.f32 %v3922_v43, %v3926_v44  ;;  %v2428_v29 = vld [vmem:[%s7463_s28 + $0x2bc] sm:$0xff]  ;;  %v1357_v40 = vld [vmem:[%s7463_s28 + $0x2a6] sm:$0xff] }
 0x290   : > { %v3379_v47 = vmul.f32 %v8171_v2, %v3270_v42  ;;  %v2429_v42 = vld [vmem:[%s7463_s28 + $0x2c4] sm:$0xff] }
 0x291   : > { %v3931_v48 = vmax.f32 %v3919_v45, %v3929_v46 }
 0x292   : > { %v3488_v49 = vadd.f32 %v8177_v55, %v3379_v47  ;;  %v2973_v50 = vpop.f32.mrf.mxu2  ;;  %v1044_v51 = vpop.f32.mrf.mxu0  ;;  %v2095_v53 = vld [vmem:[#allocation2 + $0x1f0] sm:$0xff] }
 0x293   : > { %v1904_v52 = vpop.f32.mrf.mxu1  ;;  %3933 = vst.msk [vmem:[#allocation3 + $0x62] sm:$0xff] %vm1170_vm2, %v3931_v48 }
 0x294   : > { %v3593_v56 = vmax.f32 %v3488_v49, 0.0  ;;  %1234 = vst.msk [vmem:[#allocation2 + $0x1f8] sm:$0xff] %vm1170_vm2, %v1044_v51  ;;  %v2200_v57 = vadd.f32 %v2095_v53, %v1904_v52  ;;  %v494_v52 = vld [vmem:[%s7463_s28 + $0x298] sm:$0xff]  ;;  %v1358_v53 = vld [vmem:[%s7463_s28 + $0x2ae] sm:$0xff] }
 0x295   : > { %v3166_v60 = vld [vmem:[#allocation2 + $0x1e8] sm:$0xff]  ;;  %6742 = vmatmul.msk.f32.gmra.mxu0 %vm518_vm1, %v490_v62 }
 0x296   : > { %3698 = vst.msk [vmem:[#allocation2 + $0x1e0] sm:$0xff] %vm1170_vm2, %v3593_v56  ;;  %v3271_v14 = vadd.f32 %v3166_v60, %v2973_v50  ;;  %6847 = vmatmul.msk.f32.gmra.mxu1 %vm518_vm1, %v1354_v54  ;;  %v3924_v61 = vld [vmem:[#allocation2 + $0x1d2] ss:$2 sm:$0x3f] }
 0x297   : > { %2305 = vst.msk [vmem:[#allocation2 + $0x1f0] sm:$0xff] %vm1170_vm2, %v2200_v57  ;;  %6953 = vmatmul.msk.f32.gmra.mxu2 %vm518_vm1, %v2426_v58  ;;  %v3928_v63 = vld [vmem:[#allocation2 + $0x1d3] ss:$2 sm:$0x3f] }
 0x298   : > { %v3380_v0 = vmul.f32 %v8171_v2, %v3271_v14  ;;  %v3930_v3 = vmax.f32 %v3924_v61, %v3928_v63  ;;  %v2430_v56 = vld [vmem:[%s7463_s28 + $0x2cc] sm:$0xff] }
 0x29a   : > { %v3489_v4 = vadd.f32 %v8177_v55, %v3380_v0  ;;  %v2976_v5 = vpop.f32.mrf.mxu2  ;;  %v4118_v6 = vld [vmem:[#allocation3 + $0x61] sm:$0xff]  ;;  %v3932_v7 = vmax.f32 %v3920_v1, %v3930_v3  ;;  %v1047_v8 = vpop.f32.mrf.mxu0  ;;  %v495_v0 = vld [vmem:[%s7463_s28 + $0x2a0] sm:$0xff]  ;;  %v1359_v1 = vld [vmem:[%s7463_s28 + $0x2b6] sm:$0xff] }
 0x29b   : > { %6992 = vmatmul.msk.f32.gmra.mxu3 %vm1170_vm2, %v4118_v6  ;;  %v1907_v10 = vpop.f32.mrf.mxu1  ;;  %v2096_v11 = vld [vmem:[#allocation2 + $0x1f8] sm:$0xff]  ;;  %1235 = vst.msk [vmem:[#allocation2 + $0x200] sm:$0xff] %vm1170_vm2, %v1047_v8 }
 0x29c   : > { %v3594_v15 = vmax.f32 %v3489_v4, 0.0  ;;  %v2201_v16 = vadd.f32 %v2096_v11, %v1907_v10  ;;  %3934 = vst.msk [vmem:[#allocation3 + $0x6a] sm:$0x3f] %vm3765_vm3, %v3932_v7 }
 0x29d   : > { %6743 = vmatmul.msk.f32.gmra.mxu0 %vm518_vm1, %v491_v12 }
 0x29e   : > { %3699 = vst.msk [vmem:[#allocation2 + $0x1e8] sm:$0xff] %vm1170_vm2, %v3594_v15  ;;  %v3167_v18 = vld [vmem:[#allocation2 + $0x1f0] sm:$0xff]  ;;  %6848 = vmatmul.msk.f32.gmra.mxu1 %vm518_vm1, %v1355_v13 }
 0x29f   : > { %v3272_v19 = vadd.f32 %v3167_v18, %v2976_v5  ;;  %2306 = vst.msk [vmem:[#allocation2 + $0x1f8] sm:$0xff] %vm1170_vm2, %v2201_v16  ;;  %6954 = vmatmul.msk.f32.gmra.mxu2 %vm518_vm1, %v2427_v17  ;;  %v2431_v5 = vld [vmem:[%s7463_s28 + $0x2d4] sm:$0xff]  ;;  %v496_v18 = vld [vmem:[%s7463_s28 + $0x2a8] sm:$0xff] }
 0x2a1   : > { %v3381_v20 = vmul.f32 %v8171_v2, %v3272_v19  ;;  %v1360_v19 = vld [vmem:[%s7463_s28 + $0x2be] sm:$0xff] }
 0x2a2   : > { %v2979_v21 = vpop.f32.mrf.mxu2  ;;  %v1050_v23 = vpop.f32.mrf.mxu0  ;;  %v2097_v25 = vld [vmem:[#allocation2 + $0x200] sm:$0xff] }
 0x2a3   : > { %v3490_v22 = vadd.f32 %v8177_v55, %v3381_v20  ;;  %v1910_v24 = vpop.f32.mrf.mxu1  ;;  %1236 = vst.msk [vmem:[#allocation2 + $0x208] sm:$0xff] %vm1170_vm2, %v1050_v23 }
 0x2a4   : > { %v2202_v28 = vadd.f32 %v2097_v25, %v1910_v24 }
 0x2a5   : > { %v3595_v30 = vmax.f32 %v3490_v22, 0.0  ;;  %6744 = vmatmul.msk.f32.gmra.mxu0 %vm518_vm1, %v492_v26  ;;  %v3936_v11 = vld [vmem:[#allocation2 + $0x1e0] ss:$2 sm:$0xff]  ;;  %v3940_v12 = vld [vmem:[#allocation2 + $0x1e1] ss:$2 sm:$0xff] }
 0x2a6   : > { %v3168_v31 = vld [vmem:[#allocation2 + $0x1f8] sm:$0xff]  ;;  %2307 = vst.msk [vmem:[#allocation2 + $0x200] sm:$0xff] %vm1170_vm2, %v2202_v28  ;;  %6849 = vmatmul.msk.f32.gmra.mxu1 %vm518_vm1, %v1356_v27  ;;  %v3943_v26 = vmax.f32 %v3936_v11, %v3940_v12 }
 0x2a7   : > { %3700 = vst.msk [vmem:[#allocation2 + $0x1f0] sm:$0xff] %vm1170_vm2, %v3595_v30  ;;  %v3273_v32 = vadd.f32 %v3168_v31, %v2979_v21  ;;  %6955 = vmatmul.msk.f32.gmra.mxu2 %vm518_vm1, %v2428_v29  ;;  %v2432_v21 = vld [vmem:[%s7463_s28 + $0x2dc] sm:$0xff]  ;;  %v2435_v11 = vld [vmem:[%s7463_s28 + $0x2f4] sm:$0xff] }
 0x2a9   : > { %v3382_v33 = vmul.f32 %v8171_v2, %v3273_v32 }
 0x2aa   : > { %v2982_v34 = vpop.f32.mrf.mxu2  ;;  %v1053_v36 = vpop.f32.mrf.mxu0  ;;  %v2098_v38 = vld [vmem:[#allocation2 + $0x208] sm:$0xff] }
 0x2ab   : > { %v3491_v35 = vadd.f32 %v8177_v55, %v3382_v33  ;;  %v1913_v37 = vpop.f32.mrf.mxu1  ;;  %1237 = vst.msk [vmem:[#allocation2 + $0x210] sm:$0xff] %vm1170_vm2, %v1053_v36  ;;  %v497_v36 = vld [vmem:[%s7463_s28 + $0x2b0] sm:$0xff] }
 0x2ac   : > { %v2203_v41 = vadd.f32 %v2098_v38, %v1913_v37  ;;  %v1361_v37 = vld [vmem:[%s7463_s28 + $0x2c6] sm:$0xff] }
 0x2ad   : > { %v3596_v43 = vmax.f32 %v3491_v35, 0.0  ;;  %v3169_v44 = vld [vmem:[#allocation2 + $0x200] sm:$0xff]  ;;  %6745 = vmatmul.msk.f32.gmra.mxu0 %vm518_vm1, %v493_v39 }
 0x2ae   : > { %v3274_v45 = vadd.f32 %v3169_v44, %v2982_v34  ;;  %2308 = vst.msk [vmem:[#allocation2 + $0x208] sm:$0xff] %vm1170_vm2, %v2203_v41  ;;  %6850 = vmatmul.msk.f32.gmra.mxu1 %vm518_vm1, %v1357_v40  ;;  %v2433_v39 = vld [vmem:[%s7463_s28 + $0x2e4] sm:$0xff] }
 0x2af   : > { %3701 = vst.msk [vmem:[#allocation2 + $0x1f8] sm:$0xff] %vm1170_vm2, %v3596_v43  ;;  %6956 = vmatmul.msk.f32.gmra.mxu2 %vm518_vm1, %v2429_v42 }
 0x2b0   : > { %v3383_v46 = vmul.f32 %v8171_v2, %v3274_v45 }
 0x2b2   : > { %v3492_v47 = vadd.f32 %v8177_v55, %v3383_v46  ;;  %v2985_v48 = vpop.f32.mrf.mxu2  ;;  %v1056_v49 = vpop.f32.mrf.mxu0  ;;  %v2099_v51 = vld [vmem:[#allocation2 + $0x210] sm:$0xff] }
 0x2b3   : > { %v1916_v50 = vpop.f32.mrf.mxu1  ;;  %1238 = vst.msk [vmem:[#allocation2 + $0x218] sm:$0xff] %vm1170_vm2, %v1056_v49 }
 0x2b4   : > { %v3597_v62 = vmax.f32 %v3492_v47, 0.0  ;;  %v2204_v54 = vadd.f32 %v2099_v51, %v1916_v50  ;;  %v498_v50 = vld [vmem:[%s7463_s28 + $0x2b8] sm:$0xff]  ;;  %v1362_v51 = vld [vmem:[%s7463_s28 + $0x2ce] sm:$0xff] }
 0x2b5   : > { %v3170_v57 = vld [vmem:[#allocation2 + $0x208] sm:$0xff]  ;;  %6746 = vmatmul.msk.f32.gmra.mxu0 %vm518_vm1, %v494_v52 }
 0x2b6   : > { %3702 = vst.msk [vmem:[#allocation2 + $0x200] sm:$0xff] %vm1170_vm2, %v3597_v62  ;;  %v3275_v58 = vadd.f32 %v3170_v57, %v2985_v48  ;;  %6851 = vmatmul.msk.f32.gmra.mxu1 %vm518_vm1, %v1358_v53  ;;  %v2434_v62 = vld [vmem:[%s7463_s28 + $0x2ec] sm:$0xff] }
 0x2b7   : > { %2309 = vst.msk [vmem:[#allocation2 + $0x210] sm:$0xff] %vm1170_vm2, %v2204_v54  ;;  %6957 = vmatmul.msk.f32.gmra.mxu2 %vm518_vm1, %v2430_v56  ;;  %v3938_v54 = vld [vmem:[#allocation2 + $0x1f0] ss:$2 sm:$0x3f] }
 0x2b8   : > { %v3384_v59 = vmul.f32 %v8171_v2, %v3275_v58  ;;  %v3942_v57 = vld [vmem:[#allocation2 + $0x1f1] ss:$2 sm:$0x3f] }
 0x2ba   : > { %v3493_v60 = vadd.f32 %v8177_v55, %v3384_v59  ;;  %v2988_v9 = vpop.f32.mrf.mxu2  ;;  %v1059_v14 = vpop.f32.mrf.mxu0  ;;  %v2100_v63 = vld [vmem:[#allocation2 + $0x218] sm:$0xff] }
 0x2bb   : > { %v1919_v61 = vpop.f32.mrf.mxu1  ;;  %1239 = vst.msk [vmem:[#allocation2 + $0x220] sm:$0xff] %vm1170_vm2, %v1059_v14  ;;  %v3944_v14 = vmax.f32 %v3938_v54, %v3942_v57 }
 0x2bc   : > { %v3598_v3 = vmax.f32 %v3493_v60, 0.0  ;;  %v2205_v4 = vadd.f32 %v2100_v63, %v1919_v61 }
 0x2bd   : > { %6747 = vmatmul.msk.f32.gmra.mxu0 %vm518_vm1, %v495_v0 }
 0x2be   : > { %3703 = vst.msk [vmem:[#allocation2 + $0x208] sm:$0xff] %vm1170_vm2, %v3598_v3  ;;  %v3171_v6 = vld [vmem:[#allocation2 + $0x210] sm:$0xff]  ;;  %6852 = vmatmul.msk.f32.gmra.mxu1 %vm518_vm1, %v1359_v1 }
 0x2bf   : > { %v3276_v7 = vadd.f32 %v3171_v6, %v2988_v9  ;;  %2310 = vst.msk [vmem:[#allocation2 + $0x218] sm:$0xff] %vm1170_vm2, %v2205_v4  ;;  %6958 = vmatmul.msk.f32.gmra.mxu2 %vm518_vm1, %v2431_v5  ;;  %v499_v6 = vld [vmem:[%s7463_s28 + $0x2c0] sm:$0xff] }
 0x2c1   : > { %v3385_v8 = vmul.f32 %v8171_v2, %v3276_v7  ;;  %v1363_v7 = vld [vmem:[%s7463_s28 + $0x2d6] sm:$0xff] }
 0x2c2   : > { %v2991_v10 = vpop.f32.mrf.mxu2  ;;  %v1062_v15 = vpop.f32.mrf.mxu0  ;;  %v2101_v17 = vld [vmem:[#allocation2 + $0x220] sm:$0xff] }
 0x2c3   : > { %v3494_v13 = vadd.f32 %v8177_v55, %v3385_v8  ;;  %v1922_v16 = vpop.f32.mrf.mxu1  ;;  %1240 = vst.msk [vmem:[#allocation2 + $0x228] sm:$0xff] %vm1170_vm2, %v1062_v15 }
 0x2c4   : > { %v2206_v20 = vadd.f32 %v2101_v17, %v1922_v16 }
 0x2c5   : > { %v3599_v22 = vmax.f32 %v3494_v13, 0.0  ;;  %v3946_v23 = vld [vmem:[#allocation2 + $0x1fe] ss:$2 sm:$0xff]  ;;  %v3950_v24 = vld [vmem:[#allocation2 + $0x1ff] ss:$2 sm:$0xff]  ;;  %6748 = vmatmul.msk.f32.gmra.mxu0 %vm518_vm1, %v496_v18 }
 0x2c6   : > { %v3172_v25 = vld [vmem:[#allocation2 + $0x218] sm:$0xff]  ;;  %2311 = vst.msk [vmem:[#allocation2 + $0x220] sm:$0xff] %vm1170_vm2, %v2206_v20  ;;  %6853 = vmatmul.msk.f32.gmra.mxu1 %vm518_vm1, %v1360_v19  ;;  %v3953_v27 = vmax.f32 %v3946_v23, %v3950_v24 }
 0x2c7   : > { %3704 = vst.msk [vmem:[#allocation2 + $0x210] sm:$0xff] %vm1170_vm2, %v3599_v22  ;;  %v3277_v28 = vadd.f32 %v3172_v25, %v2991_v10  ;;  %6959 = vmatmul.msk.f32.gmra.mxu2 %vm518_vm1, %v2432_v21  ;;  %v500_v21 = vld [vmem:[%s7463_s28 + $0x2c8] sm:$0xff]  ;;  %v1364_v22 = vld [vmem:[%s7463_s28 + $0x2de] sm:$0xff] }
 0x2c8   : > { %v3955_v29 = vmax.f32 %v3943_v26, %v3953_v27  ;;  %v2436_v25 = vld [vmem:[%s7463_s28 + $0x2fc] sm:$0xff] }
 0x2c9   : > { %v3386_v30 = vmul.f32 %v8171_v2, %v3277_v28 }
 0x2ca   : > { %v2994_v31 = vpop.f32.mrf.mxu2  ;;  %3957 = vst.msk [vmem:[#allocation3 + $0x70] sm:$0xff] %vm1170_vm2, %v3955_v29  ;;  %v1065_v33 = vpop.f32.mrf.mxu0  ;;  %v2102_v35 = vld [vmem:[#allocation2 + $0x228] sm:$0xff] }
 0x2cb   : > { %v3495_v32 = vadd.f32 %v8177_v55, %v3386_v30  ;;  %v1925_v34 = vpop.f32.mrf.mxu1  ;;  %1241 = vst.msk [vmem:[#allocation2 + $0x230] sm:$0xff] %vm1170_vm2, %v1065_v33 }
 0x2cc   : > { %v2207_v38 = vadd.f32 %v2102_v35, %v1925_v34  ;;  %v501_v35 = vld [vmem:[%s7463_s28 + $0x2d0] sm:$0xff] }
 0x2cd   : > { %v3600_v40 = vmax.f32 %v3495_v32, 0.0  ;;  %v3173_v41 = vld [vmem:[#allocation2 + $0x220] sm:$0xff]  ;;  %6749 = vmatmul.msk.f32.gmra.mxu0 %vm518_vm1, %v497_v36 }
 0x2ce   : > { %v3278_v42 = vadd.f32 %v3173_v41, %v2994_v31  ;;  %2312 = vst.msk [vmem:[#allocation2 + $0x228] sm:$0xff] %vm1170_vm2, %v2207_v38  ;;  %6854 = vmatmul.msk.f32.gmra.mxu1 %vm518_vm1, %v1361_v37  ;;  %v1365_v36 = vld [vmem:[%s7463_s28 + $0x2e6] sm:$0xff] }
 0x2cf   : > { %3705 = vst.msk [vmem:[#allocation2 + $0x218] sm:$0xff] %vm1170_vm2, %v3600_v40  ;;  %6960 = vmatmul.msk.f32.gmra.mxu2 %vm518_vm1, %v2433_v39  ;;  %v2437_v38 = vld [vmem:[%s7463_s28 + $0x304] sm:$0xff] }
 0x2d0   : > { %v3387_v43 = vmul.f32 %v8171_v2, %v3278_v42  ;;  %v8462_v42 = vld [vmem:[%s10031_s3] ss:$0 sm:$0xff] }
 0x2d1   : > { %v4119_v44 = vld [vmem:[#allocation3 + $0x69] sm:$0xff] }
 0x2d2   : > { %v3496_v45 = vadd.f32 %v8177_v55, %v3387_v43  ;;  %v2997_v46 = vpop.f32.mrf.mxu2  ;;  %6993 = vmatmul.msk.f32.gmra.mxu3 %vm1170_vm2, %v4119_v44  ;;  %v1068_v47 = vpop.f32.mrf.mxu0  ;;  %v2103_v49 = vld [vmem:[#allocation2 + $0x230] sm:$0xff] }
 0x2d3   : > { %v1928_v48 = vpop.f32.mrf.mxu1  ;;  %1242 = vst.msk [vmem:[#allocation2 + $0x238] sm:$0xff] %vm1170_vm2, %v1068_v47 }
 0x2d4   : > { %v3601_v52 = vmax.f32 %v3496_v45, 0.0  ;;  %v2208_v53 = vadd.f32 %v2103_v49, %v1928_v48  ;;  %v502_v48 = vld [vmem:[%s7463_s28 + $0x2d8] sm:$0xff]  ;;  %v1366_v49 = vld [vmem:[%s7463_s28 + $0x2ee] sm:$0xff] }
 0x2d5   : > { %v3174_v56 = vld [vmem:[#allocation2 + $0x228] sm:$0xff]  ;;  %6750 = vmatmul.msk.f32.gmra.mxu0 %vm518_vm1, %v498_v50 }
 0x2d6   : > { %3706 = vst.msk [vmem:[#allocation2 + $0x220] sm:$0xff] %vm1170_vm2, %v3601_v52  ;;  %v3279_v58 = vadd.f32 %v3174_v56, %v2997_v46  ;;  %6855 = vmatmul.msk.f32.gmra.mxu1 %vm518_vm1, %v1362_v51  ;;  %v3948_v59 = vld [vmem:[#allocation2 + $0x20e] ss:$2 sm:$0x3f] }
 0x2d7   : > { %2313 = vst.msk [vmem:[#allocation2 + $0x230] sm:$0xff] %vm1170_vm2, %v2208_v53  ;;  %6961 = vmatmul.msk.f32.gmra.mxu2 %vm518_vm1, %v2434_v62  ;;  %v3952_v60 = vld [vmem:[#allocation2 + $0x20f] ss:$2 sm:$0x3f] }
 0x2d8   : > { %v3388_v9 = vmul.f32 %v8171_v2, %v3279_v58  ;;  %v3954_v61 = vmax.f32 %v3948_v59, %v3952_v60  ;;  %v2438_v52 = vld [vmem:[%s7463_s28 + $0x30c] sm:$0xff] }
 0x2da   : > { %v3497_v63 = vadd.f32 %v8177_v55, %v3388_v9  ;;  %v3000_v0 = vpop.f32.mrf.mxu2  ;;  %v3956_v1 = vmax.f32 %v3944_v14, %v3954_v61  ;;  %v1071_v3 = vpop.f32.mrf.mxu0  ;;  %v2104_v5 = vld [vmem:[#allocation2 + $0x238] sm:$0xff]  ;;  %v503_v9 = vld [vmem:[%s7463_s28 + $0x2e0] sm:$0xff] }
 0x2db   : > { %v1931_v4 = vpop.f32.mrf.mxu1  ;;  %1243 = vst.msk [vmem:[#allocation2 + $0x240] sm:$0xff] %vm1170_vm2, %v1071_v3  ;;  %v1367_v14 = vld [vmem:[%s7463_s28 + $0x2f6] sm:$0xff] }
 0x2dc   : > { %v3602_v8 = vmax.f32 %v3497_v63, 0.0  ;;  %v2209_v10 = vadd.f32 %v2104_v5, %v1931_v4  ;;  %3958 = vst.msk [vmem:[#allocation3 + $0x78] sm:$0x3f] %vm3765_vm3, %v3956_v1 }
 0x2dd   : > { %6751 = vmatmul.msk.f32.gmra.mxu0 %vm518_vm1, %v499_v6 }
 0x2de   : > { %3707 = vst.msk [vmem:[#allocation2 + $0x228] sm:$0xff] %vm1170_vm2, %v3602_v8  ;;  %v3175_v12 = vld [vmem:[#allocation2 + $0x230] sm:$0xff]  ;;  %6856 = vmatmul.msk.f32.gmra.mxu1 %vm518_vm1, %v1363_v7 }
 0x2df   : > { %v3280_v13 = vadd.f32 %v3175_v12, %v3000_v0  ;;  %2314 = vst.msk [vmem:[#allocation2 + $0x238] sm:$0xff] %vm1170_vm2, %v2209_v10  ;;  %6962 = vmatmul.msk.f32.gmra.mxu2 %vm518_vm1, %v2435_v11  ;;  %v2439_v0 = vld [vmem:[%s7463_s28 + $0x314] sm:$0xff] }
 0x2e1   : > { %v3389_v15 = vmul.f32 %v8171_v2, %v3280_v13  ;;  %v504_v13 = vld [vmem:[%s7463_s28 + $0x2e8] sm:$0xff] }
 0x2e2   : > { %v3003_v16 = vpop.f32.mrf.mxu2  ;;  %v1074_v18 = vpop.f32.mrf.mxu0  ;;  %v2105_v20 = vld [vmem:[#allocation2 + $0x240] sm:$0xff] }
 0x2e3   : > { %v3498_v17 = vadd.f32 %v8177_v55, %v3389_v15  ;;  %v1934_v19 = vpop.f32.mrf.mxu1  ;;  %v4120_v23 = vld [vmem:[#allocation3 + $0x71] sm:$0xff]  ;;  %1244 = vst.msk [vmem:[#allocation2 + $0x248] sm:$0xff] %vm1170_vm2, %v1074_v18 }
 0x2e4   : > { %v2210_v24 = vadd.f32 %v2105_v20, %v1934_v19  ;;  %6994 = vmatmul.msk.f32.gmra.mxu3 %vm1170_vm2, %v4120_v23  ;;  %v1368_v15 = vld [vmem:[%s7463_s28 + $0x2fe] sm:$0xff] }
 0x2e5   : > { %v3603_v26 = vmax.f32 %v3498_v17, 0.0  ;;  %6752 = vmatmul.msk.f32.gmra.mxu0 %vm518_vm1, %v500_v21  ;;  %v3960_v6 = vld [vmem:[#allocation2 + $0x21c] ss:$2 sm:$0xff]  ;;  %v3964_v7 = vld [vmem:[#allocation2 + $0x21d] ss:$2 sm:$0xff] }
 0x2e6   : > { %v3176_v27 = vld [vmem:[#allocation2 + $0x238] sm:$0xff]  ;;  %2315 = vst.msk [vmem:[#allocation2 + $0x240] sm:$0xff] %vm1170_vm2, %v2210_v24  ;;  %6857 = vmatmul.msk.f32.gmra.mxu1 %vm518_vm1, %v1364_v22  ;;  %v3967_v22 = vmax.f32 %v3960_v6, %v3964_v7  ;;  %v507_v6 = vld [vmem:[%s7463_s28 + $0x300] sm:$0xff] }
 0x2e7   : > { %3708 = vst.msk [vmem:[#allocation2 + $0x230] sm:$0xff] %vm1170_vm2, %v3603_v26  ;;  %v3281_v28 = vadd.f32 %v3176_v27, %v3003_v16  ;;  %6963 = vmatmul.msk.f32.gmra.mxu2 %vm518_vm1, %v2436_v25  ;;  %v2440_v17 = vld [vmem:[%s7463_s28 + $0x31c] sm:$0xff] }
 0x2e8   : > { %v5240_v25 = vld [vmem:[%s10032_s4 + $0xd8] sm:$0xff] }
 0x2e9   : > { %v3390_v29 = vmul.f32 %v8171_v2, %v3281_v28  ;;  %v8456_v2 = vld [vmem:[%s10030_s2] ss:$0 sm:$0xff]  ;;  %5484 = vmatpush.msra.mxu2 %v5240_v25  ;;  %v1371_v7 = vld [vmem:[%s7463_s28 + $0x316] sm:$0xff] }
 0x2ea   : > { %v3006_v30 = vpop.f32.mrf.mxu2  ;;  %v1077_v32 = vpop.f32.mrf.mxu0  ;;  %v2106_v34 = vld [vmem:[#allocation2 + $0x248] sm:$0xff]  ;;  %v2444_v25 = vld [vmem:[%s7463_s28 + $0x33c] sm:$0xff] }
 0x2eb   : > { %v3499_v31 = vadd.f32 %v8177_v55, %v3390_v29  ;;  %v1937_v33 = vpop.f32.mrf.mxu1  ;;  %1245 = vst.msk [vmem:[#allocation2 + $0x250] sm:$0xff] %vm1170_vm2, %v1077_v32 }
 0x2ec   : > { %v2211_v37 = vadd.f32 %v2106_v34, %v1937_v33  ;;  %v505_v33 = vld [vmem:[%s7463_s28 + $0x2f0] sm:$0xff]  ;;  %v1369_v34 = vld [vmem:[%s7463_s28 + $0x306] sm:$0xff] }
 0x2ed   : > { %v3604_v39 = vmax.f32 %v3499_v31, 0.0  ;;  %v3177_v40 = vld [vmem:[#allocation2 + $0x240] sm:$0xff]  ;;  %6753 = vmatmul.msk.f32.gmra.mxu0 %vm518_vm1, %v501_v35 }
 0x2ee   : > { %v3282_v41 = vadd.f32 %v3177_v40, %v3006_v30  ;;  %2316 = vst.msk [vmem:[#allocation2 + $0x248] sm:$0xff] %vm1170_vm2, %v2211_v37  ;;  %6858 = vmatmul.msk.f32.gmra.mxu1 %vm518_vm1, %v1365_v36  ;;  %v2441_v36 = vld [vmem:[%s7463_s28 + $0x324] sm:$0xff]  ;;  %v3962_v37 = vld [vmem:[#allocation2 + $0x22c] ss:$2 sm:$0x3f] }
 0x2ef   : > { %3709 = vst.msk [vmem:[#allocation2 + $0x238] sm:$0xff] %vm1170_vm2, %v3604_v39  ;;  %6964 = vmatmul.msk.f32.gmra.mxu2 %vm518_vm1, %v2437_v38  ;;  %v3966_v40 = vld [vmem:[#allocation2 + $0x22d] ss:$2 sm:$0x3f] }
 0x2f0   : > { %v3391_v55 = vmul.f32 %v8456_v2, %v3282_v41 }
 0x2f2   : > { %v3500_v43 = vadd.f32 %v8462_v42, %v3391_v55  ;;  %v3009_v44 = vpop.f32.mrf.mxu2  ;;  %v1080_v45 = vpop.f32.mrf.mxu0  ;;  %v2107_v47 = vld [vmem:[#allocation2 + $0x250] sm:$0xff] }
 0x2f3   : > { %v1940_v46 = vpop.f32.mrf.mxu1  ;;  %1246 = vst.msk [vmem:[#allocation2 + $0x258] sm:$0xff] %vm1170_vm2, %v1080_v45  ;;  %v5265_v45 = vld [vmem:[%s10032_s4 + $0xf8] sm:$0xff] }
 0x2f4   : > { %v3605_v50 = vmax.f32 %v3500_v43, 0.0  ;;  %v2212_v51 = vadd.f32 %v2107_v47, %v1940_v46  ;;  %v3968_v47 = vmax.f32 %v3962_v37, %v3966_v40  ;;  %5341 = vmatpush.msra.mxu1 %v5265_v45  ;;  %v510_v45 = vld [vmem:[%s7463_s28 + $0x318] sm:$0xff] }
 0x2f5   : > { %v3178_v53 = vld [vmem:[#allocation2 + $0x248] sm:$0xff]  ;;  %6754 = vmatmul.msk.f32.gmra.mxu0 %vm518_vm1, %v502_v48 }
 0x2f6   : > { %3710 = vst.msk [vmem:[#allocation2 + $0x240] sm:$0xff] %vm1170_vm2, %v3605_v50  ;;  %v3283_v62 = vadd.f32 %v3178_v53, %v3009_v44  ;;  %6859 = vmatmul.msk.f32.gmra.mxu1 %vm518_vm1, %v1366_v49  ;;  %v4105_v44 = vld [vmem:[%s10032_s4 + $0x18] sm:$0xff] }
 0x2f7   : > { %2317 = vst.msk [vmem:[#allocation2 + $0x250] sm:$0xff] %vm1170_vm2, %v2212_v51  ;;  %6965 = vmatmul.msk.f32.gmra.mxu2 %vm518_vm1, %v2438_v52  ;;  %4349 = vmatpush.msrb.mxu3 %v4105_v44 }
 0x2f8   : > { %v3392_v54 = vmul.f32 %v8456_v2, %v3283_v62 }
 0x2fa   : > { %v3501_v56 = vadd.f32 %v8462_v42, %v3392_v54  ;;  %v3012_v57 = vpop.f32.mrf.mxu2  ;;  %v1083_v58 = vpop.f32.mrf.mxu0  ;;  %v2108_v60 = vld [vmem:[#allocation2 + $0x258] sm:$0xff] }
 0x2fb   : > { %v1943_v59 = vpop.f32.mrf.mxu1  ;;  %1247 = vst.msk [vmem:[#allocation2 + $0x260] sm:$0xff] %vm1170_vm2, %v1083_v58 }
 0x2fc   : > { %v3606_v61 = vmax.f32 %v3501_v56, 0.0  ;;  %v2213_v63 = vadd.f32 %v2108_v60, %v1943_v59  ;;  %v506_v56 = vld [vmem:[%s7463_s28 + $0x2f8] sm:$0xff]  ;;  %v2442_v60 = vld [vmem:[%s7463_s28 + $0x32c] sm:$0xff] }
 0x2fd   : > { %6755 = vmatmul.msk.f32.gmra.mxu0 %vm518_vm1, %v503_v9 }
 0x2fe   : > { %3711 = vst.msk [vmem:[#allocation2 + $0x248] sm:$0xff] %vm1170_vm2, %v3606_v61  ;;  %v3179_v1 = vld [vmem:[#allocation2 + $0x250] sm:$0xff]  ;;  %6860 = vmatmul.msk.f32.gmra.mxu1 %vm518_vm1, %v1367_v14  ;;  %v4988_v61 = vld [vmem:[%s10032_s4 + $0xb8] sm:$0xff] }
 0x2ff   : > { %v3284_v3 = vadd.f32 %v3179_v1, %v3012_v57  ;;  %2318 = vst.msk [vmem:[#allocation2 + $0x258] sm:$0xff] %vm1170_vm2, %v2213_v63  ;;  %6966 = vmatmul.msk.f32.gmra.mxu2 %vm518_vm1, %v2439_v0  ;;  %v1370_v57 = vld [vmem:[%s7463_s28 + $0x30e] sm:$0xff]  ;;  %5064 = vmatpush.msrb.mxu0 %v4988_v61 }
 0x301   : > { %v3393_v4 = vmul.f32 %v8456_v2, %v3284_v3 }
 0x302   : > { %v3015_v5 = vpop.f32.mrf.mxu2  ;;  %v1086_v10 = vpop.f32.mrf.mxu0  ;;  %v2109_v12 = vld [vmem:[#allocation2 + $0x260] sm:$0xff] }
 0x303   : > { %v3502_v8 = vadd.f32 %v8462_v42, %v3393_v4  ;;  %v1946_v11 = vpop.f32.mrf.mxu1  ;;  %1248 = vst.msk [vmem:[#allocation2 + $0x268] sm:$0xff] %vm1170_vm2, %v1086_v10 }
 0x304   : > { %v2214_v16 = vadd.f32 %v2109_v12, %v1946_v11  ;;  %v2443_v12 = vld [vmem:[%s7463_s28 + $0x334] sm:$0xff] }
 0x305   : > { %v3607_v18 = vmax.f32 %v3502_v8, 0.0  ;;  %v3970_v19 = vld [vmem:[#allocation2 + $0x23a] ss:$2 sm:$0xff]  ;;  %v3974_v20 = vld [vmem:[#allocation2 + $0x23b] ss:$2 sm:$0xff]  ;;  %6756 = vmatmul.msk.f32.gmra.mxu0 %vm518_vm1, %v504_v13 }
 0x306   : > { %v3180_v21 = vld [vmem:[#allocation2 + $0x258] sm:$0xff]  ;;  %2319 = vst.msk [vmem:[#allocation2 + $0x260] sm:$0xff] %vm1170_vm2, %v2214_v16  ;;  %6861 = vmatmul.msk.f32.gmra.mxu1 %vm518_vm1, %v1368_v15  ;;  %v3977_v23 = vmax.f32 %v3970_v19, %v3974_v20 }
 0x307   : > { %3712 = vst.msk [vmem:[#allocation2 + $0x250] sm:$0xff] %vm1170_vm2, %v3607_v18  ;;  %v3285_v24 = vadd.f32 %v3180_v21, %v3015_v5  ;;  %6967 = vmatmul.msk.f32.gmra.mxu2 %vm518_vm1, %v2440_v17 }
 0x308   : > { %v3979_v26 = vmax.f32 %v3967_v22, %v3977_v23  ;;  %v508_v22 = vld [vmem:[%s7463_s28 + $0x308] sm:$0xff]  ;;  %v1372_v23 = vld [vmem:[%s7463_s28 + $0x31e] sm:$0xff] }
 0x309   : > { %v3394_v27 = vmul.f32 %v8456_v2, %v3285_v24 }
 0x30a   : > { %v3018_v28 = vpop.f32.mrf.mxu2  ;;  %3981 = vst.msk [vmem:[#allocation3 + $0x7e] sm:$0xff] %vm1170_vm2, %v3979_v26  ;;  %v1089_v30 = vpop.f32.mrf.mxu0  ;;  %v2110_v32 = vld [vmem:[#allocation2 + $0x268] sm:$0xff] }
 0x30b   : > { %v3503_v29 = vadd.f32 %v8462_v42, %v3394_v27  ;;  %v1949_v31 = vpop.f32.mrf.mxu1  ;;  %1249 = vst.msk [vmem:[#allocation2 + $0x270] sm:$0xff] %vm1170_vm2, %v1089_v30 }
 0x30c   : > { %v2215_v35 = vadd.f32 %v2110_v32, %v1949_v31 }
 0x30d   : > { %v3608_v38 = vmax.f32 %v3503_v29, 0.0  ;;  %v3181_v39 = vld [vmem:[#allocation2 + $0x260] sm:$0xff]  ;;  %6757 = vmatmul.msk.f32.gmra.mxu0 %vm518_vm1, %v505_v33 }
 0x30e   : > { %v3286_v41 = vadd.f32 %v3181_v39, %v3018_v28  ;;  %2320 = vst.msk [vmem:[#allocation2 + $0x268] sm:$0xff] %vm1170_vm2, %v2215_v35  ;;  %6862 = vmatmul.msk.f32.gmra.mxu1 %vm518_vm1, %v1369_v34  ;;  %v3972_v55 = vld [vmem:[#allocation2 + $0x24a] ss:$2 sm:$0x3f] }
 0x30f   : > { %3713 = vst.msk [vmem:[#allocation2 + $0x258] sm:$0xff] %vm1170_vm2, %v3608_v38  ;;  %6968 = vmatmul.msk.f32.gmra.mxu2 %vm518_vm1, %v2441_v36  ;;  %v3976_v43 = vld [vmem:[#allocation2 + $0x24b] ss:$2 sm:$0x3f] }
 0x310   : > { %v3395_v46 = vmul.f32 %v8456_v2, %v3286_v41  ;;  %v3978_v48 = vmax.f32 %v3972_v55, %v3976_v43  ;;  %v509_v35 = vld [vmem:[%s7463_s28 + $0x310] sm:$0xff]  ;;  %v1373_v36 = vld [vmem:[%s7463_s28 + $0x326] sm:$0xff] }
 0x311   : > { %v4121_v49 = vld [vmem:[#allocation3 + $0x79] sm:$0xff] }
 0x312   : > { %v3504_v50 = vadd.f32 %v8462_v42, %v3395_v46  ;;  %v3021_v51 = vpop.f32.mrf.mxu2  ;;  %6995 = vmatmul.msk.f32.gmra.mxu3 %vm1170_vm2, %v4121_v49  ;;  %v3980_v52 = vmax.f32 %v3968_v47, %v3978_v48  ;;  %v1092_v53 = vpop.f32.mrf.mxu0  ;;  %v2111_v54 = vld [vmem:[#allocation2 + $0x270] sm:$0xff]  ;;  %v2445_v38 = vld [vmem:[%s7463_s28 + $0x344] sm:$0xff] }
 0x313   : > { %v1952_v62 = vpop.f32.mrf.mxu1  ;;  %1250 = vst.msk [vmem:[#allocation2 + $0x278] sm:$0xff] %vm1170_vm2, %v1092_v53  ;;  %v1374_v49 = vld [vmem:[%s7463_s28 + $0x32e] sm:$0xff] }
 0x314   : > { %v3609_v58 = vmax.f32 %v3504_v50, 0.0  ;;  %v2216_v59 = vadd.f32 %v2111_v54, %v1952_v62  ;;  %3982 = vst.msk [vmem:[#allocation3 + $0x86] sm:$0x3f] %vm3765_vm3, %v3980_v52  ;;  %v4987_v50 = vld [vmem:[%s10032_s4 + $0xb0] sm:$0xff]  ;;  %v4986_v54 = vld [vmem:[%s10032_s4 + $0xa8] sm:$0xff] }
 0x315   : > { %v3182_v9 = vld [vmem:[#allocation2 + $0x268] sm:$0xff]  ;;  %6758 = vmatmul.msk.f32.gmra.mxu0 %vm518_vm1, %v506_v56 }
 0x316   : > { %3714 = vst.msk [vmem:[#allocation2 + $0x260] sm:$0xff] %vm1170_vm2, %v3609_v58  ;;  %v3287_v14 = vadd.f32 %v3182_v9, %v3021_v51  ;;  %6863 = vmatmul.msk.f32.gmra.mxu1 %vm518_vm1, %v1370_v57  ;;  %v2446_v53 = vld [vmem:[%s7463_s28 + $0x34c] sm:$0xff]  ;;  %5065 = vmatpush.msrb.mxu0 %v4987_v50  ;;  %v4985_v58 = vld [vmem:[%s10032_s4 + $0xa0] sm:$0xff] }
 0x317   : > { %2321 = vst.msk [vmem:[#allocation2 + $0x270] sm:$0xff] %vm1170_vm2, %v2216_v59  ;;  %6969 = vmatmul.msk.f32.gmra.mxu2 %vm518_vm1, %v2442_v60  ;;  %v4104_v57 = vld [vmem:[%s10032_s4 + $0x10] sm:$0xff] }
 0x318   : > { %v3396_v63 = vmul.f32 %v8456_v2, %v3287_v14  ;;  %4350 = vmatpush.msrb.mxu3 %v4104_v57  ;;  %5066 = vmatpush.msrb.mxu0 %v4986_v54 }
 0x31a   : > { %v3505_v0 = vadd.f32 %v8462_v42, %v3396_v63  ;;  %v3024_v1 = vpop.f32.mrf.mxu2  ;;  %v1095_v3 = vpop.f32.mrf.mxu0  ;;  %v2112_v5 = vld [vmem:[#allocation2 + $0x278] sm:$0xff]  ;;  %5067 = vmatpush.msrb.mxu0 %v4985_v58 }
 0x31b   : > { %v1955_v4 = vpop.f32.mrf.mxu1  ;;  %v4122_v10 = vld [vmem:[#allocation3 + $0x81] sm:$0xff]  ;;  %1251 = vst.msk [vmem:[#allocation2 + $0x280] sm:$0xff] %vm1170_vm2, %v1095_v3  ;;  %v511_v3 = vld [vmem:[%s7463_s28 + $0x320] sm:$0xff] }
 0x31c   : > { %v3610_v8 = vmax.f32 %v3505_v0, 0.0  ;;  %v2217_v11 = vadd.f32 %v2112_v5, %v1955_v4  ;;  %6996 = vmatmul.msk.f32.gmra.mxu3 %vm1170_vm2, %v4122_v10  ;;  %v1375_v4 = vld [vmem:[%s7463_s28 + $0x336] sm:$0xff] }
 0x31d   : > { %6759 = vmatmul.msk.f32.gmra.mxu0 %vm518_vm1, %v507_v6  ;;  %v3984_v14 = vld [vmem:[#allocation2 + $0x258] ss:$2 sm:$0xff]  ;;  %v3988_v61 = vld [vmem:[#allocation2 + $0x259] ss:$2 sm:$0xff] }
 0x31e   : > { %3715 = vst.msk [vmem:[#allocation2 + $0x268] sm:$0xff] %vm1170_vm2, %v3610_v8  ;;  %v3183_v13 = vld [vmem:[#allocation2 + $0x270] sm:$0xff]  ;;  %6864 = vmatmul.msk.f32.gmra.mxu1 %vm518_vm1, %v1371_v7 }
 0x31f   : > { %v3288_v15 = vadd.f32 %v3183_v13, %v3024_v1  ;;  %2322 = vst.msk [vmem:[#allocation2 + $0x278] sm:$0xff] %vm1170_vm2, %v2217_v11  ;;  %6970 = vmatmul.msk.f32.gmra.mxu2 %vm518_vm1, %v2443_v12  ;;  %v2447_v7 = vld [vmem:[%s7463_s28 + $0x354] sm:$0xff]  ;;  %v3991_v12 = vmax.f32 %v3984_v14, %v3988_v61 }
 0x320   : > { %v1378_v61 = vld [vmem:[%s7463_s28 + $0x34e] sm:$0xff] }
 0x321   : > { %v3397_v16 = vmul.f32 %v8456_v2, %v3288_v15 }
 0x322   : > { %v3027_v17 = vpop.f32.mrf.mxu2  ;;  %v1098_v19 = vpop.f32.mrf.mxu0  ;;  %v2113_v21 = vld [vmem:[#allocation2 + $0x280] sm:$0xff] }
 0x323   : > { %v3506_v18 = vadd.f32 %v8462_v42, %v3397_v16  ;;  %v1958_v20 = vpop.f32.mrf.mxu1  ;;  %1252 = vst.msk [vmem:[#allocation2 + $0x288] sm:$0xff] %vm1170_vm2, %v1098_v19 }
 0x324   : > { %v2218_v24 = vadd.f32 %v2113_v21, %v1958_v20 }
 0x325   : > { %v3611_v26 = vmax.f32 %v3506_v18, 0.0  ;;  %6760 = vmatmul.msk.f32.gmra.mxu0 %vm518_vm1, %v508_v22 }
 0x326   : > { %v3184_v27 = vld [vmem:[#allocation2 + $0x278] sm:$0xff]  ;;  %2323 = vst.msk [vmem:[#allocation2 + $0x280] sm:$0xff] %vm1170_vm2, %v2218_v24  ;;  %6865 = vmatmul.msk.f32.gmra.mxu1 %vm518_vm1, %v1372_v23  ;;  %v512_v23 = vld [vmem:[%s7463_s28 + $0x328] sm:$0xff] }
 0x327   : > { %3716 = vst.msk [vmem:[#allocation2 + $0x270] sm:$0xff] %vm1170_vm2, %v3611_v26  ;;  %v3289_v28 = vadd.f32 %v3184_v27, %v3027_v17  ;;  %6971 = vmatmul.msk.f32.gmra.mxu2 %vm518_vm1, %v2444_v25  ;;  %v1376_v24 = vld [vmem:[%s7463_s28 + $0x33e] sm:$0xff] }
 0x328   : > { %v2448_v26 = vld [vmem:[%s7463_s28 + $0x35c] sm:$0xff] }
 0x329   : > { %v3398_v29 = vmul.f32 %v8456_v2, %v3289_v28 }
 0x32a   : > { %v3030_v30 = vpop.f32.mrf.mxu2  ;;  %v1101_v32 = vpop.f32.mrf.mxu0  ;;  %v2114_v34 = vld [vmem:[#allocation2 + $0x288] sm:$0xff] }
 0x32b   : > { %v3507_v31 = vadd.f32 %v8462_v42, %v3398_v29  ;;  %v1961_v33 = vpop.f32.mrf.mxu1  ;;  %1253 = vst.msk [vmem:[#allocation2 + $0x290] sm:$0xff] %vm1170_vm2, %v1101_v32 }
 0x32c   : > { %v2219_v37 = vadd.f32 %v2114_v34, %v1961_v33  ;;  %v513_v33 = vld [vmem:[%s7463_s28 + $0x330] sm:$0xff]  ;;  %v1377_v34 = vld [vmem:[%s7463_s28 + $0x346] sm:$0xff] }
 0x32d   : > { %v3612_v39 = vmax.f32 %v3507_v31, 0.0  ;;  %v3185_v40 = vld [vmem:[#allocation2 + $0x280] sm:$0xff]  ;;  %6761 = vmatmul.msk.f32.gmra.mxu0 %vm518_vm1, %v509_v35 }
 0x32e   : > { %v3290_v41 = vadd.f32 %v3185_v40, %v3030_v30  ;;  %2324 = vst.msk [vmem:[#allocation2 + $0x288] sm:$0xff] %vm1170_vm2, %v2219_v37  ;;  %6866 = vmatmul.msk.f32.gmra.mxu1 %vm518_vm1, %v1373_v36  ;;  %v5264_v40 = vld [vmem:[%s10032_s4 + $0xf0] sm:$0xff] }
 0x32f   : > { %3717 = vst.msk [vmem:[#allocation2 + $0x278] sm:$0xff] %vm1170_vm2, %v3612_v39  ;;  %6972 = vmatmul.msk.f32.gmra.mxu2 %vm518_vm1, %v2445_v38  ;;  %v3986_v39 = vld [vmem:[#allocation2 + $0x268] ss:$2 sm:$0x3f]  ;;  %5342 = vmatpush.msra.mxu1 %v5264_v40 }
 0x330   : > { %v3399_v55 = vmul.f32 %v8456_v2, %v3290_v41  ;;  %v5239_v41 = vld [vmem:[%s10032_s4 + $0xd0] sm:$0xff] }
 0x331   : > { %5485 = vmatpush.msra.mxu2 %v5239_v41 }
 0x332   : > { %v3508_v43 = vadd.f32 %v8462_v42, %v3399_v55  ;;  %v3033_v44 = vpop.f32.mrf.mxu2  ;;  %v1104_v46 = vpop.f32.mrf.mxu0  ;;  %v2115_v48 = vld [vmem:[#allocation2 + $0x290] sm:$0xff] }
 0x333   : > { %v1964_v47 = vpop.f32.mrf.mxu1  ;;  %1254 = vst.msk [vmem:[#allocation2 + $0x298] sm:$0xff] %vm1170_vm2, %v1104_v46 }
 0x334   : > { %v3613_v51 = vmax.f32 %v3508_v43, 0.0  ;;  %v2220_v52 = vadd.f32 %v2115_v48, %v1964_v47  ;;  %v2449_v43 = vld [vmem:[%s7463_s28 + $0x364] sm:$0xff] }
 0x335   : > { %v3186_v62 = vld [vmem:[#allocation2 + $0x288] sm:$0xff]  ;;  %6762 = vmatmul.msk.f32.gmra.mxu0 %vm518_vm1, %v510_v45 }
 0x336   : > { %3718 = vst.msk [vmem:[#allocation2 + $0x280] sm:$0xff] %vm1170_vm2, %v3613_v51  ;;  %v3291_v56 = vadd.f32 %v3186_v62, %v3033_v44  ;;  %6867 = vmatmul.msk.f32.gmra.mxu1 %vm518_vm1, %v1374_v49  ;;  %v3990_v44 = vld [vmem:[#allocation2 + $0x269] ss:$2 sm:$0x3f] }
 0x337   : > { %2325 = vst.msk [vmem:[#allocation2 + $0x290] sm:$0xff] %vm1170_vm2, %v2220_v52  ;;  %6973 = vmatmul.msk.f32.gmra.mxu2 %vm518_vm1, %v2446_v53  ;;  %v5263_v47 = vld [vmem:[%s10032_s4 + $0xe8] sm:$0xff]  ;;  %v5262_v52 = vld [vmem:[%s10032_s4 + $0xe0] sm:$0xff]  ;;  %v3992_v54 = vmax.f32 %v3986_v39, %v3990_v44 }
 0x338   : > { %v3400_v59 = vmul.f32 %v8456_v2, %v3291_v56  ;;  %v5238_v48 = vld [vmem:[%s10032_s4 + $0xc8] sm:$0xff]  ;;  %5343 = vmatpush.msra.mxu1 %v5263_v47  ;;  %v5237_v53 = vld [vmem:[%s10032_s4 + $0xc0] sm:$0xff] }
 0x339   : > { %5486 = vmatpush.msra.mxu2 %v5238_v48  ;;  %v5216_v48 = vld [vmem:[#allocation3 + $0x1c] sm:$0xff] }
 0x33a   : > { %v3509_v60 = vadd.f32 %v8462_v42, %v3400_v59  ;;  %v3036_v9 = vpop.f32.mrf.mxu2  ;;  %v1107_v63 = vpop.f32.mrf.mxu0  ;;  %v2116_v1 = vld [vmem:[#allocation2 + $0x298] sm:$0xff]  ;;  %5344 = vmatpush.msra.mxu1 %v5262_v52 }
 0x33b   : > { %v1967_v0 = vpop.f32.mrf.mxu1  ;;  %1255 = vst.msk [vmem:[#allocation2 + $0x2a0] sm:$0xff] %vm1170_vm2, %v1107_v63  ;;  %5487 = vmatpush.msra.mxu2 %v5237_v53 }
 0x33c   : > { %v3614_v5 = vmax.f32 %v3509_v60, 0.0  ;;  %v2221_v6 = vadd.f32 %v2116_v1, %v1967_v0  ;;  %v2450_v1 = vld [vmem:[%s7463_s28 + $0x36c] sm:$0xff] }
 0x33d   : > { %v3994_v8 = vld [vmem:[#allocation2 + $0x276] ss:$2 sm:$0xff]  ;;  %v3998_v10 = vld [vmem:[#allocation2 + $0x277] ss:$2 sm:$0xff]  ;;  %6763 = vmatmul.msk.f32.gmra.mxu0 %vm518_vm1, %v511_v3 }
 0x33e   : > { %3719 = vst.msk [vmem:[#allocation2 + $0x288] sm:$0xff] %vm1170_vm2, %v3614_v5  ;;  %v3187_v11 = vld [vmem:[#allocation2 + $0x290] sm:$0xff]  ;;  %6868 = vmatmul.msk.f32.gmra.mxu1 %vm518_vm1, %v1375_v4  ;;  %v4001_v13 = vmax.f32 %v3994_v8, %v3998_v10  ;;  %v8648_v4 = vld [vmem:[#allocation3 + $0x10] sm:$0xff] }
 0x33f   : > { %v3292_v15 = vadd.f32 %v3187_v11, %v3036_v9  ;;  %2326 = vst.msk [vmem:[#allocation2 + $0x298] sm:$0xff] %vm1170_vm2, %v2221_v6  ;;  %6974 = vmatmul.msk.f32.gmra.mxu2 %vm518_vm1, %v2447_v7 }
 0x340   : > { %v4003_v16 = vmax.f32 %v3991_v12, %v4001_v13  ;;  %v1379_v13 = vld [vmem:[%s7463_s28 + $0x356] sm:$0xff] }
 0x341   : > { %v3401_v17 = vmul.f32 %v8456_v2, %v3292_v15 }
 0x342   : > { %v3039_v18 = vpop.f32.mrf.mxu2  ;;  %4005 = vst.msk [vmem:[#allocation3 + $0x8c] sm:$0xff] %vm1170_vm2, %v4003_v16  ;;  %v1110_v20 = vpop.f32.mrf.mxu0  ;;  %v2117_v22 = vld [vmem:[#allocation2 + $0x2a0] sm:$0xff] }
 0x343   : > { %v3510_v19 = vadd.f32 %v8462_v42, %v3401_v17  ;;  %v1970_v21 = vpop.f32.mrf.mxu1  ;;  %1256 = vst.msk [vmem:[#allocation2 + $0x2a8] sm:$0xff] %vm1170_vm2, %v1110_v20 }
 0x344   : > { %v2222_v25 = vadd.f32 %v2117_v22, %v1970_v21  ;;  %v4103_v21 = vld [vmem:[%s10032_s4 + $0x8] sm:$0xff] }
 0x345   : > { %v3615_v27 = vmax.f32 %v3510_v19, 0.0  ;;  %6764 = vmatmul.msk.f32.gmra.mxu0 %vm518_vm1, %v512_v23  ;;  %v8663_v19 = vld [vmem:[#allocation3 + $0x18] sm:$0xff]  ;;  %4351 = vmatpush.msrb.mxu3 %v4103_v21 }
 0x346   : > { %v3188_v28 = vld [vmem:[#allocation2 + $0x298] sm:$0xff]  ;;  %2327 = vst.msk [vmem:[#allocation2 + $0x2a0] sm:$0xff] %vm1170_vm2, %v2222_v25  ;;  %6869 = vmatmul.msk.f32.gmra.mxu1 %vm518_vm1, %v1376_v24 }
 0x347   : > { %3720 = vst.msk [vmem:[#allocation2 + $0x290] sm:$0xff] %vm1170_vm2, %v3615_v27  ;;  %v3293_v29 = vadd.f32 %v3188_v28, %v3039_v18  ;;  %6975 = vmatmul.msk.f32.gmra.mxu2 %vm518_vm1, %v2448_v26  ;;  %v2451_v18 = vld [vmem:[%s7463_s28 + $0x374] sm:$0xff] }
 0x349   : > { %v3402_v30 = vmul.f32 %v8456_v2, %v3293_v29  ;;  %v4123_v31 = vld [vmem:[#allocation3 + $0x89] sm:$0xff]  ;;  %v1380_v29 = vld [vmem:[%s7463_s28 + $0x35e] sm:$0xff] }
 0x34a   : > { %v3042_v32 = vpop.f32.mrf.mxu2  ;;  %6997 = vmatmul.msk.f32.gmra.mxu3 %vm1170_vm2, %v4123_v31  ;;  %v1113_v36 = vpop.f32.mrf.mxu0  ;;  %v2118_v38 = vld [vmem:[#allocation2 + $0x2a8] sm:$0xff]  ;;  %v2452_v31 = vld [vmem:[%s7463_s28 + $0x37c] sm:$0xff]  ;;  %s7277_s28 = scalar_lea.hbm %s10040_s12, 2 }
 0x34b   : > { %v3511_v35 = vadd.f32 %v8462_v42, %v3402_v30  ;;  %v1973_v37 = vpop.f32.mrf.mxu1  ;;  %1257 = vst.msk [vmem:[#allocation2 + $0x2b0] sm:$0xff] %vm1170_vm2, %v1113_v36  ;;  %p7279_p1 = scmp.lt.s32.totalorder %s7277_s28, %s7273_s17 }
 0x34c   : > { %v2223_v55 = vadd.f32 %v2118_v38, %v1973_v37 }
 0x34d   : > { %v3616_v45 = vmax.f32 %v3511_v35, 0.0  ;;  %v3189_v46 = vld [vmem:[#allocation2 + $0x2a0] sm:$0xff]  ;;  %6765 = vmatmul.msk.f32.gmra.mxu0 %vm518_vm1, %v513_v33  ;;  %v8679_v33 = vld [vmem:[#allocation3 + $0x20] sm:$0xff]  ;;  %p7280_p2 = por %p7279_p1, %p7278_p0 }
 0x34e   : > { %v3294_v49 = vadd.f32 %v3189_v46, %v3042_v32  ;;  %2328 = vst.msk [vmem:[#allocation2 + $0x2a8] sm:$0xff] %vm1170_vm2, %v2223_v55  ;;  %6870 = vmatmul.msk.f32.gmra.mxu1 %vm518_vm1, %v1377_v34  ;;  %v3996_v50 = vld [vmem:[#allocation2 + $0x286] ss:$2 sm:$0x3f] }
 0x34f   : > { %3721 = vst.msk [vmem:[#allocation2 + $0x298] sm:$0xff] %vm1170_vm2, %v3616_v45  ;;  %6976 = vmatmul.msk.f32.gmra.mxu2 %vm518_vm1, %v2449_v43  ;;  %v4000_v51 = vld [vmem:[#allocation2 + $0x287] ss:$2 sm:$0x3f]  ;;  %p7281_p3 = pnand %p7280_p2, %p7276_p13 }
 0x350   : > { %v3403_v62 = vmul.f32 %v8456_v2, %v3294_v49  ;;  %v4002_v56 = vmax.f32 %v3996_v50, %v4000_v51  ;;  %v8690_v45 = vld [vmem:[#allocation3 + $0x28] sm:$0xff]  ;;  %v5241_v46 = vld [vmem:[#allocation3 + $0x1d] sm:$0xff] }
 0x352   : > { %v3512_v57 = vadd.f32 %v8462_v42, %v3403_v62  ;;  %v3045_v58 = vpop.f32.mrf.mxu2  ;;  %v4004_v59 = vmax.f32 %v3992_v54, %v4002_v56  ;;  %v1116_v60 = vpop.f32.mrf.mxu0  ;;  %v2119_v14 = vld [vmem:[#allocation2 + $0x2b0] sm:$0xff] }
 0x353   : > { %v1976_v9 = vpop.f32.mrf.mxu1  ;;  %1258 = vst.msk [vmem:[#allocation2 + $0x2b8] sm:$0xff] %vm1170_vm2, %v1116_v60 }
 0x354   : > { %v3617_v63 = vmax.f32 %v3512_v57, 0.0  ;;  %v2224_v0 = vadd.f32 %v2119_v14, %v1976_v9  ;;  %4006 = vst.msk [vmem:[#allocation3 + $0x94] sm:$0x3f] %vm3765_vm3, %v4004_v59  ;;  %v5242_v59 = vld [vmem:[#allocation3 + $0x25] sm:$0xff] }
 0x355   : > { %v3190_v3 = vld [vmem:[#allocation2 + $0x2a8] sm:$0xff]  ;;  %7085 = vmatmul.msk.f32.vlgmr.msrb.gmra.mxu0 %vm1170_vm2, %v8648_v4 }
 0x356   : > { %3722 = vst.msk [vmem:[#allocation2 + $0x2a0] sm:$0xff] %vm1170_vm2, %v3617_v63  ;;  %v3295_v5 = vadd.f32 %v3190_v3, %v3045_v58  ;;  %6871 = vmatmul.msk.f32.gmra.mxu1 %vm518_vm1, %v1378_v61  ;;  %v8701_v58 = vld [vmem:[#allocation3 + $0x30] sm:$0xff]  ;;  %v5217_v9 = vld [vmem:[#allocation3 + $0x24] sm:$0xff] }
 0x357   : > { %2329 = vst.msk [vmem:[#allocation2 + $0x2b0] sm:$0xff] %vm1170_vm2, %v2224_v0  ;;  %6977 = vmatmul.msk.f32.gmra.mxu2 %vm518_vm1, %v2450_v1 }
 0x358   : > { %v3404_v6 = vmul.f32 %v8456_v2, %v3295_v5 }
 0x35a   : > { %v3513_v7 = vadd.f32 %v8462_v42, %v3404_v6  ;;  %v3048_v8 = vpop.f32.mrf.mxu2  ;;  %v1119_v10 = vpop.f32.mrf.mxu0  ;;  %v2120_v12 = vld [vmem:[#allocation2 + $0x2b8] sm:$0xff] }
 0x35b   : > { %v1979_v11 = vpop.f32.mrf.mxu1  ;;  %v4124_v16 = vld [vmem:[#allocation3 + $0x91] sm:$0xff]  ;;  %1259 = vst.msk [vmem:[#allocation2 + $0x2c0] sm:$0xff] %vm1170_vm2, %v1119_v10 }
 0x35c   : > { %v3618_v15 = vmax.f32 %v3513_v7, 0.0  ;;  %v2225_v17 = vadd.f32 %v2120_v12, %v1979_v11  ;;  %6998 = vmatmul.msk.f32.gmra.mxu3 %vm1170_vm2, %v4124_v16  ;;  %v5243_v10 = vld [vmem:[#allocation3 + $0x2d] sm:$0xff]  ;;  %v8712_v11 = vld [vmem:[#allocation3 + $0x38] sm:$0xff] }
 0x35d   : > { %7086 = vmatmul.msk.f32.gmra.mxu0 %vm1170_vm2, %v8663_v19  ;;  %v4008_v5 = vld [vmem:[#allocation2 + $0x294] ss:$2 sm:$0xff]  ;;  %v4012_v6 = vld [vmem:[#allocation2 + $0x295] ss:$2 sm:$0xff] }
 0x35e   : > { %3723 = vst.msk [vmem:[#allocation2 + $0x2a8] sm:$0xff] %vm1170_vm2, %v3618_v15  ;;  %v3191_v20 = vld [vmem:[#allocation2 + $0x2b0] sm:$0xff]  ;;  %6872 = vmatmul.msk.f32.gmra.mxu1 %vm518_vm1, %v1379_v13 }
 0x35f   : > { %v3296_v22 = vadd.f32 %v3191_v20, %v3048_v8  ;;  %2330 = vst.msk [vmem:[#allocation2 + $0x2b8] sm:$0xff] %vm1170_vm2, %v2225_v17  ;;  %6978 = vmatmul.msk.f32.gmra.mxu2 %vm518_vm1, %v2451_v18  ;;  %v5218_v16 = vld [vmem:[#allocation3 + $0x2c] sm:$0xff]  ;;  %v4015_v17 = vmax.f32 %v4008_v5, %v4012_v6 }
 0x360   : > { %v8751_v6 = vld [vmem:[#allocation3 + $0x50] sm:$0xff] }
 0x361   : > { %v3405_v23 = vmul.f32 %v8456_v2, %v3296_v22 }
 0x362   : > { %v3051_v24 = vpop.f32.mrf.mxu2  ;;  %v1122_v26 = vpop.f32.mrf.mxu0  ;;  %v2121_v28 = vld [vmem:[#allocation2 + $0x2c0] sm:$0xff] }
 0x363   : > { %v3514_v25 = vadd.f32 %v8462_v42, %v3405_v23  ;;  %v1982_v27 = vpop.f32.mrf.mxu1  ;;  %1260 = vst.msk [vmem:[#allocation2 + $0x2c8] sm:$0xff] %vm1170_vm2, %v1122_v26 }
 0x364   : > { %v2226_v30 = vadd.f32 %v2121_v28, %v1982_v27 }
 0x365   : > { %v3619_v32 = vmax.f32 %v3514_v25, 0.0  ;;  %7087 = vmatmul.msk.f32.gmra.mxu0 %vm1170_vm2, %v8679_v33  ;;  %v4010_v28 = vld [vmem:[#allocation2 + $0x2a4] ss:$2 sm:$0x3f] }
 0x366   : > { %v3192_v34 = vld [vmem:[#allocation2 + $0x2b8] sm:$0xff]  ;;  %2331 = vst.msk [vmem:[#allocation2 + $0x2c0] sm:$0xff] %vm1170_vm2, %v2226_v30  ;;  %6873 = vmatmul.msk.f32.gmra.mxu1 %vm518_vm1, %v1380_v29  ;;  %v4014_v30 = vld [vmem:[#allocation2 + $0x2a5] ss:$2 sm:$0x3f] }
 0x367   : > { %3724 = vst.msk [vmem:[#allocation2 + $0x2b0] sm:$0xff] %vm1170_vm2, %v3619_v32  ;;  %v3297_v35 = vadd.f32 %v3192_v34, %v3051_v24  ;;  %6979 = vmatmul.msk.f32.gmra.mxu2 %vm518_vm1, %v2452_v31  ;;  %v8724_v32 = vld [vmem:[#allocation3 + $0x40] sm:$0xff]  ;;  %v5244_v34 = vld [vmem:[#allocation3 + $0x35] sm:$0xff] }
 0x369   : > { %v3406_v36 = vmul.f32 %v8456_v2, %v3297_v35 }
 0x36a   : > { %v3054_v37 = vpop.f32.mrf.mxu2  ;;  %v1125_v39 = vpop.f32.mrf.mxu0  ;;  %v2122_v41 = vld [vmem:[#allocation2 + $0x2c8] sm:$0xff] }
 0x36b   : > { %v3515_v38 = vadd.f32 %v8462_v42, %v3406_v36  ;;  %v1985_v40 = vpop.f32.mrf.mxu1  ;;  %1261 = vst.msk [vmem:[#allocation2 + $0x2d0] sm:$0xff] %vm1170_vm2, %v1125_v39 }
 0x36c   : > { %v2227_v55 = vadd.f32 %v2122_v41, %v1985_v40  ;;  %v4016_v40 = vmax.f32 %v4010_v28, %v4014_v30 }
 0x36d   : > { %v3620_v43 = vmax.f32 %v3515_v38, 0.0  ;;  %v3193_v44 = vld [vmem:[#allocation2 + $0x2c0] sm:$0xff]  ;;  %7088 = vmatmul.msk.f32.gmra.mxu0 %vm1170_vm2, %v8690_v45 }
 0x36e   : > { %v3298_v47 = vadd.f32 %v3193_v44, %v3054_v37  ;;  %2332 = vst.msk [vmem:[#allocation2 + $0x2c8] sm:$0xff] %vm1170_vm2, %v2227_v55  ;;  %7106 = vmatmul.msk.f32.vlgmr.msra.gmra.mxu1 %vm1170_vm2, %v5241_v46  ;;  %v5219_v37 = vld [vmem:[#allocation3 + $0x34] sm:$0xff] }
 0x36f   : > { %3725 = vst.msk [vmem:[#allocation2 + $0x2b8] sm:$0xff] %vm1170_vm2, %v3620_v43  ;;  %7127 = vmatmul.msk.f32.vlgmr.msra.gmra.mxu2 %vm1170_vm2, %v5216_v48  ;;  %v4102_v55 = vld [vmem:[%s10032_s4] sm:$0xff] }
 0x370   : > { %v3407_v49 = vmul.f32 %v8456_v2, %v3298_v47  ;;  %4352 = vmatpush.msrb.mxu3 %v4102_v55  ;;  %v8788_v55 = vld [vmem:[%s10030_s2] ss:$0 sm:$0xff] }
 0x372   : > { %v3516_v50 = vadd.f32 %v8462_v42, %v3407_v49  ;;  %v3057_v51 = vpop.f32.mrf.mxu2  ;;  %v1128_v52 = vpop.f32.mrf.mxu0  ;;  %v2123_v62 = vld [vmem:[#allocation2 + $0x2d0] sm:$0xff] }
 0x373   : > { %v1988_v53 = vpop.f32.mrf.mxu1  ;;  %1262 = vst.msk [vmem:[#allocation2 + $0x2d8] sm:$0xff] %vm1170_vm2, %v1128_v52 }
 0x374   : > { %v3621_v54 = vmax.f32 %v3516_v50, 0.0  ;;  %v2228_v56 = vadd.f32 %v2123_v62, %v1988_v53 }
 0x375   : > { %v3194_v57 = vld [vmem:[#allocation2 + $0x2c8] sm:$0xff]  ;;  %7089 = vmatmul.msk.f32.gmra.mxu0 %vm1170_vm2, %v8701_v58 }
 0x376   : > { %3726 = vst.msk [vmem:[#allocation2 + $0x2c0] sm:$0xff] %vm1170_vm2, %v3621_v54  ;;  %v3299_v60 = vadd.f32 %v3194_v57, %v3057_v51  ;;  %7107 = vmatmul.msk.f32.gmra.mxu1 %vm1170_vm2, %v5242_v59  ;;  %v8740_v54 = vld [vmem:[#allocation3 + $0x48] sm:$0xff]  ;;  %v5220_v59 = vld [vmem:[#allocation3 + $0x3c] sm:$0xff] }
 0x377   : > { %2333 = vst.msk [vmem:[#allocation2 + $0x2d0] sm:$0xff] %vm1170_vm2, %v2228_v56  ;;  %7128 = vmatmul.msk.f32.gmra.mxu2 %vm1170_vm2, %v5217_v9  ;;  %v5245_v56 = vld [vmem:[#allocation3 + $0x3d] sm:$0xff] }
 0x378   : > { %v3408_v14 = vmul.f32 %v8456_v2, %v3299_v60 }
 0x37a   : > { %v3517_v61 = vadd.f32 %v8462_v42, %v3408_v14  ;;  %v3060_v63 = vpop.f32.mrf.mxu2  ;;  %v1131_v0 = vpop.f32.mrf.mxu0  ;;  %v2124_v3 = vld [vmem:[#allocation2 + $0x2d8] sm:$0xff] }
 0x37b   : > { %v1991_v1 = vpop.f32.mrf.mxu1  ;;  %1263 = vst.msk [vmem:[#allocation2 + $0x2e0] sm:$0xff] %vm1170_vm2, %v1131_v0 }
 0x37c   : > { %v3622_v7 = vmax.f32 %v3517_v61, 0.0  ;;  %v2229_v8 = vadd.f32 %v2124_v3, %v1991_v1 }
 0x37d   : > { %v4018_v12 = vld [vmem:[#allocation2 + $0x2b2] ss:$2 sm:$0xff]  ;;  %v4022_v13 = vld [vmem:[#allocation2 + $0x2b3] ss:$2 sm:$0xff]  ;;  %7090 = vmatmul.msk.f32.gmra.mxu0 %vm1170_vm2, %v8712_v11 }
 0x37e   : > { %3727 = vst.msk [vmem:[#allocation2 + $0x2c8] sm:$0xff] %vm1170_vm2, %v3622_v7  ;;  %v3195_v15 = vld [vmem:[#allocation2 + $0x2d0] sm:$0xff]  ;;  %7108 = vmatmul.msk.f32.gmra.mxu1 %vm1170_vm2, %v5243_v10  ;;  %v4025_v18 = vmax.f32 %v4018_v12, %v4022_v13 }
 0x37f   : > { %v3300_v20 = vadd.f32 %v3195_v15, %v3060_v63  ;;  %2334 = vst.msk [vmem:[#allocation2 + $0x2d8] sm:$0xff] %vm1170_vm2, %v2229_v8  ;;  %7129 = vmatmul.msk.f32.gmra.mxu2 %vm1170_vm2, %v5218_v16  ;;  %v5246_v7 = vld [vmem:[#allocation3 + $0x45] sm:$0xff] }
 0x380   : > { %v4027_v21 = vmax.f32 %v4015_v17, %v4025_v18  ;;  %v5221_v10 = vld [vmem:[#allocation3 + $0x44] sm:$0xff] }
 0x381   : > { %v3409_v22 = vmul.f32 %v8456_v2, %v3300_v20 }
 0x382   : > { %v3063_v23 = vpop.f32.mrf.mxu2  ;;  %4029 = vst.msk [vmem:[#allocation3 + $0x9a] sm:$0xff] %vm1170_vm2, %v4027_v21  ;;  %v1134_v25 = vpop.f32.mrf.mxu0  ;;  %v2125_v27 = vld [vmem:[#allocation2 + $0x2e0] sm:$0xff] }
 0x383   : > { %v3518_v24 = vadd.f32 %v8462_v42, %v3409_v22  ;;  %v1994_v26 = vpop.f32.mrf.mxu1  ;;  %1264 = vst.msk [vmem:[#allocation2 + $0x2e8] sm:$0xff] %vm1170_vm2, %v1134_v25  ;;  %v8762_v22 = vld [vmem:[#allocation3 + $0x58] sm:$0xff]  ;;  %v5222_v25 = vld [vmem:[#allocation3 + $0x4c] sm:$0xff] }
 0x384   : > { %v2230_v29 = vadd.f32 %v2125_v27, %v1994_v26  ;;  %v8770_v27 = vpop.f32.mrf.mxu3 }
 0x385   : > { %v3623_v31 = vmax.f32 %v3518_v24, 0.0  ;;  %v4020_v35 = vld [vmem:[#allocation2 + $0x2c2] ss:$2 sm:$0x3f]  ;;  %7091 = vmatmul.msk.f32.gmra.mxu0 %vm1170_vm2, %v8724_v32 }
 0x386   : > { %v3196_v36 = vld [vmem:[#allocation2 + $0x2d8] sm:$0xff]  ;;  %2335 = vst.msk [vmem:[#allocation2 + $0x2e0] sm:$0xff] %vm1170_vm2, %v2230_v29  ;;  %7109 = vmatmul.msk.f32.gmra.mxu1 %vm1170_vm2, %v5244_v34  ;;  %v4024_v38 = vld [vmem:[#allocation2 + $0x2c3] ss:$2 sm:$0x3f] }
 0x387   : > { %3728 = vst.msk [vmem:[#allocation2 + $0x2d0] sm:$0xff] %vm1170_vm2, %v3623_v31  ;;  %v3301_v39 = vadd.f32 %v3196_v36, %v3063_v23  ;;  %7130 = vmatmul.msk.f32.gmra.mxu2 %vm1170_vm2, %v5219_v37  ;;  %v4026_v41 = vmax.f32 %v4020_v35, %v4024_v38  ;;  %v5247_v23 = vld [vmem:[#allocation3 + $0x4d] sm:$0xff]  ;;  %v8775_v37 = vld [vmem:[#allocation3 + $0x60] sm:$0xff]  ;;  %v5248_v38 = vld [vmem:[#allocation3 + $0x55] sm:$0xff] }
 0x389   : > { %v3410_v43 = vmul.f32 %v8456_v2, %v3301_v39  ;;  %v4125_v44 = vld [vmem:[#allocation3 + $0x99] sm:$0xff]  ;;  %v4028_v46 = vmax.f32 %v4016_v40, %v4026_v41 }
 0x38a   : > { %v3066_v47 = vpop.f32.mrf.mxu2  ;;  %6999 = vmatmul.msk.f32.gmra.mxu3 %vm1170_vm2, %v4125_v44  ;;  %v1137_v49 = vpop.f32.mrf.mxu0  ;;  %v2126_v51 = vld [vmem:[#allocation2 + $0x2e8] sm:$0xff] }
 0x38b   : > { %v3519_v48 = vadd.f32 %v8462_v42, %v3410_v43  ;;  %v1997_v50 = vpop.f32.mrf.mxu1  ;;  %4030 = vst.msk [vmem:[#allocation3 + $0xa2] sm:$0x3f] %vm3765_vm3, %v4028_v46  ;;  %v8794_v46 = vld [vmem:[%s10031_s3] ss:$0 sm:$0xff] }
 0x38c   : > { %1265 = vst.msk [vmem:[#allocation2 + $0x2f0] sm:$0xff] %vm1170_vm2, %v1137_v49  ;;  %v2231_v52 = vadd.f32 %v2126_v51, %v1997_v50  ;;  %v8782_v41 = vpop.f32.mrf.mxu3 }
 0x38d   : > { %v3624_v53 = vmax.f32 %v3519_v48, 0.0  ;;  %v3197_v62 = vld [vmem:[#allocation2 + $0x2e0] sm:$0xff]  ;;  %7092 = vmatmul.msk.f32.gmra.mxu0 %vm1170_vm2, %v8740_v54 }
 0x38e   : > { %v3302_v57 = vadd.f32 %v3197_v62, %v3066_v47  ;;  %2336 = vst.msk [vmem:[#allocation2 + $0x2e8] sm:$0xff] %vm1170_vm2, %v2231_v52  ;;  %7110 = vmatmul.msk.f32.gmra.mxu1 %vm1170_vm2, %v5245_v56  ;;  %v8798_v62 = vld [vmem:[#allocation3 + $0x68] sm:$0xff]  ;;  %v5249_v56 = vld [vmem:[#allocation3 + $0x5d] sm:$0xff] }
 0x38f   : > { %3729 = vst.msk [vmem:[#allocation2 + $0x2d8] sm:$0xff] %vm1170_vm2, %v3624_v53  ;;  %7131 = vmatmul.msk.f32.gmra.mxu2 %vm1170_vm2, %v5220_v59  ;;  %v5224_v59 = vld [vmem:[#allocation3 + $0x5c] sm:$0xff] }
 0x390   : > { %v3411_v60 = vmul.f32 %v8456_v2, %v3302_v57 }
 0x392   : > { %v3520_v9 = vadd.f32 %v8462_v42, %v3411_v60  ;;  %v3069_v14 = vpop.f32.mrf.mxu2  ;;  %v1140_v61 = vpop.f32.mrf.mxu0 }
 0x393   : > { %v2000_v63 = vpop.f32.mrf.mxu1  ;;  %v2127_v0 = vld [vmem:[#allocation2 + $0x2f0] sm:$0xff]  ;;  %1266 = vst.msk [vmem:[#allocation2 + $0x2f8] sm:$0xff] %vm1170_vm2, %v1140_v61 }
 0x394   : > { %v3625_v1 = vmax.f32 %v3520_v9, 0.0  ;;  %v2232_v3 = vadd.f32 %v2127_v0, %v2000_v63  ;;  %v8807_v9 = vpop.f32.mrf.mxu3 }
 0x395   : > { %v3198_v5 = vld [vmem:[#allocation2 + $0x2e8] sm:$0xff]  ;;  %7093 = vmatmul.msk.f32.gmra.mxu0 %vm1170_vm2, %v8751_v6 }
 0x396   : > { %3730 = vst.msk [vmem:[#allocation2 + $0x2e0] sm:$0xff] %vm1170_vm2, %v3625_v1  ;;  %v3303_v8 = vadd.f32 %v3198_v5, %v3069_v14  ;;  %7111 = vmatmul.msk.f32.gmra.mxu1 %vm1170_vm2, %v5246_v7  ;;  %v4032_v7 = vld [vmem:[#allocation2 + $0x2d0] ss:$2 sm:$0xff] }
 0x397   : > { %2337 = vst.msk [vmem:[#allocation2 + $0x2f0] sm:$0xff] %vm1170_vm2, %v2232_v3  ;;  %7132 = vmatmul.msk.f32.gmra.mxu2 %vm1170_vm2, %v5221_v10 }
 0x398   : > { %v3412_v12 = vmul.f32 %v8456_v2, %v3303_v8  ;;  %v4036_v8 = vld [vmem:[#allocation2 + $0x2d1] ss:$2 sm:$0xff] }
 0x39a   : > { %v3521_v13 = vadd.f32 %v8462_v42, %v3412_v12  ;;  %v3072_v15 = vpop.f32.mrf.mxu2  ;;  %v1143_v16 = vpop.f32.mrf.mxu0  ;;  %v2128_v18 = vld [vmem:[#allocation2 + $0x2f8] sm:$0xff] }
 0x39b   : > { %v2003_v17 = vpop.f32.mrf.mxu1  ;;  %1267 = vst.msk [vmem:[#allocation2 + $0x300] sm:$0xff] %vm1170_vm2, %v1143_v16  ;;  %v8811_v12 = vld [vmem:[#allocation3 + $0x70] sm:$0xff]  ;;  %v5225_v16 = vld [vmem:[#allocation3 + $0x64] sm:$0xff] }
 0x39c   : > { %v3626_v20 = vmax.f32 %v3521_v13, 0.0  ;;  %v2233_v21 = vadd.f32 %v2128_v18, %v2003_v17  ;;  %v5250_v13 = vld [vmem:[#allocation3 + $0x65] sm:$0xff] }
 0x39d   : > { %7094 = vmatmul.msk.f32.gmra.mxu0 %vm1170_vm2, %v8762_v22 }
 0x39e   : > { %3731 = vst.msk [vmem:[#allocation2 + $0x2e8] sm:$0xff] %vm1170_vm2, %v3626_v20  ;;  %v3199_v24 = vld [vmem:[#allocation2 + $0x2f0] sm:$0xff]  ;;  %7112 = vmatmul.msk.f32.gmra.mxu1 %vm1170_vm2, %v5247_v23  ;;  %v4039_v20 = vmax.f32 %v4032_v7, %v4036_v8 }
 0x39f   : > { %v3304_v26 = vadd.f32 %v3199_v24, %v3072_v15  ;;  %2338 = vst.msk [vmem:[#allocation2 + $0x2f8] sm:$0xff] %vm1170_vm2, %v2233_v21  ;;  %7133 = vmatmul.msk.f32.gmra.mxu2 %vm1170_vm2, %v5222_v25  ;;  %v8820_v25 = vpop.f32.mrf.mxu3 }
 0x3a1   : > { %v3413_v28 = vmul.f32 %v8456_v2, %v3304_v26  ;;  %v5223_v2 = vld [vmem:[#allocation3 + $0x54] sm:$0xff] }
 0x3a2   : > { %v3075_v29 = vpop.f32.mrf.mxu2  ;;  %v1146_v31 = vpop.f32.mrf.mxu0  ;;  %v2129_v35 = vld [vmem:[#allocation2 + $0x300] sm:$0xff] }
 0x3a3   : > { %v3522_v30 = vadd.f32 %v8462_v42, %v3413_v28  ;;  %v2006_v34 = vpop.f32.mrf.mxu1  ;;  %1268 = vst.msk [vmem:[#allocation2 + $0x308] sm:$0xff] %vm1170_vm2, %v1146_v31 }
 0x3a4   : > { %v2234_v36 = vadd.f32 %v2129_v35, %v2006_v34 }
 0x3a5   : > { %v3627_v39 = vmax.f32 %v3522_v30, 0.0  ;;  %7095 = vmatmul.msk.f32.gmra.mxu0 %vm1170_vm2, %v8775_v37 }
 0x3a6   : > { %v3200_v40 = vld [vmem:[#allocation2 + $0x2f8] sm:$0xff]  ;;  %2339 = vst.msk [vmem:[#allocation2 + $0x300] sm:$0xff] %vm1170_vm2, %v2234_v36  ;;  %7113 = vmatmul.msk.f32.gmra.mxu1 %vm1170_vm2, %v5248_v38  ;;  %v8825_v36 = vld [vmem:[#allocation3 + $0x78] sm:$0xff] }
 0x3a7   : > { %v3305_v42 = vadd.f32 %v3200_v40, %v3075_v29  ;;  %7134 = vmatmul.msk.f32.gmra.mxu2 %vm1170_vm2, %v5223_v2  ;;  %3732 = vst.msk [vmem:[#allocation2 + $0x2f0] sm:$0xff] %vm1170_vm2, %v3627_v39  ;;  %v5251_v38 = vld [vmem:[#allocation3 + $0x6d] sm:$0xff] }
 0x3a8   : > { %v4441_v39 = vld [vmem:[%s10032_s4 + $0x58] sm:$0xff] }
 0x3a9   : > { %v3414_v43 = vmul.f32 %v8788_v55, %v3305_v42  ;;  %v5226_v2 = vld [vmem:[#allocation3 + $0x6c] sm:$0xff]  ;;  %4517 = vmatpush.msra.mxu3 %v4441_v39 }
 0x3aa   : > { %v3078_v44 = vpop.f32.mrf.mxu2  ;;  %v1149_v48 = vpop.f32.mrf.mxu0  ;;  %v2130_v50 = vld [vmem:[#allocation2 + $0x308] sm:$0xff] }
 0x3ab   : > { %v3523_v47 = vadd.f32 %v8794_v46, %v3414_v43  ;;  %v2009_v49 = vpop.f32.mrf.mxu1  ;;  %1269 = vst.msk [vmem:[#allocation2 + $0x310] sm:$0xff] %vm1170_vm2, %v1149_v48 }
 0x3ac   : > { %v2235_v51 = vadd.f32 %v2130_v50, %v2009_v49  ;;  %v4038_v50 = vld [vmem:[#allocation2 + $0x2e1] ss:$2 sm:$0x3f] }
 0x3ad   : > { %v3628_v52 = vmax.f32 %v3523_v47, 0.0  ;;  %v3201_v53 = vld [vmem:[#allocation2 + $0x300] sm:$0xff]  ;;  %7096 = vmatmul.msk.f32.gmra.mxu0 %vm1170_vm2, %v8798_v62 }
 0x3ae   : > { %v3306_v57 = vadd.f32 %v3201_v53, %v3078_v44  ;;  %2340 = vst.msk [vmem:[#allocation2 + $0x308] sm:$0xff] %vm1170_vm2, %v2235_v51  ;;  %7114 = vmatmul.msk.f32.gmra.mxu1 %vm1170_vm2, %v5249_v56  ;;  %v8837_v44 = vpop.f32.mrf.mxu3  ;;  %v4034_v47 = vld [vmem:[#allocation2 + $0x2e0] ss:$2 sm:$0x3f] }
 0x3af   : > { %3733 = vst.msk [vmem:[#allocation2 + $0x2f8] sm:$0xff] %vm1170_vm2, %v3628_v52  ;;  %7135 = vmatmul.msk.f32.gmra.mxu2 %vm1170_vm2, %v5224_v59  ;;  %v8842_v59 = vld [vmem:[#allocation3 + $0x80] sm:$0xff] }
 0x3b0   : > { %v3415_v60 = vmul.f32 %v8788_v55, %v3306_v57 }
 0x3b2   : > { %v3524_v14 = vadd.f32 %v8794_v46, %v3415_v60  ;;  %v3081_v61 = vpop.f32.mrf.mxu2  ;;  %v1152_v63 = vpop.f32.mrf.mxu0  ;;  %v2131_v1 = vld [vmem:[#allocation2 + $0x310] sm:$0xff]  ;;  %v5252_v60 = vld [vmem:[#allocation3 + $0x75] sm:$0xff] }
 0x3b3   : > { %v2012_v0 = vpop.f32.mrf.mxu1  ;;  %1270 = vst.msk [vmem:[#allocation2 + $0x318] sm:$0xff] %vm1170_vm2, %v1152_v63 }
 0x3b4   : > { %v3629_v3 = vmax.f32 %v3524_v14, 0.0  ;;  %v2236_v5 = vadd.f32 %v2131_v1, %v2012_v0  ;;  %v5227_v1 = vld [vmem:[#allocation3 + $0x74] sm:$0xff] }
 0x3b5   : > { %v3202_v10 = vld [vmem:[#allocation2 + $0x308] sm:$0xff]  ;;  %7097 = vmatmul.msk.f32.gmra.mxu0 %vm1170_vm2, %v8811_v12 }
 0x3b6   : > { %3734 = vst.msk [vmem:[#allocation2 + $0x300] sm:$0xff] %vm1170_vm2, %v3629_v3  ;;  %v3307_v15 = vadd.f32 %v3202_v10, %v3081_v61  ;;  %7115 = vmatmul.msk.f32.gmra.mxu1 %vm1170_vm2, %v5250_v13  ;;  %v4042_v17 = vld [vmem:[#allocation2 + $0x2ee] ss:$2 sm:$0xff]  ;;  %v4046_v18 = vld [vmem:[#allocation2 + $0x2ef] ss:$2 sm:$0xff]  ;;  %v4040_v3 = vmax.f32 %v4034_v47, %v4038_v50  ;;  %v8851_v13 = vpop.f32.mrf.mxu3 }
 0x3b7   : > { %2341 = vst.msk [vmem:[#allocation2 + $0x310] sm:$0xff] %vm1170_vm2, %v2236_v5  ;;  %7136 = vmatmul.msk.f32.gmra.mxu2 %vm1170_vm2, %v5225_v16  ;;  %v4049_v21 = vmax.f32 %v4042_v17, %v4046_v18  ;;  %v4081_v16 = vld [vmem:[#allocation3] sm:$0xff] }
 0x3b8   : > { %v3416_v23 = vmul.f32 %v8788_v55, %v3307_v15  ;;  %v5254_v50 = vld [vmem:[#allocation3 + $0x85] sm:$0xff] }
 0x3b9   : > { %v4051_v24 = vmax.f32 %v4039_v20, %v4049_v21 }
 0x3ba   : > { %v3525_v26 = vadd.f32 %v8794_v46, %v3416_v23  ;;  %v3084_v28 = vpop.f32.mrf.mxu2  ;;  %v1155_v29 = vpop.f32.mrf.mxu0  ;;  %v2132_v31 = vld [vmem:[#allocation2 + $0x318] sm:$0xff] }
 0x3bb   : > { %v2015_v30 = vpop.f32.mrf.mxu1  ;;  %4053 = vst.msk [vmem:[#allocation3 + $0xa8] sm:$0xff] %vm1170_vm2, %v4051_v24 }
 0x3bc   : > { %v3630_v34 = vmax.f32 %v3525_v26, 0.0  ;;  %1271 = vst.msk [vmem:[#allocation2 + $0x320] sm:$0xff] %vm1170_vm2, %v1155_v29  ;;  %v2237_v35 = vadd.f32 %v2132_v31, %v2015_v30  ;;  %v5253_v29 = vld [vmem:[#allocation3 + $0x7d] sm:$0xff] }
 0x3bd   : > { %7098 = vmatmul.msk.f32.gmra.mxu0 %vm1170_vm2, %v8825_v36  ;;  %v5228_v31 = vld [vmem:[#allocation3 + $0x7c] sm:$0xff] }
 0x3be   : > { %3735 = vst.msk [vmem:[#allocation2 + $0x308] sm:$0xff] %vm1170_vm2, %v3630_v34  ;;  %v3203_v40 = vld [vmem:[#allocation2 + $0x310] sm:$0xff]  ;;  %7116 = vmatmul.msk.f32.gmra.mxu1 %vm1170_vm2, %v5251_v38 }
 0x3bf   : > { %v3308_v42 = vadd.f32 %v3203_v40, %v3084_v28  ;;  %2342 = vst.msk [vmem:[#allocation2 + $0x318] sm:$0xff] %vm1170_vm2, %v2237_v35  ;;  %7137 = vmatmul.msk.f32.gmra.mxu2 %vm1170_vm2, %v5226_v2  ;;  %v8857_v28 = vld [vmem:[#allocation3 + $0x88] sm:$0xff]  ;;  %v8866_v35 = vpop.f32.mrf.mxu3 }
 0x3c0   : > { %v4082_v40 = vld [vmem:[#allocation3 + $0x8] sm:$0xff] }
 0x3c1   : > { %v3417_v43 = vmul.f32 %v8788_v55, %v3308_v42 }
 0x3c2   : > { %v3087_v48 = vpop.f32.mrf.mxu2  ;;  %v4126_v49 = vld [vmem:[#allocation3 + $0xa1] sm:$0xff]  ;;  %v1158_v52 = vpop.f32.mrf.mxu0 }
 0x3c3   : > { %v3526_v51 = vadd.f32 %v8794_v46, %v3417_v43  ;;  %7000 = vmatmul.msk.f32.gmra.mxu3 %vm1170_vm2, %v4126_v49  ;;  %v2018_v53 = vpop.f32.mrf.mxu1  ;;  %v2133_v56 = vld [vmem:[#allocation2 + $0x320] sm:$0xff]  ;;  %1272 = vst.msk [vmem:[#allocation2 + $0x328] sm:$0xff] %vm1170_vm2, %v1158_v52  ;;  %v8870_v49 = vld [vmem:[#allocation3 + $0x90] sm:$0xff]  ;;  %v5229_v52 = vld [vmem:[#allocation3 + $0x84] sm:$0xff] }
 0x3c4   : > { %v2238_v57 = vadd.f32 %v2133_v56, %v2018_v53 }
 0x3c5   : > { %v4044_v14 = vld [vmem:[#allocation2 + $0x2fe] ss:$2 sm:$0x3f]  ;;  %v4048_v61 = vld [vmem:[#allocation2 + $0x2ff] ss:$2 sm:$0x3f]  ;;  %7099 = vmatmul.msk.f32.gmra.mxu0 %vm1170_vm2, %v8842_v59 }
 0x3c6   : > { %v3631_v63 = vmax.f32 %v3526_v51, 0.0  ;;  %v3204_v0 = vld [vmem:[#allocation2 + $0x318] sm:$0xff]  ;;  %2343 = vst.msk [vmem:[#allocation2 + $0x320] sm:$0xff] %vm1170_vm2, %v2238_v57  ;;  %7117 = vmatmul.msk.f32.gmra.mxu1 %vm1170_vm2, %v5252_v60  ;;  %v4050_v5 = vmax.f32 %v4044_v14, %v4048_v61 }
 0x3c7   : > { %v3309_v7 = vadd.f32 %v3204_v0, %v3087_v48  ;;  %7138 = vmatmul.msk.f32.gmra.mxu2 %vm1170_vm2, %v5227_v1  ;;  %v8879_v56 = vpop.f32.mrf.mxu3  ;;  %v2136_v61 = vld [vmem:[#allocation2 + $0x338] sm:$0xff]  ;;  %v8884_v1 = vld [vmem:[#allocation3 + $0x98] sm:$0xff] }
 0x3c8   : > { %3736 = vst.msk [vmem:[#allocation2 + $0x310] sm:$0xff] %vm1170_vm2, %v3631_v63  ;;  %v4052_v8 = vmax.f32 %v4040_v3, %v4050_v5  ;;  %v5255_v3 = vld [vmem:[#allocation3 + $0x8d] sm:$0xff] }
 0x3c9   : > { %v3418_v10 = vmul.f32 %v8788_v55, %v3309_v7  ;;  %v5230_v7 = vld [vmem:[#allocation3 + $0x8c] sm:$0xff] }
 0x3ca   : > { %v3090_v15 = vpop.f32.mrf.mxu2  ;;  %4054 = vst.msk [vmem:[#allocation3 + $0xb0] sm:$0x3f] %vm3765_vm3, %v4052_v8  ;;  %v1161_v18 = vpop.f32.mrf.mxu0  ;;  %v2134_v21 = vld [vmem:[#allocation2 + $0x328] sm:$0xff] }
 0x3cb   : > { %v3527_v17 = vadd.f32 %v8794_v46, %v3418_v10  ;;  %7001 = vmatmul.msk.f32.vlgmr.msrb.gmra.mxu3 %vm1170_vm2, %v4081_v16  ;;  %v2021_v20 = vpop.f32.mrf.mxu1  ;;  %1273 = vst.msk [vmem:[#allocation2 + $0x330] sm:$0xff] %vm1170_vm2, %v1161_v18 }
 0x3cc   : > { %v2239_v23 = vadd.f32 %v2134_v21, %v2021_v20  ;;  %v2137_v20 = vld [vmem:[#allocation2 + $0x340] sm:$0xff] }
 0x3cd   : > { %v3632_v24 = vmax.f32 %v3527_v17, 0.0  ;;  %v3205_v26 = vld [vmem:[#allocation2 + $0x320] sm:$0xff]  ;;  %7100 = vmatmul.msk.f32.gmra.mxu0 %vm1170_vm2, %v8857_v28 }
 0x3ce   : > { %v3310_v30 = vadd.f32 %v3205_v26, %v3090_v15  ;;  %2344 = vst.msk [vmem:[#allocation2 + $0x328] sm:$0xff] %vm1170_vm2, %v2239_v23  ;;  %7118 = vmatmul.msk.f32.gmra.mxu1 %vm1170_vm2, %v5253_v29  ;;  %v5256_v26 = vld [vmem:[#allocation3 + $0x95] sm:$0xff]  ;;  %v7321_v29 = vmov 0.0  }
 0x3cf   : > { %3737 = vst.msk [vmem:[#allocation2 + $0x318] sm:$0xff] %vm1170_vm2, %v3632_v24  ;;  %7139 = vmatmul.msk.f32.gmra.mxu2 %vm1170_vm2, %v5228_v31  ;;  %v8896_v15 = vpop.f32.mrf.mxu3  ;;  %v8901_v24 = vld [vmem:[#allocation3 + $0xa0] sm:$0xff] }
 0x3d0   : > { %v3419_v34 = vmul.f32 %v8788_v55, %v3310_v30  ;;  %4080 = vst.msk [vmem:[#allocation3 + $0xc4] sm:$0x3] %vm4079_vm4, %v7321_v29 }
 0x3d1   : > { %5948 = vst.msk [vmem:[#allocation5 + $0x24] sm:$0x3] %vm5947_vm7, %v7321_v29  ;;  %v6247_v29 = vld [vmem:[%s10035_s7 + $0x188] sm:$0xff] }
 0x3d2   : > { %v3528_v38 = vadd.f32 %v8794_v46, %v3419_v34  ;;  %v3093_v39 = vpop.f32.mrf.mxu2  ;;  %v2135_v42 = vld [vmem:[#allocation2 + $0x330] sm:$0xff] }
 0x3d3   : > { %7002 = vmatmul.msk.f32.gmra.mxu3 %vm1170_vm2, %v4082_v40  ;;  %v2024_v2 = vpop.f32.mrf.mxu1 }
 0x3d4   : > { %v3633_v43 = vmax.f32 %v3528_v38, 0.0  ;;  %v2240_v47 = vadd.f32 %v2135_v42, %v2024_v2 }
 0x3d5   : > { %v3206_v48 = vld [vmem:[#allocation2 + $0x328] sm:$0xff]  ;;  %7101 = vmatmul.msk.f32.gmra.mxu0 %vm1170_vm2, %v8870_v49 }
 0x3d6   : > { %3738 = vst.msk [vmem:[#allocation2 + $0x320] sm:$0xff] %vm1170_vm2, %v3633_v43  ;;  %v3311_v51 = vadd.f32 %v3206_v48, %v3093_v39  ;;  %7119 = vmatmul.msk.f32.gmra.mxu1 %vm1170_vm2, %v5254_v50  ;;  %v4983_v43 = vld [vmem:[#allocation3 + $0xa8] sm:$0xff]  ;;  %v5232_v50 = vld [vmem:[#allocation3 + $0x9c] sm:$0xff] }
 0x3d7   : > { %2345 = vst.msk [vmem:[#allocation2 + $0x330] sm:$0xff] %vm1170_vm2, %v2240_v47  ;;  %7140 = vmatmul.msk.f32.gmra.mxu2 %vm1170_vm2, %v5229_v52  ;;  %v8914_v39 = vpop.f32.mrf.mxu3  ;;  %v5257_v47 = vld [vmem:[#allocation3 + $0x9d] sm:$0xff]  ;;  %v4060_v52 = vld [vmem:[#allocation2 + $0x30d] ss:$2 sm:$0xff] }
 0x3d8   : > { %v3420_v53 = vmul.f32 %v8788_v55, %v3311_v51 }
 0x3da   : > { %v3529_v57 = vadd.f32 %v8794_v46, %v3420_v53  ;;  %v3096_v60 = vpop.f32.mrf.mxu2 }
 0x3db   : > { %7003 = vmatmul.msk.f32.gmra.mxu3 %vm1170_vm2, %v8648_v4  ;;  %v2027_v14 = vpop.f32.mrf.mxu1  ;;  %v4440_v4 = vld [vmem:[%s10032_s4 + $0x50] sm:$0xff] }
 0x3dc   : > { %v3634_v63 = vmax.f32 %v3529_v57, 0.0  ;;  %v2241_v0 = vadd.f32 %v2136_v61, %v2027_v14  ;;  %4518 = vmatpush.msra.mxu3 %v4440_v4  ;;  %v5258_v14 = vld [vmem:[#allocation3 + $0xa5] sm:$0xff] }
 0x3dd   : > { %7102 = vmatmul.msk.f32.gmra.mxu0 %vm1170_vm2, %v8884_v1 }
 0x3de   : > { %3739 = vst.msk [vmem:[#allocation2 + $0x328] sm:$0xff] %vm1170_vm2, %v3634_v63  ;;  %v3207_v5 = vld [vmem:[#allocation2 + $0x330] sm:$0xff]  ;;  %7120 = vmatmul.msk.f32.gmra.mxu1 %vm1170_vm2, %v5255_v3 }
 0x3df   : > { %v3312_v8 = vadd.f32 %v3207_v5, %v3096_v60  ;;  %2346 = vst.msk [vmem:[#allocation2 + $0x338] sm:$0xff] %vm1170_vm2, %v2241_v0  ;;  %7141 = vmatmul.msk.f32.gmra.mxu2 %vm1170_vm2, %v5230_v7  ;;  %v8924_v57 = vpop.f32.mrf.mxu3  ;;  %v5233_v3 = vld [vmem:[#allocation3 + $0xa4] sm:$0xff]  ;;  %v4058_v5 = vld [vmem:[#allocation2 + $0x31c] ss:$2 sm:$0x3f] }
 0x3e1   : > { %v3421_v10 = vmul.f32 %v8788_v55, %v3312_v8  ;;  %v5259_v8 = vld [vmem:[#allocation3 + $0xad] sm:$0xff] }
 0x3e2   : > { %v3099_v17 = vpop.f32.mrf.mxu2 }
 0x3e3   : > { %v3530_v16 = vadd.f32 %v8794_v46, %v3421_v10  ;;  %7004 = vmatmul.msk.f32.gmra.mxu3 %vm1170_vm2, %v8663_v19  ;;  %v2030_v18 = vpop.f32.mrf.mxu1  ;;  %v5231_v19 = vld [vmem:[#allocation3 + $0x94] sm:$0xff] }
 0x3e4   : > { %v2242_v21 = vadd.f32 %v2137_v20, %v2030_v18  ;;  %v5234_v18 = vld [vmem:[#allocation3 + $0xac] sm:$0xff] }
 0x3e5   : > { %v3635_v23 = vmax.f32 %v3530_v16, 0.0  ;;  %7103 = vmatmul.msk.f32.gmra.mxu0 %vm1170_vm2, %v8901_v24 }
 0x3e6   : > { %v3208_v30 = vld [vmem:[#allocation2 + $0x338] sm:$0xff]  ;;  %2347 = vst.msk [vmem:[#allocation2 + $0x340] sm:$0xff] %vm1170_vm2, %v2242_v21  ;;  %7121 = vmatmul.msk.f32.gmra.mxu1 %vm1170_vm2, %v5256_v26 }
 0x3e7   : > { %3740 = vst.msk [vmem:[#allocation2 + $0x330] sm:$0xff] %vm1170_vm2, %v3635_v23  ;;  %v3313_v31 = vadd.f32 %v3208_v30, %v3099_v17  ;;  %7142 = vmatmul.msk.f32.gmra.mxu2 %vm1170_vm2, %v5231_v19  ;;  %v8935_v4 = vpop.f32.mrf.mxu3 }
 0x3e9   : > { %v3422_v34 = vmul.f32 %v8788_v55, %v3313_v31 }
 0x3ea   : > { %v3102_v2 = vpop.f32.mrf.mxu2 }
 0x3eb   : > { %v3531_v38 = vadd.f32 %v8794_v46, %v3422_v34  ;;  %7005 = vmatmul.msk.f32.gmra.mxu3 %vm1170_vm2, %v8679_v33  ;;  %v4056_v33 = vld [vmem:[#allocation2 + $0x30c] ss:$2 sm:$0xff] }
 0x3ec   : > { %v4063_v61 = vmax.f32 %v4056_v33, %v4060_v52  ;;  %v4421_v33 = vld [vmem:[#allocation3 + $0x22] sm:$0xff] }
 0x3ed   : > { %v3636_v40 = vmax.f32 %v3531_v38, 0.0  ;;  %v3209_v42 = vld [vmem:[#allocation2 + $0x340] sm:$0xff]  ;;  %7104 = vmatmul.msk.f32.gmra.mxu0 %vm1170_vm2, %v4983_v43 }
 0x3ee   : > { %v3314_v48 = vadd.f32 %v3209_v42, %v3102_v2  ;;  %7122 = vmatmul.msk.f32.gmra.mxu1 %vm1170_vm2, %v5257_v47  ;;  %v4417_v42 = vld [vmem:[#allocation3 + $0x2] sm:$0xff]  ;;  %v4418_v47 = vld [vmem:[#allocation3 + $0xa] sm:$0xff] }
 0x3ef   : > { %3741 = vst.msk [vmem:[#allocation2 + $0x338] sm:$0xff] %vm1170_vm2, %v3636_v40  ;;  %7143 = vmatmul.msk.f32.gmra.mxu2 %vm1170_vm2, %v5232_v50  ;;  %v8943_v23 = vpop.f32.mrf.mxu3  ;;  %v4438_v40 = vld [vmem:[%s10032_s4 + $0x40] sm:$0xff] }
 0x3f0   : > { %v3423_v51 = vmul.f32 %v8788_v55, %v3314_v48  ;;  %v4419_v48 = vld [vmem:[#allocation3 + $0x12] sm:$0xff]  ;;  %v4420_v50 = vld [vmem:[#allocation3 + $0x1a] sm:$0xff] }
 0x3f2   : > { %v3532_v53 = vadd.f32 %v8794_v46, %v3423_v51  ;;  %v4062_v46 = vld [vmem:[#allocation2 + $0x31d] ss:$2 sm:$0x3f] }
 0x3f3   : > { %7006 = vmatmul.msk.f32.gmra.mxu3 %vm1170_vm2, %v8690_v45  ;;  %v4439_v45 = vld [vmem:[%s10032_s4 + $0x48] sm:$0xff]  ;;  %v4064_v10 = vmax.f32 %v4058_v5, %v4062_v46  ;;  %v4426_v46 = vld [vmem:[#allocation3 + $0x4a] sm:$0xff] }
 0x3f4   : > { %v3637_v60 = vmax.f32 %v3532_v53, 0.0  ;;  %4519 = vmatpush.msra.mxu3 %v4439_v45  ;;  %v4422_v53 = vld [vmem:[#allocation3 + $0x2a] sm:$0xff]  ;;  %v4427_v45 = vld [vmem:[#allocation3 + $0x52] sm:$0xff] }
 0x3f6   : > { %v4066_v63 = vld [vmem:[#allocation2 + $0x32a] ss:$2 sm:$0xff]  ;;  %v4070_v0 = vld [vmem:[#allocation2 + $0x32b] ss:$2 sm:$0xff]  ;;  %3742 = vst.msk [vmem:[#allocation2 + $0x340] sm:$0xff] %vm1170_vm2, %v3637_v60  ;;  %7123 = vmatmul.msk.f32.gmra.mxu1 %vm1170_vm2, %v5258_v14  ;;  %4520 = vmatpush.msra.mxu3 %v4438_v40  ;;  %v4423_v14 = vld [vmem:[#allocation3 + $0x32] sm:$0xff] }
 0x3f7   : > { %7144 = vmatmul.msk.f32.gmra.mxu2 %vm1170_vm2, %v5233_v3  ;;  %v4073_v55 = vmax.f32 %v4066_v63, %v4070_v0  ;;  %v8949_v19 = vpop.f32.mrf.mxu3  ;;  %v4675_v63 = vld [vmem:[%s10032_s4 + $0x88] sm:$0xff] }
 0x3f8   : > { %v4424_v0 = vld [vmem:[#allocation3 + $0x3a] sm:$0xff]  ;;  %v4433_v40 = vld [vmem:[#allocation3 + $0x82] sm:$0xff] }
 0x3f9   : > { %v4075_v7 = vmax.f32 %v4063_v61, %v4073_v55  ;;  %v4425_v55 = vld [vmem:[#allocation3 + $0x42] sm:$0xff] }
 0x3fb   : > { %7007 = vmatmul.msk.f32.gmra.mxu3 %vm1170_vm2, %v8701_v58  ;;  %4077 = vst.msk [vmem:[#allocation3 + $0xb6] sm:$0xff] %vm1170_vm2, %v4075_v7 }
 0x3fd   : > { %v4068_v16 = vld [vmem:[#allocation2 + $0x33a] ss:$2 sm:$0x3f]  ;;  %v4072_v17 = vld [vmem:[#allocation2 + $0x33b] ss:$2 sm:$0x3f] }
 0x3fe   : > { %7124 = vmatmul.msk.f32.gmra.mxu1 %vm1170_vm2, %v5259_v8  ;;  %v4074_v20 = vmax.f32 %v4068_v16, %v4072_v17  ;;  %v4674_v17 = vld [vmem:[%s10032_s4 + $0x80] sm:$0xff] }
 0x3ff   : > { %7145 = vmatmul.msk.f32.gmra.mxu2 %vm1170_vm2, %v5234_v18  ;;  %v4429_v18 = vld [vmem:[#allocation3 + $0x62] sm:$0xff] }
 0x400   : > { %v4076_v58 = vmax.f32 %v4064_v10, %v4074_v20  ;;  %v4428_v10 = vld [vmem:[#allocation3 + $0x5a] sm:$0xff] }
 0x402   : > { %v4984_v21 = vld [vmem:[#allocation3 + $0xb0] sm:$0xff]  ;;  %4078 = vst.msk [vmem:[#allocation3 + $0xbe] sm:$0x3f] %vm3765_vm3, %v4076_v58 }
 0x403   : > { %7008 = vmatmul.msk.f32.gmra.mxu3 %vm1170_vm2, %v8712_v11  ;;  %7105 = vmatmul.msk.f32.gmra.mxu0 %vm1170_vm2, %v4984_v21  ;;  %v5260_v26 = vld [vmem:[#allocation3 + $0xb5] sm:$0xff]  ;;  %v8955_v11 = vpop.f32.mrf.mxu3  ;;  %v4430_v58 = vld [vmem:[#allocation3 + $0x6a] sm:$0xff] }
 0x404   : > { %v5235_v30 = vld [vmem:[#allocation3 + $0xb4] sm:$0xff] }
 0x406   : > { %7125 = vmatmul.msk.f32.gmra.mxu1 %vm1170_vm2, %v5260_v26  ;;  %v4431_v26 = vld [vmem:[#allocation3 + $0x72] sm:$0xff] }
 0x407   : > { %7146 = vmatmul.msk.f32.gmra.mxu2 %vm1170_vm2, %v5235_v30 }
 0x409   : > { %v5261_v31 = vld [vmem:[#allocation3 + $0xbd] sm:$0xff] }
 0x40a   : > { %v5236_v34 = vld [vmem:[#allocation3 + $0xbc] sm:$0xff] }
 0x40b   : > { %7009 = vmatmul.msk.f32.gmra.mxu3 %vm1170_vm2, %v8724_v32  ;;  %v8959_v38 = vpop.f32.mrf.mxu3 }
 0x40e   : > { %7126 = vmatmul.msk.f32.gmra.mxu1 %vm1170_vm2, %v5261_v31  ;;  %v4432_v31 = vld [vmem:[#allocation3 + $0x7a] sm:$0xff] }
 0x40f   : > { %7147 = vmatmul.msk.f32.gmra.mxu2 %vm1170_vm2, %v5236_v34 }
 0x413   : > { %7010 = vmatmul.msk.f32.gmra.mxu3 %vm1170_vm2, %v8740_v54  ;;  %v8963_v32 = vpop.f32.mrf.mxu3 }
 0x41b   : > { %7011 = vmatmul.msk.f32.gmra.mxu3 %vm1170_vm2, %v8751_v6  ;;  %v8970_v54 = vpop.f32.mrf.mxu3 }
 0x423   : > { %7012 = vmatmul.msk.f32.gmra.mxu3 %vm1170_vm2, %v8762_v22  ;;  %v8974_v6 = vpop.f32.mrf.mxu3 }
 0x42b   : > { %7013 = vmatmul.msk.f32.gmra.mxu3 %vm1170_vm2, %v8775_v37  ;;  %v8978_v22 = vpop.f32.mrf.mxu3 }
 0x433   : > { %7014 = vmatmul.msk.f32.gmra.mxu3 %vm1170_vm2, %v8798_v62  ;;  %v4677_v62 = vld [vmem:[%s10032_s4 + $0x98] sm:$0xff] }
 0x434   : > { %4753 = vmatpush.msrb.mxu3 %v4677_v62 }
 0x43b   : > { %7015 = vmatmul.msk.f32.gmra.mxu3 %vm1170_vm2, %v8811_v12 }
 0x443   : > { %7016 = vmatmul.msk.f32.gmra.mxu3 %vm1170_vm2, %v8825_v36 }
 0x446   : > { %v8982_v2 = vpop.f32.mrf.mxu3 }
 0x44b   : > { %7017 = vmatmul.msk.f32.gmra.mxu3 %vm1170_vm2, %v8842_v59 }
 0x44e   : > { %v8986_v37 = vpop.f32.mrf.mxu3 }
 0x44f   : > { %v4355_v62 = vadd.f32 %v8986_v37, %v8770_v27  ;;  %v4435_v27 = vld [vmem:[#allocation3 + $0x92] sm:$0xff] }
 0x453   : > { %7018 = vmatmul.msk.f32.gmra.mxu3 %vm1170_vm2, %v8857_v28 }
 0x456   : > { %v8993_v12 = vpop.f32.mrf.mxu3 }
 0x45b   : > { %7019 = vmatmul.msk.f32.gmra.mxu3 %vm1170_vm2, %v8870_v49  ;;  %v4676_v49 = vld [vmem:[%s10032_s4 + $0x90] sm:$0xff] }
 0x45c   : > { %4754 = vmatpush.msrb.mxu3 %v4676_v49  ;;  %v4434_v49 = vld [vmem:[#allocation3 + $0x8a] sm:$0xff] }
 0x45e   : > { %v8997_v36 = vpop.f32.mrf.mxu3  ;;  %4755 = vmatpush.msrb.mxu3 %v4675_v63 }
 0x45f   : > { %v4361_v37 = vadd.f32 %v8997_v36, %v8807_v9 }
 0x460   : > { %4756 = vmatpush.msrb.mxu3 %v4674_v17 }
 0x463   : > { %7020 = vmatmul.msk.f32.gmra.mxu3 %vm1170_vm2, %v8884_v1 }
 0x466   : > { %v9001_v59 = vpop.f32.mrf.mxu3 }
 0x46b   : > { %7021 = vmatmul.msk.f32.gmra.mxu3 %vm1170_vm2, %v8901_v24 }
 0x46e   : > { %v9005_v28 = vpop.f32.mrf.mxu3 }
 0x46f   : > { %v4367_v9 = vadd.f32 %v9005_v28, %v8837_v44  ;;  %v4651_v44 = vld [vmem:[%s10032_s4 + $0x70] sm:$0xff] }
 0x473   : > { %7022 = vmatmul.msk.f32.vlgmr.msra.gmra.mxu3 %vm1170_vm2, %v4417_v42 }
 0x476   : > { %v9008_v43 = vpop.f32.mrf.mxu3 }
 0x47b   : > { %7023 = vmatmul.msk.f32.gmra.mxu3 %vm1170_vm2, %v4418_v47 }
 0x47e   : > { %v9014_v1 = vpop.f32.mrf.mxu3 }
 0x47f   : > { %v4373_v28 = vadd.f32 %v9014_v1, %v8866_v35 }
 0x483   : > { %7024 = vmatmul.msk.f32.gmra.mxu3 %vm1170_vm2, %v4419_v48  ;;  %v4652_v48 = vld [vmem:[%s10032_s4 + $0x78] sm:$0xff] }
 0x484   : > { %4896 = vmatpush.msra.mxu3 %v4652_v48  ;;  %v4658_v48 = vld [vmem:[#allocation3 + $0x37] sm:$0xff] }
 0x486   : > { %v9017_v24 = vpop.f32.mrf.mxu3  ;;  %4897 = vmatpush.msra.mxu3 %v4651_v44 }
 0x48b   : > { %7025 = vmatmul.msk.f32.gmra.mxu3 %vm1170_vm2, %v4420_v50  ;;  %v4358_v50 = vadd.f32 %v8993_v12, %v8782_v41  ;;  %v4364_v41 = vadd.f32 %v9001_v59, %v8820_v25  ;;  %v4370_v25 = vadd.f32 %v9008_v43, %v8851_v13  ;;  %v4655_v13 = vld [vmem:[#allocation3 + $0x1f] sm:$0xff]  ;;  %v4376_v43 = vadd.f32 %v9017_v24, %v8879_v56 }
 0x48e   : > { %v9020_v51 = vpop.f32.mrf.mxu3 }
 0x48f   : > { %v4379_v35 = vadd.f32 %v9020_v51, %v8896_v15 }
 0x493   : > { %7026 = vmatmul.msk.f32.gmra.mxu3 %vm1170_vm2, %v4421_v33 }
 0x496   : > { %v9023_v52 = vpop.f32.mrf.mxu3 }
 0x497   : > { %v4382_v56 = vadd.f32 %v9023_v52, %v8914_v39 }
 0x49b   : > { %7027 = vmatmul.msk.f32.gmra.mxu3 %vm1170_vm2, %v4422_v53 }
 0x49e   : > { %v9026_v60 = vpop.f32.mrf.mxu3 }
 0x49f   : > { %v4385_v15 = vadd.f32 %v9026_v60, %v8924_v57 }
 0x4a3   : > { %7028 = vmatmul.msk.f32.gmra.mxu3 %vm1170_vm2, %v4423_v14 }
 0x4a6   : > { %v9029_v61 = vpop.f32.mrf.mxu3 }
 0x4a7   : > { %v4388_v39 = vadd.f32 %v9029_v61, %v8935_v4  ;;  %v4661_v4 = vld [vmem:[#allocation3 + $0x4f] sm:$0xff] }
 0x4ab   : > { %7029 = vmatmul.msk.f32.gmra.mxu3 %vm1170_vm2, %v4424_v0  ;;  %v4436_v0 = vld [vmem:[#allocation3 + $0x9a] sm:$0xff] }
 0x4ae   : > { %v9035_v3 = vpop.f32.mrf.mxu3 }
 0x4af   : > { %v4391_v57 = vadd.f32 %v9035_v3, %v8943_v23 }
 0x4b3   : > { %7030 = vmatmul.msk.f32.gmra.mxu3 %vm1170_vm2, %v4425_v55 }
 0x4b6   : > { %v9038_v5 = vpop.f32.mrf.mxu3 }
 0x4b7   : > { %v4394_v61 = vadd.f32 %v9038_v5, %v8949_v19 }
 0x4bb   : > { %7031 = vmatmul.msk.f32.gmra.mxu3 %vm1170_vm2, %v4426_v46  ;;  %v4437_v46 = vld [vmem:[#allocation3 + $0xa2] sm:$0xff] }
 0x4be   : > { %v9041_v7 = vpop.f32.mrf.mxu3 }
 0x4bf   : > { %v4397_v23 = vadd.f32 %v9041_v7, %v8955_v11 }
 0x4c3   : > { %7032 = vmatmul.msk.f32.gmra.mxu3 %vm1170_vm2, %v4427_v45 }
 0x4c6   : > { %v9044_v8 = vpop.f32.mrf.mxu3 }
 0x4c7   : > { %v4400_v19 = vadd.f32 %v9044_v8, %v8959_v38 }
 0x4cb   : > { %7033 = vmatmul.msk.f32.gmra.mxu3 %vm1170_vm2, %v4428_v10  ;;  %v4653_v10 = vld [vmem:[#allocation3 + $0xf] sm:$0xff] }
 0x4ce   : > { %v9047_v16 = vpop.f32.mrf.mxu3 }
 0x4cf   : > { %v4403_v11 = vadd.f32 %v9047_v16, %v8963_v32  ;;  %v4666_v32 = vld [vmem:[#allocation3 + $0x77] sm:$0xff] }
 0x4d3   : > { %7034 = vmatmul.msk.f32.gmra.mxu3 %vm1170_vm2, %v4429_v18  ;;  %v4654_v18 = vld [vmem:[#allocation3 + $0x17] sm:$0xff] }
 0x4d6   : > { %v9053_v20 = vpop.f32.mrf.mxu3 }
 0x4d7   : > { %v4406_v38 = vadd.f32 %v9053_v20, %v8970_v54 }
 0x4db   : > { %7035 = vmatmul.msk.f32.gmra.mxu3 %vm1170_vm2, %v4430_v58 }
 0x4de   : > { %v9056_v21 = vpop.f32.mrf.mxu3 }
 0x4df   : > { %v4409_v16 = vadd.f32 %v9056_v21, %v8974_v6 }
 0x4e3   : > { %7036 = vmatmul.msk.f32.gmra.mxu3 %vm1170_vm2, %v4431_v26 }
 0x4e6   : > { %v9059_v30 = vpop.f32.mrf.mxu3 }
 0x4e7   : > { %v4412_v54 = vadd.f32 %v9059_v30, %v8978_v22  ;;  %v4670_v22 = vld [vmem:[#allocation3 + $0x97] sm:$0xff] }
 0x4e8   : > { %v5576_v30 = vld [vmem:[%s10032_s4 + $0x118] sm:$0xff] }
 0x4eb   : > { %7037 = vmatmul.msk.f32.gmra.mxu3 %vm1170_vm2, %v4432_v31 }
 0x4ee   : > { %v9062_v34 = vpop.f32.mrf.mxu3 }
 0x4ef   : > { %v4415_v6 = vadd.f32 %v9062_v34, %v8982_v2  ;;  %v4671_v2 = vld [vmem:[#allocation3 + $0x9f] sm:$0xff] }
 0x4f3   : > { %7038 = vmatmul.msk.f32.gmra.mxu3 %vm1170_vm2, %v4433_v40 }
 0x4f6   : > { %v4522_v42 = vpop.f32.mrf.mxu3 }
 0x4f7   : > { %v4585_v47 = vadd.f32 %v4522_v42, %v4355_v62  ;;  %v4656_v62 = vld [vmem:[#allocation3 + $0x27] sm:$0xff] }
 0x4f9   : > { %4607 = vst.msk [vmem:[#allocation4] sm:$0xff] %vm4606_vm5, %v4585_v47  ;;  %v4657_v47 = vld [vmem:[#allocation3 + $0x2f] sm:$0xff] }
 0x4fb   : > { %7039 = vmatmul.msk.f32.gmra.mxu3 %vm1170_vm2, %v4434_v49 }
 0x4fe   : > { %v4525_v33 = vpop.f32.mrf.mxu3 }
 0x4ff   : > { %v4586_v53 = vadd.f32 %v4525_v33, %v4358_v50  ;;  %v4659_v33 = vld [vmem:[#allocation3 + $0x3f] sm:$0xff] }
 0x501   : > { %4608 = vst.msk [vmem:[#allocation4 + $0x8] sm:$0xff] %vm4606_vm5, %v4586_v53 }
 0x503   : > { %7040 = vmatmul.msk.f32.gmra.mxu3 %vm1170_vm2, %v4435_v27  ;;  %v4650_v27 = vld [vmem:[%s10032_s4 + $0x68] sm:$0xff] }
 0x504   : > { %4898 = vmatpush.msra.mxu3 %v4650_v27 }
 0x506   : > { %v4528_v14 = vpop.f32.mrf.mxu3 }
 0x507   : > { %v4587_v63 = vadd.f32 %v4528_v14, %v4361_v37  ;;  %v4660_v37 = vld [vmem:[#allocation3 + $0x47] sm:$0xff] }
 0x509   : > { %4609 = vst.msk [vmem:[#allocation4 + $0x10] sm:$0xff] %vm4606_vm5, %v4587_v63 }
 0x50b   : > { %7041 = vmatmul.msk.f32.gmra.mxu3 %vm1170_vm2, %v4436_v0 }
 0x50e   : > { %v4531_v12 = vpop.f32.mrf.mxu3 }
 0x50f   : > { %v4588_v55 = vadd.f32 %v4531_v12, %v4364_v41  ;;  %v4662_v41 = vld [vmem:[#allocation3 + $0x57] sm:$0xff] }
 0x511   : > { %4610 = vst.msk [vmem:[#allocation4 + $0x18] sm:$0xff] %vm4606_vm5, %v4588_v55  ;;  %v4663_v55 = vld [vmem:[#allocation3 + $0x5f] sm:$0xff] }
 0x513   : > { %7042 = vmatmul.msk.f32.gmra.mxu3 %vm1170_vm2, %v4437_v46 }
 0x516   : > { %v4534_v36 = vpop.f32.mrf.mxu3 }
 0x517   : > { %v4589_v45 = vadd.f32 %v4534_v36, %v4367_v9  ;;  %v4664_v9 = vld [vmem:[#allocation3 + $0x67] sm:$0xff] }
 0x519   : > { %4611 = vst.msk [vmem:[#allocation4 + $0x20] sm:$0xff] %vm4606_vm5, %v4589_v45  ;;  %v4649_v45 = vld [vmem:[%s10032_s4 + $0x60] sm:$0xff] }
 0x51a   : > { %4899 = vmatpush.msra.mxu3 %v4649_v45 }
 0x51b   : > { %7043 = vmatmul.msk.f32.vlgmr.msrb.gmra.mxu3 %vm1170_vm2, %v4653_v10  ;;  %v4665_v10 = vld [vmem:[#allocation3 + $0x6f] sm:$0xff] }
 0x51c   : > { %5652 = vmatpush.msrb.mxu3 %v5576_v30 }
 0x51e   : > { %v4537_v59 = vpop.f32.mrf.mxu3 }
 0x51f   : > { %v4590_v17 = vadd.f32 %v4537_v59, %v4370_v25 }
 0x521   : > { %4612 = vst.msk [vmem:[#allocation4 + $0x28] sm:$0xff] %vm4606_vm5, %v4590_v17 }
 0x523   : > { %7044 = vmatmul.msk.f32.gmra.mxu3 %vm1170_vm2, %v4654_v18  ;;  %v4667_v18 = vld [vmem:[#allocation3 + $0x7f] sm:$0xff] }
 0x526   : > { %v4540_v58 = vpop.f32.mrf.mxu3 }
 0x527   : > { %v4591_v26 = vadd.f32 %v4540_v58, %v4373_v28  ;;  %v4668_v28 = vld [vmem:[#allocation3 + $0x87] sm:$0xff] }
 0x529   : > { %4613 = vst.msk [vmem:[#allocation4 + $0x30] sm:$0xff] %vm4606_vm5, %v4591_v26  ;;  %v4669_v26 = vld [vmem:[#allocation3 + $0x8f] sm:$0xff] }
 0x52b   : > { %7045 = vmatmul.msk.f32.gmra.mxu3 %vm1170_vm2, %v4655_v13 }
 0x52e   : > { %v4543_v31 = vpop.f32.mrf.mxu3 }
 0x52f   : > { %v4592_v40 = vadd.f32 %v4543_v31, %v4376_v43  ;;  %v4672_v31 = vld [vmem:[#allocation3 + $0xa7] sm:$0xff] }
 0x531   : > { %4614 = vst.msk [vmem:[#allocation4 + $0x38] sm:$0xff] %vm4606_vm5, %v4592_v40 }
 0x533   : > { %7046 = vmatmul.msk.f32.gmra.mxu3 %vm1170_vm2, %v4656_v62  ;;  %v4673_v62 = vld [vmem:[#allocation3 + $0xaf] sm:$0xff] }
 0x536   : > { %v4546_v1 = vpop.f32.mrf.mxu3 }
 0x537   : > { %v4593_v42 = vadd.f32 %v4546_v1, %v4379_v35  ;;  %v4628_v1 = vld [vmem:[#allocation3 + $0xe] sm:$0xff] }
 0x539   : > { %4615 = vst.msk [vmem:[#allocation4 + $0x40] sm:$0xff] %vm4606_vm5, %v4593_v42 }
 0x53b   : > { %7047 = vmatmul.msk.f32.gmra.mxu3 %vm1170_vm2, %v4657_v47  ;;  %v4629_v47 = vld [vmem:[#allocation3 + $0x16] sm:$0xff] }
 0x53e   : > { %v4549_v24 = vpop.f32.mrf.mxu3 }
 0x53f   : > { %v4594_v49 = vadd.f32 %v4549_v24, %v4382_v56  ;;  %v5575_v56 = vld [vmem:[%s10032_s4 + $0x110] sm:$0xff] }
 0x540   : > { %5653 = vmatpush.msrb.mxu3 %v5575_v56 }
 0x541   : > { %4616 = vst.msk [vmem:[#allocation4 + $0x48] sm:$0xff] %vm4606_vm5, %v4594_v49  ;;  %v9187_v49 = vld [vmem:[#allocation3 + $0x1e] sm:$0xff] }
 0x543   : > { %7048 = vmatmul.msk.f32.gmra.mxu3 %vm1170_vm2, %v4658_v48 }
 0x546   : > { %v4552_v51 = vpop.f32.mrf.mxu3 }
 0x547   : > { %v4595_v50 = vadd.f32 %v4552_v51, %v4385_v15  ;;  %v9193_v15 = vld [vmem:[#allocation3 + $0x26] sm:$0xff] }
 0x549   : > { %4617 = vst.msk [vmem:[#allocation4 + $0x50] sm:$0xff] %vm4606_vm5, %v4595_v50  ;;  %v9199_v50 = vld [vmem:[#allocation3 + $0x2e] sm:$0xff] }
 0x54b   : > { %7049 = vmatmul.msk.f32.gmra.mxu3 %vm1170_vm2, %v4659_v33 }
 0x54e   : > { %v4555_v52 = vpop.f32.mrf.mxu3 }
 0x54f   : > { %v4596_v53 = vadd.f32 %v4555_v52, %v4388_v39  ;;  %v9205_v39 = vld [vmem:[#allocation3 + $0x36] sm:$0xff] }
 0x551   : > { %4618 = vst.msk [vmem:[#allocation4 + $0x58] sm:$0xff] %vm4606_vm5, %v4596_v53  ;;  %v9211_v53 = vld [vmem:[#allocation3 + $0x3e] sm:$0xff] }
 0x553   : > { %7050 = vmatmul.msk.f32.gmra.mxu3 %vm1170_vm2, %v4660_v37  ;;  %v5574_v37 = vld [vmem:[%s10032_s4 + $0x108] sm:$0xff] }
 0x554   : > { %5654 = vmatpush.msrb.mxu3 %v5574_v37 }
 0x556   : > { %v4558_v60 = vpop.f32.mrf.mxu3 }
 0x557   : > { %v4597_v14 = vadd.f32 %v4558_v60, %v4391_v57  ;;  %v9220_v57 = vld [vmem:[#allocation3 + $0x46] sm:$0xff] }
 0x559   : > { %4619 = vst.msk [vmem:[#allocation4 + $0x60] sm:$0xff] %vm4606_vm5, %v4597_v14  ;;  %v9226_v14 = vld [vmem:[#allocation3 + $0x4e] sm:$0xff] }
 0x55b   : > { %7051 = vmatmul.msk.f32.gmra.mxu3 %vm1170_vm2, %v4661_v4 }
 0x55e   : > { %v4561_v63 = vpop.f32.mrf.mxu3 }
 0x55f   : > { %v4598_v0 = vadd.f32 %v4561_v63, %v4394_v61  ;;  %v9232_v61 = vld [vmem:[#allocation3 + $0x56] sm:$0xff] }
 0x561   : > { %4620 = vst.msk [vmem:[#allocation4 + $0x68] sm:$0xff] %vm4606_vm5, %v4598_v0  ;;  %v9238_v0 = vld [vmem:[#allocation3 + $0x5e] sm:$0xff] }
 0x563   : > { %7052 = vmatmul.msk.f32.gmra.mxu3 %vm1170_vm2, %v4662_v41 }
 0x566   : > { %v4564_v3 = vpop.f32.mrf.mxu3 }
 0x567   : > { %v4599_v12 = vadd.f32 %v4564_v3, %v4397_v23  ;;  %v9244_v23 = vld [vmem:[#allocation3 + $0x66] sm:$0xff] }
 0x569   : > { %4621 = vst.msk [vmem:[#allocation4 + $0x70] sm:$0xff] %vm4606_vm5, %v4599_v12  ;;  %v5573_v12 = vld [vmem:[%s10032_s4 + $0x100] sm:$0xff] }
 0x56a   : > { %5655 = vmatpush.msrb.mxu3 %v5573_v12  ;;  %v5156_v12 = vld [vmem:[#allocation4 + $0x18] sm:$0xff] }
 0x56b   : > { %7053 = vmatmul.msk.f32.gmra.mxu3 %vm1170_vm2, %v4663_v55  ;;  %v5069_v55 = vpop.f32.mrf.mxu0 }
 0x56e   : > { %v4567_v5 = vpop.f32.mrf.mxu3 }
 0x56f   : > { %v4600_v46 = vadd.f32 %v4567_v5, %v4400_v19  ;;  %v9253_v19 = vld [vmem:[#allocation3 + $0x6e] sm:$0xff] }
 0x571   : > { %4622 = vst.msk [vmem:[#allocation4 + $0x78] sm:$0xff] %vm4606_vm5, %v4600_v46  ;;  %v9259_v46 = vld [vmem:[#allocation3 + $0x76] sm:$0xff] }
 0x573   : > { %7054 = vmatmul.msk.f32.gmra.mxu3 %vm1170_vm2, %v4664_v9  ;;  %v5072_v9 = vpop.f32.mrf.mxu0 }
 0x576   : > { %v4570_v7 = vpop.f32.mrf.mxu3 }
 0x577   : > { %v4601_v36 = vadd.f32 %v4570_v7, %v4403_v11  ;;  %v9265_v7 = vld [vmem:[#allocation3 + $0x7e] sm:$0xff] }
 0x579   : > { %4623 = vst.msk [vmem:[#allocation4 + $0x80] sm:$0xff] %vm4606_vm5, %v4601_v36 }
 0x57b   : > { %7055 = vmatmul.msk.f32.gmra.mxu3 %vm1170_vm2, %v4665_v10  ;;  %v5075_v36 = vpop.f32.mrf.mxu0  ;;  %v9271_v10 = vld [vmem:[#allocation3 + $0x86] sm:$0xff] }
 0x57e   : > { %v4573_v8 = vpop.f32.mrf.mxu3 }
 0x57f   : > { %v4602_v25 = vadd.f32 %v4573_v8, %v4406_v38 }
 0x581   : > { %4624 = vst.msk [vmem:[#allocation4 + $0x88] sm:$0xff] %vm4606_vm5, %v4602_v25  ;;  %v9277_v25 = vld [vmem:[#allocation3 + $0x8e] sm:$0xff] }
 0x583   : > { %7056 = vmatmul.msk.f32.gmra.mxu3 %vm1170_vm2, %v4666_v32  ;;  %v5078_v8 = vpop.f32.mrf.mxu0 }
 0x586   : > { %v4576_v59 = vpop.f32.mrf.mxu3 }
 0x587   : > { %v4603_v17 = vadd.f32 %v4576_v59, %v4409_v16 }
 0x589   : > { %4625 = vst.msk [vmem:[#allocation4 + $0x90] sm:$0xff] %vm4606_vm5, %v4603_v17 }
 0x58b   : > { %7057 = vmatmul.msk.f32.gmra.mxu3 %vm1170_vm2, %v4667_v18  ;;  %v5081_v17 = vpop.f32.mrf.mxu0  ;;  %v5153_v18 = vld [vmem:[#allocation4] sm:$0xff] }
 0x58e   : > { %v4579_v20 = vpop.f32.mrf.mxu3 }
 0x58f   : > { %v4604_v44 = vadd.f32 %v4579_v20, %v4412_v54  ;;  %v9282_v54 = vld [vmem:[#allocation3 + $0x96] sm:$0xff] }
 0x591   : > { %4626 = vst.msk [vmem:[#allocation4 + $0x98] sm:$0xff] %vm4606_vm5, %v4604_v44 }
 0x593   : > { %7058 = vmatmul.msk.f32.gmra.mxu3 %vm1170_vm2, %v4668_v28 }
 0x596   : > { %v4582_v21 = vpop.f32.mrf.mxu3 }
 0x597   : > { %v4605_v58 = vadd.f32 %v4582_v21, %v4415_v6  ;;  %v5154_v21 = vld [vmem:[#allocation4 + $0x8] sm:$0xff] }
 0x599   : > { %4627 = vst.msk [vmem:[#allocation4 + $0xa0] sm:$0xff] %vm4606_vm5, %v4605_v58  ;;  %v9288_v58 = vld [vmem:[#allocation3 + $0x9e] sm:$0xff] }
 0x59b   : > { %7059 = vmatmul.msk.f32.gmra.mxu3 %vm1170_vm2, %v4669_v26 }
 0x59e   : > { %v9161_v13 = vpop.f32.mrf.mxu3 }
 0x5a3   : > { %7060 = vmatmul.msk.f32.gmra.mxu3 %vm1170_vm2, %v4670_v22 }
 0x5a6   : > { %v9167_v43 = vpop.f32.mrf.mxu3 }
 0x5ab   : > { %7061 = vmatmul.msk.f32.gmra.mxu3 %vm1170_vm2, %v4671_v2 }
 0x5ae   : > { %v9170_v34 = vpop.f32.mrf.mxu3 }
 0x5b3   : > { %7062 = vmatmul.msk.f32.gmra.mxu3 %vm1170_vm2, %v4672_v31  ;;  %v5155_v31 = vld [vmem:[#allocation4 + $0x10] sm:$0xff] }
 0x5b6   : > { %v9173_v40 = vpop.f32.mrf.mxu3 }
 0x5bb   : > { %7063 = vmatmul.msk.f32.gmra.mxu3 %vm1170_vm2, %v4673_v62  ;;  %v9294_v62 = vld [vmem:[#allocation3 + $0xa6] sm:$0xff] }
 0x5be   : > { %v9176_v35 = vpop.f32.mrf.mxu3 }
 0x5c3   : > { %7064 = vmatmul.msk.f32.vlgmr.msra.gmra.mxu3 %vm1170_vm2, %v4628_v1 }
 0x5c6   : > { %v9179_v42 = vpop.f32.mrf.mxu3 }
 0x5cb   : > { %7065 = vmatmul.msk.f32.gmra.mxu3 %vm1170_vm2, %v4629_v47 }
 0x5ce   : > { %v9185_v24 = vpop.f32.mrf.mxu3 }
 0x5d3   : > { %7066 = vmatmul.msk.f32.gmra.mxu3 %vm1170_vm2, %v9187_v49 }
 0x5d6   : > { %v9191_v48 = vpop.f32.mrf.mxu3 }
 0x5db   : > { %7067 = vmatmul.msk.f32.gmra.mxu3 %vm1170_vm2, %v9193_v15 }
 0x5de   : > { %v9197_v51 = vpop.f32.mrf.mxu3 }
 0x5e3   : > { %7068 = vmatmul.msk.f32.gmra.mxu3 %vm1170_vm2, %v9199_v50 }
 0x5e6   : > { %v9203_v33 = vpop.f32.mrf.mxu3 }
 0x5eb   : > { %7069 = vmatmul.msk.f32.gmra.mxu3 %vm1170_vm2, %v9205_v39 }
 0x5ee   : > { %v9209_v52 = vpop.f32.mrf.mxu3 }
 0x5f3   : > { %7070 = vmatmul.msk.f32.gmra.mxu3 %vm1170_vm2, %v9211_v53 }
 0x5f6   : > { %v9215_v27 = vpop.f32.mrf.mxu3 }
 0x5fb   : > { %7071 = vmatmul.msk.f32.gmra.mxu3 %vm1170_vm2, %v9220_v57 }
 0x5fe   : > { %v9224_v60 = vpop.f32.mrf.mxu3 }
 0x603   : > { %7072 = vmatmul.msk.f32.gmra.mxu3 %vm1170_vm2, %v9226_v14 }
 0x606   : > { %v9230_v4 = vpop.f32.mrf.mxu3 }
 0x60b   : > { %7073 = vmatmul.msk.f32.gmra.mxu3 %vm1170_vm2, %v9232_v61 }
 0x60e   : > { %v9236_v63 = vpop.f32.mrf.mxu3 }
 0x613   : > { %7074 = vmatmul.msk.f32.gmra.mxu3 %vm1170_vm2, %v9238_v0 }
 0x616   : > { %v9242_v41 = vpop.f32.mrf.mxu3 }
 0x61b   : > { %7075 = vmatmul.msk.f32.gmra.mxu3 %vm1170_vm2, %v9244_v23 }
 0x61e   : > { %v9248_v3 = vpop.f32.mrf.mxu3 }
 0x623   : > { %7076 = vmatmul.msk.f32.gmra.mxu3 %vm1170_vm2, %v9253_v19 }
 0x626   : > { %v9257_v5 = vpop.f32.mrf.mxu3 }
 0x62b   : > { %7077 = vmatmul.msk.f32.gmra.mxu3 %vm1170_vm2, %v9259_v46 }
 0x62e   : > { %v9263_v11 = vpop.f32.mrf.mxu3 }
 0x633   : > { %7078 = vmatmul.msk.f32.gmra.mxu3 %vm1170_vm2, %v9265_v7 }
 0x636   : > { %v9269_v45 = vpop.f32.mrf.mxu3 }
 0x63b   : > { %7079 = vmatmul.msk.f32.gmra.mxu3 %vm1170_vm2, %v9271_v10 }
 0x63e   : > { %v9275_v38 = vpop.f32.mrf.mxu3 }
 0x643   : > { %7080 = vmatmul.msk.f32.gmra.mxu3 %vm1170_vm2, %v9277_v25 }
 0x646   : > { %v4901_v32 = vpop.f32.mrf.mxu3 }
 0x647   : > { %v4902_v16 = vadd.f32 %v4901_v32, %v9161_v13  ;;  %v5084_v13 = vpop.f32.mrf.mxu0 }
 0x649   : > { %v5132_v59 = vadd.f32 %v5069_v55, %v4902_v16  ;;  %v9300_v55 = vld [vmem:[#allocation3 + $0xae] sm:$0xff] }
 0x64b   : > { %v5174_v20 = vadd.f32 %v5153_v18, %v5132_v59  ;;  %7081 = vmatmul.msk.f32.gmra.mxu3 %vm1170_vm2, %v9282_v54  ;;  %v5157_v59 = vld [vmem:[#allocation4 + $0x20] sm:$0xff] }
 0x64d   : > { %5195 = vst.msk [vmem:[#allocation4] sm:$0xff] %vm4606_vm5, %v5174_v20 }
 0x64e   : > { %v4904_v44 = vpop.f32.mrf.mxu3 }
 0x64f   : > { %v4905_v28 = vadd.f32 %v4904_v44, %v9167_v43  ;;  %v5087_v43 = vpop.f32.mrf.mxu0 }
 0x651   : > { %v5133_v6 = vadd.f32 %v5072_v9, %v4905_v28  ;;  %v5158_v28 = vld [vmem:[#allocation4 + $0x28] sm:$0xff] }
 0x653   : > { %v5175_v26 = vadd.f32 %v5154_v21, %v5133_v6  ;;  %7082 = vmatmul.msk.f32.gmra.mxu3 %vm1170_vm2, %v9288_v58 }
 0x655   : > { %5196 = vst.msk [vmem:[#allocation4 + $0x8] sm:$0xff] %vm4606_vm5, %v5175_v26  ;;  %v5159_v26 = vld [vmem:[#allocation4 + $0x30] sm:$0xff] }
 0x656   : > { %v4907_v22 = vpop.f32.mrf.mxu3 }
 0x657   : > { %v4908_v30 = vadd.f32 %v4907_v22, %v9170_v34  ;;  %v5090_v32 = vpop.f32.mrf.mxu0 }
 0x659   : > { %v5134_v2 = vadd.f32 %v5075_v36, %v4908_v30 }
 0x65b   : > { %v5176_v1 = vadd.f32 %v5155_v31, %v5134_v2  ;;  %7083 = vmatmul.msk.f32.gmra.mxu3 %vm1170_vm2, %v9294_v62  ;;  %v5160_v2 = vld [vmem:[#allocation4 + $0x38] sm:$0xff] }
 0x65d   : > { %5197 = vst.msk [vmem:[#allocation4 + $0x10] sm:$0xff] %vm4606_vm5, %v5176_v1 }
 0x65e   : > { %v4910_v47 = vpop.f32.mrf.mxu3 }
 0x65f   : > { %v4911_v56 = vadd.f32 %v4910_v47, %v9173_v40  ;;  %v5093_v44 = vpop.f32.mrf.mxu0 }
 0x661   : > { %v5135_v37 = vadd.f32 %v5078_v8, %v4911_v56 }
 0x663   : > { %v5177_v9 = vadd.f32 %v5156_v12, %v5135_v37  ;;  %7084 = vmatmul.msk.f32.gmra.mxu3 %vm1170_vm2, %v9300_v55 }
 0x665   : > { %5198 = vst.msk [vmem:[#allocation4 + $0x18] sm:$0xff] %vm4606_vm5, %v5177_v9 }
 0x666   : > { %v4913_v34 = vpop.f32.mrf.mxu3 }
 0x667   : > { %v4914_v36 = vadd.f32 %v4913_v34, %v9176_v35  ;;  %v5096_v22 = vpop.f32.mrf.mxu0 }
 0x669   : > { %v5136_v16 = vadd.f32 %v5081_v17, %v4914_v36 }
 0x66b   : > { %v5178_v18 = vadd.f32 %v5157_v59, %v5136_v16  ;;  %7148 = vmatmul.msk.f32.vlgmr.msrb.gmra.mxu3 %vm1170_vm2, %v9187_v49 }
 0x66d   : > { %5199 = vst.msk [vmem:[#allocation4 + $0x20] sm:$0xff] %vm4606_vm5, %v5178_v18 }
 0x66e   : > { %v4916_v40 = vpop.f32.mrf.mxu3 }
 0x66f   : > { %v4917_v8 = vadd.f32 %v4916_v40, %v9179_v42  ;;  %v5164_v40 = vld [vmem:[#allocation4 + $0x58] sm:$0xff] }
 0x671   : > { %v5137_v20 = vadd.f32 %v5084_v13, %v4917_v8 }
 0x673   : > { %v5179_v6 = vadd.f32 %v5158_v28, %v5137_v20  ;;  %7149 = vmatmul.msk.f32.gmra.mxu3 %vm1170_vm2, %v9193_v15  ;;  %v5165_v28 = vld [vmem:[#allocation4 + $0x60] sm:$0xff] }
 0x675   : > { %5200 = vst.msk [vmem:[#allocation4 + $0x28] sm:$0xff] %vm4606_vm5, %v5179_v6 }
 0x676   : > { %v4919_v35 = vpop.f32.mrf.mxu3 }
 0x677   : > { %v4920_v17 = vadd.f32 %v4919_v35, %v9185_v24  ;;  %v5099_v24 = vpop.f32.mrf.mxu0 }
 0x679   : > { %v5138_v21 = vadd.f32 %v5087_v43, %v4920_v17 }
 0x67b   : > { %v5180_v49 = vadd.f32 %v5159_v26, %v5138_v21  ;;  %7150 = vmatmul.msk.f32.gmra.mxu3 %vm1170_vm2, %v9199_v50  ;;  %v5161_v50 = vld [vmem:[#allocation4 + $0x40] sm:$0xff] }
 0x67d   : > { %5201 = vst.msk [vmem:[#allocation4 + $0x30] sm:$0xff] %vm4606_vm5, %v5180_v49 }
 0x67e   : > { %v4922_v42 = vpop.f32.mrf.mxu3 }
 0x67f   : > { %v4923_v13 = vadd.f32 %v4922_v42, %v9191_v48  ;;  %v5102_v37 = vpop.f32.mrf.mxu0 }
 0x681   : > { %v5139_v30 = vadd.f32 %v5090_v32, %v4923_v13 }
 0x683   : > { %v5181_v15 = vadd.f32 %v5160_v2, %v5139_v30  ;;  %7151 = vmatmul.msk.f32.gmra.mxu3 %vm1170_vm2, %v9205_v39  ;;  %v5162_v39 = vld [vmem:[#allocation4 + $0x48] sm:$0xff]  ;;  %v9350_v30 = vpop.f32.mrf.mxu2 }
 0x685   : > { %5202 = vst.msk [vmem:[#allocation4 + $0x38] sm:$0xff] %vm4606_vm5, %v5181_v15  ;;  %v5168_v15 = vld [vmem:[#allocation4 + $0x78] sm:$0xff] }
 0x686   : > { %v4925_v31 = vpop.f32.mrf.mxu3 }
 0x687   : > { %v4926_v1 = vadd.f32 %v4925_v31, %v9197_v51  ;;  %v5105_v32 = vpop.f32.mrf.mxu0 }
 0x689   : > { %v5140_v43 = vadd.f32 %v5093_v44, %v4926_v1 }
 0x68b   : > { %v5182_v47 = vadd.f32 %v5161_v50, %v5140_v43  ;;  %7152 = vmatmul.msk.f32.gmra.mxu3 %vm1170_vm2, %v9211_v53  ;;  %v5163_v53 = vld [vmem:[#allocation4 + $0x50] sm:$0xff]  ;;  %v5169_v43 = vld [vmem:[#allocation4 + $0x80] sm:$0xff]  ;;  %v5492_v50 = vpop.f32.mrf.mxu2 }
 0x68d   : > { %5203 = vst.msk [vmem:[#allocation4 + $0x40] sm:$0xff] %vm4606_vm5, %v5182_v47 }
 0x68e   : > { %v4928_v48 = vpop.f32.mrf.mxu3 }
 0x68f   : > { %v4929_v56 = vadd.f32 %v4928_v48, %v9203_v33  ;;  %v5108_v8 = vpop.f32.mrf.mxu0 }
 0x691   : > { %v5141_v12 = vadd.f32 %v5096_v22, %v4929_v56 }
 0x693   : > { %v5183_v9 = vadd.f32 %v5162_v39, %v5141_v12  ;;  %7153 = vmatmul.msk.f32.gmra.mxu3 %vm1170_vm2, %v9220_v57  ;;  %v5170_v39 = vld [vmem:[#allocation4 + $0x88] sm:$0xff] }
 0x695   : > { %5204 = vst.msk [vmem:[#allocation4 + $0x48] sm:$0xff] %vm4606_vm5, %v5183_v9 }
 0x696   : > { %v4931_v51 = vpop.f32.mrf.mxu3 }
 0x697   : > { %v4932_v34 = vadd.f32 %v4931_v51, %v9209_v52 }
 0x699   : > { %v5142_v36 = vadd.f32 %v5099_v24, %v4932_v34 }
 0x69b   : > { %v5184_v16 = vadd.f32 %v5163_v53, %v5142_v36  ;;  %7154 = vmatmul.msk.f32.gmra.mxu3 %vm1170_vm2, %v9226_v14  ;;  %v6051_v53 = vld [vmem:[%s10035_s7 + $0xb8] sm:$0xff] }
 0x69c   : > { %6069 = vmatpush.msrb.mxu2 %v6051_v53 }
 0x69d   : > { %5205 = vst.msk [vmem:[#allocation4 + $0x50] sm:$0xff] %vm4606_vm5, %v5184_v16  ;;  %v5171_v16 = vld [vmem:[#allocation4 + $0x90] sm:$0xff] }
 0x69e   : > { %v4934_v33 = vpop.f32.mrf.mxu3 }
 0x69f   : > { %v4935_v59 = vadd.f32 %v4934_v33, %v9215_v27  ;;  %v5111_v27 = vpop.f32.mrf.mxu0 }
 0x6a1   : > { %v5143_v18 = vadd.f32 %v5102_v37, %v4935_v59 }
 0x6a3   : > { %v5185_v57 = vadd.f32 %v5164_v40, %v5143_v18  ;;  %7155 = vmatmul.msk.f32.gmra.mxu3 %vm1170_vm2, %v9232_v61  ;;  %v5166_v61 = vld [vmem:[#allocation4 + $0x68] sm:$0xff] }
 0x6a5   : > { %5206 = vst.msk [vmem:[#allocation4 + $0x58] sm:$0xff] %vm4606_vm5, %v5185_v57 }
 0x6a6   : > { %v4937_v52 = vpop.f32.mrf.mxu3 }
 0x6a7   : > { %v4938_v20 = vadd.f32 %v4937_v52, %v9224_v60  ;;  %v5114_v49 = vpop.f32.mrf.mxu0  ;;  %v5172_v52 = vld [vmem:[#allocation4 + $0x98] sm:$0xff] }
 0x6a9   : > { %v5144_v44 = vadd.f32 %v5105_v32, %v4938_v20 }
 0x6ab   : > { %v5186_v14 = vadd.f32 %v5165_v28, %v5144_v44  ;;  %7156 = vmatmul.msk.f32.gmra.mxu3 %vm1170_vm2, %v9238_v0  ;;  %v5167_v0 = vld [vmem:[#allocation4 + $0x70] sm:$0xff] }
 0x6ad   : > { %5207 = vst.msk [vmem:[#allocation4 + $0x60] sm:$0xff] %vm4606_vm5, %v5186_v14 }
 0x6ae   : > { %v4940_v6 = vpop.f32.mrf.mxu3 }
 0x6af   : > { %v4941_v35 = vadd.f32 %v4940_v6, %v9230_v4  ;;  %v5117_v2 = vpop.f32.mrf.mxu0  ;;  %v5173_v6 = vld [vmem:[#allocation4 + $0xa0] sm:$0xff] }
 0x6b1   : > { %v5145_v17 = vadd.f32 %v5108_v8, %v4941_v35 }
 0x6b3   : > { %v5187_v21 = vadd.f32 %v5166_v61, %v5145_v17  ;;  %7157 = vmatmul.msk.f32.gmra.mxu3 %vm1170_vm2, %v9244_v23 }
 0x6b5   : > { %5208 = vst.msk [vmem:[#allocation4 + $0x68] sm:$0xff] %vm4606_vm5, %v5187_v21  ;;  %v9400_v21 = vld [vmem:[%s10033_s5] ss:$0 sm:$0xff] }
 0x6b6   : > { %v4943_v60 = vpop.f32.mrf.mxu3 }
 0x6b7   : > { %v4944_v26 = vadd.f32 %v4943_v60, %v9236_v63  ;;  %v5346_v63 = vpop.f32.mrf.mxu1  ;;  %v5120_v48 = vpop.f32.mrf.mxu0  ;;  %v5741_v60 = vld [vmem:[#allocation4] sm:$0xff] }
 0x6b8   : > { %v5490_v17 = vadd.f32 %v9350_v30, %v5346_v63  ;;  %v6113_v63 = vld [vmem:[%s10035_s7 + $0x130] sm:$0xff] }
 0x6b9   : > { %v5146_v22 = vadd.f32 %v5111_v27, %v4944_v26 }
 0x6bb   : > { %v5188_v42 = vadd.f32 %v5167_v0, %v5146_v22  ;;  %7158 = vmatmul.msk.f32.gmra.mxu3 %vm1170_vm2, %v9253_v19  ;;  %v5970_v19 = vld [vmem:[%s10035_s7 + $0x78] sm:$0xff] }
 0x6bc   : > { %5988 = vmatpush.msra.mxu0 %v5970_v19 }
 0x6bd   : > { %5209 = vst.msk [vmem:[#allocation4 + $0x70] sm:$0xff] %vm4606_vm5, %v5188_v42 }
 0x6be   : > { %v4946_v4 = vpop.f32.mrf.mxu3 }
 0x6bf   : > { %v4947_v13 = vadd.f32 %v4946_v4, %v9242_v41  ;;  %v5123_v51 = vpop.f32.mrf.mxu0 }
 0x6c1   : > { %v5147_v23 = vadd.f32 %v5114_v49, %v4947_v13  ;;  %v9405_v49 = vld [vmem:[%s10034_s6] ss:$0 sm:$0xff] }
 0x6c3   : > { %v5189_v24 = vadd.f32 %v5168_v15, %v5147_v23  ;;  %7159 = vmatmul.msk.f32.gmra.mxu3 %vm1170_vm2, %v9259_v46  ;;  %v5349_v46 = vpop.f32.mrf.mxu1 }
 0x6c4   : > { %v5493_v0 = vadd.f32 %v5492_v50, %v5349_v46  ;;  %v5743_v46 = vld [vmem:[#allocation4 + $0x10] sm:$0xff] }
 0x6c5   : > { %5210 = vst.msk [vmem:[#allocation4 + $0x78] sm:$0xff] %vm4606_vm5, %v5189_v24  ;;  %v5958_v24 = vld [vmem:[%s10035_s7 + $0x30] sm:$0xff] }
 0x6c6   : > { %v4949_v31 = vpop.f32.mrf.mxu3 }
 0x6c7   : > { %v4950_v41 = vadd.f32 %v4949_v31, %v9248_v3  ;;  %v9365_v3 = vpop.f32.mrf.mxu2  ;;  %v5126_v40 = vpop.f32.mrf.mxu0 }
 0x6c9   : > { %v5148_v1 = vadd.f32 %v5117_v2, %v4950_v41  ;;  %v5742_v2 = vld [vmem:[#allocation4 + $0x8] sm:$0xff] }
 0x6cb   : > { %v5190_v47 = vadd.f32 %v5169_v43, %v5148_v1  ;;  %7160 = vmatmul.msk.f32.gmra.mxu3 %vm1170_vm2, %v9265_v7  ;;  %v5352_v36 = vpop.f32.mrf.mxu1 }
 0x6cc   : > { %v5496_v31 = vadd.f32 %v9365_v3, %v5352_v36 }
 0x6cd   : > { %5211 = vst.msk [vmem:[#allocation4 + $0x80] sm:$0xff] %vm4606_vm5, %v5190_v47 }
 0x6ce   : > { %v4952_v56 = vpop.f32.mrf.mxu3 }
 0x6cf   : > { %v4953_v37 = vadd.f32 %v4952_v56, %v9257_v5  ;;  %v5959_v5 = vld [vmem:[%s10035_s7 + $0x38] sm:$0xff]  ;;  %v9382_v18 = vpop.f32.mrf.mxu2  ;;  %v5129_v28 = vpop.f32.mrf.mxu0 }
 0x6d0   : > { %6023 = vmatpush.msrb.mxu1 %v5959_v5 }
 0x6d1   : > { %v5149_v12 = vadd.f32 %v5120_v48, %v4953_v37  ;;  %v5957_v37 = vld [vmem:[%s10035_s7 + $0x28] sm:$0xff] }
 0x6d2   : > { %6024 = vmatpush.msrb.mxu1 %v5958_v24 }
 0x6d3   : > { %v5191_v9 = vadd.f32 %v5170_v39, %v5149_v12  ;;  %7161 = vmatmul.msk.f32.gmra.mxu3 %vm1170_vm2, %v9271_v10  ;;  %v6114_v10 = vld [vmem:[%s10035_s7 + $0x138] sm:$0xff]  ;;  %v5355_v8 = vpop.f32.mrf.mxu1 }
 0x6d4   : > { %6132 = vmatpush.msra.mxu3 %v6114_v10  ;;  %v5571_v12 = vld [vmem:[#allocation3 + $0xb6] sm:$0xff]  ;;  %6025 = vmatpush.msrb.mxu1 %v5957_v37  ;;  %v5572_v10 = vld [vmem:[#allocation3 + $0xbe] sm:$0xff] }
 0x6d5   : > { %5212 = vst.msk [vmem:[#allocation4 + $0x88] sm:$0xff] %vm4606_vm5, %v5191_v9  ;;  %v5499_v9 = vadd.f32 %v9382_v18, %v5355_v8 }
 0x6d6   : > { %v4955_v34 = vpop.f32.mrf.mxu3  ;;  %6133 = vmatpush.msra.mxu3 %v6113_v63  ;;  %v5954_v63 = vld [vmem:[%s10035_s7 + $0x10] sm:$0xff] }
 0x6d7   : > { %v4956_v7 = vadd.f32 %v4955_v34, %v9263_v11  ;;  %v9391_v27 = vpop.f32.mrf.mxu2 }
 0x6d9   : > { %v5150_v32 = vadd.f32 %v5123_v51, %v4956_v7 }
 0x6db   : > { %v5192_v33 = vadd.f32 %v5171_v16, %v5150_v32  ;;  %7162 = vmatmul.msk.f32.gmra.mxu3 %vm1170_vm2, %v9277_v25  ;;  %v5744_v32 = vld [vmem:[#allocation4 + $0x18] sm:$0xff] }
 0x6dd   : > { %5213 = vst.msk [vmem:[#allocation4 + $0x90] sm:$0xff] %vm4606_vm5, %v5192_v33 }
 0x6de   : > { %v4958_v11 = vpop.f32.mrf.mxu3 }
 0x6df   : > { %v4959_v59 = vadd.f32 %v4958_v11, %v9269_v45  ;;  %v5969_v45 = vld [vmem:[%s10035_s7 + $0x70] sm:$0xff]  ;;  %v9410_v22 = vpop.f32.mrf.mxu2 }
 0x6e0   : > { %5989 = vmatpush.msra.mxu0 %v5969_v45 }
 0x6e1   : > { %v5151_v57 = vadd.f32 %v5126_v40, %v4959_v59 }
 0x6e3   : > { %v5193_v20 = vadd.f32 %v5172_v52, %v5151_v57  ;;  %7163 = vmatmul.msk.f32.gmra.mxu3 %vm1170_vm2, %v9282_v54  ;;  %v5358_v54 = vpop.f32.mrf.mxu1  ;;  %v5745_v57 = vld [vmem:[#allocation4 + $0x20] sm:$0xff]  ;;  %v6049_v52 = vld [vmem:[%s10035_s7 + $0xa8] sm:$0xff] }
 0x6e4   : > { %v5502_v33 = vadd.f32 %v9391_v27, %v5358_v54 }
 0x6e5   : > { %5214 = vst.msk [vmem:[#allocation4 + $0x98] sm:$0xff] %vm4606_vm5, %v5193_v20  ;;  %v6112_v20 = vld [vmem:[%s10035_s7 + $0x128] sm:$0xff] }
 0x6e6   : > { %v4961_v44 = vpop.f32.mrf.mxu3  ;;  %6134 = vmatpush.msra.mxu3 %v6112_v20 }
 0x6e7   : > { %v4962_v25 = vadd.f32 %v4961_v44, %v9275_v38  ;;  %v9428_v1 = vpop.f32.mrf.mxu2  ;;  %v5967_v44 = vld [vmem:[%s10035_s7 + $0x60] sm:$0xff] }
 0x6e9   : > { %v5152_v14 = vadd.f32 %v5129_v28, %v4962_v25 }
 0x6eb   : > { %v5194_v35 = vadd.f32 %v5173_v6, %v5152_v14  ;;  %7164 = vmatmul.msk.f32.gmra.mxu3 %vm1170_vm2, %v9288_v58  ;;  %v5361_v4 = vpop.f32.mrf.mxu1 }
 0x6ec   : > { %v5505_v45 = vadd.f32 %v9410_v22, %v5361_v4  ;;  %v6048_v22 = vld [vmem:[%s10035_s7 + $0xa0] sm:$0xff]  ;;  %v5966_v4 = vld [vmem:[%s10035_s7 + $0x58] sm:$0xff] }
 0x6ed   : > { %5215 = vst.msk [vmem:[#allocation4 + $0xa0] sm:$0xff] %vm4606_vm5, %v5194_v35 }
 0x6ee   : > { %v5657_v38 = vpop.f32.mrf.mxu3 }
 0x6ef   : > { %v5720_v61 = vadd.f32 %v5657_v38, %v5490_v17  ;;  %v9443_v36 = vpop.f32.mrf.mxu2 }
 0x6f1   : > { %v5762_v26 = vadd.f32 %v5741_v60, %v5720_v61  ;;  %v5746_v61 = vld [vmem:[#allocation4 + $0x28] sm:$0xff] }
 0x6f3   : > { %v5787_v58 = vmul.f32 %v9400_v21, %v5762_v26  ;;  %7165 = vmatmul.msk.f32.gmra.mxu3 %vm1170_vm2, %v9294_v62  ;;  %v6050_v62 = vld [vmem:[%s10035_s7 + $0xb0] sm:$0xff]  ;;  %v9430_v48 = vpop.f32.mrf.mxu1 }
 0x6f4   : > { %6070 = vmatpush.msrb.mxu2 %v6050_v62  ;;  %v5965_v62 = vld [vmem:[%s10035_s7 + $0x50] sm:$0xff] }
 0x6f5   : > { %v5812_v42 = vadd.f32 %v9405_v49, %v5787_v58 }
 0x6f6   : > { %v5660_v13 = vpop.f32.mrf.mxu3  ;;  %6071 = vmatpush.msrb.mxu2 %v6049_v52 }
 0x6f7   : > { %v5833_v30 = vmax.f32 %v5812_v42, 0.0  ;;  %v5721_v23 = vadd.f32 %v5660_v13, %v5493_v0  ;;  %v9462_v25 = vpop.f32.mrf.mxu2  ;;  %v5956_v13 = vld [vmem:[%s10035_s7 + $0x20] sm:$0xff] }
 0x6f8   : > { %6026 = vmatpush.msrb.mxu1 %v5956_v13  ;;  %6072 = vmatpush.msrb.mxu2 %v6048_v22 }
 0x6f9   : > { %5854 = vst.msk [vmem:[#allocation4] sm:$0xff] %vm4606_vm5, %v5833_v30  ;;  %v5763_v15 = vadd.f32 %v5742_v2, %v5721_v23  ;;  %v5955_v30 = vld [vmem:[%s10035_s7 + $0x18] sm:$0xff] }
 0x6fa   : > { %v6047_v23 = vld [vmem:[%s10035_s7 + $0x98] sm:$0xff]  ;;  %6027 = vmatpush.msrb.mxu1 %v5955_v30 }
 0x6fb   : > { %v5788_v19 = vmul.f32 %v9400_v21, %v5763_v15  ;;  %7166 = vmatmul.msk.f32.gmra.mxu3 %vm1170_vm2, %v9300_v55  ;;  %v5968_v55 = vld [vmem:[%s10035_s7 + $0x68] sm:$0xff]  ;;  %v9446_v53 = vpop.f32.mrf.mxu1  ;;  %6073 = vmatpush.msrb.mxu2 %v6047_v23 }
 0x6fc   : > { %5990 = vmatpush.msra.mxu0 %v5968_v55  ;;  %6028 = vmatpush.msrb.mxu1 %v5954_v63  ;;  %v5747_v55 = vld [vmem:[#allocation4 + $0x30] sm:$0xff]  ;;  %v6109_v63 = vld [vmem:[%s10035_s7 + $0x110] sm:$0xff] }
 0x6fd   : > { %v5813_v41 = vadd.f32 %v9405_v49, %v5788_v19  ;;  %v6046_v19 = vld [vmem:[%s10035_s7 + $0x90] sm:$0xff] }
 0x6fe   : > { %v5663_v43 = vpop.f32.mrf.mxu3  ;;  %5991 = vmatpush.msra.mxu0 %v5967_v44  ;;  %6074 = vmatpush.msrb.mxu2 %v6046_v19  ;;  %v5749_v44 = vld [vmem:[#allocation4 + $0x40] sm:$0xff] }
 0x6ff   : > { %v5834_v50 = vmax.f32 %v5813_v41, 0.0  ;;  %v5722_v47 = vadd.f32 %v5663_v43, %v5496_v31  ;;  %v9486_v24 = vpop.f32.mrf.mxu2  ;;  %v5508_v31 = vadd.f32 %v9428_v1, %v9430_v48  ;;  %v6045_v1 = vld [vmem:[%s10035_s7 + $0x88] sm:$0xff] }
 0x700   : > { %5992 = vmatpush.msra.mxu0 %v5966_v4  ;;  %6075 = vmatpush.msrb.mxu2 %v6045_v1 }
 0x701   : > { %5855 = vst.msk [vmem:[#allocation4 + $0x8] sm:$0xff] %vm4606_vm5, %v5834_v50  ;;  %v5764_v56 = vadd.f32 %v5743_v46, %v5722_v47  ;;  %v5964_v47 = vld [vmem:[%s10035_s7 + $0x48] sm:$0xff] }
 0x702   : > { %5993 = vmatpush.msra.mxu0 %v5965_v62  ;;  %v5953_v46 = vld [vmem:[%s10035_s7 + $0x8] sm:$0xff] }
 0x703   : > { %v5789_v39 = vmul.f32 %v9400_v21, %v5764_v56  ;;  %7167 = vmatmul.msk.f32.gmra.mxu3 %vm1170_vm2, %v5571_v12  ;;  %v9465_v14 = vpop.f32.mrf.mxu1  ;;  %6029 = vmatpush.msrb.mxu1 %v5953_v46  ;;  %v6111_v12 = vld [vmem:[%s10035_s7 + $0x120] sm:$0xff] }
 0x704   : > { %5994 = vmatpush.msra.mxu0 %v5964_v47  ;;  %6135 = vmatpush.msra.mxu3 %v6111_v12  ;;  %v6107_v46 = vld [vmem:[%s10035_s7 + $0x100] sm:$0xff] }
 0x705   : > { %v5814_v3 = vadd.f32 %v9405_v49, %v5789_v39  ;;  %v5963_v39 = vld [vmem:[%s10035_s7 + $0x40] sm:$0xff] }
 0x706   : > { %v5666_v51 = vpop.f32.mrf.mxu3  ;;  %5995 = vmatpush.msra.mxu0 %v5963_v39 }
 0x707   : > { %v5835_v34 = vmax.f32 %v5814_v3, 0.0  ;;  %v5723_v7 = vadd.f32 %v5666_v51, %v5499_v9  ;;  %v5952_v9 = vld [vmem:[%s10035_s7] sm:$0xff] }
 0x708   : > { %v5875_v6 = vld [vmem:[#allocation4] ss:$2 sm:$0x3f]  ;;  %v5877_v35 = vld [vmem:[#allocation4 + $0x1] ss:$2 sm:$0x3f]  ;;  %6030 = vmatpush.msrb.mxu1 %v5952_v9 }
 0x709   : > { %5856 = vst.msk [vmem:[#allocation4 + $0x10] sm:$0xff] %vm4606_vm5, %v5835_v34  ;;  %v5765_v5 = vadd.f32 %v5744_v32, %v5723_v7  ;;  %v5878_v58 = vmax.f32 %v5875_v6, %v5877_v35  ;;  %v6044_v3 = vld [vmem:[%s10035_s7 + $0x80] sm:$0xff]  ;;  %v5511_v34 = vadd.f32 %v9443_v36, %v9446_v53  ;;  %v5519_v32 = vpop.f32.mrf.mxu2 }
 0x70a   : > { %6076 = vmatpush.msrb.mxu2 %v6044_v3  ;;  %v5752_v3 = vld [vmem:[#allocation4 + $0x58] sm:$0xff] }
 0x70b   : > { %v5790_v16 = vmul.f32 %v9400_v21, %v5765_v5  ;;  %7168 = vmatmul.msk.f32.gmra.mxu3 %vm1170_vm2, %v5572_v10  ;;  %v5373_v43 = vpop.f32.mrf.mxu1 }
 0x70d   : > { %v5815_v11 = vadd.f32 %v9405_v49, %v5790_v16 }
 0x70e   : > { %v5669_v59 = vpop.f32.mrf.mxu3 }
 0x70f   : > { %v5836_v18 = vmax.f32 %v5815_v11, 0.0  ;;  %v5724_v40 = vadd.f32 %v5669_v59, %v5502_v33  ;;  %v5748_v11 = vld [vmem:[#allocation4 + $0x38] sm:$0xff] }
 0x711   : > { %5857 = vst.msk [vmem:[#allocation4 + $0x18] sm:$0xff] %vm4606_vm5, %v5836_v18  ;;  %v5766_v8 = vadd.f32 %v5745_v57, %v5724_v40  ;;  %v5514_v40 = vadd.f32 %v9462_v25, %v9465_v14  ;;  %v5517_v14 = vadd.f32 %v9486_v24, %v5373_v43 }
 0x713   : > { %v5791_v28 = vmul.f32 %v9400_v21, %v5766_v8  ;;  %v5376_v33 = vpop.f32.mrf.mxu1 }
 0x714   : > { %v5520_v24 = vadd.f32 %v5519_v32, %v5376_v33 }
 0x715   : > { %v5816_v27 = vadd.f32 %v9405_v49, %v5791_v28  ;;  %v5522_v28 = vpop.f32.mrf.mxu2 }
 0x716   : > { %v5672_v54 = vpop.f32.mrf.mxu3 }
 0x717   : > { %v5837_v17 = vmax.f32 %v5816_v27, 0.0  ;;  %v5725_v38 = vadd.f32 %v5672_v54, %v5505_v45 }
 0x718   : > { %v5880_v60 = vld [vmem:[#allocation4 + $0xe] ss:$2 sm:$0x3f]  ;;  %v5882_v26 = vld [vmem:[#allocation4 + $0xf] ss:$2 sm:$0x3f] }
 0x719   : > { %v5883_v0 = vmax.f32 %v5880_v60, %v5882_v26  ;;  %5858 = vst.msk [vmem:[#allocation4 + $0x20] sm:$0xff] %vm4606_vm5, %v5837_v17  ;;  %v5767_v42 = vadd.f32 %v5746_v61, %v5725_v38 }
 0x71b   : > { %v5792_v2 = vmul.f32 %v9400_v21, %v5767_v42  ;;  %v5884_v15 = vmax.f32 %v5878_v58, %v5883_v0  ;;  %v5379_v17 = vpop.f32.mrf.mxu1  ;;  %v5750_v0 = vld [vmem:[#allocation4 + $0x48] sm:$0xff] }
 0x71c   : > { %v6110_v42 = vld [vmem:[%s10035_s7 + $0x118] sm:$0xff] }
 0x71d   : > { %v5817_v41 = vadd.f32 %v9405_v49, %v5792_v2  ;;  %5886 = vst.msk [vmem:[#allocation5] sm:$0x3f] %vm5885_vm6, %v5884_v15  ;;  %6136 = vmatpush.msra.mxu3 %v6110_v42  ;;  %v5525_v22 = vpop.f32.mrf.mxu2 }
 0x71e   : > { %v5675_v50 = vpop.f32.mrf.mxu3 }
 0x71f   : > { %v5838_v48 = vmax.f32 %v5817_v41, 0.0  ;;  %v5726_v56 = vadd.f32 %v5675_v50, %v5508_v31  ;;  %6137 = vmatpush.msra.mxu3 %v6109_v63  ;;  %v6108_v31 = vld [vmem:[%s10035_s7 + $0x108] sm:$0xff]  ;;  %v5751_v50 = vld [vmem:[#allocation4 + $0x50] sm:$0xff] }
 0x720   : > { %v5888_v8 = vld [vmem:[#allocation4 + $0x1c] ss:$2 sm:$0x3f]  ;;  %v5890_v36 = vld [vmem:[#allocation4 + $0x1d] ss:$2 sm:$0x3f] }
 0x721   : > { %5859 = vst.msk [vmem:[#allocation4 + $0x28] sm:$0xff] %vm4606_vm5, %v5838_v48  ;;  %v5768_v37 = vadd.f32 %v5747_v55, %v5726_v56  ;;  %v5891_v6 = vmax.f32 %v5888_v8, %v5890_v36  ;;  %6138 = vmatpush.msra.mxu3 %v6108_v31  ;;  %v5523_v56 = vadd.f32 %v5522_v28, %v5379_v17  ;;  %v6188_v31 = vld [vmem:[%s10035_s7 + $0x140] sm:$0xff] }
 0x723   : > { %v5793_v51 = vmul.f32 %v9400_v21, %v5768_v37  ;;  %v5382_v30 = vpop.f32.mrf.mxu1  ;;  %6139 = vmatpush.msra.mxu3 %v6107_v46 }
 0x725   : > { %v5818_v7 = vadd.f32 %v9405_v49, %v5793_v51  ;;  %v5528_v48 = vpop.f32.mrf.mxu2 }
 0x726   : > { %v5678_v5 = vpop.f32.mrf.mxu3 }
 0x727   : > { %v5839_v10 = vmax.f32 %v5818_v7, 0.0  ;;  %v5727_v16 = vadd.f32 %v5678_v5, %v5511_v34  ;;  %v5526_v7 = vadd.f32 %v5525_v22, %v5382_v30 }
 0x729   : > { %5860 = vst.msk [vmem:[#allocation4 + $0x30] sm:$0xff] %vm4606_vm5, %v5839_v10  ;;  %v5769_v59 = vadd.f32 %v5748_v11, %v5727_v16 }
 0x72b   : > { %v5794_v18 = vmul.f32 %v9400_v21, %v5769_v59  ;;  %v5385_v37 = vpop.f32.mrf.mxu1 }
 0x72d   : > { %v5819_v57 = vadd.f32 %v9405_v49, %v5794_v18  ;;  %v5531_v5 = vpop.f32.mrf.mxu2  ;;  %v5753_v18 = vld [vmem:[#allocation4 + $0x60] sm:$0xff] }
 0x72e   : > { %v5681_v53 = vpop.f32.mrf.mxu3 }
 0x72f   : > { %v5840_v52 = vmax.f32 %v5819_v57, 0.0  ;;  %v5728_v20 = vadd.f32 %v5681_v53, %v5514_v40 }
 0x730   : > { %v5893_v45 = vld [vmem:[#allocation4 + $0x2a] ss:$2 sm:$0x3f]  ;;  %v5895_v27 = vld [vmem:[#allocation4 + $0x2b] ss:$2 sm:$0x3f] }
 0x731   : > { %v5896_v35 = vmax.f32 %v5893_v45, %v5895_v27  ;;  %5861 = vst.msk [vmem:[#allocation4 + $0x38] sm:$0xff] %vm4606_vm5, %v5840_v52  ;;  %v5770_v54 = vadd.f32 %v5749_v44, %v5728_v20  ;;  %v6195_v20 = vld [vmem:[%s10035_s7 + $0x178] sm:$0xff]  ;;  %v6194_v45 = vld [vmem:[%s10035_s7 + $0x170] sm:$0xff]  ;;  %v5529_v27 = vadd.f32 %v5528_v48, %v5385_v37 }
 0x732   : > { %6213 = vmatpush.msra.mxu1 %v6195_v20 }
 0x733   : > { %v5795_v38 = vmul.f32 %v9400_v21, %v5770_v54  ;;  %v5897_v25 = vmax.f32 %v5891_v6, %v5896_v35  ;;  %v5388_v40 = vpop.f32.mrf.mxu1  ;;  %v6193_v54 = vld [vmem:[%s10035_s7 + $0x168] sm:$0xff] }
 0x734   : > { %6214 = vmatpush.msra.mxu1 %v6194_v45 }
 0x735   : > { %v5820_v61 = vadd.f32 %v9405_v49, %v5795_v38  ;;  %5898 = vst.msk [vmem:[#allocation5 + $0x6] sm:$0x3f] %vm5885_vm6, %v5897_v25  ;;  %v5534_v25 = vpop.f32.mrf.mxu2 }
 0x736   : > { %v5684_v60 = vpop.f32.mrf.mxu3  ;;  %6215 = vmatpush.msra.mxu1 %v6193_v54 }
 0x737   : > { %v5841_v26 = vmax.f32 %v5820_v61, 0.0  ;;  %v5729_v58 = vadd.f32 %v5684_v60, %v5517_v14  ;;  %v5754_v14 = vld [vmem:[#allocation4 + $0x68] sm:$0xff]  ;;  %v6192_v60 = vld [vmem:[%s10035_s7 + $0x160] sm:$0xff] }
 0x738   : > { %6216 = vmatpush.msra.mxu1 %v6192_v60  ;;  %v5758_v60 = vld [vmem:[#allocation4 + $0x88] sm:$0xff] }
 0x739   : > { %5862 = vst.msk [vmem:[#allocation4 + $0x40] sm:$0xff] %vm4606_vm5, %v5841_v26  ;;  %v5771_v13 = vadd.f32 %v5750_v0, %v5729_v58  ;;  %v6191_v58 = vld [vmem:[%s10035_s7 + $0x158] sm:$0xff] }
 0x73a   : > { %6217 = vmatpush.msra.mxu1 %v6191_v58  ;;  %v6100_v58 = vld [vmem:[%s10035_s7 + $0xe0] sm:$0xff] }
 0x73b   : > { %v5796_v4 = vmul.f32 %v9400_v21, %v5771_v13  ;;  %v5391_v26 = vpop.f32.mrf.mxu1 }
 0x73c   : > { %v5960_v23 = vld [vmem:[#allocation5 + $0x1] sm:$0xff]  ;;  %v5535_v46 = vadd.f32 %v5534_v25, %v5391_v26 }
 0x73d   : > { %v5949_v2 = vld [vmem:[#allocation5] sm:$0xff]  ;;  %v5821_v62 = vadd.f32 %v9405_v49, %v5796_v4  ;;  %7169 = vmatmul.msk.f32.vlgmr.msra.gmra.mxu0 %vm4606_vm5, %v5960_v23  ;;  %v5532_v4 = vadd.f32 %v5531_v5, %v5388_v40 }
 0x73e   : > { %v6041_v15 = vld [vmem:[#allocation5 + $0x2] sm:$0xff]  ;;  %7172 = vmatmul.msk.f32.vlgmr.msrb.gmra.mxu1 %vm4606_vm5, %v5949_v2  ;;  %v5687_v19 = vpop.f32.mrf.mxu3  ;;  %v6190_v2 = vld [vmem:[%s10035_s7 + $0x150] sm:$0xff] }
 0x73f   : > { %7175 = vmatmul.msk.f32.vlgmr.msrb.gmra.mxu2 %vm4606_vm5, %v6041_v15  ;;  %v5842_v41 = vmax.f32 %v5821_v62, 0.0  ;;  %v5730_v43 = vadd.f32 %v5687_v19, %v5520_v24  ;;  %v6189_v24 = vld [vmem:[%s10035_s7 + $0x148] sm:$0xff]  ;;  %6218 = vmatpush.msra.mxu1 %v6190_v2  ;;  %v5755_v19 = vld [vmem:[#allocation4 + $0x70] sm:$0xff] }
 0x740   : > { %v5900_v10 = vld [vmem:[#allocation4 + $0x38] ss:$2 sm:$0x3f]  ;;  %v5902_v16 = vld [vmem:[#allocation4 + $0x39] ss:$2 sm:$0x3f] }
 0x741   : > { %5863 = vst.msk [vmem:[#allocation4 + $0x48] sm:$0xff] %vm4606_vm5, %v5842_v41  ;;  %v5772_v47 = vadd.f32 %v5751_v50, %v5730_v43  ;;  %v5903_v53 = vmax.f32 %v5900_v10, %v5902_v16  ;;  %6219 = vmatpush.msra.mxu1 %v6189_v24  ;;  %v5537_v43 = vpop.f32.mrf.mxu2 }
 0x743   : > { %v5797_v1 = vmul.f32 %v9400_v21, %v5772_v47  ;;  %6220 = vmatpush.msra.mxu1 %v6188_v31  ;;  %v5394_v47 = vpop.f32.mrf.mxu1 }
 0x744   : > { %v5538_v16 = vadd.f32 %v5537_v43, %v5394_v47  ;;  %v6253_v47 = vld [vmem:[%s10035_s7 + $0x1b8] sm:$0xff] }
 0x745   : > { %v5822_v55 = vadd.f32 %v9405_v49, %v5797_v1  ;;  %6317 = vmatpush.msrb.mxu3 %v6253_v47 }
 0x746   : > { %v5690_v12 = vpop.f32.mrf.mxu3 }
 0x747   : > { %v5843_v39 = vmax.f32 %v5822_v55, 0.0  ;;  %v5731_v9 = vadd.f32 %v5690_v12, %v5523_v56 }
 0x749   : > { %5864 = vst.msk [vmem:[#allocation4 + $0x50] sm:$0xff] %vm4606_vm5, %v5843_v39  ;;  %v5773_v51 = vadd.f32 %v5752_v3, %v5731_v9  ;;  %v5756_v39 = vld [vmem:[#allocation4 + $0x78] sm:$0xff]  ;;  %v5540_v10 = vpop.f32.mrf.mxu2 }
 0x74b   : > { %v5798_v34 = vmul.f32 %v9400_v21, %v5773_v51 }
 0x74d   : > { %v5823_v32 = vadd.f32 %v9405_v49, %v5798_v34 }
 0x74e   : > { %v5693_v33 = vpop.f32.mrf.mxu3 }
 0x74f   : > { %v5844_v11 = vmax.f32 %v5823_v32, 0.0  ;;  %v5732_v59 = vadd.f32 %v5693_v33, %v5526_v7 }
 0x750   : > { %v5905_v57 = vld [vmem:[#allocation4 + $0x46] ss:$2 sm:$0x3f]  ;;  %v5907_v8 = vld [vmem:[#allocation4 + $0x47] ss:$2 sm:$0x3f] }
 0x751   : > { %5865 = vst.msk [vmem:[#allocation4 + $0x58] sm:$0xff] %vm4606_vm5, %v5844_v11  ;;  %v5774_v36 = vadd.f32 %v5753_v18, %v5732_v59  ;;  %v5908_v52 = vmax.f32 %v5905_v57, %v5907_v8  ;;  %v5397_v11 = vpop.f32.mrf.mxu1  ;;  %v5757_v57 = vld [vmem:[#allocation4 + $0x80] sm:$0xff] }
 0x752   : > { %v5541_v45 = vadd.f32 %v5540_v10, %v5397_v11  ;;  %v6248_v11 = vld [vmem:[%s10035_s7 + $0x190] sm:$0xff] }
 0x753   : > { %v5799_v44 = vmul.f32 %v9400_v21, %v5774_v36  ;;  %v5909_v28 = vmax.f32 %v5903_v53, %v5908_v52  ;;  %v6103_v36 = vld [vmem:[%s10035_s7 + $0xf8] sm:$0xff] }
 0x754   : > { %6167 = vmatpush.msrb.mxu0 %v6103_v36  ;;  %v6264_v53 = vld [vmem:[%s10035_s7 + $0x1f8] sm:$0xff]  ;;  %v6342_v36 = vld [vmem:[%s10035_s7 + $0x220] sm:$0xff] }
 0x755   : > { %v5824_v6 = vadd.f32 %v9405_v49, %v5799_v44  ;;  %5910 = vst.msk [vmem:[#allocation5 + $0xc] sm:$0x3f] %vm5885_vm6, %v5909_v28  ;;  %6282 = vmatpush.msra.mxu2 %v6264_v53  ;;  %v6102_v28 = vld [vmem:[%s10035_s7 + $0xf0] sm:$0xff] }
 0x756   : > { %v5696_v35 = vpop.f32.mrf.mxu3  ;;  %6168 = vmatpush.msrb.mxu0 %v6102_v28 }
 0x757   : > { %v5845_v17 = vmax.f32 %v5824_v6, 0.0  ;;  %v5733_v38 = vadd.f32 %v5696_v35, %v5529_v27  ;;  %v6263_v6 = vld [vmem:[%s10035_s7 + $0x1f0] sm:$0xff]  ;;  %v5543_v35 = vpop.f32.mrf.mxu2 }
 0x758   : > { %v5912_v48 = vld [vmem:[#allocation4 + $0x54] ss:$2 sm:$0x3f]  ;;  %v5914_v56 = vld [vmem:[#allocation4 + $0x55] ss:$2 sm:$0x3f]  ;;  %6283 = vmatpush.msra.mxu2 %v6263_v6 }
 0x759   : > { %5866 = vst.msk [vmem:[#allocation4 + $0x60] sm:$0xff] %vm4606_vm5, %v5845_v17  ;;  %v5775_v61 = vadd.f32 %v5754_v14, %v5733_v38  ;;  %v5915_v34 = vmax.f32 %v5912_v48, %v5914_v56  ;;  %v6101_v17 = vld [vmem:[%s10035_s7 + $0xe8] sm:$0xff]  ;;  %v6341_v6 = vld [vmem:[%s10035_s7 + $0x218] sm:$0xff] }
 0x75a   : > { %v6262_v38 = vld [vmem:[%s10035_s7 + $0x1e8] sm:$0xff]  ;;  %6169 = vmatpush.msrb.mxu0 %v6101_v17 }
 0x75b   : > { %v5800_v0 = vmul.f32 %v9400_v21, %v5775_v61  ;;  %v5400_v61 = vpop.f32.mrf.mxu1  ;;  %6284 = vmatpush.msra.mxu2 %v6262_v38  ;;  %v6251_v56 = vld [vmem:[%s10035_s7 + $0x1a8] sm:$0xff]  ;;  %v6246_v38 = vld [vmem:[%s10035_s7 + $0x180] sm:$0xff] }
 0x75c   : > { %v5961_v42 = vld [vmem:[#allocation5 + $0x9] sm:$0xff]  ;;  %6170 = vmatpush.msrb.mxu0 %v6100_v58  ;;  %v5544_v2 = vadd.f32 %v5543_v35, %v5400_v61  ;;  %v6340_v35 = vld [vmem:[%s10035_s7 + $0x210] sm:$0xff] }
 0x75d   : > { %v9582_v13 = vld [vmem:[#allocation5 + $0x8] sm:$0xff]  ;;  %v5825_v30 = vadd.f32 %v9405_v49, %v5800_v0  ;;  %7170 = vmatmul.msk.f32.gmra.mxu0 %vm4606_vm5, %v5961_v42  ;;  %v6099_v42 = vld [vmem:[%s10035_s7 + $0xd8] sm:$0xff] }
 0x75e   : > { %v6042_v22 = vld [vmem:[#allocation5 + $0xa] sm:$0xff]  ;;  %7173 = vmatmul.msk.f32.gmra.mxu1 %vm4606_vm5, %v9582_v13  ;;  %v5699_v15 = vpop.f32.mrf.mxu3  ;;  %6171 = vmatpush.msrb.mxu0 %v6099_v42 }
 0x75f   : > { %v6104_v23 = vld [vmem:[#allocation5 + $0x7] sm:$0xff]  ;;  %7176 = vmatmul.msk.f32.gmra.mxu2 %vm4606_vm5, %v6042_v22  ;;  %v5846_v62 = vmax.f32 %v5825_v30, 0.0  ;;  %v5734_v63 = vadd.f32 %v5699_v15, %v5532_v4  ;;  %v6098_v30 = vld [vmem:[%s10035_s7 + $0xd0] sm:$0xff]  ;;  %v5546_v43 = vpop.f32.mrf.mxu2 }
 0x760   : > { %7178 = vmatmul.msk.f32.vlgmr.msra.gmra.mxu3 %vm4606_vm5, %v6104_v23  ;;  %v6261_v0 = vld [vmem:[%s10035_s7 + $0x1e0] sm:$0xff]  ;;  %v6260_v22 = vld [vmem:[%s10035_s7 + $0x1d8] sm:$0xff]  ;;  %v6259_v23 = vld [vmem:[%s10035_s7 + $0x1d0] sm:$0xff]  ;;  %6172 = vmatpush.msrb.mxu0 %v6098_v30 }
 0x761   : > { %5867 = vst.msk [vmem:[#allocation4 + $0x68] sm:$0xff] %vm4606_vm5, %v5846_v62  ;;  %v5776_v41 = vadd.f32 %v5755_v19, %v5734_v63  ;;  %6285 = vmatpush.msra.mxu2 %v6261_v0  ;;  %v6097_v62 = vld [vmem:[%s10035_s7 + $0xc8] sm:$0xff] }
 0x762   : > { %v6258_v63 = vld [vmem:[%s10035_s7 + $0x1c8] sm:$0xff]  ;;  %6173 = vmatpush.msrb.mxu0 %v6097_v62 }
 0x763   : > { %v5801_v50 = vmul.f32 %v9400_v21, %v5776_v41  ;;  %6286 = vmatpush.msra.mxu2 %v6260_v22  ;;  %v5759_v41 = vld [vmem:[#allocation4 + $0x90] sm:$0xff]  ;;  %v5403_v48 = vpop.f32.mrf.mxu1 }
 0x765   : > { %v5826_v1 = vadd.f32 %v9405_v49, %v5801_v50  ;;  %6287 = vmatpush.msra.mxu2 %v6259_v23  ;;  %v6257_v50 = vld [vmem:[%s10035_s7 + $0x1c0] sm:$0xff] }
 0x766   : > { %v5702_v55 = vpop.f32.mrf.mxu3 }
 0x767   : > { %v5847_v37 = vmax.f32 %v5826_v1, 0.0  ;;  %v5735_v12 = vadd.f32 %v5702_v55, %v5535_v46  ;;  %6288 = vmatpush.msra.mxu2 %v6258_v63  ;;  %v6252_v1 = vld [vmem:[%s10035_s7 + $0x1b0] sm:$0xff]  ;;  %v5549_v53 = vpop.f32.mrf.mxu2 }
 0x768   : > { %v5917_v9 = vld [vmem:[#allocation4 + $0x62] ss:$2 sm:$0x3f]  ;;  %v5919_v3 = vld [vmem:[#allocation4 + $0x63] ss:$2 sm:$0x3f]  ;;  %6318 = vmatpush.msrb.mxu3 %v6252_v1 }
 0x769   : > { %5868 = vst.msk [vmem:[#allocation4 + $0x70] sm:$0xff] %vm4606_vm5, %v5847_v37  ;;  %v5777_v51 = vadd.f32 %v5756_v39, %v5735_v12  ;;  %v5920_v7 = vmax.f32 %v5917_v9, %v5919_v3  ;;  %6289 = vmatpush.msra.mxu2 %v6257_v50  ;;  %v5547_v12 = vadd.f32 %v5546_v43, %v5403_v48  ;;  %v6345_v9 = vld [vmem:[%s10035_s7 + $0x238] sm:$0xff]  ;;  %v6250_v3 = vld [vmem:[%s10035_s7 + $0x1a0] sm:$0xff] }
 0x76a   : > { %6319 = vmatpush.msrb.mxu3 %v6251_v56 }
 0x76b   : > { %v5802_v32 = vmul.f32 %v9400_v21, %v5777_v51  ;;  %v5921_v5 = vmax.f32 %v5915_v34, %v5920_v7  ;;  %v6344_v51 = vld [vmem:[%s10035_s7 + $0x230] sm:$0xff] }
 0x76c   : > { %6320 = vmatpush.msrb.mxu3 %v6250_v3 }
 0x76d   : > { %v5827_v33 = vadd.f32 %v9405_v49, %v5802_v32  ;;  %5922 = vst.msk [vmem:[#allocation5 + $0x12] sm:$0x3f] %vm5885_vm6, %v5921_v5  ;;  %v6249_v32 = vld [vmem:[%s10035_s7 + $0x198] sm:$0xff] }
 0x76e   : > { %v5705_v59 = vpop.f32.mrf.mxu3  ;;  %6321 = vmatpush.msrb.mxu3 %v6249_v32  ;;  %v6489_v32 = vld [vmem:[%s10038_s10 + $0xf8] sm:$0xff] }
 0x76f   : > { %v5848_v18 = vmax.f32 %v5827_v33, 0.0  ;;  %v5736_v40 = vadd.f32 %v5705_v59, %v5538_v16  ;;  %v5760_v16 = vld [vmem:[#allocation4 + $0x98] sm:$0xff]  ;;  %6490 = vmatpush.msrb.mxu2 %v6489_v32  ;;  %v6477_v32 = vld [vmem:[%s10038_s10 + $0x98] sm:$0xff] }
 0x770   : > { %v6343_v33 = vld [vmem:[%s10035_s7 + $0x228] sm:$0xff]  ;;  %6322 = vmatpush.msrb.mxu3 %v6248_v11 }
 0x771   : > { %5869 = vst.msk [vmem:[#allocation4 + $0x78] sm:$0xff] %vm4606_vm5, %v5848_v18  ;;  %v5778_v8 = vadd.f32 %v5757_v57, %v5736_v40 }
 0x772   : > { %6323 = vmatpush.msrb.mxu3 %v6247_v29  ;;  %v6445_v29 = vld [vmem:[%s10038_s10 + $0x48] sm:$0xff] }
 0x773   : > { %v5803_v52 = vmul.f32 %v9400_v21, %v5778_v8 }
 0x774   : > { %v9614_v20 = vld [vmem:[#allocation5 + $0x10] sm:$0xff]  ;;  %6324 = vmatpush.msrb.mxu3 %v6246_v38 }
 0x775   : > { %v6105_v44 = vld [vmem:[#allocation5 + $0xf] sm:$0xff]  ;;  %v5828_v27 = vadd.f32 %v9405_v49, %v5803_v52  ;;  %7174 = vmatmul.msk.f32.gmra.mxu1 %vm4606_vm5, %v9614_v20 }
 0x776   : > { %7179 = vmatmul.msk.f32.gmra.mxu3 %vm4606_vm5, %v6105_v44  ;;  %v5708_v54 = vpop.f32.mrf.mxu3  ;;  %v5406_v44 = vpop.f32.mrf.mxu1  ;;  %v6254_v30 = vld [vmem:[#allocation5 + $0xd] sm:$0xff] }
 0x777   : > { %v5849_v25 = vmax.f32 %v5828_v27, 0.0  ;;  %v5737_v14 = vadd.f32 %v5708_v54, %v5541_v45  ;;  %v5550_v28 = vadd.f32 %v5549_v53, %v5406_v44  ;;  %v6094_v63 = vld [vmem:[#allocation5 + $0xe] sm:$0xff]  ;;  %v6485_v53 = vld [vmem:[%s10038_s10 + $0xd8] sm:$0xff] }
 0x778   : > { %v5924_v37 = vld [vmem:[#allocation4 + $0x70] ss:$2 sm:$0x3f]  ;;  %v5926_v34 = vld [vmem:[#allocation4 + $0x71] ss:$2 sm:$0x3f] }
 0x779   : > { %5870 = vst.msk [vmem:[#allocation4 + $0x80] sm:$0xff] %vm4606_vm5, %v5849_v25  ;;  %v5779_v26 = vadd.f32 %v5758_v60, %v5737_v14  ;;  %v5927_v57 = vmax.f32 %v5924_v37, %v5926_v34  ;;  %v5761_v25 = vld [vmem:[#allocation4 + $0xa0] sm:$0xff]  ;;  %v6339_v14 = vld [vmem:[%s10035_s7 + $0x208] sm:$0xff] }
 0x77a   : > { %v6243_v50 = vld [vmem:[#allocation5 + $0xc] sm:$0xff] }
 0x77b   : > { %v5804_v4 = vmul.f32 %v9400_v21, %v5779_v26  ;;  %v6338_v26 = vld [vmem:[%s10035_s7 + $0x200] sm:$0xff]  ;;  %v6563_v38 = vld [vmem:[%s10038_s10 + $0x1e8] sm:$0xff] }
 0x77d   : > { %v5829_v15 = vadd.f32 %v9405_v49, %v5804_v4  ;;  %7184 = vmatmul.msk.f32.vlgmr.msra.gmra.mxu1 %vm4606_vm5, %v9582_v13  ;;  %v6096_v13 = vld [vmem:[%s10035_s7 + $0xc0] sm:$0xff] }
 0x77e   : > { %v5711_v24 = vpop.f32.mrf.mxu3  ;;  %6174 = vmatpush.msrb.mxu0 %v6096_v13  ;;  %v6093_v4 = vld [vmem:[#allocation5 + $0x6] sm:$0xff] }
 0x77f   : > { %v5850_v19 = vmax.f32 %v5829_v15, 0.0  ;;  %v5738_v31 = vadd.f32 %v5711_v24, %v5544_v2 }
 0x780   : > { %6363 = vmatpush.msra.mxu0 %v6345_v9 }
 0x781   : > { %5871 = vst.msk [vmem:[#allocation4 + $0x88] sm:$0xff] %vm4606_vm5, %v5850_v19  ;;  %v5780_v46 = vadd.f32 %v5759_v41, %v5738_v31 }
 0x782   : > { %6364 = vmatpush.msra.mxu0 %v6344_v51 }
 0x783   : > { %v5805_v55 = vmul.f32 %v9400_v21, %v5780_v46 }
 0x784   : > { %6365 = vmatpush.msra.mxu0 %v6343_v33 }
 0x785   : > { %v5830_v39 = vadd.f32 %v9405_v49, %v5805_v55  ;;  %7185 = vmatmul.msk.f32.gmra.mxu1 %vm4606_vm5, %v9614_v20 }
 0x786   : > { %v5714_v7 = vpop.f32.mrf.mxu3  ;;  %6366 = vmatpush.msra.mxu0 %v6342_v36  ;;  %v6447_v36 = vld [vmem:[%s10038_s10 + $0x58] sm:$0xff] }
 0x787   : > { %v5851_v5 = vmax.f32 %v5830_v39, 0.0  ;;  %v5739_v10 = vadd.f32 %v5714_v7, %v5547_v12  ;;  %v6451_v7 = vld [vmem:[%s10038_s10 + $0x78] sm:$0xff] }
 0x788   : > { %v5929_v59 = vld [vmem:[#allocation4 + $0x7e] ss:$2 sm:$0x3f]  ;;  %v5931_v18 = vld [vmem:[#allocation4 + $0x7f] ss:$2 sm:$0x3f]  ;;  %6367 = vmatpush.msra.mxu0 %v6341_v6  ;;  %6452 = vmatpush.msrb.mxu1 %v6451_v7 }
 0x789   : > { %5872 = vst.msk [vmem:[#allocation4 + $0x90] sm:$0xff] %vm4606_vm5, %v5851_v5  ;;  %v5781_v40 = vadd.f32 %v5760_v16, %v5739_v10  ;;  %v5932_v8 = vmax.f32 %v5929_v59, %v5931_v18  ;;  %v6450_v10 = vld [vmem:[%s10038_s10 + $0x70] sm:$0xff]  ;;  %v6449_v59 = vld [vmem:[%s10038_s10 + $0x68] sm:$0xff]  ;;  %v6439_v7 = vld [vmem:[%s10038_s10 + $0x18] sm:$0xff] }
 0x78a   : > { %6368 = vmatpush.msra.mxu0 %v6340_v35  ;;  %v6488_v16 = vld [vmem:[%s10038_s10 + $0xf0] sm:$0xff]  ;;  %6453 = vmatpush.msrb.mxu1 %v6450_v10  ;;  %v6487_v18 = vld [vmem:[%s10038_s10 + $0xe8] sm:$0xff] }
 0x78b   : > { %v5806_v52 = vmul.f32 %v9400_v21, %v5781_v40  ;;  %v5933_v20 = vmax.f32 %v5927_v57, %v5932_v8  ;;  %6491 = vmatpush.msrb.mxu2 %v6488_v16  ;;  %v6448_v57 = vld [vmem:[%s10038_s10 + $0x60] sm:$0xff]  ;;  %v6564_v6 = vld [vmem:[%s10038_s10 + $0x1f0] sm:$0xff]  ;;  %v6483_v35 = vld [vmem:[%s10038_s10 + $0xc8] sm:$0xff] }
 0x78c   : > { %6369 = vmatpush.msra.mxu0 %v6339_v14  ;;  %6454 = vmatpush.msrb.mxu1 %v6449_v59  ;;  %v6486_v8 = vld [vmem:[%s10038_s10 + $0xe0] sm:$0xff]  ;;  %v6519_v16 = vld [vmem:[%s10038_s10 + $0x138] sm:$0xff] }
 0x78d   : > { %v5831_v45 = vadd.f32 %v9405_v49, %v5806_v52  ;;  %5934 = vst.msk [vmem:[#allocation5 + $0x18] sm:$0x3f] %vm5885_vm6, %v5933_v20  ;;  %6492 = vmatpush.msrb.mxu2 %v6487_v18  ;;  %v6527_v52 = vld [vmem:[%s10038_s10 + $0x178] sm:$0xff]  ;;  %v6438_v18 = vld [vmem:[%s10038_s10 + $0x10] sm:$0xff] }
 0x78e   : > { %v5717_v27 = vpop.f32.mrf.mxu3  ;;  %6370 = vmatpush.msra.mxu0 %v6338_v26  ;;  %6455 = vmatpush.msrb.mxu1 %v6448_v57  ;;  %v6565_v20 = vld [vmem:[%s10038_s10 + $0x1f8] sm:$0xff]  ;;  %v6524_v26 = vld [vmem:[%s10038_s10 + $0x160] sm:$0xff] }
 0x78f   : > { %v5852_v54 = vmax.f32 %v5831_v45, 0.0  ;;  %v5740_v17 = vadd.f32 %v5717_v27, %v5550_v28  ;;  %6493 = vmatpush.msrb.mxu2 %v6486_v8  ;;  %6528 = vmatpush.msra.mxu3 %v6527_v52  ;;  %v6446_v28 = vld [vmem:[%s10038_s10 + $0x50] sm:$0xff]  ;;  %v6557_v59 = vld [vmem:[%s10038_s10 + $0x1b8] sm:$0xff] }
 0x790   : > { %v5938_v23 = vld [vmem:[#allocation4 + $0x8d] ss:$2 sm:$0x3f]  ;;  %6456 = vmatpush.msrb.mxu1 %v6447_v36  ;;  %v6484_v45 = vld [vmem:[%s10038_s10 + $0xd0] sm:$0xff] }
 0x791   : > { %5873 = vst.msk [vmem:[#allocation4 + $0x98] sm:$0xff] %vm4606_vm5, %v5852_v54  ;;  %v5782_v61 = vadd.f32 %v5761_v25, %v5740_v17  ;;  %6494 = vmatpush.msrb.mxu2 %v6485_v53  ;;  %v6526_v27 = vld [vmem:[%s10038_s10 + $0x170] sm:$0xff]  ;;  %v6525_v54 = vld [vmem:[%s10038_s10 + $0x168] sm:$0xff] }
 0x792   : > { %6457 = vmatpush.msrb.mxu1 %v6446_v28  ;;  %6529 = vmatpush.msra.mxu3 %v6526_v27  ;;  %v6476_v53 = vld [vmem:[%s10038_s10 + $0x90] sm:$0xff] }
 0x793   : > { %v5807_v60 = vmul.f32 %v9400_v21, %v5782_v61  ;;  %v5936_v21 = vld [vmem:[#allocation4 + $0x8c] ss:$2 sm:$0x3f]  ;;  %6495 = vmatpush.msrb.mxu2 %v6484_v45  ;;  %v6518_v52 = vld [vmem:[%s10038_s10 + $0x130] sm:$0xff] }
 0x794   : > { %v5962_v58 = vld [vmem:[#allocation5 + $0x11] sm:$0xff]  ;;  %v5939_v24 = vmax.f32 %v5936_v21, %v5938_v23  ;;  %6458 = vmatpush.msrb.mxu1 %v6445_v29  ;;  %6530 = vmatpush.msra.mxu3 %v6525_v54  ;;  %v6444_v61 = vld [vmem:[%s10038_s10 + $0x40] sm:$0xff]  ;;  %v6561_v23 = vld [vmem:[%s10038_s10 + $0x1d8] sm:$0xff] }
 0x795   : > { %v6043_v0 = vld [vmem:[#allocation5 + $0x12] sm:$0xff]  ;;  %v5832_v42 = vadd.f32 %v9405_v49, %v5807_v60  ;;  %7171 = vmatmul.msk.f32.gmra.mxu0 %vm4606_vm5, %v5962_v58  ;;  %6496 = vmatpush.msrb.mxu2 %v6483_v35  ;;  %v6482_v60 = vld [vmem:[%s10038_s10 + $0xc0] sm:$0xff] }
 0x796   : > { %7177 = vmatmul.msk.f32.gmra.mxu2 %vm4606_vm5, %v6043_v0  ;;  %v6255_v19 = vld [vmem:[#allocation5 + $0x15] sm:$0xff]  ;;  %6459 = vmatpush.msrb.mxu1 %v6444_v61  ;;  %v6562_v58 = vld [vmem:[%s10038_s10 + $0x1e0] sm:$0xff] }
 0x797   : > { %v5853_v22 = vmax.f32 %v5832_v42, 0.0  ;;  %v6095_v31 = vld [vmem:[#allocation5 + $0x16] sm:$0xff]  ;;  %6497 = vmatpush.msrb.mxu2 %v6482_v60  ;;  %6531 = vmatpush.msra.mxu3 %v6524_v26  ;;  %v6443_v42 = vld [vmem:[%s10038_s10 + $0x38] sm:$0xff]  ;;  %v6516_v60 = vld [vmem:[%s10038_s10 + $0x120] sm:$0xff] }
 0x798   : > { %v6244_v47 = vld [vmem:[#allocation5 + $0x14] sm:$0xff]  ;;  %6460 = vmatpush.msrb.mxu1 %v6443_v42  ;;  %v6554_v26 = vld [vmem:[%s10038_s10 + $0x1a0] sm:$0xff] }
 0x799   : > { %5874 = vst.msk [vmem:[#allocation4 + $0xa0] sm:$0xff] %vm4606_vm5, %v5853_v22  ;;  %v6481_v22 = vld [vmem:[%s10038_s10 + $0xb8] sm:$0xff]  ;;  %v6517_v35 = vld [vmem:[%s10038_s10 + $0x128] sm:$0xff] }
 0x79a   : > { %6498 = vmatpush.msrb.mxu2 %v6481_v22  ;;  %v6555_v54 = vld [vmem:[%s10038_s10 + $0x1a8] sm:$0xff] }
 0x79d   : > { %7181 = vmatmul.msk.f32.vlgmr.msrb.gmra.mxu0 %vm4606_vm5, %v6093_v4  ;;  %v6523_v4 = vld [vmem:[%s10038_s10 + $0x158] sm:$0xff] }
 0x79e   : > { %7187 = vmatmul.msk.f32.vlgmr.msra.gmra.mxu2 %vm4606_vm5, %v6254_v30  ;;  %6566 = vmatpush.msrb.mxu0 %v6565_v20  ;;  %v6556_v20 = vld [vmem:[%s10038_s10 + $0x1b0] sm:$0xff] }
 0x79f   : > { %6532 = vmatpush.msra.mxu3 %v6523_v4 }
 0x7a0   : > { %v5941_v2 = vld [vmem:[#allocation4 + $0x9a] ss:$2 sm:$0x3f]  ;;  %v5943_v15 = vld [vmem:[#allocation4 + $0x9b] ss:$2 sm:$0x3f]  ;;  %6567 = vmatpush.msrb.mxu0 %v6564_v6 }
 0x7a1   : > { %v5944_v49 = vmax.f32 %v5941_v2, %v5943_v15  ;;  %v6442_v15 = vld [vmem:[%s10038_s10 + $0x30] sm:$0xff] }
 0x7a2   : > { %6568 = vmatpush.msrb.mxu0 %v6563_v38  ;;  %6461 = vmatpush.msrb.mxu1 %v6442_v15 }
 0x7a3   : > { %v5945_v62 = vmax.f32 %v5939_v24, %v5944_v49  ;;  %v6480_v24 = vld [vmem:[%s10038_s10 + $0xb0] sm:$0xff] }
 0x7a4   : > { %6569 = vmatpush.msrb.mxu0 %v6562_v58  ;;  %v6522_v49 = vld [vmem:[%s10038_s10 + $0x150] sm:$0xff]  ;;  %6499 = vmatpush.msrb.mxu2 %v6480_v24 }
 0x7a5   : > { %7182 = vmatmul.msk.f32.gmra.mxu0 %vm4606_vm5, %v6094_v63  ;;  %5946 = vst.msk [vmem:[#allocation5 + $0x1e] sm:$0x3f] %vm5885_vm6, %v5945_v62  ;;  %6533 = vmatpush.msra.mxu3 %v6522_v49  ;;  %v6551_v49 = vld [vmem:[%s10038_s10 + $0x188] sm:$0xff] }
 0x7a6   : > { %7188 = vmatmul.msk.f32.gmra.mxu2 %vm4606_vm5, %v6255_v19  ;;  %6570 = vmatpush.msrb.mxu0 %v6561_v23  ;;  %v6560_v19 = vld [vmem:[%s10038_s10 + $0x1d0] sm:$0xff] }
 0x7a8   : > { %6571 = vmatpush.msrb.mxu0 %v6560_v19 }
 0x7ac   : > { %v6106_v41 = vld [vmem:[#allocation5 + $0x17] sm:$0xff] }
 0x7ad   : > { %v6187_v43 = vld [vmem:[#allocation5 + $0x18] sm:$0xff]  ;;  %7180 = vmatmul.msk.f32.gmra.mxu3 %vm4606_vm5, %v6106_v41  ;;  %7183 = vmatmul.msk.f32.gmra.mxu0 %vm4606_vm5, %v6095_v31  ;;  %v6479_v41 = vld [vmem:[%s10038_s10 + $0xa8] sm:$0xff] }
 0x7ae   : > { %v6256_v13 = vld [vmem:[#allocation5 + $0x1d] sm:$0xff]  ;;  %7186 = vmatmul.msk.f32.gmra.mxu1 %vm4606_vm5, %v6187_v43  ;;  %v6521_v43 = vld [vmem:[%s10038_s10 + $0x148] sm:$0xff]  ;;  %6500 = vmatpush.msrb.mxu2 %v6479_v41  ;;  %v6550_v41 = vld [vmem:[%s10038_s10 + $0x180] sm:$0xff] }
 0x7af   : > { %7189 = vmatmul.msk.f32.gmra.mxu2 %vm4606_vm5, %v6256_v13  ;;  %v6245_v46 = vld [vmem:[#allocation5 + $0x1c] sm:$0xff]  ;;  %6534 = vmatpush.msra.mxu3 %v6521_v43 }
 0x7b0   : > { %v6337_v1 = vld [vmem:[#allocation5 + $0x1e] sm:$0xff] }
 0x7b5   : > { %7190 = vmatmul.msk.f32.vlgmr.msrb.gmra.mxu3 %vm4606_vm5, %v6243_v50  ;;  %7193 = vmatmul.msk.f32.vlgmr.msra.gmra.mxu0 %vm4606_vm5, %v6094_v63 }
 0x7ba   : > { %v9746_v48 = vpop.f32.mrf.mxu0 }
 0x7bb   : > { %v9752_v37 = vpop.f32.mrf.mxu1 }
 0x7bc   : > { %v6033_v30 = vadd.f32 %v9752_v37, %v9746_v48  ;;  %v6559_v48 = vld [vmem:[%s10038_s10 + $0x1c8] sm:$0xff]  ;;  %v6440_v37 = vld [vmem:[%s10038_s10 + $0x20] sm:$0xff] }
 0x7bd   : > { %7191 = vmatmul.msk.f32.gmra.mxu3 %vm4606_vm5, %v6244_v47  ;;  %7194 = vmatmul.msk.f32.gmra.mxu0 %vm4606_vm5, %v6095_v31  ;;  %v6441_v31 = vld [vmem:[%s10038_s10 + $0x28] sm:$0xff] }
 0x7be   : > { %6462 = vmatpush.msrb.mxu1 %v6441_v31  ;;  %6572 = vmatpush.msrb.mxu0 %v6559_v48 }
 0x7c0   : > { %6463 = vmatpush.msrb.mxu1 %v6440_v37 }
 0x7c2   : > { %v9754_v12 = vpop.f32.mrf.mxu2  ;;  %6464 = vmatpush.msrb.mxu1 %v6439_v7 }
 0x7c3   : > { %v6087_v62 = vadd.f32 %v9754_v12, %v6033_v30  ;;  %v6478_v12 = vld [vmem:[%s10038_s10 + $0xa0] sm:$0xff]  ;;  %v6514_v30 = vld [vmem:[%s10038_s10 + $0x110] sm:$0xff] }
 0x7c4   : > { %6501 = vmatpush.msrb.mxu2 %v6478_v12  ;;  %6465 = vmatpush.msrb.mxu1 %v6438_v18 }
 0x7c5   : > { %7192 = vmatmul.msk.f32.gmra.mxu3 %vm4606_vm5, %v6245_v46  ;;  %7195 = vmatmul.msk.f32.gmra.mxu0 %vm4606_vm5, %v6337_v1  ;;  %v9885_v46 = vld [vmem:[%s10036_s8] ss:$0 sm:$0xff] }
 0x7c6   : > { %v9890_v1 = vld [vmem:[%s10037_s9] ss:$0 sm:$0xff]  ;;  %6502 = vmatpush.msrb.mxu2 %v6477_v32 }
 0x7c8   : > { %6503 = vmatpush.msrb.mxu2 %v6476_v53  ;;  %v6434_v53 = vld [vmem:[%s10039_s11] sm:$0x1] }
 0x7da   : > { %v9748_v56 = vpop.f32.mrf.mxu0 }
 0x7db   : > { %v9756_v3 = vpop.f32.mrf.mxu1 }
 0x7dc   : > { %v6036_v57 = vadd.f32 %v9756_v3, %v9748_v56  ;;  %v6437_v56 = vld [vmem:[%s10038_s10 + $0x8] sm:$0xff] }
 0x7dd   : > { %v6475_v3 = vld [vmem:[%s10038_s10 + $0x88] sm:$0xff]  ;;  %6466 = vmatpush.msrb.mxu1 %v6437_v56 }
 0x7de   : > { %6504 = vmatpush.msrb.mxu2 %v6475_v3 }
 0x7e2   : > { %v9758_v51 = vpop.f32.mrf.mxu2 }
 0x7e3   : > { %v6141_v9 = vpop.f32.mrf.mxu3  ;;  %v6088_v27 = vadd.f32 %v9758_v51, %v6036_v57  ;;  %v6474_v51 = vld [vmem:[%s10038_s10 + $0x80] sm:$0xff] }
 0x7e4   : > { %6505 = vmatpush.msrb.mxu2 %v6474_v51 }
 0x7f2   : > { %v9776_v33 = vpop.f32.mrf.mxu1 }
 0x7f9   : > { %v9768_v5 = vpop.f32.mrf.mxu3 }
 0x7fa   : > { %v6222_v25 = vpop.f32.mrf.mxu1 }
 0x812   : > { %v9750_v55 = vpop.f32.mrf.mxu0 }
 0x813   : > { %v6039_v42 = vadd.f32 %v9776_v33, %v9750_v55  ;;  %v6513_v33 = vld [vmem:[%s10038_s10 + $0x108] sm:$0xff] }
 0x819   : > { %v9778_v11 = vpop.f32.mrf.mxu2 }
 0x81a   : > { %v6176_v39 = vpop.f32.mrf.mxu0  ;;  %v6089_v15 = vadd.f32 %v9778_v11, %v6039_v42  ;;  %v6512_v11 = vld [vmem:[%s10038_s10 + $0x100] sm:$0xff] }
 0x81b   : > { %v6177_v17 = vadd.f32 %v6176_v39, %v6141_v9  ;;  %v6520_v39 = vld [vmem:[%s10038_s10 + $0x140] sm:$0xff] }
 0x81c   : > { %6535 = vmatpush.msra.mxu3 %v6520_v39 }
 0x81d   : > { %v6231_v21 = vadd.f32 %v6222_v25, %v6177_v17  ;;  %v6436_v17 = vld [vmem:[%s10038_s10] sm:$0xff] }
 0x81e   : > { %6536 = vmatpush.msra.mxu3 %v6519_v16  ;;  %6467 = vmatpush.msrb.mxu1 %v6436_v17 }
 0x81f   : > { %v6237_v13 = vadd.f32 %v6231_v21, %v6087_v62  ;;  %v6552_v21 = vld [vmem:[%s10038_s10 + $0x190] sm:$0xff] }
 0x820   : > { %6537 = vmatpush.msra.mxu3 %v6518_v52 }
 0x821   : > { %v6291_v14 = vpop.f32.mrf.mxu2 }
 0x822   : > { %v9760_v34 = vpop.f32.mrf.mxu0  ;;  %6538 = vmatpush.msra.mxu3 %v6517_v35 }
 0x823   : > { %v6180_v50 = vadd.f32 %v9760_v34, %v9768_v5  ;;  %v6558_v34 = vld [vmem:[%s10038_s10 + $0x1c0] sm:$0xff]  ;;  %v6225_v5 = vpop.f32.mrf.mxu1 }
 0x824   : > { %6573 = vmatpush.msrb.mxu0 %v6558_v34  ;;  %6539 = vmatpush.msra.mxu3 %v6516_v60 }
 0x825   : > { %v6232_v8 = vadd.f32 %v6225_v5, %v6180_v50 }
 0x826   : > { %6574 = vmatpush.msrb.mxu0 %v6557_v59 }
 0x827   : > { %v6238_v38 = vadd.f32 %v6232_v8, %v6088_v27 }
 0x828   : > { %6575 = vmatpush.msrb.mxu0 %v6556_v20 }
 0x829   : > { %v6294_v10 = vpop.f32.mrf.mxu2 }
 0x82a   : > { %v9786_v40 = vpop.f32.mrf.mxu0  ;;  %6576 = vmatpush.msrb.mxu0 %v6555_v54 }
 0x82c   : > { %6577 = vmatpush.msrb.mxu0 %v6554_v26 }
 0x830   : > { %v9806_v44 = vpop.f32.mrf.mxu3 }
 0x831   : > { %v6183_v25 = vadd.f32 %v9786_v40, %v9806_v44  ;;  %v6515_v40 = vld [vmem:[%s10038_s10 + $0x118] sm:$0xff] }
 0x832   : > { %v6372_v0 = vpop.f32.mrf.mxu0  ;;  %v6553_v44 = vld [vmem:[%s10038_s10 + $0x198] sm:$0xff]  ;;  %v6297_v23 = vpop.f32.mrf.mxu2  ;;  %6540 = vmatpush.msra.mxu3 %v6515_v40 }
 0x833   : > { %6578 = vmatpush.msrb.mxu0 %v6553_v44 }
 0x834   : > { %6541 = vmatpush.msra.mxu3 %v6514_v30 }
 0x835   : > { %6579 = vmatpush.msrb.mxu0 %v6552_v21 }
 0x836   : > { %6542 = vmatpush.msra.mxu3 %v6513_v33 }
 0x837   : > { %6580 = vmatpush.msrb.mxu0 %v6551_v49 }
 0x838   : > { %v6326_v2 = vpop.f32.mrf.mxu3  ;;  %6543 = vmatpush.msra.mxu3 %v6512_v11 }
 0x839   : > { %v6327_v63 = vadd.f32 %v6326_v2, %v6291_v14  ;;  %6581 = vmatpush.msrb.mxu0 %v6550_v41 }
 0x83a   : > { %v6375_v28 = vpop.f32.mrf.mxu0 }
 0x83b   : > { %v6381_v47 = vadd.f32 %v6372_v0, %v6327_v63  ;;  %v6228_v0 = vpop.f32.mrf.mxu1 }
 0x83c   : > { %v6233_v22 = vadd.f32 %v6228_v0, %v6183_v25 }
 0x83d   : > { %v6387_v9 = vadd.f32 %v6381_v47, %v6237_v13 }
 0x83e   : > { %v6239_v63 = vadd.f32 %v6233_v22, %v6089_v15 }
 0x83f   : > { %v6394_v36 = vmul.f32 %v9885_v46, %v6387_v9 }
 0x840   : > { %v6329_v45 = vpop.f32.mrf.mxu3 }
 0x841   : > { %v6401_v6 = vadd.f32 %v9890_v1, %v6394_v36  ;;  %v6330_v29 = vadd.f32 %v6329_v45, %v6294_v10 }
 0x842   : > { %v6378_v62 = vpop.f32.mrf.mxu0 }
 0x843   : > { %v6404_v14 = vmax.f32 %v6401_v6, 0.0  ;;  %v6382_v61 = vadd.f32 %v6375_v28, %v6330_v29 }
 0x845   : > { %6407 = vst [vmem:[#allocation6] sm:$0xff] %v6404_v14  ;;  %v6388_v58 = vadd.f32 %v6382_v61, %v6238_v38 }
 0x847   : > { %v6395_v4 = vmul.f32 %v9885_v46, %v6388_v58 }
 0x848   : > { %v6332_v2 = vpop.f32.mrf.mxu3 }
 0x849   : > { %v6402_v24 = vadd.f32 %v9890_v1, %v6395_v4  ;;  %v6333_v55 = vadd.f32 %v6332_v2, %v6297_v23 }
 0x84b   : > { %v6405_v19 = vmax.f32 %v6402_v24, 0.0  ;;  %v6383_v31 = vadd.f32 %v6378_v62, %v6333_v55 }
 0x84c   : > { %v6410_v47 = vld [vmem:[#allocation6] ss:$2 sm:$0x3]  ;;  %v6412_v48 = vld [vmem:[#allocation6 + $0x1] ss:$2 sm:$0x3] }
 0x84d   : > { %6408 = vst [vmem:[#allocation6 + $0x8] sm:$0xff] %v6405_v19  ;;  %v6389_v43 = vadd.f32 %v6383_v31, %v6239_v63  ;;  %v6413_v9 = vmax.f32 %v6410_v47, %v6412_v48 }
 0x84f   : > { %v6396_v13 = vmul.f32 %v9885_v46, %v6389_v43 }
 0x851   : > { %v6403_v50 = vadd.f32 %v9890_v1, %v6396_v13 }
 0x853   : > { %v6406_v37 = vmax.f32 %v6403_v50, 0.0 }
 0x854   : > { %v6415_v12 = vld [vmem:[#allocation6 + $0x6] ss:$2 sm:$0x3]  ;;  %v6417_v39 = vld [vmem:[#allocation6 + $0x7] ss:$2 sm:$0x3] }
 0x855   : > { %v6418_v34 = vmax.f32 %v6415_v12, %v6417_v39  ;;  %6409 = vst [vmem:[#allocation6 + $0x10] sm:$0xff] %v6406_v37  ;;  %v6422_v32 = vld [vmem:[#allocation6 + $0xc] ss:$2 sm:$0x3] }
 0x856   : > { %v6424_v5 = vld [vmem:[#allocation6 + $0xd] ss:$2 sm:$0x3] }
 0x857   : > { %v6419_v7 = vmax.f32 %v6413_v9, %v6418_v34  ;;  %v6425_v59 = vmax.f32 %v6422_v32, %v6424_v5 }
 0x859   : > { %6420 = vst [vmem:[#allocation7] sm:$0x3] %v6419_v7 }
 0x85c   : > { %v6427_v10 = vld [vmem:[#allocation6 + $0x12] ss:$2 sm:$0x3]  ;;  %v6429_v16 = vld [vmem:[#allocation6 + $0x13] ss:$2 sm:$0x3] }
 0x85d   : > { %v6430_v18 = vmax.f32 %v6427_v10, %v6429_v16 }
 0x85f   : > { %v6431_v57 = vmax.f32 %v6425_v59, %v6430_v18 }
 0x860   : > { %v6435_v46 = vld [vmem:[#allocation7] sm:$0x1]  ;;  %v6473_v1 = vld [vmem:[#allocation7 + $0x1] sm:$0x1] }
 0x861   : > { %6468 = vmatmul.f32.vlgmr.msrb.gmra.mxu1 %v6435_v46  ;;  %6506 = vmatmul.f32.vlgmr.msrb.gmra.mxu2 %v6473_v1  ;;  %6432 = vst [vmem:[#allocation7 + $0x2] sm:$0x3] %v6431_v57 }
 0x868   : > { %v6511_v8 = vld [vmem:[#allocation7 + $0x2] sm:$0x1]  ;;  %v6549_v36 = vld [vmem:[#allocation7 + $0x3] sm:$0x1] }
 0x869   : > { %6544 = vmatmul.f32.vlgmr.msra.gmra.mxu3 %v6511_v8  ;;  %6582 = vmatmul.f32.vlgmr.msrb.gmra.mxu0 %v6549_v36 }
 0x8de   : > { %v6469_v52 = vpop.f32.mrf.mxu1 }
 0x8df   : > { %v6472_v28 = vadd.f32 %v6469_v52, %v6434_v53 }
 0x8e4   : > { %v6507_v20 = vpop.f32.mrf.mxu2 }
 0x8e5   : > { %v6510_v45 = vadd.f32 %v6507_v20, %v6472_v28 }
 0x8e6   : > { %v6583_v27 = vpop.f32.mrf.mxu0 }
 0x8ec   : > { %v6545_v56 = vpop.f32.mrf.mxu3 }
 0x8ed   : > { %v6548_v3 = vadd.f32 %v6545_v56, %v6510_v45 }
 0x8ef   : > { %v6586_v6 = vadd.f32 %v6583_v27, %v6548_v3 }
 0x8f1   : > { %6588 = vst.msk [vmem:[%s405_s20] sm:$0x1] %vm6587_vm8, %v6586_v6 }
 0x8f2   : > { %7284 = shalt.err (!%p7281_p3)
}
 0x8f3   : > { %7203 = dma.vmem_to_hbm [thread:$0]  (%p7425_p5), %s6601_s26, 16, %s6603_s29, %s6590_s15  }
 0x8f4 PF: > { %p7209_p4 = scmp.ge.s32.totalorder %s7319_s24, 2  ;;  %s6614_s18 = sand.u32 1, %s7307_s21  }
 0x8f5   : > { %s6615_s20 = scalar_lea.sflag [#allocation9], %s6614_s18 }
 0x8f6   : > { %p7206_p7 = pnand %p7209_p4, %p7429_p6 }
 0x8f8   : > { %p7207_p8 = pneg %p7206_p7 }
 0x8fa   : > { %7302 = dma.done.wait (%p7207_p8), %s6615_s20, 16  }
 0x8fb   : > { %7304 = vsyncadd (%p7207_p8), %s6615_s20, 4294967280  ;;  %p22_p9 = scmp.ge.s32.totalorder %s7412_s27, 4   ;;  %s10047_s21 = smov %s7311_s22 }
 0x8fc   : > { %s10048_s22 = smov %s7315_s23  ;;  %s10049_s23 = smov %s7423_s30 }
 0x8fd   : > { %s10050_s24 = smov %s7412_s27  ;;  %24 = sbr.rel (!%p22_p9) target bundleno = 6 (0x6), region = 244 }
 0x902   :  { %6620 = vsyncpa [#allocation9], 1 }
 0x903   :  { %6622 = vsyncpa [#allocation9 + $0x1], 1 }

</bundles_post_ra>
